<compile_context>
chip_gen: v6e
topology: v6e:2x2x1
jax: 0.10.0
libtpu: 0.0.40
codegen_flags: <defaults>
</compile_context>

<pallas_src>
import math
import functools

import jax
import jax.numpy as jnp
from jax.experimental import pallas as pl
from jax.experimental.pallas import tpu as pltpu

# Hyper-parameters matching TransformerModel(vocab_size=32, embed_dim=64,
# num_heads=4, num_layers=2), dim_feedforward=256.
VOCAB = 32
EMBED = 64
HEADS = 4
HEAD_DIM = EMBED // HEADS
FF = 256
LAYERS = 2
LN_EPS = 1e-5

_VMEM = functools.partial(pl.BlockSpec, memory_space=pltpu.MemorySpace.VMEM)


def _layernorm(x, g, b):
    mu = jnp.mean(x, axis=-1, keepdims=True)
    xc = x - mu
    var = jnp.mean(xc * xc, axis=-1, keepdims=True)
    return xc * jax.lax.rsqrt(var + LN_EPS) * g + b


def fused_transformer_kernel(B, S,
                             tok_ref, emb_ref, pe_ref,
                             wq_ref, bq_ref, wk_ref, bk_ref, wv_ref, bv_ref,
                             wo_ref, bo_ref, ln1g_ref, ln1b_ref,
                             w1_ref, b1_ref, w2_ref, b2_ref,
                             ln2g_ref, ln2b_ref,
                             fcw_ref, fcb_ref, out_ref):
    """Entire TransformerModel forward for one (B, S) batch, fully VMEM-resident."""
    SB = S * B

    # ---- embedding lookup: one-hot built in-kernel, 8 KiB table stays in VMEM ----
    tok = tok_ref[...]                                             # (SB, 1) int32
    iota = jax.lax.broadcasted_iota(jnp.int32, (SB, VOCAB), 1)
    onehot = (iota == tok).astype(jnp.float32)                     # (SB, VOCAB)
    x = jnp.dot(onehot, emb_ref[...], preferred_element_type=jnp.float32)

    # ---- positional encoding (pre-expanded to row order r = s*B + b) ----
    x = x + pe_ref[...]                                            # (SB, E)

    scale = 1.0 / math.sqrt(HEAD_DIM)
    for l in range(LAYERS):                  # static unroll over the 2 layers
        # ---- multi-head self-attention (post-norm encoder layer) ----
        attn = bo_ref[l]                     # out-proj bias, broadcast over rows
        for h in range(HEADS):               # static unroll; per-head weights are
            idx = l * HEADS + h              # leading-dim indexed (no lane slicing)
            qh = jnp.dot(x, wq_ref[idx], preferred_element_type=jnp.float32) + bq_ref[idx]
            kh = jnp.dot(x, wk_ref[idx], preferred_element_type=jnp.float32) + bk_ref[idx]
            vh = jnp.dot(x, wv_ref[idx], preferred_element_type=jnp.float32) + bv_ref[idx]
            q3 = (qh * scale).reshape(S, B, HEAD_DIM)              # minor dim preserved
            k3 = kh.reshape(S, B, HEAD_DIM)
            v3 = vh.reshape(S, B, HEAD_DIM)
            s = jnp.einsum('bqd,bkd->bqk', q3, k3,
                           preferred_element_type=jnp.float32)     # (S, B, B)
            s = s - jnp.max(s, axis=-1, keepdims=True)
            p = jnp.exp(s)
            p = p * pl.reciprocal(jnp.sum(p, axis=-1, keepdims=True), approx=True)
            ctx = jnp.einsum('bqk,bkd->bqd', p, v3,
                             preferred_element_type=jnp.float32)   # (S, B, D)
            # out_proj applied per-head slab and accumulated (== concat(heads) @ Wo^T)
            attn = attn + jnp.dot(ctx.reshape(SB, HEAD_DIM), wo_ref[idx],
                                  preferred_element_type=jnp.float32)

        # residual + LayerNorm 1 (dropout is identity in eval mode)
        h1 = _layernorm(x + attn, ln1g_ref[l], ln1b_ref[l])

        # feed-forward: Linear(E, FF) -> ReLU -> Linear(FF, E)
        ff = jnp.dot(h1, w1_ref[l], preferred_element_type=jnp.float32) + b1_ref[l]
        ff = jnp.maximum(ff, 0.0)
        ff = jnp.dot(ff, w2_ref[l], preferred_element_type=jnp.float32) + b2_ref[l]

        # residual + LayerNorm 2
        x = _layernorm(h1 + ff, ln2g_ref[l], ln2b_ref[l])

    # last "token" along the original S axis: rows [(S-1)*B : S*B]  -> (B, E)
    last = x[(S - 1) * B:, :]
    out_ref[...] = (jnp.dot(last, fcw_ref[...], preferred_element_type=jnp.float32)
                    + fcb_ref[...])


def positional_encoding(seq_len, d_model):
    position = jnp.arange(seq_len, dtype=jnp.float32)[:, None]
    div_term = jnp.exp(jnp.arange(0, d_model, 2, dtype=jnp.float32)
                       * (-math.log(10000.0) / d_model))
    ang = position * div_term
    # interleave: pe[:, 0::2] = sin, pe[:, 1::2] = cos
    return jnp.stack([jnp.sin(ang), jnp.cos(ang)], axis=-1).reshape(seq_len, d_model)


def init_params(key):
    keys = jax.random.split(key, 2 + LAYERS * 6)

    def w(k, shape, scale=0.05):
        return scale * jax.random.normal(k, shape, dtype=jnp.float32)

    params = {
        'embed': w(keys[0], (VOCAB, EMBED)),       # nn.Embedding weight (VOCAB, E)
        'fc_w': w(keys[1], (VOCAB, EMBED)).T,      # nn.Linear weight, pre-transposed (E, VOCAB)
        'fc_b': jnp.zeros((1, VOCAB), jnp.float32),
    }

    wq, bq, wk, bk, wv, bv, wo = [], [], [], [], [], [], []
    bo, ln1g, ln1b, w1, b1, w2, b2, ln2g, ln2b = [], [], [], [], [], [], [], [], []

    ki = 2
    for _ in range(LAYERS):
        in_proj_w = w(keys[ki], (3 * EMBED, EMBED)); ki += 1          # PyTorch (3E, E)
        in_proj_b = w(keys[ki], (3 * EMBED,), 0.01); ki += 1
        out_proj_w = w(keys[ki], (EMBED, EMBED)); ki += 1             # PyTorch (out, in)
        lin1_w = w(keys[ki], (FF, EMBED)); ki += 1
        lin1_b = w(keys[ki], (FF,), 0.01); ki += 1
        lin2_w = w(keys[ki], (EMBED, FF)); ki += 1

        def per_head_in(Wslice, bslice):
            # y = x @ W^T + b; head h uses output columns [h*D, (h+1)*D).
            Wt = Wslice.T                                              # (E_in, E_out)
            Wh = Wt.reshape(EMBED, HEADS, HEAD_DIM).transpose(1, 0, 2)  # (H, E, D)
            bh = bslice.reshape(HEADS, 1, HEAD_DIM)                     # (H, 1, D)
            return Wh, bh

        Wqh, bqh = per_head_in(in_proj_w[:EMBED], in_proj_b[:EMBED])
        Wkh, bkh = per_head_in(in_proj_w[EMBED:2 * EMBED], in_proj_b[EMBED:2 * EMBED])
        Wvh, bvh = per_head_in(in_proj_w[2 * EMBED:], in_proj_b[2 * EMBED:])
        Woh = out_proj_w.T.reshape(HEADS, HEAD_DIM, EMBED)             # (H, D, E)

        wq.append(Wqh); bq.append(bqh)
        wk.append(Wkh); bk.append(bkh)
        wv.append(Wvh); bv.append(bvh)
        wo.append(Woh)
        bo.append(jnp.zeros((1, EMBED), jnp.float32))
        ln1g.append(jnp.ones((1, EMBED), jnp.float32))
        ln1b.append(jnp.zeros((1, EMBED), jnp.float32))
        w1.append(lin1_w.T)                      # (E, FF)
        b1.append(lin1_b[None, :])               # (1, FF)
        w2.append(lin2_w.T)                      # (FF, E)
        b2.append(jnp.zeros((1, EMBED), jnp.float32))
        ln2g.append(jnp.ones((1, EMBED), jnp.float32))
        ln2b.append(jnp.zeros((1, EMBED), jnp.float32))

    # Stack per-head weights along a single leading axis (index = layer*HEADS + head)
    params['wq'] = jnp.concatenate(wq, 0)        # (L*H, E, D)
    params['bq'] = jnp.concatenate(bq, 0)        # (L*H, 1, D)
    params['wk'] = jnp.concatenate(wk, 0)
    params['bk'] = jnp.concatenate(bk, 0)
    params['wv'] = jnp.concatenate(wv, 0)
    params['bv'] = jnp.concatenate(bv, 0)
    params['wo'] = jnp.concatenate(wo, 0)        # (L*H, D, E)
    params['bo'] = jnp.stack(bo, 0)              # (L, 1, E)
    params['ln1g'] = jnp.stack(ln1g, 0)
    params['ln1b'] = jnp.stack(ln1b, 0)
    params['w1'] = jnp.stack(w1, 0)              # (L, E, FF)
    params['b1'] = jnp.stack(b1, 0)              # (L, 1, FF)
    params['w2'] = jnp.stack(w2, 0)              # (L, FF, E)
    params['b2'] = jnp.stack(b2, 0)
    params['ln2g'] = jnp.stack(ln2g, 0)
    params['ln2b'] = jnp.stack(ln2b, 0)
    return params


def transformer_forward(tokens, params):
    B, S = tokens.shape
    # Row ordering r = s*B + b replicates PyTorch's batch_first=False semantics
    # (attention over the original B axis, per s). Cheap XLA-side permute of ints.
    tok_flat = tokens.T.reshape(S * B, 1).astype(jnp.int32)
    # Positional encoding pre-expanded to the same row order: pe_full[r] = pe[s].
    pe_full = jnp.repeat(positional_encoding(S, EMBED), B, axis=0)    # (S*B, E)

    kernel = functools.partial(fused_transformer_kernel, B, S)
    n_in = 21
    logits = pl.pallas_call(
        kernel,
        out_shape=jax.ShapeDtypeStruct((B, VOCAB), jnp.float32),
        in_specs=[_VMEM()] * n_in,
        out_specs=_VMEM(),
    )(tok_flat, params['embed'], pe_full,
      params['wq'], params['bq'], params['wk'], params['bk'],
      params['wv'], params['bv'], params['wo'], params['bo'],
      params['ln1g'], params['ln1b'], params['w1'], params['b1'],
      params['w2'], params['b2'], params['ln2g'], params['ln2b'],
      params['fc_w'], params['fc_b'])
    # TODO(synk): Dropout(p=0.1) is identity (inference/eval mode); training-mode dropout not implemented.
    return logits, None


if __name__ == "__main__":
    key = jax.random.PRNGKey(0)
    pkey, tkey = jax.random.split(key)
    params = init_params(pkey)

    B, S = 8, 8
    tokens = jax.random.randint(tkey, (B, S), 0, VOCAB, dtype=jnp.int32)

    logits, aux = jax.jit(transformer_forward)(tokens, params)
    jax.block_until_ready(logits)

    assert logits.shape == (B, VOCAB), logits.shape
    assert aux is None
    assert bool(jnp.all(jnp.isfinite(logits)))
    print("KERNEL_OK")
</pallas_src>

<mosaic_0001>
module attributes {stable_mosaic.version = 11 : i64} {
  func.func @fused_transformer_kernel(%arg0: memref<64x1xi32, #tpu.memory_space<vmem>>, %arg1: memref<32x64xf32, #tpu.memory_space<vmem>>, %arg2: memref<64x64xf32, #tpu.memory_space<vmem>>, %arg3: memref<8x64x16xf32, #tpu.memory_space<vmem>>, %arg4: memref<8x1x16xf32, #tpu.memory_space<vmem>>, %arg5: memref<8x64x16xf32, #tpu.memory_space<vmem>>, %arg6: memref<8x1x16xf32, #tpu.memory_space<vmem>>, %arg7: memref<8x64x16xf32, #tpu.memory_space<vmem>>, %arg8: memref<8x1x16xf32, #tpu.memory_space<vmem>>, %arg9: memref<8x16x64xf32, #tpu.memory_space<vmem>>, %arg10: memref<2x1x64xf32, #tpu.memory_space<vmem>>, %arg11: memref<2x1x64xf32, #tpu.memory_space<vmem>>, %arg12: memref<2x1x64xf32, #tpu.memory_space<vmem>>, %arg13: memref<2x64x256xf32, #tpu.memory_space<vmem>>, %arg14: memref<2x1x256xf32, #tpu.memory_space<vmem>>, %arg15: memref<2x256x64xf32, #tpu.memory_space<vmem>>, %arg16: memref<2x1x64xf32, #tpu.memory_space<vmem>>, %arg17: memref<2x1x64xf32, #tpu.memory_space<vmem>>, %arg18: memref<2x1x64xf32, #tpu.memory_space<vmem>>, %arg19: memref<64x32xf32, #tpu.memory_space<vmem>>, %arg20: memref<1x32xf32, #tpu.memory_space<vmem>>, %arg21: memref<8x32xf32, #tpu.memory_space<vmem>>) attributes {dimension_semantics = [], scalar_prefetch = 0 : i64, scratch_operands = 0 : i64, tpu.core_type = #tpu.core_type<tc>} {
    %c0 = arith.constant 0 : index
    %c0_0 = arith.constant 0 : index
    %0 = vector.load %arg0[%c0, %c0_0] : memref<64x1xi32, #tpu.memory_space<vmem>>, vector<64x1xi32>
    %1 = tpu.iota {dimensions = array<i32: 1>} : vector<64x32xi32>
    %2 = vector.broadcast %0 : vector<64x1xi32> to vector<64x32xi32>
    %3 = arith.cmpi eq, %1, %2 : vector<64x32xi32>
    %4 = arith.extui %3 : vector<64x32xi1> to vector<64x32xi32>
    %5 = arith.sitofp %4 : vector<64x32xi32> to vector<64x32xf32>
    %c0_1 = arith.constant 0 : index
    %c0_2 = arith.constant 0 : index
    %6 = vector.load %arg1[%c0_1, %c0_2] : memref<32x64xf32, #tpu.memory_space<vmem>>, vector<32x64xf32>
    %cst = arith.constant dense<0.000000e+00> : vector<64x64xf32>
    %7 = tpu.matmul %5, %6, %cst {dimension_numbers = #tpu.dot_dimension_numbers<[1], [0], [0], [1], [0, 0, 1, 1], [], []>} : vector<64x32xf32>, vector<32x64xf32>, vector<64x64xf32> -> vector<64x64xf32>
    %c0_3 = arith.constant 0 : index
    %c0_4 = arith.constant 0 : index
    %8 = vector.load %arg2[%c0_3, %c0_4] : memref<64x64xf32, #tpu.memory_space<vmem>>, vector<64x64xf32>
    %9 = arith.addf %7, %8 : vector<64x64xf32>
    %c0_5 = arith.constant 0 : index
    %c0_6 = arith.constant 0 : index
    %c0_7 = arith.constant 0 : index
    %10 = vector.load %arg10[%c0_5, %c0_6, %c0_7] : memref<2x1x64xf32, #tpu.memory_space<vmem>>, vector<1x1x64xf32>
    %11 = vector.shape_cast %10 : vector<1x1x64xf32> to vector<1x64xf32>
    %c0_8 = arith.constant 0 : index
    %c0_9 = arith.constant 0 : index
    %c0_10 = arith.constant 0 : index
    %12 = vector.load %arg3[%c0_8, %c0_9, %c0_10] : memref<8x64x16xf32, #tpu.memory_space<vmem>>, vector<1x64x16xf32>
    %13 = vector.shape_cast %12 : vector<1x64x16xf32> to vector<64x16xf32>
    %cst_11 = arith.constant dense<0.000000e+00> : vector<64x16xf32>
    %14 = tpu.matmul %9, %13, %cst_11 {dimension_numbers = #tpu.dot_dimension_numbers<[1], [0], [0], [1], [0, 0, 1, 1], [], []>} : vector<64x64xf32>, vector<64x16xf32>, vector<64x16xf32> -> vector<64x16xf32>
    %c0_12 = arith.constant 0 : index
    %c0_13 = arith.constant 0 : index
    %c0_14 = arith.constant 0 : index
    %15 = vector.load %arg4[%c0_12, %c0_13, %c0_14] : memref<8x1x16xf32, #tpu.memory_space<vmem>>, vector<1x1x16xf32>
    %16 = vector.shape_cast %15 : vector<1x1x16xf32> to vector<1x16xf32>
    %17 = vector.broadcast %16 : vector<1x16xf32> to vector<64x16xf32>
    %18 = arith.addf %14, %17 : vector<64x16xf32>
    %c0_15 = arith.constant 0 : index
    %c0_16 = arith.constant 0 : index
    %c0_17 = arith.constant 0 : index
    %19 = vector.load %arg5[%c0_15, %c0_16, %c0_17] : memref<8x64x16xf32, #tpu.memory_space<vmem>>, vector<1x64x16xf32>
    %20 = vector.shape_cast %19 : vector<1x64x16xf32> to vector<64x16xf32>
    %cst_18 = arith.constant dense<0.000000e+00> : vector<64x16xf32>
    %21 = tpu.matmul %9, %20, %cst_18 {dimension_numbers = #tpu.dot_dimension_numbers<[1], [0], [0], [1], [0, 0, 1, 1], [], []>} : vector<64x64xf32>, vector<64x16xf32>, vector<64x16xf32> -> vector<64x16xf32>
    %c0_19 = arith.constant 0 : index
    %c0_20 = arith.constant 0 : index
    %c0_21 = arith.constant 0 : index
    %22 = vector.load %arg6[%c0_19, %c0_20, %c0_21] : memref<8x1x16xf32, #tpu.memory_space<vmem>>, vector<1x1x16xf32>
    %23 = vector.shape_cast %22 : vector<1x1x16xf32> to vector<1x16xf32>
    %24 = vector.broadcast %23 : vector<1x16xf32> to vector<64x16xf32>
    %25 = arith.addf %21, %24 : vector<64x16xf32>
    %c0_22 = arith.constant 0 : index
    %c0_23 = arith.constant 0 : index
    %c0_24 = arith.constant 0 : index
    %26 = vector.load %arg7[%c0_22, %c0_23, %c0_24] : memref<8x64x16xf32, #tpu.memory_space<vmem>>, vector<1x64x16xf32>
    %27 = vector.shape_cast %26 : vector<1x64x16xf32> to vector<64x16xf32>
    %cst_25 = arith.constant dense<0.000000e+00> : vector<64x16xf32>
    %28 = tpu.matmul %9, %27, %cst_25 {dimension_numbers = #tpu.dot_dimension_numbers<[1], [0], [0], [1], [0, 0, 1, 1], [], []>} : vector<64x64xf32>, vector<64x16xf32>, vector<64x16xf32> -> vector<64x16xf32>
    %c0_26 = arith.constant 0 : index
    %c0_27 = arith.constant 0 : index
    %c0_28 = arith.constant 0 : index
    %29 = vector.load %arg8[%c0_26, %c0_27, %c0_28] : memref<8x1x16xf32, #tpu.memory_space<vmem>>, vector<1x1x16xf32>
    %30 = vector.shape_cast %29 : vector<1x1x16xf32> to vector<1x16xf32>
    %31 = vector.broadcast %30 : vector<1x16xf32> to vector<64x16xf32>
    %32 = arith.addf %28, %31 : vector<64x16xf32>
    %cst_29 = arith.constant 2.500000e-01 : f32
    %33 = vector.broadcast %cst_29 : f32 to vector<64x16xf32>
    %34 = arith.mulf %18, %33 : vector<64x16xf32>
    %35 = vector.shape_cast %34 : vector<64x16xf32> to vector<8x8x16xf32>
    %36 = vector.shape_cast %25 : vector<64x16xf32> to vector<8x8x16xf32>
    %37 = vector.shape_cast %32 : vector<64x16xf32> to vector<8x8x16xf32>
    "tpu.trace_start"() <{level = 10 : i32, message = "bqd,bkd->bqk"}> : () -> ()
    %cst_30 = arith.constant dense<0.000000e+00> : vector<8x8x8xf32>
    %38 = tpu.matmul %35, %36, %cst_30 {dimension_numbers = #tpu.dot_dimension_numbers<[2], [2], [1], [1], [0, 0, 0, 1, 1, 1], [0], [0]>} : vector<8x8x16xf32>, vector<8x8x16xf32>, vector<8x8x8xf32> -> vector<8x8x8xf32>
    "tpu.trace_stop"() : () -> ()
    %cst_31 = arith.constant dense<0xFF800000> : vector<8x8xf32>
    %39 = vector.multi_reduction <maximumf>, %38, %cst_31 [2] : vector<8x8x8xf32> to vector<8x8xf32>
    %40 = vector.shape_cast %39 : vector<8x8xf32> to vector<8x8x1xf32>
    %41 = vector.broadcast %40 : vector<8x8x1xf32> to vector<8x8x8xf32>
    %42 = arith.subf %38, %41 : vector<8x8x8xf32>
    %43 = math.exp %42 : vector<8x8x8xf32>
    %cst_32 = arith.constant dense<0.000000e+00> : vector<8x8xf32>
    %44 = vector.multi_reduction <add>, %43, %cst_32 [2] : vector<8x8x8xf32> to vector<8x8xf32>
    %45 = vector.shape_cast %44 : vector<8x8xf32> to vector<8x8x1xf32>
    %46 = tpu.reciprocal %45 {approx = true} : vector<8x8x1xf32> -> vector<8x8x1xf32>
    %47 = vector.broadcast %46 : vector<8x8x1xf32> to vector<8x8x8xf32>
    %48 = arith.mulf %43, %47 : vector<8x8x8xf32>
    "tpu.trace_start"() <{level = 10 : i32, message = "bqk,bkd->bqd"}> : () -> ()
    %cst_33 = arith.constant dense<0.000000e+00> : vector<8x8x16xf32>
    %49 = tpu.matmul %48, %37, %cst_33 {dimension_numbers = #tpu.dot_dimension_numbers<[2], [1], [1], [2], [0, 0, 0, 1, 1, 2], [0], [0]>} : vector<8x8x8xf32>, vector<8x8x16xf32>, vector<8x8x16xf32> -> vector<8x8x16xf32>
    "tpu.trace_stop"() : () -> ()
    %50 = vector.shape_cast %49 : vector<8x8x16xf32> to vector<64x16xf32>
    %c0_34 = arith.constant 0 : index
    %c0_35 = arith.constant 0 : index
    %c0_36 = arith.constant 0 : index
    %51 = vector.load %arg9[%c0_34, %c0_35, %c0_36] : memref<8x16x64xf32, #tpu.memory_space<vmem>>, vector<1x16x64xf32>
    %52 = vector.shape_cast %51 : vector<1x16x64xf32> to vector<16x64xf32>
    %cst_37 = arith.constant dense<0.000000e+00> : vector<64x64xf32>
    %53 = tpu.matmul %50, %52, %cst_37 {dimension_numbers = #tpu.dot_dimension_numbers<[1], [0], [0], [1], [0, 0, 1, 1], [], []>} : vector<64x16xf32>, vector<16x64xf32>, vector<64x64xf32> -> vector<64x64xf32>
    %54 = vector.broadcast %11 : vector<1x64xf32> to vector<64x64xf32>
    %55 = arith.addf %54, %53 : vector<64x64xf32>
    %c1 = arith.constant 1 : index
    %c0_38 = arith.constant 0 : index
    %c0_39 = arith.constant 0 : index
    %56 = vector.load %arg3[%c1, %c0_38, %c0_39] : memref<8x64x16xf32, #tpu.memory_space<vmem>>, vector<1x64x16xf32>
    %57 = vector.shape_cast %56 : vector<1x64x16xf32> to vector<64x16xf32>
    %cst_40 = arith.constant dense<0.000000e+00> : vector<64x16xf32>
    %58 = tpu.matmul %9, %57, %cst_40 {dimension_numbers = #tpu.dot_dimension_numbers<[1], [0], [0], [1], [0, 0, 1, 1], [], []>} : vector<64x64xf32>, vector<64x16xf32>, vector<64x16xf32> -> vector<64x16xf32>
    %c1_41 = arith.constant 1 : index
    %c0_42 = arith.constant 0 : index
    %c0_43 = arith.constant 0 : index
    %59 = vector.load %arg4[%c1_41, %c0_42, %c0_43] : memref<8x1x16xf32, #tpu.memory_space<vmem>>, vector<1x1x16xf32>
    %60 = vector.shape_cast %59 : vector<1x1x16xf32> to vector<1x16xf32>
    %61 = vector.broadcast %60 : vector<1x16xf32> to vector<64x16xf32>
    %62 = arith.addf %58, %61 : vector<64x16xf32>
    %c1_44 = arith.constant 1 : index
    %c0_45 = arith.constant 0 : index
    %c0_46 = arith.constant 0 : index
    %63 = vector.load %arg5[%c1_44, %c0_45, %c0_46] : memref<8x64x16xf32, #tpu.memory_space<vmem>>, vector<1x64x16xf32>
    %64 = vector.shape_cast %63 : vector<1x64x16xf32> to vector<64x16xf32>
    %cst_47 = arith.constant dense<0.000000e+00> : vector<64x16xf32>
    %65 = tpu.matmul %9, %64, %cst_47 {dimension_numbers = #tpu.dot_dimension_numbers<[1], [0], [0], [1], [0, 0, 1, 1], [], []>} : vector<64x64xf32>, vector<64x16xf32>, vector<64x16xf32> -> vector<64x16xf32>
    %c1_48 = arith.constant 1 : index
    %c0_49 = arith.constant 0 : index
    %c0_50 = arith.constant 0 : index
    %66 = vector.load %arg6[%c1_48, %c0_49, %c0_50] : memref<8x1x16xf32, #tpu.memory_space<vmem>>, vector<1x1x16xf32>
    %67 = vector.shape_cast %66 : vector<1x1x16xf32> to vector<1x16xf32>
    %68 = vector.broadcast %67 : vector<1x16xf32> to vector<64x16xf32>
    %69 = arith.addf %65, %68 : vector<64x16xf32>
    %c1_51 = arith.constant 1 : index
    %c0_52 = arith.constant 0 : index
    %c0_53 = arith.constant 0 : index
    %70 = vector.load %arg7[%c1_51, %c0_52, %c0_53] : memref<8x64x16xf32, #tpu.memory_space<vmem>>, vector<1x64x16xf32>
    %71 = vector.shape_cast %70 : vector<1x64x16xf32> to vector<64x16xf32>
    %cst_54 = arith.constant dense<0.000000e+00> : vector<64x16xf32>
    %72 = tpu.matmul %9, %71, %cst_54 {dimension_numbers = #tpu.dot_dimension_numbers<[1], [0], [0], [1], [0, 0, 1, 1], [], []>} : vector<64x64xf32>, vector<64x16xf32>, vector<64x16xf32> -> vector<64x16xf32>
    %c1_55 = arith.constant 1 : index
    %c0_56 = arith.constant 0 : index
    %c0_57 = arith.constant 0 : index
    %73 = vector.load %arg8[%c1_55, %c0_56, %c0_57] : memref<8x1x16xf32, #tpu.memory_space<vmem>>, vector<1x1x16xf32>
    %74 = vector.shape_cast %73 : vector<1x1x16xf32> to vector<1x16xf32>
    %75 = vector.broadcast %74 : vector<1x16xf32> to vector<64x16xf32>
    %76 = arith.addf %72, %75 : vector<64x16xf32>
    %cst_58 = arith.constant 2.500000e-01 : f32
    %77 = vector.broadcast %cst_58 : f32 to vector<64x16xf32>
    %78 = arith.mulf %62, %77 : vector<64x16xf32>
    %79 = vector.shape_cast %78 : vector<64x16xf32> to vector<8x8x16xf32>
    %80 = vector.shape_cast %69 : vector<64x16xf32> to vector<8x8x16xf32>
    %81 = vector.shape_cast %76 : vector<64x16xf32> to vector<8x8x16xf32>
    "tpu.trace_start"() <{level = 10 : i32, message = "bqd,bkd->bqk"}> : () -> ()
    %cst_59 = arith.constant dense<0.000000e+00> : vector<8x8x8xf32>
    %82 = tpu.matmul %79, %80, %cst_59 {dimension_numbers = #tpu.dot_dimension_numbers<[2], [2], [1], [1], [0, 0, 0, 1, 1, 1], [0], [0]>} : vector<8x8x16xf32>, vector<8x8x16xf32>, vector<8x8x8xf32> -> vector<8x8x8xf32>
    "tpu.trace_stop"() : () -> ()
    %cst_60 = arith.constant dense<0xFF800000> : vector<8x8xf32>
    %83 = vector.multi_reduction <maximumf>, %82, %cst_60 [2] : vector<8x8x8xf32> to vector<8x8xf32>
    %84 = vector.shape_cast %83 : vector<8x8xf32> to vector<8x8x1xf32>
    %85 = vector.broadcast %84 : vector<8x8x1xf32> to vector<8x8x8xf32>
    %86 = arith.subf %82, %85 : vector<8x8x8xf32>
    %87 = math.exp %86 : vector<8x8x8xf32>
    %cst_61 = arith.constant dense<0.000000e+00> : vector<8x8xf32>
    %88 = vector.multi_reduction <add>, %87, %cst_61 [2] : vector<8x8x8xf32> to vector<8x8xf32>
    %89 = vector.shape_cast %88 : vector<8x8xf32> to vector<8x8x1xf32>
    %90 = tpu.reciprocal %89 {approx = true} : vector<8x8x1xf32> -> vector<8x8x1xf32>
    %91 = vector.broadcast %90 : vector<8x8x1xf32> to vector<8x8x8xf32>
    %92 = arith.mulf %87, %91 : vector<8x8x8xf32>
    "tpu.trace_start"() <{level = 10 : i32, message = "bqk,bkd->bqd"}> : () -> ()
    %cst_62 = arith.constant dense<0.000000e+00> : vector<8x8x16xf32>
    %93 = tpu.matmul %92, %81, %cst_62 {dimension_numbers = #tpu.dot_dimension_numbers<[2], [1], [1], [2], [0, 0, 0, 1, 1, 2], [0], [0]>} : vector<8x8x8xf32>, vector<8x8x16xf32>, vector<8x8x16xf32> -> vector<8x8x16xf32>
    "tpu.trace_stop"() : () -> ()
    %94 = vector.shape_cast %93 : vector<8x8x16xf32> to vector<64x16xf32>
    %c1_63 = arith.constant 1 : index
    %c0_64 = arith.constant 0 : index
    %c0_65 = arith.constant 0 : index
    %95 = vector.load %arg9[%c1_63, %c0_64, %c0_65] : memref<8x16x64xf32, #tpu.memory_space<vmem>>, vector<1x16x64xf32>
    %96 = vector.shape_cast %95 : vector<1x16x64xf32> to vector<16x64xf32>
    %cst_66 = arith.constant dense<0.000000e+00> : vector<64x64xf32>
    %97 = tpu.matmul %94, %96, %cst_66 {dimension_numbers = #tpu.dot_dimension_numbers<[1], [0], [0], [1], [0, 0, 1, 1], [], []>} : vector<64x16xf32>, vector<16x64xf32>, vector<64x64xf32> -> vector<64x64xf32>
    %98 = arith.addf %55, %97 : vector<64x64xf32>
    %c2 = arith.constant 2 : index
    %c0_67 = arith.constant 0 : index
    %c0_68 = arith.constant 0 : index
    %99 = vector.load %arg3[%c2, %c0_67, %c0_68] : memref<8x64x16xf32, #tpu.memory_space<vmem>>, vector<1x64x16xf32>
    %100 = vector.shape_cast %99 : vector<1x64x16xf32> to vector<64x16xf32>
    %cst_69 = arith.constant dense<0.000000e+00> : vector<64x16xf32>
    %101 = tpu.matmul %9, %100, %cst_69 {dimension_numbers = #tpu.dot_dimension_numbers<[1], [0], [0], [1], [0, 0, 1, 1], [], []>} : vector<64x64xf32>, vector<64x16xf32>, vector<64x16xf32> -> vector<64x16xf32>
    %c2_70 = arith.constant 2 : index
    %c0_71 = arith.constant 0 : index
    %c0_72 = arith.constant 0 : index
    %102 = vector.load %arg4[%c2_70, %c0_71, %c0_72] : memref<8x1x16xf32, #tpu.memory_space<vmem>>, vector<1x1x16xf32>
    %103 = vector.shape_cast %102 : vector<1x1x16xf32> to vector<1x16xf32>
    %104 = vector.broadcast %103 : vector<1x16xf32> to vector<64x16xf32>
    %105 = arith.addf %101, %104 : vector<64x16xf32>
    %c2_73 = arith.constant 2 : index
    %c0_74 = arith.constant 0 : index
    %c0_75 = arith.constant 0 : index
    %106 = vector.load %arg5[%c2_73, %c0_74, %c0_75] : memref<8x64x16xf32, #tpu.memory_space<vmem>>, vector<1x64x16xf32>
    %107 = vector.shape_cast %106 : vector<1x64x16xf32> to vector<64x16xf32>
    %cst_76 = arith.constant dense<0.000000e+00> : vector<64x16xf32>
    %108 = tpu.matmul %9, %107, %cst_76 {dimension_numbers = #tpu.dot_dimension_numbers<[1], [0], [0], [1], [0, 0, 1, 1], [], []>} : vector<64x64xf32>, vector<64x16xf32>, vector<64x16xf32> -> vector<64x16xf32>
    %c2_77 = arith.constant 2 : index
    %c0_78 = arith.constant 0 : index
    %c0_79 = arith.constant 0 : index
    %109 = vector.load %arg6[%c2_77, %c0_78, %c0_79] : memref<8x1x16xf32, #tpu.memory_space<vmem>>, vector<1x1x16xf32>
    %110 = vector.shape_cast %109 : vector<1x1x16xf32> to vector<1x16xf32>
    %111 = vector.broadcast %110 : vector<1x16xf32> to vector<64x16xf32>
    %112 = arith.addf %108, %111 : vector<64x16xf32>
    %c2_80 = arith.constant 2 : index
    %c0_81 = arith.constant 0 : index
    %c0_82 = arith.constant 0 : index
    %113 = vector.load %arg7[%c2_80, %c0_81, %c0_82] : memref<8x64x16xf32, #tpu.memory_space<vmem>>, vector<1x64x16xf32>
    %114 = vector.shape_cast %113 : vector<1x64x16xf32> to vector<64x16xf32>
    %cst_83 = arith.constant dense<0.000000e+00> : vector<64x16xf32>
    %115 = tpu.matmul %9, %114, %cst_83 {dimension_numbers = #tpu.dot_dimension_numbers<[1], [0], [0], [1], [0, 0, 1, 1], [], []>} : vector<64x64xf32>, vector<64x16xf32>, vector<64x16xf32> -> vector<64x16xf32>
    %c2_84 = arith.constant 2 : index
    %c0_85 = arith.constant 0 : index
    %c0_86 = arith.constant 0 : index
    %116 = vector.load %arg8[%c2_84, %c0_85, %c0_86] : memref<8x1x16xf32, #tpu.memory_space<vmem>>, vector<1x1x16xf32>
    %117 = vector.shape_cast %116 : vector<1x1x16xf32> to vector<1x16xf32>
    %118 = vector.broadcast %117 : vector<1x16xf32> to vector<64x16xf32>
    %119 = arith.addf %115, %118 : vector<64x16xf32>
    %cst_87 = arith.constant 2.500000e-01 : f32
    %120 = vector.broadcast %cst_87 : f32 to vector<64x16xf32>
    %121 = arith.mulf %105, %120 : vector<64x16xf32>
    %122 = vector.shape_cast %121 : vector<64x16xf32> to vector<8x8x16xf32>
    %123 = vector.shape_cast %112 : vector<64x16xf32> to vector<8x8x16xf32>
    %124 = vector.shape_cast %119 : vector<64x16xf32> to vector<8x8x16xf32>
    "tpu.trace_start"() <{level = 10 : i32, message = "bqd,bkd->bqk"}> : () -> ()
    %cst_88 = arith.constant dense<0.000000e+00> : vector<8x8x8xf32>
    %125 = tpu.matmul %122, %123, %cst_88 {dimension_numbers = #tpu.dot_dimension_numbers<[2], [2], [1], [1], [0, 0, 0, 1, 1, 1], [0], [0]>} : vector<8x8x16xf32>, vector<8x8x16xf32>, vector<8x8x8xf32> -> vector<8x8x8xf32>
    "tpu.trace_stop"() : () -> ()
    %cst_89 = arith.constant dense<0xFF800000> : vector<8x8xf32>
    %126 = vector.multi_reduction <maximumf>, %125, %cst_89 [2] : vector<8x8x8xf32> to vector<8x8xf32>
    %127 = vector.shape_cast %126 : vector<8x8xf32> to vector<8x8x1xf32>
    %128 = vector.broadcast %127 : vector<8x8x1xf32> to vector<8x8x8xf32>
    %129 = arith.subf %125, %128 : vector<8x8x8xf32>
    %130 = math.exp %129 : vector<8x8x8xf32>
    %cst_90 = arith.constant dense<0.000000e+00> : vector<8x8xf32>
    %131 = vector.multi_reduction <add>, %130, %cst_90 [2] : vector<8x8x8xf32> to vector<8x8xf32>
    %132 = vector.shape_cast %131 : vector<8x8xf32> to vector<8x8x1xf32>
    %133 = tpu.reciprocal %132 {approx = true} : vector<8x8x1xf32> -> vector<8x8x1xf32>
    %134 = vector.broadcast %133 : vector<8x8x1xf32> to vector<8x8x8xf32>
    %135 = arith.mulf %130, %134 : vector<8x8x8xf32>
    "tpu.trace_start"() <{level = 10 : i32, message = "bqk,bkd->bqd"}> : () -> ()
    %cst_91 = arith.constant dense<0.000000e+00> : vector<8x8x16xf32>
    %136 = tpu.matmul %135, %124, %cst_91 {dimension_numbers = #tpu.dot_dimension_numbers<[2], [1], [1], [2], [0, 0, 0, 1, 1, 2], [0], [0]>} : vector<8x8x8xf32>, vector<8x8x16xf32>, vector<8x8x16xf32> -> vector<8x8x16xf32>
    "tpu.trace_stop"() : () -> ()
    %137 = vector.shape_cast %136 : vector<8x8x16xf32> to vector<64x16xf32>
    %c2_92 = arith.constant 2 : index
    %c0_93 = arith.constant 0 : index
    %c0_94 = arith.constant 0 : index
    %138 = vector.load %arg9[%c2_92, %c0_93, %c0_94] : memref<8x16x64xf32, #tpu.memory_space<vmem>>, vector<1x16x64xf32>
    %139 = vector.shape_cast %138 : vector<1x16x64xf32> to vector<16x64xf32>
    %cst_95 = arith.constant dense<0.000000e+00> : vector<64x64xf32>
    %140 = tpu.matmul %137, %139, %cst_95 {dimension_numbers = #tpu.dot_dimension_numbers<[1], [0], [0], [1], [0, 0, 1, 1], [], []>} : vector<64x16xf32>, vector<16x64xf32>, vector<64x64xf32> -> vector<64x64xf32>
    %141 = arith.addf %98, %140 : vector<64x64xf32>
    %c3 = arith.constant 3 : index
    %c0_96 = arith.constant 0 : index
    %c0_97 = arith.constant 0 : index
    %142 = vector.load %arg3[%c3, %c0_96, %c0_97] : memref<8x64x16xf32, #tpu.memory_space<vmem>>, vector<1x64x16xf32>
    %143 = vector.shape_cast %142 : vector<1x64x16xf32> to vector<64x16xf32>
    %cst_98 = arith.constant dense<0.000000e+00> : vector<64x16xf32>
    %144 = tpu.matmul %9, %143, %cst_98 {dimension_numbers = #tpu.dot_dimension_numbers<[1], [0], [0], [1], [0, 0, 1, 1], [], []>} : vector<64x64xf32>, vector<64x16xf32>, vector<64x16xf32> -> vector<64x16xf32>
    %c3_99 = arith.constant 3 : index
    %c0_100 = arith.constant 0 : index
    %c0_101 = arith.constant 0 : index
    %145 = vector.load %arg4[%c3_99, %c0_100, %c0_101] : memref<8x1x16xf32, #tpu.memory_space<vmem>>, vector<1x1x16xf32>
    %146 = vector.shape_cast %145 : vector<1x1x16xf32> to vector<1x16xf32>
    %147 = vector.broadcast %146 : vector<1x16xf32> to vector<64x16xf32>
    %148 = arith.addf %144, %147 : vector<64x16xf32>
    %c3_102 = arith.constant 3 : index
    %c0_103 = arith.constant 0 : index
    %c0_104 = arith.constant 0 : index
    %149 = vector.load %arg5[%c3_102, %c0_103, %c0_104] : memref<8x64x16xf32, #tpu.memory_space<vmem>>, vector<1x64x16xf32>
    %150 = vector.shape_cast %149 : vector<1x64x16xf32> to vector<64x16xf32>
    %cst_105 = arith.constant dense<0.000000e+00> : vector<64x16xf32>
    %151 = tpu.matmul %9, %150, %cst_105 {dimension_numbers = #tpu.dot_dimension_numbers<[1], [0], [0], [1], [0, 0, 1, 1], [], []>} : vector<64x64xf32>, vector<64x16xf32>, vector<64x16xf32> -> vector<64x16xf32>
    %c3_106 = arith.constant 3 : index
    %c0_107 = arith.constant 0 : index
    %c0_108 = arith.constant 0 : index
    %152 = vector.load %arg6[%c3_106, %c0_107, %c0_108] : memref<8x1x16xf32, #tpu.memory_space<vmem>>, vector<1x1x16xf32>
    %153 = vector.shape_cast %152 : vector<1x1x16xf32> to vector<1x16xf32>
    %154 = vector.broadcast %153 : vector<1x16xf32> to vector<64x16xf32>
    %155 = arith.addf %151, %154 : vector<64x16xf32>
    %c3_109 = arith.constant 3 : index
    %c0_110 = arith.constant 0 : index
    %c0_111 = arith.constant 0 : index
    %156 = vector.load %arg7[%c3_109, %c0_110, %c0_111] : memref<8x64x16xf32, #tpu.memory_space<vmem>>, vector<1x64x16xf32>
    %157 = vector.shape_cast %156 : vector<1x64x16xf32> to vector<64x16xf32>
    %cst_112 = arith.constant dense<0.000000e+00> : vector<64x16xf32>
    %158 = tpu.matmul %9, %157, %cst_112 {dimension_numbers = #tpu.dot_dimension_numbers<[1], [0], [0], [1], [0, 0, 1, 1], [], []>} : vector<64x64xf32>, vector<64x16xf32>, vector<64x16xf32> -> vector<64x16xf32>
    %c3_113 = arith.constant 3 : index
    %c0_114 = arith.constant 0 : index
    %c0_115 = arith.constant 0 : index
    %159 = vector.load %arg8[%c3_113, %c0_114, %c0_115] : memref<8x1x16xf32, #tpu.memory_space<vmem>>, vector<1x1x16xf32>
    %160 = vector.shape_cast %159 : vector<1x1x16xf32> to vector<1x16xf32>
    %161 = vector.broadcast %160 : vector<1x16xf32> to vector<64x16xf32>
    %162 = arith.addf %158, %161 : vector<64x16xf32>
    %cst_116 = arith.constant 2.500000e-01 : f32
    %163 = vector.broadcast %cst_116 : f32 to vector<64x16xf32>
    %164 = arith.mulf %148, %163 : vector<64x16xf32>
    %165 = vector.shape_cast %164 : vector<64x16xf32> to vector<8x8x16xf32>
    %166 = vector.shape_cast %155 : vector<64x16xf32> to vector<8x8x16xf32>
    %167 = vector.shape_cast %162 : vector<64x16xf32> to vector<8x8x16xf32>
    "tpu.trace_start"() <{level = 10 : i32, message = "bqd,bkd->bqk"}> : () -> ()
    %cst_117 = arith.constant dense<0.000000e+00> : vector<8x8x8xf32>
    %168 = tpu.matmul %165, %166, %cst_117 {dimension_numbers = #tpu.dot_dimension_numbers<[2], [2], [1], [1], [0, 0, 0, 1, 1, 1], [0], [0]>} : vector<8x8x16xf32>, vector<8x8x16xf32>, vector<8x8x8xf32> -> vector<8x8x8xf32>
    "tpu.trace_stop"() : () -> ()
    %cst_118 = arith.constant dense<0xFF800000> : vector<8x8xf32>
    %169 = vector.multi_reduction <maximumf>, %168, %cst_118 [2] : vector<8x8x8xf32> to vector<8x8xf32>
    %170 = vector.shape_cast %169 : vector<8x8xf32> to vector<8x8x1xf32>
    %171 = vector.broadcast %170 : vector<8x8x1xf32> to vector<8x8x8xf32>
    %172 = arith.subf %168, %171 : vector<8x8x8xf32>
    %173 = math.exp %172 : vector<8x8x8xf32>
    %cst_119 = arith.constant dense<0.000000e+00> : vector<8x8xf32>
    %174 = vector.multi_reduction <add>, %173, %cst_119 [2] : vector<8x8x8xf32> to vector<8x8xf32>
    %175 = vector.shape_cast %174 : vector<8x8xf32> to vector<8x8x1xf32>
    %176 = tpu.reciprocal %175 {approx = true} : vector<8x8x1xf32> -> vector<8x8x1xf32>
    %177 = vector.broadcast %176 : vector<8x8x1xf32> to vector<8x8x8xf32>
    %178 = arith.mulf %173, %177 : vector<8x8x8xf32>
    "tpu.trace_start"() <{level = 10 : i32, message = "bqk,bkd->bqd"}> : () -> ()
    %cst_120 = arith.constant dense<0.000000e+00> : vector<8x8x16xf32>
    %179 = tpu.matmul %178, %167, %cst_120 {dimension_numbers = #tpu.dot_dimension_numbers<[2], [1], [1], [2], [0, 0, 0, 1, 1, 2], [0], [0]>} : vector<8x8x8xf32>, vector<8x8x16xf32>, vector<8x8x16xf32> -> vector<8x8x16xf32>
    "tpu.trace_stop"() : () -> ()
    %180 = vector.shape_cast %179 : vector<8x8x16xf32> to vector<64x16xf32>
    %c3_121 = arith.constant 3 : index
    %c0_122 = arith.constant 0 : index
    %c0_123 = arith.constant 0 : index
    %181 = vector.load %arg9[%c3_121, %c0_122, %c0_123] : memref<8x16x64xf32, #tpu.memory_space<vmem>>, vector<1x16x64xf32>
    %182 = vector.shape_cast %181 : vector<1x16x64xf32> to vector<16x64xf32>
    %cst_124 = arith.constant dense<0.000000e+00> : vector<64x64xf32>
    %183 = tpu.matmul %180, %182, %cst_124 {dimension_numbers = #tpu.dot_dimension_numbers<[1], [0], [0], [1], [0, 0, 1, 1], [], []>} : vector<64x16xf32>, vector<16x64xf32>, vector<64x64xf32> -> vector<64x64xf32>
    %184 = arith.addf %141, %183 : vector<64x64xf32>
    %185 = arith.addf %9, %184 : vector<64x64xf32>
    %c0_125 = arith.constant 0 : index
    %c0_126 = arith.constant 0 : index
    %c0_127 = arith.constant 0 : index
    %186 = vector.load %arg11[%c0_125, %c0_126, %c0_127] : memref<2x1x64xf32, #tpu.memory_space<vmem>>, vector<1x1x64xf32>
    %187 = vector.shape_cast %186 : vector<1x1x64xf32> to vector<1x64xf32>
    %c0_128 = arith.constant 0 : index
    %c0_129 = arith.constant 0 : index
    %c0_130 = arith.constant 0 : index
    %188 = vector.load %arg12[%c0_128, %c0_129, %c0_130] : memref<2x1x64xf32, #tpu.memory_space<vmem>>, vector<1x1x64xf32>
    %189 = vector.shape_cast %188 : vector<1x1x64xf32> to vector<1x64xf32>
    %cst_131 = arith.constant dense<0.000000e+00> : vector<64xf32>
    %190 = vector.multi_reduction <add>, %185, %cst_131 [1] : vector<64x64xf32> to vector<64xf32>
    %191 = vector.shape_cast %190 : vector<64xf32> to vector<64x1xf32>
    %cst_132 = arith.constant 6.400000e+01 : f32
    %192 = vector.broadcast %cst_132 : f32 to vector<64x1xf32>
    %193 = arith.divf %191, %192 : vector<64x1xf32>
    %194 = vector.broadcast %193 : vector<64x1xf32> to vector<64x64xf32>
    %195 = arith.subf %185, %194 : vector<64x64xf32>
    %196 = arith.mulf %195, %195 : vector<64x64xf32>
    %cst_133 = arith.constant dense<0.000000e+00> : vector<64xf32>
    %197 = vector.multi_reduction <add>, %196, %cst_133 [1] : vector<64x64xf32> to vector<64xf32>
    %198 = vector.shape_cast %197 : vector<64xf32> to vector<64x1xf32>
    %cst_134 = arith.constant 6.400000e+01 : f32
    %199 = vector.broadcast %cst_134 : f32 to vector<64x1xf32>
    %200 = arith.divf %198, %199 : vector<64x1xf32>
    %cst_135 = arith.constant 9.99999974E-6 : f32
    %201 = vector.broadcast %cst_135 : f32 to vector<64x1xf32>
    %202 = arith.addf %200, %201 : vector<64x1xf32>
    %203 = math.rsqrt %202 : vector<64x1xf32>
    %204 = vector.broadcast %203 : vector<64x1xf32> to vector<64x64xf32>
    %205 = arith.mulf %195, %204 : vector<64x64xf32>
    %206 = vector.broadcast %187 : vector<1x64xf32> to vector<64x64xf32>
    %207 = arith.mulf %205, %206 : vector<64x64xf32>
    %208 = vector.broadcast %189 : vector<1x64xf32> to vector<64x64xf32>
    %209 = arith.addf %207, %208 : vector<64x64xf32>
    %c0_136 = arith.constant 0 : index
    %c0_137 = arith.constant 0 : index
    %c0_138 = arith.constant 0 : index
    %210 = vector.load %arg13[%c0_136, %c0_137, %c0_138] : memref<2x64x256xf32, #tpu.memory_space<vmem>>, vector<1x64x256xf32>
    %211 = vector.shape_cast %210 : vector<1x64x256xf32> to vector<64x256xf32>
    %cst_139 = arith.constant dense<0.000000e+00> : vector<64x256xf32>
    %212 = tpu.matmul %209, %211, %cst_139 {dimension_numbers = #tpu.dot_dimension_numbers<[1], [0], [0], [1], [0, 0, 1, 1], [], []>} : vector<64x64xf32>, vector<64x256xf32>, vector<64x256xf32> -> vector<64x256xf32>
    %c0_140 = arith.constant 0 : index
    %c0_141 = arith.constant 0 : index
    %c0_142 = arith.constant 0 : index
    %213 = vector.load %arg14[%c0_140, %c0_141, %c0_142] : memref<2x1x256xf32, #tpu.memory_space<vmem>>, vector<1x1x256xf32>
    %214 = vector.shape_cast %213 : vector<1x1x256xf32> to vector<1x256xf32>
    %215 = vector.broadcast %214 : vector<1x256xf32> to vector<64x256xf32>
    %216 = arith.addf %212, %215 : vector<64x256xf32>
    %cst_143 = arith.constant 0.000000e+00 : f32
    %217 = vector.broadcast %cst_143 : f32 to vector<64x256xf32>
    %218 = arith.maximumf %216, %217 : vector<64x256xf32>
    %c0_144 = arith.constant 0 : index
    %c0_145 = arith.constant 0 : index
    %c0_146 = arith.constant 0 : index
    %219 = vector.load %arg15[%c0_144, %c0_145, %c0_146] : memref<2x256x64xf32, #tpu.memory_space<vmem>>, vector<1x256x64xf32>
    %220 = vector.shape_cast %219 : vector<1x256x64xf32> to vector<256x64xf32>
    %cst_147 = arith.constant dense<0.000000e+00> : vector<64x64xf32>
    %221 = tpu.matmul %218, %220, %cst_147 {dimension_numbers = #tpu.dot_dimension_numbers<[1], [0], [0], [1], [0, 0, 1, 1], [], []>} : vector<64x256xf32>, vector<256x64xf32>, vector<64x64xf32> -> vector<64x64xf32>
    %c0_148 = arith.constant 0 : index
    %c0_149 = arith.constant 0 : index
    %c0_150 = arith.constant 0 : index
    %222 = vector.load %arg16[%c0_148, %c0_149, %c0_150] : memref<2x1x64xf32, #tpu.memory_space<vmem>>, vector<1x1x64xf32>
    %223 = vector.shape_cast %222 : vector<1x1x64xf32> to vector<1x64xf32>
    %224 = vector.broadcast %223 : vector<1x64xf32> to vector<64x64xf32>
    %225 = arith.addf %221, %224 : vector<64x64xf32>
    %226 = arith.addf %209, %225 : vector<64x64xf32>
    %c0_151 = arith.constant 0 : index
    %c0_152 = arith.constant 0 : index
    %c0_153 = arith.constant 0 : index
    %227 = vector.load %arg17[%c0_151, %c0_152, %c0_153] : memref<2x1x64xf32, #tpu.memory_space<vmem>>, vector<1x1x64xf32>
    %228 = vector.shape_cast %227 : vector<1x1x64xf32> to vector<1x64xf32>
    %c0_154 = arith.constant 0 : index
    %c0_155 = arith.constant 0 : index
    %c0_156 = arith.constant 0 : index
    %229 = vector.load %arg18[%c0_154, %c0_155, %c0_156] : memref<2x1x64xf32, #tpu.memory_space<vmem>>, vector<1x1x64xf32>
    %230 = vector.shape_cast %229 : vector<1x1x64xf32> to vector<1x64xf32>
    %cst_157 = arith.constant dense<0.000000e+00> : vector<64xf32>
    %231 = vector.multi_reduction <add>, %226, %cst_157 [1] : vector<64x64xf32> to vector<64xf32>
    %232 = vector.shape_cast %231 : vector<64xf32> to vector<64x1xf32>
    %cst_158 = arith.constant 6.400000e+01 : f32
    %233 = vector.broadcast %cst_158 : f32 to vector<64x1xf32>
    %234 = arith.divf %232, %233 : vector<64x1xf32>
    %235 = vector.broadcast %234 : vector<64x1xf32> to vector<64x64xf32>
    %236 = arith.subf %226, %235 : vector<64x64xf32>
    %237 = arith.mulf %236, %236 : vector<64x64xf32>
    %cst_159 = arith.constant dense<0.000000e+00> : vector<64xf32>
    %238 = vector.multi_reduction <add>, %237, %cst_159 [1] : vector<64x64xf32> to vector<64xf32>
    %239 = vector.shape_cast %238 : vector<64xf32> to vector<64x1xf32>
    %cst_160 = arith.constant 6.400000e+01 : f32
    %240 = vector.broadcast %cst_160 : f32 to vector<64x1xf32>
    %241 = arith.divf %239, %240 : vector<64x1xf32>
    %cst_161 = arith.constant 9.99999974E-6 : f32
    %242 = vector.broadcast %cst_161 : f32 to vector<64x1xf32>
    %243 = arith.addf %241, %242 : vector<64x1xf32>
    %244 = math.rsqrt %243 : vector<64x1xf32>
    %245 = vector.broadcast %244 : vector<64x1xf32> to vector<64x64xf32>
    %246 = arith.mulf %236, %245 : vector<64x64xf32>
    %247 = vector.broadcast %228 : vector<1x64xf32> to vector<64x64xf32>
    %248 = arith.mulf %246, %247 : vector<64x64xf32>
    %249 = vector.broadcast %230 : vector<1x64xf32> to vector<64x64xf32>
    %250 = arith.addf %248, %249 : vector<64x64xf32>
    %c1_162 = arith.constant 1 : index
    %c0_163 = arith.constant 0 : index
    %c0_164 = arith.constant 0 : index
    %251 = vector.load %arg10[%c1_162, %c0_163, %c0_164] : memref<2x1x64xf32, #tpu.memory_space<vmem>>, vector<1x1x64xf32>
    %252 = vector.shape_cast %251 : vector<1x1x64xf32> to vector<1x64xf32>
    %c4 = arith.constant 4 : index
    %c0_165 = arith.constant 0 : index
    %c0_166 = arith.constant 0 : index
    %253 = vector.load %arg3[%c4, %c0_165, %c0_166] : memref<8x64x16xf32, #tpu.memory_space<vmem>>, vector<1x64x16xf32>
    %254 = vector.shape_cast %253 : vector<1x64x16xf32> to vector<64x16xf32>
    %cst_167 = arith.constant dense<0.000000e+00> : vector<64x16xf32>
    %255 = tpu.matmul %250, %254, %cst_167 {dimension_numbers = #tpu.dot_dimension_numbers<[1], [0], [0], [1], [0, 0, 1, 1], [], []>} : vector<64x64xf32>, vector<64x16xf32>, vector<64x16xf32> -> vector<64x16xf32>
    %c4_168 = arith.constant 4 : index
    %c0_169 = arith.constant 0 : index
    %c0_170 = arith.constant 0 : index
    %256 = vector.load %arg4[%c4_168, %c0_169, %c0_170] : memref<8x1x16xf32, #tpu.memory_space<vmem>>, vector<1x1x16xf32>
    %257 = vector.shape_cast %256 : vector<1x1x16xf32> to vector<1x16xf32>
    %258 = vector.broadcast %257 : vector<1x16xf32> to vector<64x16xf32>
    %259 = arith.addf %255, %258 : vector<64x16xf32>
    %c4_171 = arith.constant 4 : index
    %c0_172 = arith.constant 0 : index
    %c0_173 = arith.constant 0 : index
    %260 = vector.load %arg5[%c4_171, %c0_172, %c0_173] : memref<8x64x16xf32, #tpu.memory_space<vmem>>, vector<1x64x16xf32>
    %261 = vector.shape_cast %260 : vector<1x64x16xf32> to vector<64x16xf32>
    %cst_174 = arith.constant dense<0.000000e+00> : vector<64x16xf32>
    %262 = tpu.matmul %250, %261, %cst_174 {dimension_numbers = #tpu.dot_dimension_numbers<[1], [0], [0], [1], [0, 0, 1, 1], [], []>} : vector<64x64xf32>, vector<64x16xf32>, vector<64x16xf32> -> vector<64x16xf32>
    %c4_175 = arith.constant 4 : index
    %c0_176 = arith.constant 0 : index
    %c0_177 = arith.constant 0 : index
    %263 = vector.load %arg6[%c4_175, %c0_176, %c0_177] : memref<8x1x16xf32, #tpu.memory_space<vmem>>, vector<1x1x16xf32>
    %264 = vector.shape_cast %263 : vector<1x1x16xf32> to vector<1x16xf32>
    %265 = vector.broadcast %264 : vector<1x16xf32> to vector<64x16xf32>
    %266 = arith.addf %262, %265 : vector<64x16xf32>
    %c4_178 = arith.constant 4 : index
    %c0_179 = arith.constant 0 : index
    %c0_180 = arith.constant 0 : index
    %267 = vector.load %arg7[%c4_178, %c0_179, %c0_180] : memref<8x64x16xf32, #tpu.memory_space<vmem>>, vector<1x64x16xf32>
    %268 = vector.shape_cast %267 : vector<1x64x16xf32> to vector<64x16xf32>
    %cst_181 = arith.constant dense<0.000000e+00> : vector<64x16xf32>
    %269 = tpu.matmul %250, %268, %cst_181 {dimension_numbers = #tpu.dot_dimension_numbers<[1], [0], [0], [1], [0, 0, 1, 1], [], []>} : vector<64x64xf32>, vector<64x16xf32>, vector<64x16xf32> -> vector<64x16xf32>
    %c4_182 = arith.constant 4 : index
    %c0_183 = arith.constant 0 : index
    %c0_184 = arith.constant 0 : index
    %270 = vector.load %arg8[%c4_182, %c0_183, %c0_184] : memref<8x1x16xf32, #tpu.memory_space<vmem>>, vector<1x1x16xf32>
    %271 = vector.shape_cast %270 : vector<1x1x16xf32> to vector<1x16xf32>
    %272 = vector.broadcast %271 : vector<1x16xf32> to vector<64x16xf32>
    %273 = arith.addf %269, %272 : vector<64x16xf32>
    %cst_185 = arith.constant 2.500000e-01 : f32
    %274 = vector.broadcast %cst_185 : f32 to vector<64x16xf32>
    %275 = arith.mulf %259, %274 : vector<64x16xf32>
    %276 = vector.shape_cast %275 : vector<64x16xf32> to vector<8x8x16xf32>
    %277 = vector.shape_cast %266 : vector<64x16xf32> to vector<8x8x16xf32>
    %278 = vector.shape_cast %273 : vector<64x16xf32> to vector<8x8x16xf32>
    "tpu.trace_start"() <{level = 10 : i32, message = "bqd,bkd->bqk"}> : () -> ()
    %cst_186 = arith.constant dense<0.000000e+00> : vector<8x8x8xf32>
    %279 = tpu.matmul %276, %277, %cst_186 {dimension_numbers = #tpu.dot_dimension_numbers<[2], [2], [1], [1], [0, 0, 0, 1, 1, 1], [0], [0]>} : vector<8x8x16xf32>, vector<8x8x16xf32>, vector<8x8x8xf32> -> vector<8x8x8xf32>
    "tpu.trace_stop"() : () -> ()
    %cst_187 = arith.constant dense<0xFF800000> : vector<8x8xf32>
    %280 = vector.multi_reduction <maximumf>, %279, %cst_187 [2] : vector<8x8x8xf32> to vector<8x8xf32>
    %281 = vector.shape_cast %280 : vector<8x8xf32> to vector<8x8x1xf32>
    %282 = vector.broadcast %281 : vector<8x8x1xf32> to vector<8x8x8xf32>
    %283 = arith.subf %279, %282 : vector<8x8x8xf32>
    %284 = math.exp %283 : vector<8x8x8xf32>
    %cst_188 = arith.constant dense<0.000000e+00> : vector<8x8xf32>
    %285 = vector.multi_reduction <add>, %284, %cst_188 [2] : vector<8x8x8xf32> to vector<8x8xf32>
    %286 = vector.shape_cast %285 : vector<8x8xf32> to vector<8x8x1xf32>
    %287 = tpu.reciprocal %286 {approx = true} : vector<8x8x1xf32> -> vector<8x8x1xf32>
    %288 = vector.broadcast %287 : vector<8x8x1xf32> to vector<8x8x8xf32>
    %289 = arith.mulf %284, %288 : vector<8x8x8xf32>
    "tpu.trace_start"() <{level = 10 : i32, message = "bqk,bkd->bqd"}> : () -> ()
    %cst_189 = arith.constant dense<0.000000e+00> : vector<8x8x16xf32>
    %290 = tpu.matmul %289, %278, %cst_189 {dimension_numbers = #tpu.dot_dimension_numbers<[2], [1], [1], [2], [0, 0, 0, 1, 1, 2], [0], [0]>} : vector<8x8x8xf32>, vector<8x8x16xf32>, vector<8x8x16xf32> -> vector<8x8x16xf32>
    "tpu.trace_stop"() : () -> ()
    %291 = vector.shape_cast %290 : vector<8x8x16xf32> to vector<64x16xf32>
    %c4_190 = arith.constant 4 : index
    %c0_191 = arith.constant 0 : index
    %c0_192 = arith.constant 0 : index
    %292 = vector.load %arg9[%c4_190, %c0_191, %c0_192] : memref<8x16x64xf32, #tpu.memory_space<vmem>>, vector<1x16x64xf32>
    %293 = vector.shape_cast %292 : vector<1x16x64xf32> to vector<16x64xf32>
    %cst_193 = arith.constant dense<0.000000e+00> : vector<64x64xf32>
    %294 = tpu.matmul %291, %293, %cst_193 {dimension_numbers = #tpu.dot_dimension_numbers<[1], [0], [0], [1], [0, 0, 1, 1], [], []>} : vector<64x16xf32>, vector<16x64xf32>, vector<64x64xf32> -> vector<64x64xf32>
    %295 = vector.broadcast %252 : vector<1x64xf32> to vector<64x64xf32>
    %296 = arith.addf %295, %294 : vector<64x64xf32>
    %c5 = arith.constant 5 : index
    %c0_194 = arith.constant 0 : index
    %c0_195 = arith.constant 0 : index
    %297 = vector.load %arg3[%c5, %c0_194, %c0_195] : memref<8x64x16xf32, #tpu.memory_space<vmem>>, vector<1x64x16xf32>
    %298 = vector.shape_cast %297 : vector<1x64x16xf32> to vector<64x16xf32>
    %cst_196 = arith.constant dense<0.000000e+00> : vector<64x16xf32>
    %299 = tpu.matmul %250, %298, %cst_196 {dimension_numbers = #tpu.dot_dimension_numbers<[1], [0], [0], [1], [0, 0, 1, 1], [], []>} : vector<64x64xf32>, vector<64x16xf32>, vector<64x16xf32> -> vector<64x16xf32>
    %c5_197 = arith.constant 5 : index
    %c0_198 = arith.constant 0 : index
    %c0_199 = arith.constant 0 : index
    %300 = vector.load %arg4[%c5_197, %c0_198, %c0_199] : memref<8x1x16xf32, #tpu.memory_space<vmem>>, vector<1x1x16xf32>
    %301 = vector.shape_cast %300 : vector<1x1x16xf32> to vector<1x16xf32>
    %302 = vector.broadcast %301 : vector<1x16xf32> to vector<64x16xf32>
    %303 = arith.addf %299, %302 : vector<64x16xf32>
    %c5_200 = arith.constant 5 : index
    %c0_201 = arith.constant 0 : index
    %c0_202 = arith.constant 0 : index
    %304 = vector.load %arg5[%c5_200, %c0_201, %c0_202] : memref<8x64x16xf32, #tpu.memory_space<vmem>>, vector<1x64x16xf32>
    %305 = vector.shape_cast %304 : vector<1x64x16xf32> to vector<64x16xf32>
    %cst_203 = arith.constant dense<0.000000e+00> : vector<64x16xf32>
    %306 = tpu.matmul %250, %305, %cst_203 {dimension_numbers = #tpu.dot_dimension_numbers<[1], [0], [0], [1], [0, 0, 1, 1], [], []>} : vector<64x64xf32>, vector<64x16xf32>, vector<64x16xf32> -> vector<64x16xf32>
    %c5_204 = arith.constant 5 : index
    %c0_205 = arith.constant 0 : index
    %c0_206 = arith.constant 0 : index
    %307 = vector.load %arg6[%c5_204, %c0_205, %c0_206] : memref<8x1x16xf32, #tpu.memory_space<vmem>>, vector<1x1x16xf32>
    %308 = vector.shape_cast %307 : vector<1x1x16xf32> to vector<1x16xf32>
    %309 = vector.broadcast %308 : vector<1x16xf32> to vector<64x16xf32>
    %310 = arith.addf %306, %309 : vector<64x16xf32>
    %c5_207 = arith.constant 5 : index
    %c0_208 = arith.constant 0 : index
    %c0_209 = arith.constant 0 : index
    %311 = vector.load %arg7[%c5_207, %c0_208, %c0_209] : memref<8x64x16xf32, #tpu.memory_space<vmem>>, vector<1x64x16xf32>
    %312 = vector.shape_cast %311 : vector<1x64x16xf32> to vector<64x16xf32>
    %cst_210 = arith.constant dense<0.000000e+00> : vector<64x16xf32>
    %313 = tpu.matmul %250, %312, %cst_210 {dimension_numbers = #tpu.dot_dimension_numbers<[1], [0], [0], [1], [0, 0, 1, 1], [], []>} : vector<64x64xf32>, vector<64x16xf32>, vector<64x16xf32> -> vector<64x16xf32>
    %c5_211 = arith.constant 5 : index
    %c0_212 = arith.constant 0 : index
    %c0_213 = arith.constant 0 : index
    %314 = vector.load %arg8[%c5_211, %c0_212, %c0_213] : memref<8x1x16xf32, #tpu.memory_space<vmem>>, vector<1x1x16xf32>
    %315 = vector.shape_cast %314 : vector<1x1x16xf32> to vector<1x16xf32>
    %316 = vector.broadcast %315 : vector<1x16xf32> to vector<64x16xf32>
    %317 = arith.addf %313, %316 : vector<64x16xf32>
    %cst_214 = arith.constant 2.500000e-01 : f32
    %318 = vector.broadcast %cst_214 : f32 to vector<64x16xf32>
    %319 = arith.mulf %303, %318 : vector<64x16xf32>
    %320 = vector.shape_cast %319 : vector<64x16xf32> to vector<8x8x16xf32>
    %321 = vector.shape_cast %310 : vector<64x16xf32> to vector<8x8x16xf32>
    %322 = vector.shape_cast %317 : vector<64x16xf32> to vector<8x8x16xf32>
    "tpu.trace_start"() <{level = 10 : i32, message = "bqd,bkd->bqk"}> : () -> ()
    %cst_215 = arith.constant dense<0.000000e+00> : vector<8x8x8xf32>
    %323 = tpu.matmul %320, %321, %cst_215 {dimension_numbers = #tpu.dot_dimension_numbers<[2], [2], [1], [1], [0, 0, 0, 1, 1, 1], [0], [0]>} : vector<8x8x16xf32>, vector<8x8x16xf32>, vector<8x8x8xf32> -> vector<8x8x8xf32>
    "tpu.trace_stop"() : () -> ()
    %cst_216 = arith.constant dense<0xFF800000> : vector<8x8xf32>
    %324 = vector.multi_reduction <maximumf>, %323, %cst_216 [2] : vector<8x8x8xf32> to vector<8x8xf32>
    %325 = vector.shape_cast %324 : vector<8x8xf32> to vector<8x8x1xf32>
    %326 = vector.broadcast %325 : vector<8x8x1xf32> to vector<8x8x8xf32>
    %327 = arith.subf %323, %326 : vector<8x8x8xf32>
    %328 = math.exp %327 : vector<8x8x8xf32>
    %cst_217 = arith.constant dense<0.000000e+00> : vector<8x8xf32>
    %329 = vector.multi_reduction <add>, %328, %cst_217 [2] : vector<8x8x8xf32> to vector<8x8xf32>
    %330 = vector.shape_cast %329 : vector<8x8xf32> to vector<8x8x1xf32>
    %331 = tpu.reciprocal %330 {approx = true} : vector<8x8x1xf32> -> vector<8x8x1xf32>
    %332 = vector.broadcast %331 : vector<8x8x1xf32> to vector<8x8x8xf32>
    %333 = arith.mulf %328, %332 : vector<8x8x8xf32>
    "tpu.trace_start"() <{level = 10 : i32, message = "bqk,bkd->bqd"}> : () -> ()
    %cst_218 = arith.constant dense<0.000000e+00> : vector<8x8x16xf32>
    %334 = tpu.matmul %333, %322, %cst_218 {dimension_numbers = #tpu.dot_dimension_numbers<[2], [1], [1], [2], [0, 0, 0, 1, 1, 2], [0], [0]>} : vector<8x8x8xf32>, vector<8x8x16xf32>, vector<8x8x16xf32> -> vector<8x8x16xf32>
    "tpu.trace_stop"() : () -> ()
    %335 = vector.shape_cast %334 : vector<8x8x16xf32> to vector<64x16xf32>
    %c5_219 = arith.constant 5 : index
    %c0_220 = arith.constant 0 : index
    %c0_221 = arith.constant 0 : index
    %336 = vector.load %arg9[%c5_219, %c0_220, %c0_221] : memref<8x16x64xf32, #tpu.memory_space<vmem>>, vector<1x16x64xf32>
    %337 = vector.shape_cast %336 : vector<1x16x64xf32> to vector<16x64xf32>
    %cst_222 = arith.constant dense<0.000000e+00> : vector<64x64xf32>
    %338 = tpu.matmul %335, %337, %cst_222 {dimension_numbers = #tpu.dot_dimension_numbers<[1], [0], [0], [1], [0, 0, 1, 1], [], []>} : vector<64x16xf32>, vector<16x64xf32>, vector<64x64xf32> -> vector<64x64xf32>
    %339 = arith.addf %296, %338 : vector<64x64xf32>
    %c6 = arith.constant 6 : index
    %c0_223 = arith.constant 0 : index
    %c0_224 = arith.constant 0 : index
    %340 = vector.load %arg3[%c6, %c0_223, %c0_224] : memref<8x64x16xf32, #tpu.memory_space<vmem>>, vector<1x64x16xf32>
    %341 = vector.shape_cast %340 : vector<1x64x16xf32> to vector<64x16xf32>
    %cst_225 = arith.constant dense<0.000000e+00> : vector<64x16xf32>
    %342 = tpu.matmul %250, %341, %cst_225 {dimension_numbers = #tpu.dot_dimension_numbers<[1], [0], [0], [1], [0, 0, 1, 1], [], []>} : vector<64x64xf32>, vector<64x16xf32>, vector<64x16xf32> -> vector<64x16xf32>
    %c6_226 = arith.constant 6 : index
    %c0_227 = arith.constant 0 : index
    %c0_228 = arith.constant 0 : index
    %343 = vector.load %arg4[%c6_226, %c0_227, %c0_228] : memref<8x1x16xf32, #tpu.memory_space<vmem>>, vector<1x1x16xf32>
    %344 = vector.shape_cast %343 : vector<1x1x16xf32> to vector<1x16xf32>
    %345 = vector.broadcast %344 : vector<1x16xf32> to vector<64x16xf32>
    %346 = arith.addf %342, %345 : vector<64x16xf32>
    %c6_229 = arith.constant 6 : index
    %c0_230 = arith.constant 0 : index
    %c0_231 = arith.constant 0 : index
    %347 = vector.load %arg5[%c6_229, %c0_230, %c0_231] : memref<8x64x16xf32, #tpu.memory_space<vmem>>, vector<1x64x16xf32>
    %348 = vector.shape_cast %347 : vector<1x64x16xf32> to vector<64x16xf32>
    %cst_232 = arith.constant dense<0.000000e+00> : vector<64x16xf32>
    %349 = tpu.matmul %250, %348, %cst_232 {dimension_numbers = #tpu.dot_dimension_numbers<[1], [0], [0], [1], [0, 0, 1, 1], [], []>} : vector<64x64xf32>, vector<64x16xf32>, vector<64x16xf32> -> vector<64x16xf32>
    %c6_233 = arith.constant 6 : index
    %c0_234 = arith.constant 0 : index
    %c0_235 = arith.constant 0 : index
    %350 = vector.load %arg6[%c6_233, %c0_234, %c0_235] : memref<8x1x16xf32, #tpu.memory_space<vmem>>, vector<1x1x16xf32>
    %351 = vector.shape_cast %350 : vector<1x1x16xf32> to vector<1x16xf32>
    %352 = vector.broadcast %351 : vector<1x16xf32> to vector<64x16xf32>
    %353 = arith.addf %349, %352 : vector<64x16xf32>
    %c6_236 = arith.constant 6 : index
    %c0_237 = arith.constant 0 : index
    %c0_238 = arith.constant 0 : index
    %354 = vector.load %arg7[%c6_236, %c0_237, %c0_238] : memref<8x64x16xf32, #tpu.memory_space<vmem>>, vector<1x64x16xf32>
    %355 = vector.shape_cast %354 : vector<1x64x16xf32> to vector<64x16xf32>
    %cst_239 = arith.constant dense<0.000000e+00> : vector<64x16xf32>
    %356 = tpu.matmul %250, %355, %cst_239 {dimension_numbers = #tpu.dot_dimension_numbers<[1], [0], [0], [1], [0, 0, 1, 1], [], []>} : vector<64x64xf32>, vector<64x16xf32>, vector<64x16xf32> -> vector<64x16xf32>
    %c6_240 = arith.constant 6 : index
    %c0_241 = arith.constant 0 : index
    %c0_242 = arith.constant 0 : index
    %357 = vector.load %arg8[%c6_240, %c0_241, %c0_242] : memref<8x1x16xf32, #tpu.memory_space<vmem>>, vector<1x1x16xf32>
    %358 = vector.shape_cast %357 : vector<1x1x16xf32> to vector<1x16xf32>
    %359 = vector.broadcast %358 : vector<1x16xf32> to vector<64x16xf32>
    %360 = arith.addf %356, %359 : vector<64x16xf32>
    %cst_243 = arith.constant 2.500000e-01 : f32
    %361 = vector.broadcast %cst_243 : f32 to vector<64x16xf32>
    %362 = arith.mulf %346, %361 : vector<64x16xf32>
    %363 = vector.shape_cast %362 : vector<64x16xf32> to vector<8x8x16xf32>
    %364 = vector.shape_cast %353 : vector<64x16xf32> to vector<8x8x16xf32>
    %365 = vector.shape_cast %360 : vector<64x16xf32> to vector<8x8x16xf32>
    "tpu.trace_start"() <{level = 10 : i32, message = "bqd,bkd->bqk"}> : () -> ()
    %cst_244 = arith.constant dense<0.000000e+00> : vector<8x8x8xf32>
    %366 = tpu.matmul %363, %364, %cst_244 {dimension_numbers = #tpu.dot_dimension_numbers<[2], [2], [1], [1], [0, 0, 0, 1, 1, 1], [0], [0]>} : vector<8x8x16xf32>, vector<8x8x16xf32>, vector<8x8x8xf32> -> vector<8x8x8xf32>
    "tpu.trace_stop"() : () -> ()
    %cst_245 = arith.constant dense<0xFF800000> : vector<8x8xf32>
    %367 = vector.multi_reduction <maximumf>, %366, %cst_245 [2] : vector<8x8x8xf32> to vector<8x8xf32>
    %368 = vector.shape_cast %367 : vector<8x8xf32> to vector<8x8x1xf32>
    %369 = vector.broadcast %368 : vector<8x8x1xf32> to vector<8x8x8xf32>
    %370 = arith.subf %366, %369 : vector<8x8x8xf32>
    %371 = math.exp %370 : vector<8x8x8xf32>
    %cst_246 = arith.constant dense<0.000000e+00> : vector<8x8xf32>
    %372 = vector.multi_reduction <add>, %371, %cst_246 [2] : vector<8x8x8xf32> to vector<8x8xf32>
    %373 = vector.shape_cast %372 : vector<8x8xf32> to vector<8x8x1xf32>
    %374 = tpu.reciprocal %373 {approx = true} : vector<8x8x1xf32> -> vector<8x8x1xf32>
    %375 = vector.broadcast %374 : vector<8x8x1xf32> to vector<8x8x8xf32>
    %376 = arith.mulf %371, %375 : vector<8x8x8xf32>
    "tpu.trace_start"() <{level = 10 : i32, message = "bqk,bkd->bqd"}> : () -> ()
    %cst_247 = arith.constant dense<0.000000e+00> : vector<8x8x16xf32>
    %377 = tpu.matmul %376, %365, %cst_247 {dimension_numbers = #tpu.dot_dimension_numbers<[2], [1], [1], [2], [0, 0, 0, 1, 1, 2], [0], [0]>} : vector<8x8x8xf32>, vector<8x8x16xf32>, vector<8x8x16xf32> -> vector<8x8x16xf32>
    "tpu.trace_stop"() : () -> ()
    %378 = vector.shape_cast %377 : vector<8x8x16xf32> to vector<64x16xf32>
    %c6_248 = arith.constant 6 : index
    %c0_249 = arith.constant 0 : index
    %c0_250 = arith.constant 0 : index
    %379 = vector.load %arg9[%c6_248, %c0_249, %c0_250] : memref<8x16x64xf32, #tpu.memory_space<vmem>>, vector<1x16x64xf32>
    %380 = vector.shape_cast %379 : vector<1x16x64xf32> to vector<16x64xf32>
    %cst_251 = arith.constant dense<0.000000e+00> : vector<64x64xf32>
    %381 = tpu.matmul %378, %380, %cst_251 {dimension_numbers = #tpu.dot_dimension_numbers<[1], [0], [0], [1], [0, 0, 1, 1], [], []>} : vector<64x16xf32>, vector<16x64xf32>, vector<64x64xf32> -> vector<64x64xf32>
    %382 = arith.addf %339, %381 : vector<64x64xf32>
    %c7 = arith.constant 7 : index
    %c0_252 = arith.constant 0 : index
    %c0_253 = arith.constant 0 : index
    %383 = vector.load %arg3[%c7, %c0_252, %c0_253] : memref<8x64x16xf32, #tpu.memory_space<vmem>>, vector<1x64x16xf32>
    %384 = vector.shape_cast %383 : vector<1x64x16xf32> to vector<64x16xf32>
    %cst_254 = arith.constant dense<0.000000e+00> : vector<64x16xf32>
    %385 = tpu.matmul %250, %384, %cst_254 {dimension_numbers = #tpu.dot_dimension_numbers<[1], [0], [0], [1], [0, 0, 1, 1], [], []>} : vector<64x64xf32>, vector<64x16xf32>, vector<64x16xf32> -> vector<64x16xf32>
    %c7_255 = arith.constant 7 : index
    %c0_256 = arith.constant 0 : index
    %c0_257 = arith.constant 0 : index
    %386 = vector.load %arg4[%c7_255, %c0_256, %c0_257] : memref<8x1x16xf32, #tpu.memory_space<vmem>>, vector<1x1x16xf32>
    %387 = vector.shape_cast %386 : vector<1x1x16xf32> to vector<1x16xf32>
    %388 = vector.broadcast %387 : vector<1x16xf32> to vector<64x16xf32>
    %389 = arith.addf %385, %388 : vector<64x16xf32>
    %c7_258 = arith.constant 7 : index
    %c0_259 = arith.constant 0 : index
    %c0_260 = arith.constant 0 : index
    %390 = vector.load %arg5[%c7_258, %c0_259, %c0_260] : memref<8x64x16xf32, #tpu.memory_space<vmem>>, vector<1x64x16xf32>
    %391 = vector.shape_cast %390 : vector<1x64x16xf32> to vector<64x16xf32>
    %cst_261 = arith.constant dense<0.000000e+00> : vector<64x16xf32>
    %392 = tpu.matmul %250, %391, %cst_261 {dimension_numbers = #tpu.dot_dimension_numbers<[1], [0], [0], [1], [0, 0, 1, 1], [], []>} : vector<64x64xf32>, vector<64x16xf32>, vector<64x16xf32> -> vector<64x16xf32>
    %c7_262 = arith.constant 7 : index
    %c0_263 = arith.constant 0 : index
    %c0_264 = arith.constant 0 : index
    %393 = vector.load %arg6[%c7_262, %c0_263, %c0_264] : memref<8x1x16xf32, #tpu.memory_space<vmem>>, vector<1x1x16xf32>
    %394 = vector.shape_cast %393 : vector<1x1x16xf32> to vector<1x16xf32>
    %395 = vector.broadcast %394 : vector<1x16xf32> to vector<64x16xf32>
    %396 = arith.addf %392, %395 : vector<64x16xf32>
    %c7_265 = arith.constant 7 : index
    %c0_266 = arith.constant 0 : index
    %c0_267 = arith.constant 0 : index
    %397 = vector.load %arg7[%c7_265, %c0_266, %c0_267] : memref<8x64x16xf32, #tpu.memory_space<vmem>>, vector<1x64x16xf32>
    %398 = vector.shape_cast %397 : vector<1x64x16xf32> to vector<64x16xf32>
    %cst_268 = arith.constant dense<0.000000e+00> : vector<64x16xf32>
    %399 = tpu.matmul %250, %398, %cst_268 {dimension_numbers = #tpu.dot_dimension_numbers<[1], [0], [0], [1], [0, 0, 1, 1], [], []>} : vector<64x64xf32>, vector<64x16xf32>, vector<64x16xf32> -> vector<64x16xf32>
    %c7_269 = arith.constant 7 : index
    %c0_270 = arith.constant 0 : index
    %c0_271 = arith.constant 0 : index
    %400 = vector.load %arg8[%c7_269, %c0_270, %c0_271] : memref<8x1x16xf32, #tpu.memory_space<vmem>>, vector<1x1x16xf32>
    %401 = vector.shape_cast %400 : vector<1x1x16xf32> to vector<1x16xf32>
    %402 = vector.broadcast %401 : vector<1x16xf32> to vector<64x16xf32>
    %403 = arith.addf %399, %402 : vector<64x16xf32>
    %cst_272 = arith.constant 2.500000e-01 : f32
    %404 = vector.broadcast %cst_272 : f32 to vector<64x16xf32>
    %405 = arith.mulf %389, %404 : vector<64x16xf32>
    %406 = vector.shape_cast %405 : vector<64x16xf32> to vector<8x8x16xf32>
    %407 = vector.shape_cast %396 : vector<64x16xf32> to vector<8x8x16xf32>
    %408 = vector.shape_cast %403 : vector<64x16xf32> to vector<8x8x16xf32>
    "tpu.trace_start"() <{level = 10 : i32, message = "bqd,bkd->bqk"}> : () -> ()
    %cst_273 = arith.constant dense<0.000000e+00> : vector<8x8x8xf32>
    %409 = tpu.matmul %406, %407, %cst_273 {dimension_numbers = #tpu.dot_dimension_numbers<[2], [2], [1], [1], [0, 0, 0, 1, 1, 1], [0], [0]>} : vector<8x8x16xf32>, vector<8x8x16xf32>, vector<8x8x8xf32> -> vector<8x8x8xf32>
    "tpu.trace_stop"() : () -> ()
    %cst_274 = arith.constant dense<0xFF800000> : vector<8x8xf32>
    %410 = vector.multi_reduction <maximumf>, %409, %cst_274 [2] : vector<8x8x8xf32> to vector<8x8xf32>
    %411 = vector.shape_cast %410 : vector<8x8xf32> to vector<8x8x1xf32>
    %412 = vector.broadcast %411 : vector<8x8x1xf32> to vector<8x8x8xf32>
    %413 = arith.subf %409, %412 : vector<8x8x8xf32>
    %414 = math.exp %413 : vector<8x8x8xf32>
    %cst_275 = arith.constant dense<0.000000e+00> : vector<8x8xf32>
    %415 = vector.multi_reduction <add>, %414, %cst_275 [2] : vector<8x8x8xf32> to vector<8x8xf32>
    %416 = vector.shape_cast %415 : vector<8x8xf32> to vector<8x8x1xf32>
    %417 = tpu.reciprocal %416 {approx = true} : vector<8x8x1xf32> -> vector<8x8x1xf32>
    %418 = vector.broadcast %417 : vector<8x8x1xf32> to vector<8x8x8xf32>
    %419 = arith.mulf %414, %418 : vector<8x8x8xf32>
    "tpu.trace_start"() <{level = 10 : i32, message = "bqk,bkd->bqd"}> : () -> ()
    %cst_276 = arith.constant dense<0.000000e+00> : vector<8x8x16xf32>
    %420 = tpu.matmul %419, %408, %cst_276 {dimension_numbers = #tpu.dot_dimension_numbers<[2], [1], [1], [2], [0, 0, 0, 1, 1, 2], [0], [0]>} : vector<8x8x8xf32>, vector<8x8x16xf32>, vector<8x8x16xf32> -> vector<8x8x16xf32>
    "tpu.trace_stop"() : () -> ()
    %421 = vector.shape_cast %420 : vector<8x8x16xf32> to vector<64x16xf32>
    %c7_277 = arith.constant 7 : index
    %c0_278 = arith.constant 0 : index
    %c0_279 = arith.constant 0 : index
    %422 = vector.load %arg9[%c7_277, %c0_278, %c0_279] : memref<8x16x64xf32, #tpu.memory_space<vmem>>, vector<1x16x64xf32>
    %423 = vector.shape_cast %422 : vector<1x16x64xf32> to vector<16x64xf32>
    %cst_280 = arith.constant dense<0.000000e+00> : vector<64x64xf32>
    %424 = tpu.matmul %421, %423, %cst_280 {dimension_numbers = #tpu.dot_dimension_numbers<[1], [0], [0], [1], [0, 0, 1, 1], [], []>} : vector<64x16xf32>, vector<16x64xf32>, vector<64x64xf32> -> vector<64x64xf32>
    %425 = arith.addf %382, %424 : vector<64x64xf32>
    %426 = arith.addf %250, %425 : vector<64x64xf32>
    %c1_281 = arith.constant 1 : index
    %c0_282 = arith.constant 0 : index
    %c0_283 = arith.constant 0 : index
    %427 = vector.load %arg11[%c1_281, %c0_282, %c0_283] : memref<2x1x64xf32, #tpu.memory_space<vmem>>, vector<1x1x64xf32>
    %428 = vector.shape_cast %427 : vector<1x1x64xf32> to vector<1x64xf32>
    %c1_284 = arith.constant 1 : index
    %c0_285 = arith.constant 0 : index
    %c0_286 = arith.constant 0 : index
    %429 = vector.load %arg12[%c1_284, %c0_285, %c0_286] : memref<2x1x64xf32, #tpu.memory_space<vmem>>, vector<1x1x64xf32>
    %430 = vector.shape_cast %429 : vector<1x1x64xf32> to vector<1x64xf32>
    %cst_287 = arith.constant dense<0.000000e+00> : vector<64xf32>
    %431 = vector.multi_reduction <add>, %426, %cst_287 [1] : vector<64x64xf32> to vector<64xf32>
    %432 = vector.shape_cast %431 : vector<64xf32> to vector<64x1xf32>
    %cst_288 = arith.constant 6.400000e+01 : f32
    %433 = vector.broadcast %cst_288 : f32 to vector<64x1xf32>
    %434 = arith.divf %432, %433 : vector<64x1xf32>
    %435 = vector.broadcast %434 : vector<64x1xf32> to vector<64x64xf32>
    %436 = arith.subf %426, %435 : vector<64x64xf32>
    %437 = arith.mulf %436, %436 : vector<64x64xf32>
    %cst_289 = arith.constant dense<0.000000e+00> : vector<64xf32>
    %438 = vector.multi_reduction <add>, %437, %cst_289 [1] : vector<64x64xf32> to vector<64xf32>
    %439 = vector.shape_cast %438 : vector<64xf32> to vector<64x1xf32>
    %cst_290 = arith.constant 6.400000e+01 : f32
    %440 = vector.broadcast %cst_290 : f32 to vector<64x1xf32>
    %441 = arith.divf %439, %440 : vector<64x1xf32>
    %cst_291 = arith.constant 9.99999974E-6 : f32
    %442 = vector.broadcast %cst_291 : f32 to vector<64x1xf32>
    %443 = arith.addf %441, %442 : vector<64x1xf32>
    %444 = math.rsqrt %443 : vector<64x1xf32>
    %445 = vector.broadcast %444 : vector<64x1xf32> to vector<64x64xf32>
    %446 = arith.mulf %436, %445 : vector<64x64xf32>
    %447 = vector.broadcast %428 : vector<1x64xf32> to vector<64x64xf32>
    %448 = arith.mulf %446, %447 : vector<64x64xf32>
    %449 = vector.broadcast %430 : vector<1x64xf32> to vector<64x64xf32>
    %450 = arith.addf %448, %449 : vector<64x64xf32>
    %c1_292 = arith.constant 1 : index
    %c0_293 = arith.constant 0 : index
    %c0_294 = arith.constant 0 : index
    %451 = vector.load %arg13[%c1_292, %c0_293, %c0_294] : memref<2x64x256xf32, #tpu.memory_space<vmem>>, vector<1x64x256xf32>
    %452 = vector.shape_cast %451 : vector<1x64x256xf32> to vector<64x256xf32>
    %cst_295 = arith.constant dense<0.000000e+00> : vector<64x256xf32>
    %453 = tpu.matmul %450, %452, %cst_295 {dimension_numbers = #tpu.dot_dimension_numbers<[1], [0], [0], [1], [0, 0, 1, 1], [], []>} : vector<64x64xf32>, vector<64x256xf32>, vector<64x256xf32> -> vector<64x256xf32>
    %c1_296 = arith.constant 1 : index
    %c0_297 = arith.constant 0 : index
    %c0_298 = arith.constant 0 : index
    %454 = vector.load %arg14[%c1_296, %c0_297, %c0_298] : memref<2x1x256xf32, #tpu.memory_space<vmem>>, vector<1x1x256xf32>
    %455 = vector.shape_cast %454 : vector<1x1x256xf32> to vector<1x256xf32>
    %456 = vector.broadcast %455 : vector<1x256xf32> to vector<64x256xf32>
    %457 = arith.addf %453, %456 : vector<64x256xf32>
    %cst_299 = arith.constant 0.000000e+00 : f32
    %458 = vector.broadcast %cst_299 : f32 to vector<64x256xf32>
    %459 = arith.maximumf %457, %458 : vector<64x256xf32>
    %c1_300 = arith.constant 1 : index
    %c0_301 = arith.constant 0 : index
    %c0_302 = arith.constant 0 : index
    %460 = vector.load %arg15[%c1_300, %c0_301, %c0_302] : memref<2x256x64xf32, #tpu.memory_space<vmem>>, vector<1x256x64xf32>
    %461 = vector.shape_cast %460 : vector<1x256x64xf32> to vector<256x64xf32>
    %cst_303 = arith.constant dense<0.000000e+00> : vector<64x64xf32>
    %462 = tpu.matmul %459, %461, %cst_303 {dimension_numbers = #tpu.dot_dimension_numbers<[1], [0], [0], [1], [0, 0, 1, 1], [], []>} : vector<64x256xf32>, vector<256x64xf32>, vector<64x64xf32> -> vector<64x64xf32>
    %c1_304 = arith.constant 1 : index
    %c0_305 = arith.constant 0 : index
    %c0_306 = arith.constant 0 : index
    %463 = vector.load %arg16[%c1_304, %c0_305, %c0_306] : memref<2x1x64xf32, #tpu.memory_space<vmem>>, vector<1x1x64xf32>
    %464 = vector.shape_cast %463 : vector<1x1x64xf32> to vector<1x64xf32>
    %465 = vector.broadcast %464 : vector<1x64xf32> to vector<64x64xf32>
    %466 = arith.addf %462, %465 : vector<64x64xf32>
    %467 = arith.addf %450, %466 : vector<64x64xf32>
    %c1_307 = arith.constant 1 : index
    %c0_308 = arith.constant 0 : index
    %c0_309 = arith.constant 0 : index
    %468 = vector.load %arg17[%c1_307, %c0_308, %c0_309] : memref<2x1x64xf32, #tpu.memory_space<vmem>>, vector<1x1x64xf32>
    %469 = vector.shape_cast %468 : vector<1x1x64xf32> to vector<1x64xf32>
    %c1_310 = arith.constant 1 : index
    %c0_311 = arith.constant 0 : index
    %c0_312 = arith.constant 0 : index
    %470 = vector.load %arg18[%c1_310, %c0_311, %c0_312] : memref<2x1x64xf32, #tpu.memory_space<vmem>>, vector<1x1x64xf32>
    %471 = vector.shape_cast %470 : vector<1x1x64xf32> to vector<1x64xf32>
    %cst_313 = arith.constant dense<0.000000e+00> : vector<64xf32>
    %472 = vector.multi_reduction <add>, %467, %cst_313 [1] : vector<64x64xf32> to vector<64xf32>
    %473 = vector.shape_cast %472 : vector<64xf32> to vector<64x1xf32>
    %cst_314 = arith.constant 6.400000e+01 : f32
    %474 = vector.broadcast %cst_314 : f32 to vector<64x1xf32>
    %475 = arith.divf %473, %474 : vector<64x1xf32>
    %476 = vector.broadcast %475 : vector<64x1xf32> to vector<64x64xf32>
    %477 = arith.subf %467, %476 : vector<64x64xf32>
    %478 = arith.mulf %477, %477 : vector<64x64xf32>
    %cst_315 = arith.constant dense<0.000000e+00> : vector<64xf32>
    %479 = vector.multi_reduction <add>, %478, %cst_315 [1] : vector<64x64xf32> to vector<64xf32>
    %480 = vector.shape_cast %479 : vector<64xf32> to vector<64x1xf32>
    %cst_316 = arith.constant 6.400000e+01 : f32
    %481 = vector.broadcast %cst_316 : f32 to vector<64x1xf32>
    %482 = arith.divf %480, %481 : vector<64x1xf32>
    %cst_317 = arith.constant 9.99999974E-6 : f32
    %483 = vector.broadcast %cst_317 : f32 to vector<64x1xf32>
    %484 = arith.addf %482, %483 : vector<64x1xf32>
    %485 = math.rsqrt %484 : vector<64x1xf32>
    %486 = vector.broadcast %485 : vector<64x1xf32> to vector<64x64xf32>
    %487 = arith.mulf %477, %486 : vector<64x64xf32>
    %488 = vector.broadcast %469 : vector<1x64xf32> to vector<64x64xf32>
    %489 = arith.mulf %487, %488 : vector<64x64xf32>
    %490 = vector.broadcast %471 : vector<1x64xf32> to vector<64x64xf32>
    %491 = arith.addf %489, %490 : vector<64x64xf32>
    %492 = vector.extract_strided_slice %491 {offsets = [56, 0], sizes = [8, 64], strides = [1, 1]} : vector<64x64xf32> to vector<8x64xf32>
    %c0_318 = arith.constant 0 : index
    %c0_319 = arith.constant 0 : index
    %493 = vector.load %arg19[%c0_318, %c0_319] : memref<64x32xf32, #tpu.memory_space<vmem>>, vector<64x32xf32>
    %cst_320 = arith.constant dense<0.000000e+00> : vector<8x32xf32>
    %494 = tpu.matmul %492, %493, %cst_320 {dimension_numbers = #tpu.dot_dimension_numbers<[1], [0], [0], [1], [0, 0, 1, 1], [], []>} : vector<8x64xf32>, vector<64x32xf32>, vector<8x32xf32> -> vector<8x32xf32>
    %c0_321 = arith.constant 0 : index
    %c0_322 = arith.constant 0 : index
    %495 = vector.load %arg20[%c0_321, %c0_322] : memref<1x32xf32, #tpu.memory_space<vmem>>, vector<1x32xf32>
    %496 = vector.broadcast %495 : vector<1x32xf32> to vector<8x32xf32>
    %497 = arith.addf %494, %496 : vector<8x32xf32>
    %c0_323 = arith.constant 0 : index
    %c0_324 = arith.constant 0 : index
    %498 = vector.load %arg21[%c0_323, %c0_324] : memref<8x32xf32, #tpu.memory_space<vmem>>, vector<8x32xf32>
    tpu.vector_store %arg21[%c0_323, %c0_324], %497 {strides = array<i32>} : memref<8x32xf32, #tpu.memory_space<vmem>>, vector<8x32xf32>,
    return
  }
}

</mosaic_0001>

<bundles_post_ra>
// kernel: transformer_forward.1
= control target key start
LH: loop header
LB: loop body
LE: loop exit
PB: predicated region body
PF: predicated region fallthrough
CT: control target
= control target key end

     0   :  { %s22555_s0 = inlined_call_operand.vmem [shape: s32[64,1], index: 0, kind: input, shape index: {}]   ;;  %s22556_s1 = inlined_call_operand.vmem [shape: f32[32,64], index: 1, kind: input, shape index: {}]   ;;  %s22557_s2 = inlined_call_operand.vmem [shape: f32[64,64], index: 2, kind: input, shape index: {}]   ;;  %s22558_s3 = inlined_call_operand.vmem [shape: f32[8,64,16], index: 3, kind: input, shape index: {}]   ;;  %s22559_s4 = inlined_call_operand.vmem [shape: f32[8,1,16], index: 4, kind: input, shape index: {}]   ;;  %s22560_s5 = inlined_call_operand.vmem [shape: f32[8,64,16], index: 5, kind: input, shape index: {}]   ;;  %s22561_s6 = inlined_call_operand.vmem [shape: f32[8,1,16], index: 6, kind: input, shape index: {}]   ;;  %s22562_s7 = inlined_call_operand.vmem [shape: f32[8,64,16], index: 7, kind: input, shape index: {}]   ;;  %s22563_s8 = inlined_call_operand.vmem [shape: f32[8,1,16], index: 8, kind: input, shape index: {}]   ;;  %s22564_s9 = inlined_call_operand.vmem [shape: f32[8,16,64], index: 9, kind: input, shape index: {}]   ;;  %s22565_s10 = inlined_call_operand.vmem [shape: f32[2,1,64], index: 10, kind: input, shape index: {}]   ;;  %s22566_s11 = inlined_call_operand.vmem [shape: f32[2,1,64], index: 11, kind: input, shape index: {}]   ;;  %s22567_s12 = inlined_call_operand.vmem [shape: f32[2,1,64], index: 12, kind: input, shape index: {}]   ;;  %s22568_s13 = inlined_call_operand.vmem [shape: f32[2,64,256], index: 13, kind: input, shape index: {}]   ;;  %s22569_s14 = inlined_call_operand.vmem [shape: f32[2,1,256], index: 14, kind: input, shape index: {}]   ;;  %s22570_s15 = inlined_call_operand.vmem [shape: f32[2,256,64], index: 15, kind: input, shape index: {}]   ;;  %s22571_s16 = inlined_call_operand.vmem [shape: f32[2,1,64], index: 16, kind: input, shape index: {}]   ;;  %s22572_s17 = inlined_call_operand.vmem [shape: f32[2,1,64], index: 17, kind: input, shape index: {}]   ;;  %s22573_s18 = inlined_call_operand.vmem [shape: f32[2,1,64], index: 18, kind: input, shape index: {}]   ;;  %s22574_s19 = inlined_call_operand.vmem [shape: f32[64,32], index: 19, kind: input, shape index: {}]   ;;  %s22575_s20 = inlined_call_operand.vmem [shape: f32[1,32], index: 20, kind: input, shape index: {}]   ;;  %s22576_s21 = inlined_call_operand.hbm [shape: f32[8,32], index: 21, kind: output, shape index: {}]  }
   0x1   :  { %22583 = sst [smem:[#allocation5_spill]] %s22555_s0 }
   0x2   :  { %22584 = sst [smem:[#allocation6_spill]] %s22556_s1 }
   0x3   :  { %22585 = sst [smem:[#allocation7_spill]] %s22557_s2 }
   0x4   :  { %22586 = sst [smem:[#allocation8_spill]] %s22558_s3 }
   0x5   :  { %22587 = sst [smem:[#allocation9_spill]] %s22559_s4 }
   0x6   :  { %22588 = sst [smem:[#allocation10_spill]] %s22560_s5 }
   0x7   :  { %s22589_s26 = sld [smem:[#allocation5_spill]]  ;;  %v19350_v2 = vmov 0  }
   0x8   :  { %19020 = vset.pattern.permute.xlu1 %v19350_v2  ;;  %19019 = vset.pattern.permute.xlu0 %v19350_v2  ;;  %s22590_s0 = sld [smem:[#allocation6_spill]] }
   0xd   :  { %v71_v0 = vld [vmem:[%s22589_s26 + $0x10] sm:$0xff]  ;;  %v69_v1 = vld [vmem:[%s22589_s26] sm:$0xff]  ;;  %v72_v4 = vld [vmem:[%s22589_s26 + $0x18] sm:$0xff] }
   0xe   :  { %86 = vperm.xlu1 %19020, %v71_v0   ;;  %80 = vperm.xlu0 %19019, %v69_v1   ;;  %v130_v3 = vld [vmem:[%s22590_s0 + $0x18] sm:$0xff]  ;;  %v70_v5 = vld [vmem:[%s22589_s26 + $0x8] sm:$0xff]  ;;  %v129_v6 = vld [vmem:[%s22590_s0 + $0x10] sm:$0xff] }
   0xf   :  { %17520 = vmatprep.subr.mxu0 %v130_v3 }
  0x10   :  { %17521 = vmatpush3.msra.mxu0 %v130_v3 }
  0x11   :  { %26 = vsyncpa [#allocation3], 0  ;;  %17522 = vmatprep.subr.mxu0 %v129_v6  ;;  %v128_v7 = vld [vmem:[%s22590_s0 + $0x8] sm:$0xff]  ;;  %v73_v9 = vld [vmem:[%s22589_s26 + $0x20] sm:$0xff]  ;;  %s22591_s2 = sld [smem:[#allocation8_spill]]  ;;  %v77_v19 = vlaneseq  ;;  %vm139_vm0 = vcmask 261120  }
  0x12   :  { %89 = vperm.xlu1 %19020, %v72_v4   ;;  %83 = vperm.xlu0 %19019, %v70_v5   ;;  %v74_v8 = vld [vmem:[%s22589_s26 + $0x28] sm:$0xff]  ;;  %v127_v10 = vld [vmem:[%s22590_s0] sm:$0xff]  ;;  %v76_v11 = vld [vmem:[%s22589_s26 + $0x38] sm:$0xff]  ;;  %s22592_s27 = sld [smem:[#allocation10_spill]]  ;;  %v19351_v23 = vmov 0.0   ;;  %vm285_vm9 = vcmask 523264  }
  0x13   :  { %17523 = vmatpush3.msra.mxu0 %v129_v6  ;;  %v75_v12 = vld [vmem:[%s22589_s26 + $0x30] sm:$0xff]  ;;  %v78_v20 = vand.u32 127, %v77_v19  ;;  %v542_v48 = vld [vmem:[%s22562_s7 + $0x38] sm:$0xff]  ;;  %s22593_s5 = sld [smem:[#allocation7_spill]]  ;;  %v540_v0 = vld [vmem:[%s22562_s7 + $0x28] sm:$0xff]  ;;  %vm19352_vm10 = vmmov 0  }
  0x14   :  { %17524 = vmatprep.subr.mxu0 %v128_v7  ;;  %v541_v57 = vld [vmem:[%s22562_s7 + $0x30] sm:$0xff]  ;;  %v539_v3 = vld [vmem:[%s22562_s7 + $0x20] sm:$0xff]  ;;  %s22594_s25 = sld [smem:[#allocation9_spill]]  ;;  %vm663_vm11 = vcmask 130048   ;;  %vm1272_vm12 = vcmask 64512   ;;  %s19353_s22 = smov [#allocation2]  }
  0x15   :  { %17525 = vmatpush3.msra.mxu0 %v128_v7  ;;  %s15883_s23 = sshll.u32 %s19353_s22, 4  ;;  %s15884_s23 = int_to_ptr.vmem [resolvable:$true] %s15883_s23 }
  0x16   :  { %95 = vperm.xlu1 %19020, %v74_v8   ;;  %92 = vperm.xlu0 %19019, %v73_v9   ;;  %v538_v9 = vld [vmem:[%s22562_s7 + $0x18] sm:$0xff]  ;;  %p19333_p1 = scmp.lt.s32.totalorder %s15884_s23, %s15884_s23 }
  0x17   :  { %17526 = vmatprep.subr.mxu0 %v127_v10  ;;  %v277_v13 = vld [vmem:[%s22591_s2 + $0x38] sm:$0xff]  ;;  %v276_v15 = vld [vmem:[%s22591_s2 + $0x30] sm:$0xff]  ;;  %v275_v16 = vld [vmem:[%s22591_s2 + $0x28] sm:$0xff] }
  0x18   :  { %17527 = vmatpush3.msra.mxu0 %v127_v10  ;;  %v422_v14 = vld [vmem:[%s22592_s27 + $0x38] sm:$0xff]  ;;  %17540 = vmatprep.subr.mxu1 %v277_v13  ;;  %v274_v17 = vld [vmem:[%s22591_s2 + $0x20] sm:$0xff]  ;;  %v421_v29 = vld [vmem:[%s22592_s27 + $0x30] sm:$0xff] }
  0x19   :  { %17568 = vmatprep.subr.mxu0 %v422_v14  ;;  %17541 = vmatpush3.msra.mxu1 %v277_v13  ;;  %v273_v18 = vld [vmem:[%s22591_s2 + $0x18] sm:$0xff]  ;;  %v420_v33 = vld [vmem:[%s22592_s27 + $0x28] sm:$0xff]  ;;  %v419_v35 = vld [vmem:[%s22592_s27 + $0x20] sm:$0xff] }
  0x1a   :  { %101 = vperm.xlu1 %19020, %v76_v11   ;;  %98 = vperm.xlu0 %19019, %v75_v12   ;;  %v418_v38 = vld [vmem:[%s22592_s27 + $0x18] sm:$0xff]  ;;  %v272_v42 = vld [vmem:[%s22591_s2 + $0x10] sm:$0xff]  ;;  %v271_v44 = vld [vmem:[%s22591_s2 + $0x8] sm:$0xff] }
  0x1b   :  { %17542 = vmatprep.subr.mxu1 %v276_v15  ;;  %v417_v43 = vld [vmem:[%s22592_s27 + $0x10] sm:$0xff]  ;;  %v416_v45 = vld [vmem:[%s22592_s27 + $0x8] sm:$0xff]  ;;  %v270_v46 = vld [vmem:[%s22591_s2] sm:$0xff] }
  0x1c   :  { %17543 = vmatpush3.msra.mxu1 %v276_v15  ;;  %v415_v47 = vld [vmem:[%s22592_s27] sm:$0xff]  ;;  %v132_v51 = vld [vmem:[%s22593_s5 + $0x8] sm:$0xff]  ;;  %v133_v56 = vld [vmem:[%s22593_s5 + $0x10] sm:$0xff] }
  0x1d   :  { %17544 = vmatprep.subr.mxu1 %v275_v16  ;;  %v131_v50 = vld [vmem:[%s22593_s5] sm:$0xff]  ;;  %v134_v58 = vld [vmem:[%s22593_s5 + $0x18] sm:$0xff]  ;;  %v136_v4 = vld [vmem:[%s22593_s5 + $0x28] sm:$0xff] }
  0x1e   :  { %17545 = vmatpush3.msra.mxu1 %v275_v16  ;;  %v135_v62 = vld [vmem:[%s22593_s5 + $0x20] sm:$0xff]  ;;  %v137_v7 = vld [vmem:[%s22593_s5 + $0x30] sm:$0xff]  ;;  %v138_v12 = vld [vmem:[%s22593_s5 + $0x38] sm:$0xff] }
  0x1f   :  { %17546 = vmatprep.subr.mxu1 %v274_v17  ;;  %v537_v11 = vld [vmem:[%s22562_s7 + $0x10] sm:$0xff]  ;;  %v535_v15 = vld [vmem:[%s22562_s7] sm:$0xff] }
  0x20   :  { %17547 = vmatpush3.msra.mxu1 %v274_v17 }
  0x21   :  { %17548 = vmatprep.subr.mxu1 %v273_v18 }
  0x22   :  { %17549 = vmatpush3.msra.mxu1 %v273_v18  ;;  %v15907_v18 = vld [vmem:[%s22594_s25] ss:$0 sm:$0xff] }
  0x23   :  { %17550 = vmatprep.subr.mxu1 %v272_v42 }
  0x24   :  { %17551 = vmatpush3.msra.mxu1 %v272_v42 }
  0x25   :  { %17552 = vmatprep.subr.mxu1 %v271_v44 }
  0x26   :  { %17553 = vmatpush3.msra.mxu1 %v271_v44 }
  0x27   :  { %17554 = vmatprep.subr.mxu1 %v270_v46 }
  0x28   :  { %17555 = vmatpush3.msra.mxu1 %v270_v46 }
  0x29   :  { %18999 = vmatprep.subr.mxu1 %v542_v48 }
  0x89   :  { %v87_v21 = vpop.permute.xlu1 %86  ;;  %v81_v22 = vpop.permute.xlu0 %80 }
  0x8a   :  { %vm103_vm1 = vcmp.eq.s32.totalorder %v78_v20, %v81_v22  ;;  %vm105_vm2 = vcmp.eq.s32.totalorder %v78_v20, %v87_v21 }
  0x8b   :  { %v15891_v24 = vsel %vm103_vm1, 1.0, %v19351_v23  ;;  %v15893_v27 = vsel %vm105_vm2, 1.0, %v19351_v23 }
  0x8c   :  { %17528 = vmatprep.mubr.msk.f32.mxu0 %vm139_vm0, %v15891_v24 }
  0x8d   :  { %v90_v25 = vpop.permute.xlu1 %89  ;;  %v84_v26 = vpop.permute.xlu0 %83 }
  0x8e   :  { %vm106_vm3 = vcmp.eq.s32.totalorder %v78_v20, %v90_v25  ;;  %vm104_vm4 = vcmp.eq.s32.totalorder %v78_v20, %v84_v26 }
  0x8f   :  { %v15892_v28 = vsel %vm104_vm4, 1.0, %v19351_v23  ;;  %v15894_v30 = vsel %vm106_vm3, 1.0, %v19351_v23 }
  0x90   :  { %17529 = vmatmul.mubr.msk.f32.vlgmr.msra.gmra.mxu0 %vm139_vm0, %v15892_v28 }
  0x91   :  { %v96_v31 = vpop.permute.xlu1 %95  ;;  %v93_v32 = vpop.permute.xlu0 %92  ;;  %17531 = vmatprep.mubr.msk.f32.mxu0 %vm139_vm0, %v15893_v27  ;;  %17569 = vmatpush3.msra.mxu0 %v422_v14  ;;  %v536_v14 = vld [vmem:[%s22562_s7 + $0x8] sm:$0xff] }
  0x92   :  { %vm107_vm5 = vcmp.eq.s32.totalorder %v78_v20, %v93_v32  ;;  %17570 = vmatprep.subr.mxu0 %v421_v29  ;;  %vm108_vm6 = vcmp.eq.s32.totalorder %v78_v20, %v96_v31 }
  0x93   :  { %v15895_v34 = vsel %vm107_vm5, 1.0, %v19351_v23  ;;  %17571 = vmatpush3.msra.mxu0 %v421_v29  ;;  %v15896_v39 = vsel %vm108_vm6, 1.0, %v19351_v23 }
  0x94   :  { %17532 = vmatmul.mubr.msk.f32.gmra.mxu0 %vm139_vm0, %v15894_v30  ;;  %17572 = vmatprep.subr.mxu0 %v420_v33 }
  0x95   :  { %v102_v36 = vpop.permute.xlu1 %101  ;;  %17534 = vmatprep.mubr.msk.f32.mxu0 %vm139_vm0, %v15895_v34  ;;  %v99_v37 = vpop.permute.xlu0 %98  ;;  %17573 = vmatpush3.msra.mxu0 %v420_v33 }
  0x96   :  { %vm109_vm7 = vcmp.eq.s32.totalorder %v78_v20, %v99_v37  ;;  %17574 = vmatprep.subr.mxu0 %v419_v35  ;;  %vm110_vm8 = vcmp.eq.s32.totalorder %v78_v20, %v102_v36  ;;  %v15916_v20 = vld [vmem:[%s22561_s6] ss:$0 sm:$0xff] }
  0x97   :  { %v15897_v40 = vsel %vm109_vm7, 1.0, %v19351_v23  ;;  %17575 = vmatpush3.msra.mxu0 %v419_v35  ;;  %v15898_v41 = vsel %vm110_vm8, 1.0, %v19351_v23 }
  0x98   :  { %17535 = vmatmul.mubr.msk.f32.gmra.mxu0 %vm139_vm0, %v15896_v39  ;;  %17576 = vmatprep.subr.mxu0 %v418_v38 }
  0x99   :  { %17537 = vmatprep.mubr.msk.f32.mxu0 %vm139_vm0, %v15897_v40  ;;  %17577 = vmatpush3.msra.mxu0 %v418_v38 }
  0x9a   :  { %17578 = vmatprep.subr.mxu0 %v417_v43 }
  0x9b   :  { %17579 = vmatpush3.msra.mxu0 %v417_v43 }
  0x9c   :  { %17538 = vmatmul.mubr.msk.f32.gmra.mxu0 %vm139_vm0, %v15898_v41  ;;  %17580 = vmatprep.subr.mxu0 %v416_v45 }
  0x9d   :  { %17581 = vmatpush3.msra.mxu0 %v416_v45 }
  0x9e   :  { %17582 = vmatprep.subr.mxu0 %v415_v47 }
  0x9f   :  { %17583 = vmatpush3.msra.mxu0 %v415_v47 }
  0xa0   :  { %17596 = vmatprep.subr.mxu0 %v542_v48 }
 0x150   :  { %v17530_v49 = vpop.f32.mrf.mxu0 }
 0x151   :  { %v19576_v54 = vadd.f32 %v17530_v49, %v132_v51 }
 0x152   :  { %v230_v52 = vpop.f32.mrf.mxu0 }
 0x153   :  { %v19574_v53 = vadd.f32 %v230_v52, %v131_v50 }
 0x154   :  { %v17533_v55 = vpop.f32.mrf.mxu0 }
 0x155   :  { %17556 = vmatprep.mubr.msk.f32.mxu1 %vm285_vm9, %v19574_v53  ;;  %17584 = vmatprep.mubr.msk.f32.mxu0 %vm285_vm9, %v19574_v53  ;;  %v19600_v63 = vadd.f32 %v17533_v55, %v134_v58 }
 0x156   :  { %v240_v59 = vpop.f32.mrf.mxu0  ;;  %17557 = vmatmul.mubr.msk.f32.vlgmr.msra.gmra.mxu1 %vm285_vm9, %v19576_v54  ;;  %17585 = vmatmul.mubr.msk.f32.vlgmr.msra.gmra.mxu0 %vm285_vm9, %v19576_v54 }
 0x157   :  { %v19595_v60 = vadd.f32 %v240_v59, %v133_v56  ;;  %17597 = vmatpush3.msra.mxu0 %v542_v48  ;;  %19007 = vmatpush3.msra.mxu1 %v542_v48 }
 0x158   :  { %v17536_v61 = vpop.f32.mrf.mxu0  ;;  %17598 = vmatprep.subr.mxu0 %v541_v57  ;;  %19000 = vmatprep.subr.mxu1 %v541_v57 }
 0x159   :  { %17559 = vmatprep.mubr.msk.f32.mxu1 %vm285_vm9, %v19595_v60  ;;  %17587 = vmatprep.mubr.msk.f32.mxu0 %vm285_vm9, %v19595_v60  ;;  %v19624_v8 = vadd.f32 %v17536_v61, %v136_v4 }
 0x15a   :  { %17599 = vmatpush3.msra.mxu0 %v541_v57  ;;  %19008 = vmatpush3.msra.mxu1 %v541_v57  ;;  %v250_v1 = vpop.f32.mrf.mxu0 }
 0x15b   :  { %v19609_v2 = vadd.f32 %v250_v1, %v135_v62  ;;  %17560 = vmatmul.mubr.msk.f32.gmra.mxu1 %vm285_vm9, %v19600_v63  ;;  %17588 = vmatmul.mubr.msk.f32.gmra.mxu0 %vm285_vm9, %v19600_v63  ;;  %v19721_v62 = vld [vmem:[%s22563_s8] ss:$0 sm:$0xff] }
 0x15c   :  { %17600 = vmatprep.subr.mxu0 %v540_v0  ;;  %19001 = vmatprep.subr.mxu1 %v540_v0  ;;  %v17539_v5 = vpop.f32.mrf.mxu0 }
 0x15d   :  { %17601 = vmatpush3.msra.mxu0 %v540_v0  ;;  %19009 = vmatpush3.msra.mxu1 %v540_v0  ;;  %v19645_v13 = vadd.f32 %v17539_v5, %v138_v12 }
 0x15e   :  { %17602 = vmatprep.subr.mxu0 %v539_v3  ;;  %19002 = vmatprep.subr.mxu1 %v539_v3  ;;  %v260_v6 = vpop.f32.mrf.mxu0 }
 0x15f   :  { %17562 = vmatprep.mubr.msk.f32.mxu1 %vm285_vm9, %v19609_v2  ;;  %17590 = vmatprep.mubr.msk.f32.mxu0 %vm285_vm9, %v19609_v2  ;;  %v19633_v10 = vadd.f32 %v260_v6, %v137_v7 }
 0x160   :  { %17603 = vmatpush3.msra.mxu0 %v539_v3  ;;  %19010 = vmatpush3.msra.mxu1 %v539_v3 }
 0x161   :  { %17563 = vmatmul.mubr.msk.f32.gmra.mxu1 %vm285_vm9, %v19624_v8  ;;  %17591 = vmatmul.mubr.msk.f32.gmra.mxu0 %vm285_vm9, %v19624_v8 }
 0x162   :  { %17604 = vmatprep.subr.mxu0 %v538_v9  ;;  %19003 = vmatprep.subr.mxu1 %v538_v9 }
 0x163   :  { %17605 = vmatpush3.msra.mxu0 %v538_v9  ;;  %19011 = vmatpush3.msra.mxu1 %v538_v9 }
 0x164   :  { %17606 = vmatprep.subr.mxu0 %v537_v11  ;;  %19004 = vmatprep.subr.mxu1 %v537_v11 }
 0x165   :  { %17565 = vmatprep.mubr.msk.f32.mxu1 %vm285_vm9, %v19633_v10  ;;  %17593 = vmatprep.mubr.msk.f32.mxu0 %vm285_vm9, %v19633_v10 }
 0x166   :  { %17607 = vmatpush3.msra.mxu0 %v537_v11  ;;  %19012 = vmatpush3.msra.mxu1 %v537_v11 }
 0x167   :  { %17566 = vmatmul.mubr.msk.f32.gmra.mxu1 %vm285_vm9, %v19645_v13  ;;  %17594 = vmatmul.mubr.msk.f32.gmra.mxu0 %vm285_vm9, %v19645_v13 }
 0x168   :  { %17608 = vmatprep.subr.mxu0 %v536_v14  ;;  %19005 = vmatprep.subr.mxu1 %v536_v14 }
 0x169   :  { %17609 = vmatpush3.msra.mxu0 %v536_v14  ;;  %19013 = vmatpush3.msra.mxu1 %v536_v14 }
 0x16a   :  { %17612 = vmatprep.mubr.msk.f32.mxu0 %vm285_vm9, %v19574_v53  ;;  %17615 = vmatprep.mubr.msk.f32.mxu1 %vm285_vm9, %v19595_v60 }
 0x16b   :  { %17610 = vmatprep.subr.mxu0 %v535_v15  ;;  %19006 = vmatprep.subr.mxu1 %v535_v15 }
 0x16c   :  { %17611 = vmatpush3.msra.mxu0 %v535_v15  ;;  %19014 = vmatpush3.msra.mxu1 %v535_v15 }
 0x16d   :  { %17613 = vmatmul.mubr.msk.f32.vlgmr.msra.gmra.mxu0 %vm285_vm9, %v19576_v54  ;;  %17616 = vmatmul.mubr.msk.f32.vlgmr.msra.gmra.mxu1 %vm285_vm9, %v19600_v63 }
 0x16e   :  { %17618 = vmatprep.mubr.msk.f32.mxu1 %vm285_vm9, %v19609_v2  ;;  %17624 = vmatprep.subr.mxu0 %v19351_v23 }
 0x16f   :  { %17639 = vmatprep.subr.mxu1 %v19351_v23  ;;  %17626 = vmatprep.mubr.msk.f32.mxu0 %vm19352_vm10, %v19351_v23 }
 0x171   :  { %17619 = vmatmul.mubr.msk.f32.gmra.mxu1 %vm285_vm9, %v19624_v8 }
 0x172   :  { %17621 = vmatprep.mubr.msk.f32.mxu1 %vm285_vm9, %v19633_v10 }
 0x175   :  { %17622 = vmatmul.mubr.msk.f32.gmra.mxu1 %vm285_vm9, %v19645_v13 }
 0x176   :  { %17641 = vmatprep.mubr.msk.f32.mxu1 %vm19352_vm10, %v19351_v23 }
 0x216   :  { %v17558_v16 = vpop.f32.mrf.mxu1  ;;  %v17586_v17 = vpop.f32.mrf.mxu0 }
 0x217   :  { %v382_v29 = vadd.f32 %v17558_v16, %v15907_v18  ;;  %v502_v32 = vadd.f32 %v17586_v17, %v15916_v20 }
 0x218   :  { %v376_v21 = vpop.f32.mrf.mxu1  ;;  %v496_v22 = vpop.f32.mrf.mxu0 }
 0x219   :  { %v377_v24 = vadd.f32 %v15907_v18, %v376_v21  ;;  %v497_v25 = vadd.f32 %v15916_v20, %v496_v22  ;;  %v656_v36 = vmul.f32 0.25, %v382_v29 }
 0x21b   :  { %v655_v26 = vmul.f32 0.25, %v377_v24  ;;  %v17561_v27 = vpop.f32.mrf.mxu1  ;;  %v17589_v28 = vpop.f32.mrf.mxu0  ;;  %17625 = vmatpush3.xpose.msk.msra.mxu0 %vm663_vm11, %v497_v25 }
 0x21c   :  { %v392_v30 = vadd.f32 %v17561_v27, %v15907_v18  ;;  %v512_v31 = vadd.f32 %v17589_v28, %v15916_v20  ;;  %17629 = vmatprep.subr.mxu0 %v19351_v23 }
 0x21d   :  { %v386_v33 = vpop.f32.mrf.mxu1  ;;  %v506_v34 = vpop.f32.mrf.mxu0 }
 0x21e   :  { %v658_v35 = vmul.f32 0.25, %v392_v30  ;;  %17640 = vmatpush3.xpose.msk.msra.mxu1 %vm663_vm11, %v512_v31  ;;  %17627 = vmatmul.mubr.msk.f32.vlgmr.msra.gmra.mxu0 %vm663_vm11, %v655_v26  ;;  %v387_v37 = vadd.f32 %v15907_v18, %v386_v33  ;;  %v507_v38 = vadd.f32 %v15916_v20, %v506_v34 }
 0x21f   :  { %17630 = vmatpush3.xpose.msk.msra.mxu0 %vm663_vm11, %v502_v32  ;;  %17649 = vmatprep.subr.mxu1 %v19351_v23 }
 0x220   :  { %17631 = vmatprep.mubr.msk.f32.mxu0 %vm19352_vm10, %v19351_v23  ;;  %17634 = vmatprep.subr.mxu0 %v19351_v23  ;;  %v657_v45 = vmul.f32 0.25, %v387_v37 }
 0x221   :  { %v17564_v39 = vpop.f32.mrf.mxu1  ;;  %v17592_v40 = vpop.f32.mrf.mxu0  ;;  %17642 = vmatmul.mubr.msk.f32.vlgmr.msra.gmra.mxu1 %vm663_vm11, %v658_v35 }
 0x222   :  { %v402_v41 = vadd.f32 %v17564_v39, %v15907_v18  ;;  %v522_v42 = vadd.f32 %v17592_v40, %v15916_v20  ;;  %17632 = vmatmul.mubr.msk.f32.vlgmr.msra.gmra.mxu0 %vm663_vm11, %v656_v36  ;;  %17651 = vmatprep.mubr.msk.f32.mxu1 %vm19352_vm10, %v19351_v23 }
 0x223   :  { %v396_v43 = vpop.f32.mrf.mxu1  ;;  %v516_v44 = vpop.f32.mrf.mxu0  ;;  %17635 = vmatpush3.xpose.msk.msra.mxu0 %vm663_vm11, %v507_v38  ;;  %17636 = vmatprep.mubr.msk.f32.mxu0 %vm19352_vm10, %v19351_v23 }
 0x224   :  { %v660_v46 = vmul.f32 0.25, %v402_v41  ;;  %v397_v47 = vadd.f32 %v15907_v18, %v396_v43  ;;  %17650 = vmatpush3.xpose.msk.msra.mxu1 %vm663_vm11, %v522_v42  ;;  %17644 = vmatprep.subr.mxu0 %v19351_v23  ;;  %v517_v48 = vadd.f32 %v15916_v20, %v516_v44 }
 0x225   :  { %17659 = vmatprep.subr.mxu1 %v19351_v23 }
 0x226   :  { %17637 = vmatmul.mubr.msk.f32.vlgmr.msra.gmra.mxu0 %vm663_vm11, %v657_v45  ;;  %v659_v51 = vmul.f32 0.25, %v397_v47 }
 0x227   :  { %v17567_v49 = vpop.f32.mrf.mxu1  ;;  %v17595_v50 = vpop.f32.mrf.mxu0  ;;  %17652 = vmatmul.mubr.msk.f32.vlgmr.msra.gmra.mxu1 %vm663_vm11, %v660_v46  ;;  %17645 = vmatpush3.xpose.msk.msra.mxu0 %vm663_vm11, %v517_v48 }
 0x228   :  { %v412_v52 = vadd.f32 %v17567_v49, %v15907_v18  ;;  %v532_v55 = vadd.f32 %v17595_v50, %v15916_v20  ;;  %17661 = vmatprep.mubr.msk.f32.mxu1 %vm19352_vm10, %v19351_v23  ;;  %17646 = vmatprep.mubr.msk.f32.mxu0 %vm19352_vm10, %v19351_v23 }
 0x229   :  { %v406_v56 = vpop.f32.mrf.mxu1  ;;  %v526_v57 = vpop.f32.mrf.mxu0  ;;  %17654 = vmatprep.subr.mxu0 %v19351_v23 }
 0x22a   :  { %v662_v58 = vmul.f32 0.25, %v412_v52  ;;  %v407_v59 = vadd.f32 %v15907_v18, %v406_v56  ;;  %v527_v61 = vadd.f32 %v15916_v20, %v526_v57  ;;  %17660 = vmatpush3.xpose.msk.msra.mxu1 %vm663_vm11, %v532_v55  ;;  %17647 = vmatmul.mubr.msk.f32.vlgmr.msra.gmra.mxu0 %vm663_vm11, %v659_v51 }
 0x22b   :  { %17669 = vmatprep.subr.mxu1 %v19351_v23  ;;  %17656 = vmatprep.mubr.msk.f32.mxu0 %vm19352_vm10, %v19351_v23 }
 0x22c   :  { %17655 = vmatpush3.xpose.msk.msra.mxu0 %vm663_vm11, %v527_v61  ;;  %v661_v0 = vmul.f32 0.25, %v407_v59 }
 0x22d   :  { %v17614_v1 = vpop.f32.mrf.mxu0  ;;  %v17617_v3 = vpop.f32.mrf.mxu1  ;;  %17662 = vmatmul.mubr.msk.f32.vlgmr.msra.gmra.mxu1 %vm663_vm11, %v662_v58  ;;  %17664 = vmatprep.subr.mxu0 %v19351_v23 }
 0x22e   :  { %v622_v4 = vadd.f32 %v17614_v1, %v19721_v62  ;;  %v19731_v5 = vadd.f32 %v17617_v3, %v19721_v62  ;;  %17671 = vmatprep.mubr.msk.f32.mxu1 %vm19352_vm10, %v19351_v23 }
 0x22f   :  { %v616_v6 = vpop.f32.mrf.mxu0  ;;  %v19735_v7 = vpop.f32.mrf.mxu1  ;;  %17657 = vmatmul.mubr.msk.f32.vlgmr.msra.gmra.mxu0 %vm663_vm11, %v661_v0 }
 0x230   :  { %v617_v9 = vadd.f32 %v19721_v62, %v616_v6  ;;  %17670 = vmatpush3.msra.mxu1 %v622_v4  ;;  %17666 = vmatprep.mubr.msk.f32.mxu0 %vm19352_vm10, %v19351_v23 }
 0x231   :  { %v17620_v11 = vpop.f32.mrf.mxu1  ;;  %17679 = vmatprep.subr.mxu1 %v19351_v23 }
 0x232   :  { %v19743_v12 = vadd.f32 %v17620_v11, %v19721_v62  ;;  %17665 = vmatpush3.msra.mxu0 %v617_v9 }
 0x233   :  { %v19745_v14 = vpop.f32.mrf.mxu1  ;;  %17674 = vmatprep.subr.mxu0 %v19351_v23 }
 0x235   :  { %v17623_v15 = vpop.f32.mrf.mxu1 }
 0x236   :  { %v19749_v16 = vadd.f32 %v17623_v15, %v19721_v62 }
 0x237   :  { %v19751_v18 = vpop.f32.mrf.mxu1 }
 0x2de   :  { %v736_v17 = vpop.f32.mrf.mxu0 }
 0x2df   :  { %v1273_v20 = vsel %vm1272_vm12, %v736_v17, -inf }
 0x2e0   :  { %1274 = vmax.xlane.f32.xlu0 %v1273_v20  ;;  %v17628_v21 = vpop.f32.mrf.mxu0 }
 0x2e1   :  { %v964_v22 = vpop.f32.mrf.mxu1 }
 0x2e2   :  { %v812_v24 = vpop.f32.mrf.mxu0  ;;  %v1282_v35 = vsel %vm1272_vm12, %v964_v22, -inf }
 0x2e3   :  { %v17643_v25 = vpop.f32.mrf.mxu1  ;;  %v1276_v26 = vsel %vm1272_vm12, %v812_v24, -inf }
 0x2e4   :  { %1277 = vmax.xlane.f32.xlu1 %v1276_v26  ;;  %v17633_v27 = vpop.f32.mrf.mxu0 }
 0x2e6   :  { %v888_v28 = vpop.f32.mrf.mxu0 }
 0x2e7   :  { %v1116_v29 = vpop.f32.mrf.mxu1  ;;  %v1279_v30 = vsel %vm1272_vm12, %v888_v28, -inf }
 0x2e8   :  { %1280 = vmax.xlane.f32.xlu0 %v1279_v30  ;;  %v17638_v31 = vpop.f32.mrf.mxu0  ;;  %v1288_v40 = vsel %vm1272_vm12, %v1116_v29, -inf }
 0x2e9   :  { %v17653_v32 = vpop.f32.mrf.mxu1 }
 0x2ea   :  { %v1040_v33 = vpop.f32.mrf.mxu0 }
 0x2eb   :  { %v1285_v34 = vsel %vm1272_vm12, %v1040_v33, -inf }
 0x2ec   :  { %1286 = vmax.xlane.f32.xlu1 %v1285_v34  ;;  %v17648_v36 = vpop.f32.mrf.mxu0  ;;  %1283 = vmax.xlane.f32.xlu0 %v1282_v35 }
 0x2ed   :  { %v1268_v37 = vpop.f32.mrf.mxu1 }
 0x2ee   :  { %v1294_v43 = vsel %vm1272_vm12, %v1268_v37, -inf }
 0x2ef   :  { %v17663_v38 = vpop.f32.mrf.mxu1  ;;  %v1192_v39 = vpop.f32.mrf.mxu0 }
 0x2f0   :  { %1289 = vmax.xlane.f32.xlu0 %v1288_v40  ;;  %v1291_v41 = vsel %vm1272_vm12, %v1192_v39, -inf }
 0x2f1   :  { %1292 = vmax.xlane.f32.xlu1 %v1291_v41  ;;  %v17658_v42 = vpop.f32.mrf.mxu0 }
 0x2f4   :  { %1295 = vmax.xlane.f32.xlu0 %v1294_v43 }
 0x369   :  { %v1275_v44 = vpop.xlane.xlu0 %1274 }
 0x36a   :  { %v1297_v45 = vsub.f32 %v736_v17, %v1275_v44  ;;  %v627_v44 = vadd.f32 %v19721_v62, %v19735_v7 }
 0x36c   :  { %v1305_v46 = vmul.f32 1.442695, %v1297_v45 }
 0x36d   :  { %v1278_v47 = vpop.xlane.xlu1 %1277 }
 0x36e   :  { %19021 = vpow2.f32 %v1305_v46  ;;  %v1298_v48 = vsub.f32 %v812_v24, %v1278_v47 }
 0x370   :  { %v1307_v49 = vmul.f32 1.442695, %v1298_v48 }
 0x371   :  { %v1281_v50 = vpop.xlane.xlu0 %1280 }
 0x372   :  { %19023 = vpow2.f32 %v1307_v49  ;;  %v1299_v51 = vsub.f32 %v888_v28, %v1281_v50 }
 0x374   :  { %v1309_v52 = vmul.f32 1.442695, %v1299_v51  ;;  %v637_v51 = vadd.f32 %v19721_v62, %v19745_v14 }
 0x375   :  { %v1287_v55 = vpop.xlane.xlu1 %1286  ;;  %v1284_v56 = vpop.xlane.xlu0 %1283 }
 0x376   :  { %19025 = vpow2.f32 %v1309_v52  ;;  %v1301_v57 = vsub.f32 %v1040_v33, %v1287_v55  ;;  %v1300_v58 = vsub.f32 %v964_v22, %v1284_v56  ;;  %v647_v56 = vadd.f32 %v19721_v62, %v19751_v18  ;;  %v15974_v18 = vld [vmem:[%s22591_s2 + $0x78] sm:$0xff] }
 0x378   :  { %v1313_v59 = vmul.f32 1.442695, %v1301_v57  ;;  %v1311_v61 = vmul.f32 1.442695, %v1300_v58 }
 0x379   :  { %v1290_v0 = vpop.xlane.xlu0 %1289 }
 0x37a   :  { %19027 = vpow2.f32 %v1313_v59  ;;  %v1302_v1 = vsub.f32 %v1116_v29, %v1290_v0  ;;  %v1293_v3 = vpop.xlane.xlu1 %1292  ;;  %v15973_v0 = vld [vmem:[%s22591_s2 + $0x70] sm:$0xff] }
 0x37b   :  { %v19022_v4 = vpop.eup %19021  ;;  %19029 = vpow2.f32 %v1311_v61  ;;  %v1303_v6 = vsub.f32 %v1192_v39, %v1293_v3  ;;  %v15970_v3 = vld [vmem:[%s22591_s2 + $0x58] sm:$0xff] }
 0x37c   :  { %v1315_v9 = vmul.f32 1.442695, %v1302_v1  ;;  %v1321_v11 = vsel %vm1272_vm12, %v19022_v4, 0.0  ;;  %v15972_v1 = vld [vmem:[%s22591_s2 + $0x68] sm:$0xff] }
 0x37d   :  { %v1317_v15 = vmul.f32 1.442695, %v1303_v6  ;;  %v1296_v17 = vpop.xlane.xlu0 %1295  ;;  %1322 = vadd.xlane.f32.xlu1 %v1321_v11  ;;  %v15968_v6 = vld [vmem:[%s22591_s2 + $0x48] sm:$0xff]  ;;  %v16010_v11 = vld [vmem:[%s22562_s7 + $0x78] sm:$0xff] }
 0x37e   :  { %19031 = vpow2.f32 %v1315_v9  ;;  %v1304_v20 = vsub.f32 %v1268_v37, %v1296_v17  ;;  %v15967_v9 = vld [vmem:[%s22591_s2 + $0x40] sm:$0xff]  ;;  %v16008_v17 = vld [vmem:[%s22562_s7 + $0x68] sm:$0xff] }
 0x37f   :  { %v19024_v21 = vpop.eup %19023  ;;  %19033 = vpow2.f32 %v1317_v15  ;;  %v16009_v15 = vld [vmem:[%s22562_s7 + $0x70] sm:$0xff] }
 0x380   :  { %v1319_v22 = vmul.f32 1.442695, %v1304_v20  ;;  %v1324_v24 = vsel %vm1272_vm12, %v19024_v21, 0.0  ;;  %v16007_v20 = vld [vmem:[%s22562_s7 + $0x60] sm:$0xff] }
 0x381   :  { %1325 = vadd.xlane.f32.xlu0 %v1324_v24  ;;  %v16004_v24 = vld [vmem:[%s22562_s7 + $0x48] sm:$0xff] }
 0x382   :  { %19035 = vpow2.f32 %v1319_v22  ;;  %v16005_v22 = vld [vmem:[%s22562_s7 + $0x50] sm:$0xff] }
 0x383   :  { %v19026_v25 = vpop.eup %19025 }
 0x384   :  { %v1327_v26 = vsel %vm1272_vm12, %v19026_v25, 0.0 }
 0x385   :  { %1328 = vadd.xlane.f32.xlu1 %v1327_v26  ;;  %v1946_v26 = vld [vmem:[%s22564_s9 + $0x8] sm:$0xff] }
 0x387   :  { %v19028_v27 = vpop.eup %19027 }
 0x388   :  { %v19030_v28 = vpop.eup %19029  ;;  %v1333_v29 = vsel %vm1272_vm12, %v19028_v27, 0.0 }
 0x389   :  { %v1330_v30 = vsel %vm1272_vm12, %v19030_v28, 0.0  ;;  %1334 = vadd.xlane.f32.xlu1 %v1333_v29 }
 0x38a   :  { %1331 = vadd.xlane.f32.xlu0 %v1330_v30 }
 0x38b   :  { %v19032_v31 = vpop.eup %19031 }
 0x38c   :  { %v19034_v32 = vpop.eup %19033  ;;  %v1336_v33 = vsel %vm1272_vm12, %v19032_v31, 0.0 }
 0x38d   :  { %v1339_v34 = vsel %vm1272_vm12, %v19034_v32, 0.0 }
 0x38e   :  { %1337 = vadd.xlane.f32.xlu0 %v1336_v33  ;;  %1340 = vadd.xlane.f32.xlu1 %v1339_v34  ;;  %v15990_v34 = vld [vmem:[%s22592_s27 + $0x68] sm:$0xff] }
 0x38f   :  { %v19036_v35 = vpop.eup %19035 }
 0x390   :  { %v1342_v36 = vsel %vm1272_vm12, %v19036_v35, 0.0 }
 0x392   :  { %1343 = vadd.xlane.f32.xlu0 %v1342_v36  ;;  %v15989_v36 = vld [vmem:[%s22592_s27 + $0x60] sm:$0xff] }
 0x406   :  { %v1323_v37 = vpop.xlane.xlu1 %1322 }
 0x407   :  { %19037 = vrcp.f32 %v1323_v37 }
 0x40a   :  { %v1326_v38 = vpop.xlane.xlu0 %1325 }
 0x40b   :  { %19039 = vrcp.f32 %v1326_v38  ;;  %v15988_v38 = vld [vmem:[%s22592_s27 + $0x58] sm:$0xff] }
 0x40e   :  { %v1329_v39 = vpop.xlane.xlu1 %1328 }
 0x40f   :  { %19041 = vrcp.f32 %v1329_v39 }
 0x412   :  { %v1335_v40 = vpop.xlane.xlu1 %1334 }
 0x413   :  { %v1332_v41 = vpop.xlane.xlu0 %1331  ;;  %19043 = vrcp.f32 %v1335_v40 }
 0x414   :  { %v19038_v42 = vpop.eup %19037  ;;  %19045 = vrcp.f32 %v1332_v41  ;;  %v15987_v41 = vld [vmem:[%s22592_s27 + $0x50] sm:$0xff] }
 0x415   :  { %v1353_v43 = vmul.f32 %v19038_v42, %v19022_v4  ;;  %v15969_v4 = vld [vmem:[%s22591_s2 + $0x50] sm:$0xff] }
 0x417   :  { %v1338_v45 = vpop.xlane.xlu0 %1337  ;;  %v1341_v46 = vpop.xlane.xlu1 %1340  ;;  %17667 = vmatmul.mubr.msk.f32.vlgmr.msra.gmra.mxu0 %vm1272_vm12, %v1353_v43 }
 0x418   :  { %v19040_v47 = vpop.eup %19039  ;;  %19047 = vrcp.f32 %v1338_v45  ;;  %17675 = vmatpush3.msra.mxu0 %v627_v44  ;;  %17676 = vmatprep.mubr.msk.f32.mxu0 %vm19352_vm10, %v19351_v23  ;;  %v15986_v44 = vld [vmem:[%s22592_s27 + $0x48] sm:$0xff] }
 0x419   :  { %19049 = vrcp.f32 %v1341_v46  ;;  %v1354_v48 = vmul.f32 %v19040_v47, %v19024_v21  ;;  %17684 = vmatprep.subr.mxu0 %v19351_v23  ;;  %v16006_v21 = vld [vmem:[%s22562_s7 + $0x58] sm:$0xff]  ;;  %v15985_v46 = vld [vmem:[%s22592_s27 + $0x40] sm:$0xff] }
 0x41b   :  { %v1344_v49 = vpop.xlane.xlu0 %1343  ;;  %17672 = vmatmul.mubr.msk.f32.vlgmr.msra.gmra.mxu1 %vm1272_vm12, %v1354_v48 }
 0x41c   :  { %v19042_v50 = vpop.eup %19041  ;;  %19051 = vrcp.f32 %v1344_v49  ;;  %17680 = vmatpush3.msra.mxu1 %v19731_v5  ;;  %17681 = vmatprep.mubr.msk.f32.mxu1 %vm19352_vm10, %v19351_v23 }
 0x41d   :  { %v1355_v7 = vmul.f32 %v19042_v50, %v19026_v25  ;;  %17689 = vmatprep.subr.mxu1 %v19351_v23  ;;  %v16003_v25 = vld [vmem:[%s22562_s7 + $0x40] sm:$0xff] }
 0x41f   :  { %17677 = vmatmul.mubr.msk.f32.vlgmr.msra.gmra.mxu0 %vm1272_vm12, %v1355_v7 }
 0x420   :  { %v19044_v52 = vpop.eup %19043  ;;  %17685 = vmatpush3.msra.mxu0 %v637_v51  ;;  %17686 = vmatprep.mubr.msk.f32.mxu0 %vm19352_vm10, %v19351_v23 }
 0x421   :  { %v19046_v55 = vpop.eup %19045  ;;  %17694 = vmatprep.subr.mxu0 %v19351_v23  ;;  %v1357_v5 = vmul.f32 %v19044_v52, %v19028_v27  ;;  %v1945_v27 = vld [vmem:[%s22564_s9] sm:$0xff] }
 0x422   :  { %v1356_v57 = vmul.f32 %v19046_v55, %v19030_v28  ;;  %v15992_v28 = vld [vmem:[%s22592_s27 + $0x78] sm:$0xff] }
 0x423   :  { %17687 = vmatmul.mubr.msk.f32.vlgmr.msra.gmra.mxu0 %vm1272_vm12, %v1357_v5 }
 0x424   :  { %17682 = vmatmul.mubr.msk.f32.vlgmr.msra.gmra.mxu1 %vm1272_vm12, %v1356_v57  ;;  %17695 = vmatpush3.msra.mxu0 %v647_v56 }
 0x425   :  { %v19048_v14 = vpop.eup %19047  ;;  %17690 = vmatpush3.msra.mxu1 %v19743_v12  ;;  %17691 = vmatprep.mubr.msk.f32.mxu1 %vm19352_vm10, %v19351_v23 }
 0x426   :  { %v19050_v58 = vpop.eup %19049  ;;  %17696 = vmatprep.mubr.msk.f32.mxu0 %vm19352_vm10, %v19351_v23  ;;  %17699 = vmatprep.subr.mxu1 %v19351_v23  ;;  %v1358_v59 = vmul.f32 %v19048_v14, %v19032_v31 }
 0x427   :  { %v1359_v62 = vmul.f32 %v19050_v58, %v19034_v32  ;;  %17704 = vmatprep.subr.mxu0 %v1946_v26  ;;  %v15991_v32 = vld [vmem:[%s22592_s27 + $0x70] sm:$0xff] }
 0x428   :  { %17692 = vmatmul.mubr.msk.f32.vlgmr.msra.gmra.mxu1 %vm1272_vm12, %v1358_v59 }
 0x429   :  { %v19052_v61 = vpop.eup %19051  ;;  %17697 = vmatmul.mubr.msk.f32.vlgmr.msra.gmra.mxu0 %vm1272_vm12, %v1359_v62  ;;  %17700 = vmatpush3.msra.mxu1 %v19749_v16  ;;  %v15971_v16 = vld [vmem:[%s22591_s2 + $0x60] sm:$0xff] }
 0x42a   :  { %17701 = vmatprep.mubr.msk.f32.mxu1 %vm19352_vm10, %v19351_v23  ;;  %17720 = vmatprep.subr.mxu1 %v15974_v18  ;;  %v1360_v12 = vmul.f32 %v19052_v61, %v19036_v35 }
 0x42b   :  { %17705 = vmatpush3.msra.mxu0 %v1946_v26  ;;  %v15976_v26 = vld [vmem:[%s22594_s25 + $0x1] ss:$0 sm:$0xff] }
 0x42c   :  { %17702 = vmatmul.mubr.msk.f32.vlgmr.msra.gmra.mxu1 %vm1272_vm12, %v1360_v12  ;;  %17706 = vmatprep.subr.mxu0 %v1945_v27 }
 0x42d   :  { %17721 = vmatpush3.msra.mxu1 %v15974_v18  ;;  %17736 = vmatprep.mubr.msk.f32.mxu1 %vm285_vm9, %v19574_v53  ;;  %v19953_v18 = vld [vmem:[%s22563_s8 + $0x1] ss:$0 sm:$0xff] }
 0x42e   :  { %17722 = vmatprep.subr.mxu1 %v15973_v0  ;;  %17707 = vmatpush3.msra.mxu0 %v1945_v27 }
 0x42f   :  { %17723 = vmatpush3.msra.mxu1 %v15973_v0  ;;  %17748 = vmatprep.subr.mxu0 %v15992_v28 }
 0x430   :  { %17724 = vmatprep.subr.mxu1 %v15972_v1 }
 0x431   :  { %17725 = vmatpush3.msra.mxu1 %v15972_v1 }
 0x432   :  { %17726 = vmatprep.subr.mxu1 %v15971_v16 }
 0x433   :  { %17727 = vmatpush3.msra.mxu1 %v15971_v16 }
 0x434   :  { %17728 = vmatprep.subr.mxu1 %v15970_v3 }
 0x435   :  { %17729 = vmatpush3.msra.mxu1 %v15970_v3 }
 0x436   :  { %17730 = vmatprep.subr.mxu1 %v15969_v4 }
 0x437   :  { %17731 = vmatpush3.msra.mxu1 %v15969_v4 }
 0x438   :  { %17732 = vmatprep.subr.mxu1 %v15968_v6 }
 0x439   :  { %17733 = vmatpush3.msra.mxu1 %v15968_v6 }
 0x43a   :  { %17734 = vmatprep.subr.mxu1 %v15967_v9 }
 0x43b   :  { %17735 = vmatpush3.msra.mxu1 %v15967_v9 }
 0x43c   :  { %17737 = vmatmul.mubr.msk.f32.vlgmr.msra.gmra.mxu1 %vm285_vm9, %v19576_v54  ;;  %17776 = vmatprep.subr.mxu1 %v16010_v11 }
 0x43d   :  { %17739 = vmatprep.mubr.msk.f32.mxu1 %vm285_vm9, %v19595_v60  ;;  %17777 = vmatpush3.msra.mxu1 %v16010_v11 }
 0x43e   :  { %17778 = vmatprep.subr.mxu1 %v16009_v15 }
 0x43f   :  { %17779 = vmatpush3.msra.mxu1 %v16009_v15 }
 0x440   :  { %17740 = vmatmul.mubr.msk.f32.gmra.mxu1 %vm285_vm9, %v19600_v63  ;;  %17780 = vmatprep.subr.mxu1 %v16008_v17 }
 0x441   :  { %17742 = vmatprep.mubr.msk.f32.mxu1 %vm285_vm9, %v19609_v2  ;;  %17781 = vmatpush3.msra.mxu1 %v16008_v17 }
 0x442   :  { %17782 = vmatprep.subr.mxu1 %v16007_v20 }
 0x443   :  { %17783 = vmatpush3.msra.mxu1 %v16007_v20 }
 0x444   :  { %17743 = vmatmul.mubr.msk.f32.gmra.mxu1 %vm285_vm9, %v19624_v8  ;;  %17784 = vmatprep.subr.mxu1 %v16006_v21 }
 0x445   :  { %17745 = vmatprep.mubr.msk.f32.mxu1 %vm285_vm9, %v19633_v10  ;;  %17785 = vmatpush3.msra.mxu1 %v16006_v21 }
 0x446   :  { %17786 = vmatprep.subr.mxu1 %v16005_v22 }
 0x447   :  { %17787 = vmatpush3.msra.mxu1 %v16005_v22 }
 0x448   :  { %17746 = vmatmul.mubr.msk.f32.gmra.mxu1 %vm285_vm9, %v19645_v13  ;;  %17788 = vmatprep.subr.mxu1 %v16004_v24 }
 0x449   :  { %17789 = vmatpush3.msra.mxu1 %v16004_v24  ;;  %17792 = vmatprep.mubr.msk.f32.mxu1 %vm285_vm9, %v19574_v53 }
 0x44a   :  { %17790 = vmatprep.subr.mxu1 %v16003_v25 }
 0x44b   :  { %17791 = vmatpush3.msra.mxu1 %v16003_v25 }
 0x44c   :  { %17793 = vmatmul.mubr.msk.f32.vlgmr.msra.gmra.mxu1 %vm285_vm9, %v19576_v54  ;;  %17824 = vmatprep.subr.mxu1 %v19351_v23 }
 0x44d   :  { %17795 = vmatprep.mubr.msk.f32.mxu1 %vm285_vm9, %v19595_v60 }
 0x450   :  { %17796 = vmatmul.mubr.msk.f32.gmra.mxu1 %vm285_vm9, %v19600_v63 }
 0x451   :  { %17798 = vmatprep.mubr.msk.f32.mxu1 %vm285_vm9, %v19609_v2 }
 0x454   :  { %17799 = vmatmul.mubr.msk.f32.gmra.mxu1 %vm285_vm9, %v19624_v8 }
 0x455   :  { %17801 = vmatprep.mubr.msk.f32.mxu1 %vm285_vm9, %v19633_v10 }
 0x458   :  { %17802 = vmatmul.mubr.msk.f32.gmra.mxu1 %vm285_vm9, %v19645_v13 }
 0x459   :  { %17826 = vmatprep.mubr.msk.f32.mxu1 %vm19352_vm10, %v19351_v23 }
 0x4d7   :  { %v1430_v29 = vpop.f32.mrf.mxu0 }
 0x4d8   :  { %17708 = vmatprep.mubr.msk.f32.mxu0 %vm663_vm11, %v1430_v29 }
 0x4d9   :  { %v17668_v30 = vpop.f32.mrf.mxu0 }
 0x4db   :  { %v1503_v31 = vpop.f32.mrf.mxu1 }
 0x4dc   :  { %17709 = vmatmul.mubr.msk.f32.vlgmr.msra.gmra.mxu0 %vm663_vm11, %v1503_v31 }
 0x4dd   :  { %v17673_v33 = vpop.f32.mrf.mxu1  ;;  %17749 = vmatpush3.msra.mxu0 %v15992_v28  ;;  %v15994_v28 = vld [vmem:[%s22561_s6 + $0x1] ss:$0 sm:$0xff] }
 0x4de   :  { %17750 = vmatprep.subr.mxu0 %v15991_v32 }
 0x4df   :  { %v1576_v35 = vpop.f32.mrf.mxu0  ;;  %17751 = vmatpush3.msra.mxu0 %v15991_v32 }
 0x4e0   :  { %17711 = vmatprep.mubr.msk.f32.mxu0 %vm663_vm11, %v1576_v35  ;;  %17752 = vmatprep.subr.mxu0 %v15990_v34 }
 0x4e1   :  { %v17678_v37 = vpop.f32.mrf.mxu0  ;;  %17753 = vmatpush3.msra.mxu0 %v15990_v34 }
 0x4e2   :  { %17754 = vmatprep.subr.mxu0 %v15989_v36 }
 0x4e3   :  { %v1722_v39 = vpop.f32.mrf.mxu0  ;;  %17755 = vmatpush3.msra.mxu0 %v15989_v36 }
 0x4e4   :  { %v1649_v40 = vpop.f32.mrf.mxu1  ;;  %17756 = vmatprep.subr.mxu0 %v15988_v38 }
 0x4e5   :  { %17712 = vmatmul.mubr.msk.f32.gmra.mxu0 %vm663_vm11, %v1649_v40  ;;  %v17688_v42 = vpop.f32.mrf.mxu0 }
 0x4e6   :  { %v17683_v43 = vpop.f32.mrf.mxu1  ;;  %17714 = vmatprep.mubr.msk.f32.mxu0 %vm663_vm11, %v1722_v39  ;;  %17757 = vmatpush3.msra.mxu0 %v15988_v38 }
 0x4e7   :  { %17758 = vmatprep.subr.mxu0 %v15987_v41 }
 0x4e8   :  { %v1795_v45 = vpop.f32.mrf.mxu1  ;;  %17759 = vmatpush3.msra.mxu0 %v15987_v41 }
 0x4e9   :  { %v1868_v47 = vpop.f32.mrf.mxu0  ;;  %17715 = vmatmul.mubr.msk.f32.gmra.mxu0 %vm663_vm11, %v1795_v45  ;;  %17760 = vmatprep.subr.mxu0 %v15986_v44 }
 0x4ea   :  { %v17693_v48 = vpop.f32.mrf.mxu1  ;;  %17717 = vmatprep.mubr.msk.f32.mxu0 %vm663_vm11, %v1868_v47  ;;  %17761 = vmatpush3.msra.mxu0 %v15986_v44 }
 0x4eb   :  { %v17698_v49 = vpop.f32.mrf.mxu0  ;;  %17762 = vmatprep.subr.mxu0 %v15985_v46 }
 0x4ec   :  { %v1941_v50 = vpop.f32.mrf.mxu1  ;;  %17763 = vmatpush3.msra.mxu0 %v15985_v46 }
 0x4ed   :  { %17718 = vmatmul.mubr.msk.f32.gmra.mxu0 %vm663_vm11, %v1941_v50  ;;  %17804 = vmatprep.subr.mxu0 %v19351_v23 }
 0x4ee   :  { %v17703_v7 = vpop.f32.mrf.mxu1  ;;  %17764 = vmatprep.mubr.msk.f32.mxu0 %vm285_vm9, %v19574_v53 }
 0x4f1   :  { %17765 = vmatmul.mubr.msk.f32.vlgmr.msra.gmra.mxu0 %vm285_vm9, %v19576_v54 }
 0x4f2   :  { %17767 = vmatprep.mubr.msk.f32.mxu0 %vm285_vm9, %v19595_v60 }
 0x4f5   :  { %17768 = vmatmul.mubr.msk.f32.gmra.mxu0 %vm285_vm9, %v19600_v63 }
 0x4f6   :  { %17770 = vmatprep.mubr.msk.f32.mxu0 %vm285_vm9, %v19609_v2 }
 0x4f9   :  { %17771 = vmatmul.mubr.msk.f32.gmra.mxu0 %vm285_vm9, %v19624_v8 }
 0x4fa   :  { %17773 = vmatprep.mubr.msk.f32.mxu0 %vm285_vm9, %v19633_v10 }
 0x4fc   :  { %v17738_v51 = vpop.f32.mrf.mxu1 }
 0x4fd   :  { %17774 = vmatmul.mubr.msk.f32.gmra.mxu0 %vm285_vm9, %v19645_v13  ;;  %v2179_v32 = vadd.f32 %v17738_v51, %v15976_v26 }
 0x4fe   :  { %v2173_v52 = vpop.f32.mrf.mxu1  ;;  %17806 = vmatprep.mubr.msk.f32.mxu0 %vm19352_vm10, %v19351_v23 }
 0x4ff   :  { %v2174_v27 = vadd.f32 %v15976_v26, %v2173_v52  ;;  %v2457_v37 = vmul.f32 0.25, %v2179_v32 }
 0x500   :  { %v17741_v55 = vpop.f32.mrf.mxu1 }
 0x501   :  { %v2456_v33 = vmul.f32 0.25, %v2174_v27  ;;  %v2189_v44 = vadd.f32 %v17741_v55, %v15976_v26 }
 0x502   :  { %v2183_v5 = vpop.f32.mrf.mxu1 }
 0x503   :  { %v2184_v38 = vadd.f32 %v15976_v26, %v2183_v5  ;;  %v2459_v7 = vmul.f32 0.25, %v2189_v44 }
 0x504   :  { %v19942_v56 = vpop.f32.mrf.mxu1 }
 0x505   :  { %v2458_v45 = vmul.f32 0.25, %v2184_v38  ;;  %v2199_v51 = vadd.f32 %v19942_v56, %v15976_v26 }
 0x506   :  { %v2193_v57 = vpop.f32.mrf.mxu1 }
 0x507   :  { %v2194_v39 = vadd.f32 %v15976_v26, %v2193_v57  ;;  %v2461_v56 = vmul.f32 0.25, %v2199_v51 }
 0x508   :  { %v19944_v14 = vpop.f32.mrf.mxu1 }
 0x509   :  { %v2460_v46 = vmul.f32 0.25, %v2194_v39  ;;  %v2209_v57 = vadd.f32 %v19944_v14, %v15976_v26 }
 0x50a   :  { %v2203_v58 = vpop.f32.mrf.mxu1 }
 0x50b   :  { %v2204_v47 = vadd.f32 %v15976_v26, %v2203_v58 }
 0x50c   :  { %v19946_v59 = vpop.f32.mrf.mxu1 }
 0x50d   :  { %v2462_v52 = vmul.f32 0.25, %v2204_v47  ;;  %v2423_v14 = vadd.f32 %v19946_v59, %v19953_v18 }
 0x50e   :  { %v19948_v62 = vpop.f32.mrf.mxu1 }
 0x50f   :  { %v2418_v55 = vadd.f32 %v19953_v18, %v19948_v62  ;;  %v2463_v62 = vmul.f32 0.25, %v2209_v57 }
 0x510   :  { %v17797_v61 = vpop.f32.mrf.mxu1 }
 0x511   :  { %v19956_v12 = vadd.f32 %v17797_v61, %v19953_v18 }
 0x512   :  { %v19958_v0 = vpop.f32.mrf.mxu1 }
 0x514   :  { %v17800_v1 = vpop.f32.mrf.mxu1 }
 0x515   :  { %v19961_v16 = vadd.f32 %v17800_v1, %v19953_v18 }
 0x516   :  { %v19963_v3 = vpop.f32.mrf.mxu1 }
 0x518   :  { %v17803_v4 = vpop.f32.mrf.mxu1 }
 0x519   :  { %v19966_v6 = vadd.f32 %v17803_v4, %v19953_v18 }
 0x51a   :  { %v20040_v27 = vpop.f32.mrf.mxu1 }
 0x59c   :  { %v19968_v9 = vpop.f32.mrf.mxu0 }
 0x59e   :  { %v19970_v11 = vpop.f32.mrf.mxu0 }
 0x5a5   :  { %v19972_v15 = vpop.f32.mrf.mxu0 }
 0x5a7   :  { %v19974_v17 = vpop.f32.mrf.mxu0 }
 0x5a9   :  { %v19976_v20 = vpop.f32.mrf.mxu0 }
 0x5ab   :  { %v19978_v21 = vpop.f32.mrf.mxu0 }
 0x5ad   :  { %v19980_v22 = vpop.f32.mrf.mxu0 }
 0x5af   :  { %v19982_v24 = vpop.f32.mrf.mxu0 }
 0x5b1   :  { %v17766_v25 = vpop.f32.mrf.mxu0 }
 0x5b2   :  { %v2301_v35 = vadd.f32 %v17766_v25, %v15994_v28 }
 0x5b3   :  { %v2295_v29 = vpop.f32.mrf.mxu0 }
 0x5b4   :  { %v2296_v30 = vadd.f32 %v15994_v28, %v2295_v29 }
 0x5b5   :  { %v17769_v31 = vpop.f32.mrf.mxu0 }
 0x5b6   :  { %17805 = vmatpush3.xpose.msk.msra.mxu0 %vm663_vm11, %v2296_v30  ;;  %v2311_v49 = vadd.f32 %v17769_v31, %v15994_v28 }
 0x5b7   :  { %v2305_v34 = vpop.f32.mrf.mxu0  ;;  %17809 = vmatprep.subr.mxu0 %v19351_v23 }
 0x5b8   :  { %v2306_v41 = vadd.f32 %v15994_v28, %v2305_v34 }
 0x5b9   :  { %v17772_v36 = vpop.f32.mrf.mxu0  ;;  %17807 = vmatmul.mubr.msk.f32.vlgmr.msra.gmra.mxu0 %vm663_vm11, %v2456_v33 }
 0x5ba   :  { %17810 = vmatpush3.xpose.msk.msra.mxu0 %vm663_vm11, %v2301_v35  ;;  %17811 = vmatprep.mubr.msk.f32.mxu0 %vm19352_vm10, %v19351_v23  ;;  %v2321_v5 = vadd.f32 %v17772_v36, %v15994_v28 }
 0x5bb   :  { %v2315_v40 = vpop.f32.mrf.mxu0  ;;  %17814 = vmatprep.subr.mxu0 %v19351_v23 }
 0x5bc   :  { %v2316_v42 = vadd.f32 %v15994_v28, %v2315_v40 }
 0x5bd   :  { %v17775_v43 = vpop.f32.mrf.mxu0  ;;  %17812 = vmatmul.mubr.msk.f32.vlgmr.msra.gmra.mxu0 %vm663_vm11, %v2457_v37 }
 0x5be   :  { %17815 = vmatpush3.xpose.msk.msra.mxu0 %vm663_vm11, %v2306_v41  ;;  %17825 = vmatpush3.xpose.msk.msra.mxu1 %vm663_vm11, %v2316_v42  ;;  %v2331_v58 = vadd.f32 %v17775_v43, %v15994_v28 }
 0x5bf   :  { %v2325_v48 = vpop.f32.mrf.mxu0  ;;  %17816 = vmatprep.mubr.msk.f32.mxu0 %vm19352_vm10, %v19351_v23  ;;  %17819 = vmatprep.subr.mxu0 %v19351_v23 }
 0x5c0   :  { %v2326_v50 = vadd.f32 %v15994_v28, %v2325_v48  ;;  %17834 = vmatprep.subr.mxu1 %v19351_v23 }
 0x5c1   :  { %17817 = vmatmul.mubr.msk.f32.vlgmr.msra.gmra.mxu0 %vm663_vm11, %v2458_v45  ;;  %17827 = vmatmul.mubr.msk.f32.vlgmr.msra.gmra.mxu1 %vm663_vm11, %v2460_v46 }
 0x5c2   :  { %17820 = vmatpush3.xpose.msk.msra.mxu0 %vm663_vm11, %v2311_v49  ;;  %17835 = vmatpush3.xpose.msk.msra.mxu1 %vm663_vm11, %v2326_v50 }
 0x5c3   :  { %17821 = vmatprep.mubr.msk.f32.mxu0 %vm19352_vm10, %v19351_v23  ;;  %17836 = vmatprep.mubr.msk.f32.mxu1 %vm19352_vm10, %v19351_v23 }
 0x5c4   :  { %17829 = vmatprep.subr.mxu0 %v19351_v23  ;;  %17844 = vmatprep.subr.mxu1 %v19351_v23 }
 0x5c5   :  { %17822 = vmatmul.mubr.msk.f32.vlgmr.msra.gmra.mxu0 %vm663_vm11, %v2459_v7  ;;  %17837 = vmatmul.mubr.msk.f32.vlgmr.msra.gmra.mxu1 %vm663_vm11, %v2462_v52 }
 0x5c6   :  { %17830 = vmatpush3.xpose.msk.msra.mxu0 %vm663_vm11, %v2321_v5  ;;  %17845 = vmatpush3.msra.mxu1 %v2418_v55 }
 0x5c7   :  { %17831 = vmatprep.mubr.msk.f32.mxu0 %vm19352_vm10, %v19351_v23  ;;  %17839 = vmatprep.subr.mxu0 %v19351_v23 }
 0x5c8   :  { %17846 = vmatprep.mubr.msk.f32.mxu1 %vm19352_vm10, %v19351_v23  ;;  %17854 = vmatprep.subr.mxu1 %v19351_v23 }
 0x5c9   :  { %17832 = vmatmul.mubr.msk.f32.vlgmr.msra.gmra.mxu0 %vm663_vm11, %v2461_v56 }
 0x5ca   :  { %17840 = vmatpush3.xpose.msk.msra.mxu0 %vm663_vm11, %v2331_v58  ;;  %17841 = vmatprep.mubr.msk.f32.mxu0 %vm19352_vm10, %v19351_v23 }
 0x5cb   :  { %17849 = vmatprep.subr.mxu0 %v19351_v23 }
 0x5cd   :  { %17842 = vmatmul.mubr.msk.f32.vlgmr.msra.gmra.mxu0 %vm663_vm11, %v2463_v62 }
 0x5ce   :  { %17850 = vmatpush3.msra.mxu0 %v2423_v14  ;;  %17851 = vmatprep.mubr.msk.f32.mxu0 %vm19352_vm10, %v19351_v23 }
 0x5cf   :  { %17859 = vmatprep.subr.mxu0 %v19351_v23 }
 0x679   :  { %v2536_v61 = vpop.f32.mrf.mxu0 }
 0x67a   :  { %v3072_v1 = vsel %vm1272_vm12, %v2536_v61, -inf }
 0x67b   :  { %3073 = vmax.xlane.f32.xlu1 %v3072_v1  ;;  %v17808_v4 = vpop.f32.mrf.mxu0 }
 0x67d   :  { %v2612_v25 = vpop.f32.mrf.mxu0 }
 0x67e   :  { %v3075_v26 = vsel %vm1272_vm12, %v2612_v25, -inf }
 0x67f   :  { %3076 = vmax.xlane.f32.xlu0 %v3075_v26  ;;  %v17813_v59 = vpop.f32.mrf.mxu0 }
 0x681   :  { %v2688_v28 = vpop.f32.mrf.mxu0  ;;  %v2840_v29 = vpop.f32.mrf.mxu1 }
 0x682   :  { %v3078_v30 = vsel %vm1272_vm12, %v2688_v28, -inf  ;;  %v3084_v35 = vsel %vm1272_vm12, %v2840_v29, -inf }
 0x683   :  { %v17828_v31 = vpop.f32.mrf.mxu1  ;;  %3079 = vmax.xlane.f32.xlu1 %v3078_v30  ;;  %v17818_v32 = vpop.f32.mrf.mxu0 }
 0x685   :  { %v2764_v33 = vpop.f32.mrf.mxu0  ;;  %v2992_v34 = vpop.f32.mrf.mxu1 }
 0x686   :  { %v3081_v36 = vsel %vm1272_vm12, %v2764_v33, -inf  ;;  %v3090_v40 = vsel %vm1272_vm12, %v2992_v34, -inf }
 0x687   :  { %v17838_v37 = vpop.f32.mrf.mxu1  ;;  %3085 = vmax.xlane.f32.xlu1 %v3084_v35  ;;  %3082 = vmax.xlane.f32.xlu0 %v3081_v36  ;;  %v17823_v38 = vpop.f32.mrf.mxu0 }
 0x689   :  { %v2916_v39 = vpop.f32.mrf.mxu0 }
 0x68a   :  { %v3087_v41 = vsel %vm1272_vm12, %v2916_v39, -inf }
 0x68b   :  { %3091 = vmax.xlane.f32.xlu1 %v3090_v40  ;;  %3088 = vmax.xlane.f32.xlu0 %v3087_v41  ;;  %v17833_v42 = vpop.f32.mrf.mxu0 }
 0x68d   :  { %v3068_v43 = vpop.f32.mrf.mxu0 }
 0x68e   :  { %v3093_v44 = vsel %vm1272_vm12, %v3068_v43, -inf }
 0x68f   :  { %3094 = vmax.xlane.f32.xlu0 %v3093_v44  ;;  %v17843_v45 = vpop.f32.mrf.mxu0 }
 0x704   :  { %v3074_v46 = vpop.xlane.xlu1 %3073 }
 0x705   :  { %v3096_v47 = vsub.f32 %v2536_v61, %v3074_v46 }
 0x707   :  { %v3104_v48 = vmul.f32 1.442695, %v3096_v47 }
 0x708   :  { %v3077_v49 = vpop.xlane.xlu0 %3076 }
 0x709   :  { %19053 = vpow2.f32 %v3104_v48  ;;  %v3097_v50 = vsub.f32 %v2612_v25, %v3077_v49 }
 0x70b   :  { %v3106_v7 = vmul.f32 1.442695, %v3097_v50 }
 0x70c   :  { %v3080_v51 = vpop.xlane.xlu1 %3079 }
 0x70d   :  { %19055 = vpow2.f32 %v3106_v7  ;;  %v3098_v52 = vsub.f32 %v2688_v28, %v3080_v51 }
 0x70f   :  { %v3108_v55 = vmul.f32 1.442695, %v3098_v52 }
 0x710   :  { %v3086_v5 = vpop.xlane.xlu1 %3085  ;;  %v3083_v56 = vpop.xlane.xlu0 %3082 }
 0x711   :  { %19057 = vpow2.f32 %v3108_v55  ;;  %v3100_v57 = vsub.f32 %v2840_v29, %v3086_v5  ;;  %v3099_v58 = vsub.f32 %v2764_v33, %v3083_v56  ;;  %v2428_v55 = vadd.f32 %v19953_v18, %v19958_v0 }
 0x713   :  { %v3112_v62 = vmul.f32 1.442695, %v3100_v57  ;;  %v3110_v14 = vmul.f32 1.442695, %v3099_v58 }
 0x714   :  { %v3092_v1 = vpop.xlane.xlu1 %3091  ;;  %v3089_v4 = vpop.xlane.xlu0 %3088 }
 0x715   :  { %19059 = vpow2.f32 %v3112_v62  ;;  %v3102_v61 = vsub.f32 %v2992_v34, %v3092_v1  ;;  %v3101_v26 = vsub.f32 %v2916_v39, %v3089_v4  ;;  %v2438_v1 = vadd.f32 %v19953_v18, %v19963_v3 }
 0x716   :  { %v19054_v59 = vpop.eup %19053  ;;  %19061 = vpow2.f32 %v3110_v14 }
 0x717   :  { %v3116_v25 = vmul.f32 1.442695, %v3102_v61  ;;  %v3114_v30 = vmul.f32 1.442695, %v3101_v26  ;;  %v3120_v31 = vsel %vm1272_vm12, %v19054_v59, 0.0  ;;  %v2448_v26 = vadd.f32 %v19953_v18, %v20040_v27  ;;  %v16062_v27 = vld [vmem:[%s22591_s2 + $0xb8] sm:$0xff] }
 0x718   :  { %3121 = vadd.xlane.f32.xlu1 %v3120_v31  ;;  %v3095_v28 = vpop.xlane.xlu0 %3094 }
 0x719   :  { %19063 = vpow2.f32 %v3116_v25  ;;  %v3103_v32 = vsub.f32 %v3068_v43, %v3095_v28  ;;  %v16061_v28 = vld [vmem:[%s22591_s2 + $0xb0] sm:$0xff] }
 0x71a   :  { %v19056_v35 = vpop.eup %19055  ;;  %19065 = vpow2.f32 %v3114_v30 }
 0x71b   :  { %v3118_v29 = vmul.f32 1.442695, %v3103_v32  ;;  %v3123_v33 = vsel %vm1272_vm12, %v19056_v35, 0.0  ;;  %v16060_v32 = vld [vmem:[%s22591_s2 + $0xa8] sm:$0xff] }
 0x71c   :  { %3124 = vadd.xlane.f32.xlu0 %v3123_v33  ;;  %v16056_v33 = vld [vmem:[%s22591_s2 + $0x88] sm:$0xff] }
 0x71d   :  { %19067 = vpow2.f32 %v3118_v29  ;;  %v16057_v29 = vld [vmem:[%s22591_s2 + $0x90] sm:$0xff] }
 0x71e   :  { %v19058_v36 = vpop.eup %19057 }
 0x71f   :  { %v3126_v34 = vsel %vm1272_vm12, %v19058_v36, 0.0 }
 0x720   :  { %3127 = vadd.xlane.f32.xlu1 %v3126_v34  ;;  %v16098_v34 = vld [vmem:[%s22562_s7 + $0xb8] sm:$0xff] }
 0x722   :  { %v19060_v37 = vpop.eup %19059 }
 0x723   :  { %v19062_v38 = vpop.eup %19061  ;;  %v3132_v39 = vsel %vm1272_vm12, %v19060_v37, 0.0 }
 0x724   :  { %3133 = vadd.xlane.f32.xlu1 %v3132_v39  ;;  %v3129_v40 = vsel %vm1272_vm12, %v19062_v38, 0.0  ;;  %v16095_v39 = vld [vmem:[%s22562_s7 + $0xa0] sm:$0xff] }
 0x725   :  { %3130 = vadd.xlane.f32.xlu0 %v3129_v40  ;;  %v16094_v40 = vld [vmem:[%s22562_s7 + $0x98] sm:$0xff] }
 0x726   :  { %v19064_v41 = vpop.eup %19063 }
 0x727   :  { %v19066_v42 = vpop.eup %19065  ;;  %v3138_v43 = vsel %vm1272_vm12, %v19064_v41, 0.0 }
 0x728   :  { %3139 = vadd.xlane.f32.xlu1 %v3138_v43  ;;  %v3135_v44 = vsel %vm1272_vm12, %v19066_v42, 0.0  ;;  %v16091_v43 = vld [vmem:[%s22562_s7 + $0x80] sm:$0xff] }
 0x729   :  { %3136 = vadd.xlane.f32.xlu0 %v3135_v44  ;;  %v16046_v44 = vld [vmem:[%s22564_s9 + $0x18] sm:$0xff] }
 0x72a   :  { %v19068_v45 = vpop.eup %19067 }
 0x72b   :  { %v3141_v46 = vsel %vm1272_vm12, %v19068_v45, 0.0 }
 0x72d   :  { %3142 = vadd.xlane.f32.xlu0 %v3141_v46  ;;  %v16080_v46 = vld [vmem:[%s22592_s27 + $0xb8] sm:$0xff] }
 0x7a1   :  { %v3122_v47 = vpop.xlane.xlu1 %3121 }
 0x7a2   :  { %19069 = vrcp.f32 %v3122_v47 }
 0x7a5   :  { %v3125_v48 = vpop.xlane.xlu0 %3124 }
 0x7a6   :  { %19071 = vrcp.f32 %v3125_v48 }
 0x7a9   :  { %v3128_v49 = vpop.xlane.xlu1 %3127 }
 0x7aa   :  { %19073 = vrcp.f32 %v3128_v49 }
 0x7ad   :  { %v3134_v50 = vpop.xlane.xlu1 %3133 }
 0x7ae   :  { %19075 = vrcp.f32 %v3134_v50  ;;  %v3131_v7 = vpop.xlane.xlu0 %3130  ;;  %v16079_v50 = vld [vmem:[%s22592_s27 + $0xb0] sm:$0xff] }
 0x7af   :  { %v19070_v51 = vpop.eup %19069  ;;  %19077 = vrcp.f32 %v3131_v7 }
 0x7b0   :  { %v3152_v52 = vmul.f32 %v19070_v51, %v19054_v59  ;;  %v16078_v51 = vld [vmem:[%s22592_s27 + $0xa8] sm:$0xff] }
 0x7b1   :  { %v3140_v5 = vpop.xlane.xlu1 %3139 }
 0x7b2   :  { %19079 = vrcp.f32 %v3140_v5  ;;  %v3137_v56 = vpop.xlane.xlu0 %3136  ;;  %17847 = vmatmul.mubr.msk.f32.vlgmr.msra.gmra.mxu1 %vm1272_vm12, %v3152_v52 }
 0x7b3   :  { %v19072_v57 = vpop.eup %19071  ;;  %19081 = vrcp.f32 %v3137_v56  ;;  %17855 = vmatpush3.msra.mxu1 %v2428_v55  ;;  %17856 = vmatprep.mubr.msk.f32.mxu1 %vm19352_vm10, %v19351_v23  ;;  %v16077_v55 = vld [vmem:[%s22592_s27 + $0xa0] sm:$0xff]  ;;  %v16076_v56 = vld [vmem:[%s22592_s27 + $0x98] sm:$0xff] }
 0x7b4   :  { %v3153_v58 = vmul.f32 %v19072_v57, %v19056_v35  ;;  %17864 = vmatprep.subr.mxu1 %v19351_v23  ;;  %v16058_v35 = vld [vmem:[%s22591_s2 + $0x98] sm:$0xff] }
 0x7b6   :  { %v3143_v62 = vpop.xlane.xlu0 %3142  ;;  %17852 = vmatmul.mubr.msk.f32.vlgmr.msra.gmra.mxu0 %vm1272_vm12, %v3153_v58 }
 0x7b7   :  { %v19074_v14 = vpop.eup %19073  ;;  %19083 = vrcp.f32 %v3143_v62  ;;  %17860 = vmatpush3.msra.mxu0 %v19956_v12  ;;  %17861 = vmatprep.mubr.msk.f32.mxu0 %vm19352_vm10, %v19351_v23  ;;  %v16075_v62 = vld [vmem:[%s22592_s27 + $0x90] sm:$0xff] }
 0x7b8   :  { %v3154_v0 = vmul.f32 %v19074_v14, %v19058_v36  ;;  %17869 = vmatprep.subr.mxu0 %v19351_v23  ;;  %v16055_v36 = vld [vmem:[%s22591_s2 + $0x80] sm:$0xff] }
 0x7ba   :  { %17857 = vmatmul.mubr.msk.f32.vlgmr.msra.gmra.mxu1 %vm1272_vm12, %v3154_v0 }
 0x7bb   :  { %v19076_v4 = vpop.eup %19075  ;;  %17865 = vmatpush3.msra.mxu1 %v2438_v1  ;;  %17866 = vmatprep.mubr.msk.f32.mxu1 %vm19352_vm10, %v19351_v23  ;;  %v16074_v1 = vld [vmem:[%s22592_s27 + $0x88] sm:$0xff] }
 0x7bc   :  { %v19078_v61 = vpop.eup %19077  ;;  %17874 = vmatprep.subr.mxu1 %v19351_v23  ;;  %v3156_v12 = vmul.f32 %v19076_v4, %v19060_v37  ;;  %v16097_v37 = vld [vmem:[%s22562_s7 + $0xb0] sm:$0xff] }
 0x7bd   :  { %v3155_v59 = vmul.f32 %v19078_v61, %v19062_v38  ;;  %v16096_v38 = vld [vmem:[%s22562_s7 + $0xa8] sm:$0xff] }
 0x7be   :  { %17867 = vmatmul.mubr.msk.f32.vlgmr.msra.gmra.mxu1 %vm1272_vm12, %v3156_v12  ;;  %v16073_v12 = vld [vmem:[%s22592_s27 + $0x80] sm:$0xff] }
 0x7bf   :  { %v19080_v25 = vpop.eup %19079  ;;  %17862 = vmatmul.mubr.msk.f32.vlgmr.msra.gmra.mxu0 %vm1272_vm12, %v3155_v59  ;;  %17875 = vmatpush3.msra.mxu1 %v2448_v26 }
 0x7c0   :  { %v19082_v3 = vpop.eup %19081  ;;  %17870 = vmatpush3.msra.mxu0 %v19961_v16  ;;  %17871 = vmatprep.mubr.msk.f32.mxu0 %vm19352_vm10, %v19351_v23  ;;  %v3158_v30 = vmul.f32 %v19080_v25, %v19064_v41  ;;  %v16093_v41 = vld [vmem:[%s22562_s7 + $0x90] sm:$0xff] }
 0x7c1   :  { %17876 = vmatprep.mubr.msk.f32.mxu1 %vm19352_vm10, %v19351_v23  ;;  %17879 = vmatprep.subr.mxu0 %v19351_v23  ;;  %v3157_v18 = vmul.f32 %v19082_v3, %v19066_v42  ;;  %v16092_v42 = vld [vmem:[%s22562_s7 + $0x88] sm:$0xff] }
 0x7c2   :  { %17877 = vmatmul.mubr.msk.f32.vlgmr.msra.gmra.mxu1 %vm1272_vm12, %v3158_v30  ;;  %17884 = vmatprep.subr.mxu1 %v16046_v44 }
 0x7c3   :  { %17872 = vmatmul.mubr.msk.f32.vlgmr.msra.gmra.mxu0 %vm1272_vm12, %v3157_v18  ;;  %17885 = vmatpush3.msra.mxu1 %v16046_v44 }
 0x7c4   :  { %v19084_v31 = vpop.eup %19083  ;;  %17880 = vmatpush3.msra.mxu0 %v19966_v6  ;;  %17881 = vmatprep.mubr.msk.f32.mxu0 %vm19352_vm10, %v19351_v23  ;;  %v16059_v6 = vld [vmem:[%s22591_s2 + $0xa0] sm:$0xff] }
 0x7c5   :  { %17900 = vmatprep.subr.mxu0 %v16062_v27  ;;  %v3159_v16 = vmul.f32 %v19084_v31, %v19068_v45  ;;  %v16045_v45 = vld [vmem:[%s22564_s9 + $0x10] sm:$0xff] }
 0x7c6   :  { %17886 = vmatprep.subr.mxu1 %v16045_v45 }
 0x7c7   :  { %17882 = vmatmul.mubr.msk.f32.vlgmr.msra.gmra.mxu0 %vm1272_vm12, %v3159_v16  ;;  %17887 = vmatpush3.msra.mxu1 %v16045_v45 }
 0x7c8   :  { %17901 = vmatpush3.msra.mxu0 %v16062_v27  ;;  %17916 = vmatprep.mubr.msk.f32.mxu0 %vm285_vm9, %v19574_v53 }
 0x7c9   :  { %17902 = vmatprep.subr.mxu0 %v16061_v28  ;;  %17928 = vmatprep.subr.mxu1 %v16080_v46 }
 0x7ca   :  { %17903 = vmatpush3.msra.mxu0 %v16061_v28 }
 0x7cb   :  { %17904 = vmatprep.subr.mxu0 %v16060_v32 }
 0x7cc   :  { %17905 = vmatpush3.msra.mxu0 %v16060_v32 }
 0x7cd   :  { %17906 = vmatprep.subr.mxu0 %v16059_v6 }
 0x7ce   :  { %17907 = vmatpush3.msra.mxu0 %v16059_v6 }
 0x7cf   :  { %17908 = vmatprep.subr.mxu0 %v16058_v35 }
 0x7d0   :  { %17909 = vmatpush3.msra.mxu0 %v16058_v35 }
 0x7d1   :  { %17910 = vmatprep.subr.mxu0 %v16057_v29 }
 0x7d2   :  { %17911 = vmatpush3.msra.mxu0 %v16057_v29 }
 0x7d3   :  { %17912 = vmatprep.subr.mxu0 %v16056_v33 }
 0x7d4   :  { %17913 = vmatpush3.msra.mxu0 %v16056_v33  ;;  %v20240_v33 = vld [vmem:[%s22563_s8 + $0x2] ss:$0 sm:$0xff] }
 0x7d5   :  { %17914 = vmatprep.subr.mxu0 %v16055_v36 }
 0x7d6   :  { %17915 = vmatpush3.msra.mxu0 %v16055_v36 }
 0x7d7   :  { %17917 = vmatmul.mubr.msk.f32.vlgmr.msra.gmra.mxu0 %vm285_vm9, %v19576_v54  ;;  %17956 = vmatprep.subr.mxu0 %v16098_v34 }
 0x7d8   :  { %17919 = vmatprep.mubr.msk.f32.mxu0 %vm285_vm9, %v19595_v60  ;;  %17957 = vmatpush3.msra.mxu0 %v16098_v34 }
 0x7d9   :  { %17958 = vmatprep.subr.mxu0 %v16097_v37 }
 0x7da   :  { %17959 = vmatpush3.msra.mxu0 %v16097_v37 }
 0x7db   :  { %17920 = vmatmul.mubr.msk.f32.gmra.mxu0 %vm285_vm9, %v19600_v63  ;;  %17960 = vmatprep.subr.mxu0 %v16096_v38 }
 0x7dc   :  { %17922 = vmatprep.mubr.msk.f32.mxu0 %vm285_vm9, %v19609_v2  ;;  %17961 = vmatpush3.msra.mxu0 %v16096_v38 }
 0x7dd   :  { %17962 = vmatprep.subr.mxu0 %v16095_v39 }
 0x7de   :  { %17963 = vmatpush3.msra.mxu0 %v16095_v39 }
 0x7df   :  { %17923 = vmatmul.mubr.msk.f32.gmra.mxu0 %vm285_vm9, %v19624_v8  ;;  %17964 = vmatprep.subr.mxu0 %v16094_v40 }
 0x7e0   :  { %17925 = vmatprep.mubr.msk.f32.mxu0 %vm285_vm9, %v19633_v10  ;;  %17965 = vmatpush3.msra.mxu0 %v16094_v40 }
 0x7e1   :  { %17966 = vmatprep.subr.mxu0 %v16093_v41 }
 0x7e2   :  { %17967 = vmatpush3.msra.mxu0 %v16093_v41 }
 0x7e3   :  { %17926 = vmatmul.mubr.msk.f32.gmra.mxu0 %vm285_vm9, %v19645_v13  ;;  %17968 = vmatprep.subr.mxu0 %v16092_v42 }
 0x7e4   :  { %17969 = vmatpush3.msra.mxu0 %v16092_v42  ;;  %17972 = vmatprep.mubr.msk.f32.mxu0 %vm285_vm9, %v19574_v53 }
 0x7e5   :  { %17970 = vmatprep.subr.mxu0 %v16091_v43 }
 0x7e6   :  { %17971 = vmatpush3.msra.mxu0 %v16091_v43  ;;  %v15966_v43 = vld [vmem:[%s22565_s10] ss:$0 sm:$0xff] }
 0x7e7   :  { %17973 = vmatmul.mubr.msk.f32.vlgmr.msra.gmra.mxu0 %vm285_vm9, %v19576_v54  ;;  %18004 = vmatprep.subr.mxu0 %v19351_v23  ;;  %v2083_v44 = vadd.f32 %v19968_v9, %v15966_v43  ;;  %v2089_v9 = vadd.f32 %v19980_v22, %v15966_v43 }
 0x7e8   :  { %17975 = vmatprep.mubr.msk.f32.mxu0 %vm285_vm9, %v19595_v60 }
 0x7eb   :  { %17976 = vmatmul.mubr.msk.f32.gmra.mxu0 %vm285_vm9, %v19600_v63 }
 0x7ec   :  { %17978 = vmatprep.mubr.msk.f32.mxu0 %vm285_vm9, %v19609_v2 }
 0x7ef   :  { %17979 = vmatmul.mubr.msk.f32.gmra.mxu0 %vm285_vm9, %v19624_v8 }
 0x7f0   :  { %17981 = vmatprep.mubr.msk.f32.mxu0 %vm285_vm9, %v19633_v10 }
 0x7f3   :  { %17982 = vmatmul.mubr.msk.f32.gmra.mxu0 %vm285_vm9, %v19645_v13 }
 0x7f4   :  { %18006 = vmatprep.mubr.msk.f32.mxu0 %vm19352_vm10, %v19351_v23 }
 0x872   :  { %v3229_v47 = vpop.f32.mrf.mxu1 }
 0x873   :  { %17888 = vmatprep.mubr.msk.f32.mxu1 %vm663_vm11, %v3229_v47 }
 0x874   :  { %v17848_v48 = vpop.f32.mrf.mxu1 }
 0x875   :  { %v2085_v48 = vadd.f32 %v19972_v15, %v15966_v43 }
 0x876   :  { %v3302_v49 = vpop.f32.mrf.mxu0 }
 0x877   :  { %17889 = vmatmul.mubr.msk.f32.vlgmr.msra.gmra.mxu1 %vm663_vm11, %v3302_v49 }
 0x878   :  { %v17853_v7 = vpop.f32.mrf.mxu0  ;;  %17929 = vmatpush3.msra.mxu1 %v16080_v46 }
 0x879   :  { %17930 = vmatprep.subr.mxu1 %v16079_v50 }
 0x87a   :  { %v3375_v52 = vpop.f32.mrf.mxu1  ;;  %17931 = vmatpush3.msra.mxu1 %v16079_v50 }
 0x87b   :  { %17891 = vmatprep.mubr.msk.f32.mxu1 %vm663_vm11, %v3375_v52  ;;  %17932 = vmatprep.subr.mxu1 %v16078_v51 }
 0x87c   :  { %v17858_v5 = vpop.f32.mrf.mxu1  ;;  %17933 = vmatpush3.msra.mxu1 %v16078_v51  ;;  %v2087_v51 = vadd.f32 %v19976_v20, %v15966_v43  ;;  %v16082_v20 = vld [vmem:[%s22561_s6 + $0x2] ss:$0 sm:$0xff] }
 0x87d   :  { %17934 = vmatprep.subr.mxu1 %v16077_v55 }
 0x87e   :  { %v3521_v57 = vpop.f32.mrf.mxu1  ;;  %17935 = vmatpush3.msra.mxu1 %v16077_v55 }
 0x87f   :  { %v3448_v58 = vpop.f32.mrf.mxu0  ;;  %17936 = vmatprep.subr.mxu1 %v16076_v56 }
 0x880   :  { %17892 = vmatmul.mubr.msk.f32.gmra.mxu1 %vm663_vm11, %v3448_v58  ;;  %v17868_v14 = vpop.f32.mrf.mxu1 }
 0x881   :  { %v17863_v0 = vpop.f32.mrf.mxu0  ;;  %17894 = vmatprep.mubr.msk.f32.mxu1 %vm663_vm11, %v3521_v57  ;;  %17937 = vmatpush3.msra.mxu1 %v16076_v56 }
 0x882   :  { %v3667_v4 = vpop.f32.mrf.mxu1  ;;  %17938 = vmatprep.subr.mxu1 %v16075_v62 }
 0x883   :  { %v3594_v61 = vpop.f32.mrf.mxu0  ;;  %17939 = vmatpush3.msra.mxu1 %v16075_v62  ;;  %v16064_v62 = vld [vmem:[%s22594_s25 + $0x2] ss:$0 sm:$0xff] }
 0x884   :  { %17895 = vmatmul.mubr.msk.f32.gmra.mxu1 %vm663_vm11, %v3594_v61  ;;  %v17878_v26 = vpop.f32.mrf.mxu1  ;;  %17940 = vmatprep.subr.mxu1 %v16074_v1 }
 0x885   :  { %v17873_v59 = vpop.f32.mrf.mxu0  ;;  %17897 = vmatprep.mubr.msk.f32.mxu1 %vm663_vm11, %v3667_v4  ;;  %17941 = vmatpush3.msra.mxu1 %v16074_v1 }
 0x886   :  { %17942 = vmatprep.subr.mxu1 %v16073_v12 }
 0x887   :  { %v3740_v25 = vpop.f32.mrf.mxu0  ;;  %17943 = vmatpush3.msra.mxu1 %v16073_v12 }
 0x888   :  { %17898 = vmatmul.mubr.msk.f32.gmra.mxu1 %vm663_vm11, %v3740_v25  ;;  %17984 = vmatprep.subr.mxu1 %v19351_v23 }
 0x889   :  { %v17883_v3 = vpop.f32.mrf.mxu0  ;;  %17944 = vmatprep.mubr.msk.f32.mxu1 %vm285_vm9, %v19574_v53 }
 0x88c   :  { %17945 = vmatmul.mubr.msk.f32.vlgmr.msra.gmra.mxu1 %vm285_vm9, %v19576_v54 }
 0x88d   :  { %17947 = vmatprep.mubr.msk.f32.mxu1 %vm285_vm9, %v19595_v60 }
 0x890   :  { %17948 = vmatmul.mubr.msk.f32.gmra.mxu1 %vm285_vm9, %v19600_v63 }
 0x891   :  { %17950 = vmatprep.mubr.msk.f32.mxu1 %vm285_vm9, %v19609_v2 }
 0x894   :  { %17951 = vmatmul.mubr.msk.f32.gmra.mxu1 %vm285_vm9, %v19624_v8 }
 0x895   :  { %17953 = vmatprep.mubr.msk.f32.mxu1 %vm285_vm9, %v19633_v10 }
 0x897   :  { %v17918_v30 = vpop.f32.mrf.mxu0 }
 0x898   :  { %17954 = vmatmul.mubr.msk.f32.gmra.mxu1 %vm285_vm9, %v19645_v13  ;;  %v3973_v22 = vadd.f32 %v17918_v30, %v16064_v62 }
 0x899   :  { %v3967_v18 = vpop.f32.mrf.mxu0  ;;  %17986 = vmatprep.mubr.msk.f32.mxu1 %vm19352_vm10, %v19351_v23 }
 0x89a   :  { %v3968_v14 = vadd.f32 %v16064_v62, %v3967_v18  ;;  %v4251_v25 = vmul.f32 0.25, %v3973_v22 }
 0x89b   :  { %v17921_v27 = vpop.f32.mrf.mxu0 }
 0x89c   :  { %v4250_v61 = vmul.f32 0.25, %v3968_v14  ;;  %v3983_v43 = vadd.f32 %v17921_v27, %v16064_v62 }
 0x89d   :  { %v3977_v31 = vpop.f32.mrf.mxu0 }
 0x89e   :  { %v3978_v3 = vadd.f32 %v16064_v62, %v3977_v31  ;;  %v4253_v27 = vmul.f32 0.25, %v3983_v43 }
 0x89f   :  { %v20229_v16 = vpop.f32.mrf.mxu0 }
 0x8a1   :  { %v3987_v28 = vpop.f32.mrf.mxu0 }
 0x8a2   :  { %v3988_v18 = vadd.f32 %v16064_v62, %v3987_v28 }
 0x8a3   :  { %v20231_v32 = vpop.f32.mrf.mxu0 }
 0x8a5   :  { %v3997_v6 = vpop.f32.mrf.mxu0 }
 0x8a7   :  { %v20233_v35 = vpop.f32.mrf.mxu0 }
 0x8a9   :  { %v20235_v29 = vpop.f32.mrf.mxu0 }
 0x8ab   :  { %v17977_v36 = vpop.f32.mrf.mxu0 }
 0x8ac   :  { %v20243_v34 = vadd.f32 %v17977_v36, %v20240_v33 }
 0x8ad   :  { %v20245_v37 = vpop.f32.mrf.mxu0 }
 0x8af   :  { %v17980_v38 = vpop.f32.mrf.mxu0 }
 0x8b0   :  { %v20248_v39 = vadd.f32 %v17980_v38, %v20240_v33 }
 0x8b1   :  { %v20250_v40 = vpop.f32.mrf.mxu0 }
 0x8b3   :  { %v17983_v41 = vpop.f32.mrf.mxu0 }
 0x8b4   :  { %v20253_v42 = vadd.f32 %v17983_v41, %v20240_v33 }
 0x937   :  { %v17890_v45 = vpop.f32.mrf.mxu1 }
 0x938   :  { %v20259_v46 = vadd.f32 %v17890_v45, %v2083_v44  ;;  %v4252_v44 = vmul.f32 0.25, %v3978_v3  ;;  %v4254_v45 = vmul.f32 0.25, %v3988_v18 }
 0x939   :  { %v20261_v47 = vpop.f32.mrf.mxu1 }
 0x940   :  { %v17893_v49 = vpop.f32.mrf.mxu1 }
 0x941   :  { %v20264_v50 = vadd.f32 %v17893_v49, %v2085_v48  ;;  %v3998_v48 = vadd.f32 %v16064_v62, %v3997_v6  ;;  %v3993_v6 = vadd.f32 %v20229_v16, %v16064_v62 }
 0x942   :  { %v20266_v7 = vpop.f32.mrf.mxu1 }
 0x943   :  { %v4255_v16 = vmul.f32 0.25, %v3993_v6 }
 0x944   :  { %v17896_v52 = vpop.f32.mrf.mxu1 }
 0x945   :  { %v20269_v55 = vadd.f32 %v17896_v52, %v2087_v51  ;;  %v4256_v51 = vmul.f32 0.25, %v3998_v48  ;;  %v4212_v52 = vadd.f32 %v20240_v33, %v20235_v29 }
 0x946   :  { %v20271_v5 = vpop.f32.mrf.mxu1 }
 0x948   :  { %v17899_v56 = vpop.f32.mrf.mxu1 }
 0x949   :  { %v20274_v57 = vadd.f32 %v17899_v56, %v2089_v9  ;;  %v4003_v56 = vadd.f32 %v20231_v32, %v16064_v62  ;;  %v4217_v32 = vadd.f32 %v20233_v35, %v20240_v33 }
 0x94a   :  { %v20276_v58 = vpop.f32.mrf.mxu1 }
 0x94c   :  { %v17946_v15 = vpop.f32.mrf.mxu1 }
 0x94d   :  { %v4095_v26 = vadd.f32 %v17946_v15, %v16082_v20  ;;  %v4257_v15 = vmul.f32 0.25, %v4003_v56 }
 0x94e   :  { %v4089_v0 = vpop.f32.mrf.mxu1 }
 0x94f   :  { %v4090_v1 = vadd.f32 %v16082_v20, %v4089_v0 }
 0x950   :  { %v17949_v4 = vpop.f32.mrf.mxu1 }
 0x951   :  { %17985 = vmatpush3.xpose.msk.msra.mxu1 %vm663_vm11, %v4090_v1  ;;  %v4105_v31 = vadd.f32 %v17949_v4, %v16082_v20  ;;  %v20334_v4 = vpop.f32.mrf.mxu0 }
 0x952   :  { %v4099_v12 = vpop.f32.mrf.mxu1  ;;  %17989 = vmatprep.subr.mxu1 %v19351_v23 }
 0x953   :  { %v4100_v30 = vadd.f32 %v16082_v20, %v4099_v12 }
 0x954   :  { %v17952_v59 = vpop.f32.mrf.mxu1  ;;  %17987 = vmatmul.mubr.msk.f32.vlgmr.msra.gmra.mxu1 %vm663_vm11, %v4250_v61 }
 0x955   :  { %17990 = vmatpush3.xpose.msk.msra.mxu1 %vm663_vm11, %v4095_v26  ;;  %17991 = vmatprep.mubr.msk.f32.mxu1 %vm19352_vm10, %v19351_v23  ;;  %v4115_v9 = vadd.f32 %v17952_v59, %v16082_v20 }
 0x956   :  { %v4109_v36 = vpop.f32.mrf.mxu1  ;;  %17994 = vmatprep.subr.mxu1 %v19351_v23 }
 0x957   :  { %v4110_v38 = vadd.f32 %v16082_v20, %v4109_v36 }
 0x958   :  { %v17955_v41 = vpop.f32.mrf.mxu1  ;;  %17992 = vmatmul.mubr.msk.f32.vlgmr.msra.gmra.mxu1 %vm663_vm11, %v4251_v25 }
 0x959   :  { %17995 = vmatpush3.xpose.msk.msra.mxu1 %vm663_vm11, %v4100_v30  ;;  %18005 = vmatpush3.xpose.msk.msra.mxu0 %vm663_vm11, %v4110_v38  ;;  %v4125_v29 = vadd.f32 %v17955_v41, %v16082_v20 }
 0x95a   :  { %v4119_v49 = vpop.f32.mrf.mxu1  ;;  %17996 = vmatprep.mubr.msk.f32.mxu1 %vm19352_vm10, %v19351_v23  ;;  %17999 = vmatprep.subr.mxu1 %v19351_v23 }
 0x95b   :  { %v4120_v28 = vadd.f32 %v16082_v20, %v4119_v49  ;;  %18014 = vmatprep.subr.mxu0 %v19351_v23 }
 0x95c   :  { %17997 = vmatmul.mubr.msk.f32.vlgmr.msra.gmra.mxu1 %vm663_vm11, %v4252_v44  ;;  %18007 = vmatmul.mubr.msk.f32.vlgmr.msra.gmra.mxu0 %vm663_vm11, %v4254_v45 }
 0x95d   :  { %18000 = vmatpush3.xpose.msk.msra.mxu1 %vm663_vm11, %v4105_v31  ;;  %18015 = vmatpush3.xpose.msk.msra.mxu0 %vm663_vm11, %v4120_v28 }
 0x95e   :  { %18001 = vmatprep.mubr.msk.f32.mxu1 %vm19352_vm10, %v19351_v23  ;;  %18016 = vmatprep.mubr.msk.f32.mxu0 %vm19352_vm10, %v19351_v23 }
 0x95f   :  { %18009 = vmatprep.subr.mxu1 %v19351_v23  ;;  %18024 = vmatprep.subr.mxu0 %v19351_v23 }
 0x960   :  { %18002 = vmatmul.mubr.msk.f32.vlgmr.msra.gmra.mxu1 %vm663_vm11, %v4253_v27  ;;  %18017 = vmatmul.mubr.msk.f32.vlgmr.msra.gmra.mxu0 %vm663_vm11, %v4256_v51 }
 0x961   :  { %18010 = vmatpush3.xpose.msk.msra.mxu1 %vm663_vm11, %v4115_v9  ;;  %18025 = vmatpush3.msra.mxu0 %v4212_v52 }
 0x962   :  { %18011 = vmatprep.mubr.msk.f32.mxu1 %vm19352_vm10, %v19351_v23  ;;  %18019 = vmatprep.subr.mxu1 %v19351_v23 }
 0x963   :  { %18026 = vmatprep.mubr.msk.f32.mxu0 %vm19352_vm10, %v19351_v23  ;;  %18034 = vmatprep.subr.mxu0 %v19351_v23 }
 0x964   :  { %18012 = vmatmul.mubr.msk.f32.vlgmr.msra.gmra.mxu1 %vm663_vm11, %v4255_v16 }
 0x965   :  { %18020 = vmatpush3.xpose.msk.msra.mxu1 %vm663_vm11, %v4125_v29  ;;  %18021 = vmatprep.mubr.msk.f32.mxu1 %vm19352_vm10, %v19351_v23 }
 0x966   :  { %18029 = vmatprep.subr.mxu1 %v19351_v23 }
 0x968   :  { %18022 = vmatmul.mubr.msk.f32.vlgmr.msra.gmra.mxu1 %vm663_vm11, %v4257_v15 }
 0x969   :  { %18030 = vmatpush3.msra.mxu1 %v4217_v32  ;;  %18031 = vmatprep.mubr.msk.f32.mxu1 %vm19352_vm10, %v19351_v23 }
 0x96a   :  { %18039 = vmatprep.subr.mxu1 %v19351_v23 }
 0xa14   :  { %v4330_v62 = vpop.f32.mrf.mxu1 }
 0xa15   :  { %v4866_v14 = vsel %vm1272_vm12, %v4330_v62, -inf }
 0xa16   :  { %4867 = vmax.xlane.f32.xlu1 %v4866_v14  ;;  %v17988_v20 = vpop.f32.mrf.mxu1 }
 0xa18   :  { %v4406_v0 = vpop.f32.mrf.mxu1 }
 0xa19   :  { %v4869_v1 = vsel %vm1272_vm12, %v4406_v0, -inf }
 0xa1a   :  { %4870 = vmax.xlane.f32.xlu0 %v4869_v1  ;;  %v17993_v35 = vpop.f32.mrf.mxu1 }
 0xa1c   :  { %v4482_v22 = vpop.f32.mrf.mxu1  ;;  %v4634_v61 = vpop.f32.mrf.mxu0 }
 0xa1d   :  { %v4872_v12 = vsel %vm1272_vm12, %v4482_v22, -inf  ;;  %v4878_v18 = vsel %vm1272_vm12, %v4634_v61, -inf }
 0xa1e   :  { %v18008_v26 = vpop.f32.mrf.mxu0  ;;  %4873 = vmax.xlane.f32.xlu1 %v4872_v12  ;;  %v17998_v59 = vpop.f32.mrf.mxu1 }
 0xa20   :  { %v4558_v25 = vpop.f32.mrf.mxu1  ;;  %v4786_v3 = vpop.f32.mrf.mxu0 }
 0xa21   :  { %v4875_v36 = vsel %vm1272_vm12, %v4558_v25, -inf  ;;  %v4884_v43 = vsel %vm1272_vm12, %v4786_v3, -inf }
 0xa22   :  { %v18018_v30 = vpop.f32.mrf.mxu0  ;;  %4879 = vmax.xlane.f32.xlu1 %v4878_v18  ;;  %4876 = vmax.xlane.f32.xlu0 %v4875_v36  ;;  %v18003_v38 = vpop.f32.mrf.mxu1 }
 0xa24   :  { %v4710_v41 = vpop.f32.mrf.mxu1 }
 0xa25   :  { %v4881_v44 = vsel %vm1272_vm12, %v4710_v41, -inf }
 0xa26   :  { %4885 = vmax.xlane.f32.xlu1 %v4884_v43  ;;  %4882 = vmax.xlane.f32.xlu0 %v4881_v44  ;;  %v18013_v45 = vpop.f32.mrf.mxu1 }
 0xa28   :  { %v4862_v48 = vpop.f32.mrf.mxu1 }
 0xa29   :  { %v4887_v49 = vsel %vm1272_vm12, %v4862_v48, -inf }
 0xa2a   :  { %4888 = vmax.xlane.f32.xlu0 %v4887_v49  ;;  %v18023_v31 = vpop.f32.mrf.mxu1 }
 0xa9f   :  { %v4868_v28 = vpop.xlane.xlu1 %4867 }
 0xaa0   :  { %v4890_v27 = vsub.f32 %v4330_v62, %v4868_v28 }
 0xaa2   :  { %v4898_v6 = vmul.f32 1.442695, %v4890_v27 }
 0xaa3   :  { %v4871_v51 = vpop.xlane.xlu0 %4870 }
 0xaa4   :  { %19085 = vpow2.f32 %v4898_v6  ;;  %v4891_v52 = vsub.f32 %v4406_v0, %v4871_v51 }
 0xaa6   :  { %v4900_v9 = vmul.f32 1.442695, %v4891_v52 }
 0xaa7   :  { %v4874_v16 = vpop.xlane.xlu1 %4873 }
 0xaa8   :  { %19087 = vpow2.f32 %v4900_v9  ;;  %v4892_v56 = vsub.f32 %v4482_v22, %v4874_v16 }
 0xaaa   :  { %v4902_v29 = vmul.f32 1.442695, %v4892_v56 }
 0xaab   :  { %v4880_v15 = vpop.xlane.xlu1 %4879  ;;  %v4877_v32 = vpop.xlane.xlu0 %4876 }
 0xaac   :  { %19089 = vpow2.f32 %v4902_v29  ;;  %v4894_v14 = vsub.f32 %v4634_v61, %v4880_v15  ;;  %v4893_v20 = vsub.f32 %v4558_v25, %v4877_v32 }
 0xaae   :  { %v4906_v1 = vmul.f32 1.442695, %v4894_v14  ;;  %v4904_v35 = vmul.f32 1.442695, %v4893_v20  ;;  %v4222_v20 = vadd.f32 %v20240_v33, %v20245_v37 }
 0xaaf   :  { %v4886_v12 = vpop.xlane.xlu1 %4885  ;;  %v4883_v26 = vpop.xlane.xlu0 %4882 }
 0xab0   :  { %19091 = vpow2.f32 %v4906_v1  ;;  %v4896_v62 = vsub.f32 %v4786_v3, %v4886_v12  ;;  %v4895_v59 = vsub.f32 %v4710_v41, %v4883_v26 }
 0xab1   :  { %v19086_v18 = vpop.eup %19085  ;;  %19093 = vpow2.f32 %v4904_v35 }
 0xab2   :  { %v4910_v0 = vmul.f32 1.442695, %v4896_v62  ;;  %v4908_v36 = vmul.f32 1.442695, %v4895_v59  ;;  %v4914_v30 = vsel %vm1272_vm12, %v19086_v18, 0.0 }
 0xab3   :  { %4915 = vadd.xlane.f32.xlu1 %v4914_v30  ;;  %v4889_v22 = vpop.xlane.xlu0 %4888  ;;  %v4242_v30 = vadd.f32 %v20240_v33, %v20334_v4  ;;  %v16150_v4 = vld [vmem:[%s22591_s2 + $0xf8] sm:$0xff] }
 0xab4   :  { %19095 = vpow2.f32 %v4910_v0  ;;  %v4897_v38 = vsub.f32 %v4862_v48, %v4889_v22 }
 0xab5   :  { %v19088_v43 = vpop.eup %19087  ;;  %19097 = vpow2.f32 %v4908_v36 }
 0xab6   :  { %v4912_v61 = vmul.f32 1.442695, %v4897_v38  ;;  %v4917_v25 = vsel %vm1272_vm12, %v19088_v43, 0.0 }
 0xab7   :  { %4918 = vadd.xlane.f32.xlu0 %v4917_v25  ;;  %v16149_v25 = vld [vmem:[%s22591_s2 + $0xf0] sm:$0xff] }
 0xab8   :  { %19099 = vpow2.f32 %v4912_v61 }
 0xab9   :  { %v19090_v44 = vpop.eup %19089 }
 0xaba   :  { %v4920_v3 = vsel %vm1272_vm12, %v19090_v44, 0.0 }
 0xabb   :  { %4921 = vadd.xlane.f32.xlu1 %v4920_v3  ;;  %v16146_v3 = vld [vmem:[%s22591_s2 + $0xd8] sm:$0xff] }
 0xabd   :  { %v19092_v41 = vpop.eup %19091 }
 0xabe   :  { %v19094_v45 = vpop.eup %19093  ;;  %v4926_v49 = vsel %vm1272_vm12, %v19092_v41, 0.0 }
 0xabf   :  { %4927 = vadd.xlane.f32.xlu1 %v4926_v49  ;;  %v4923_v31 = vsel %vm1272_vm12, %v19094_v45, 0.0  ;;  %v16143_v49 = vld [vmem:[%s22591_s2 + $0xc0] sm:$0xff] }
 0xac0   :  { %4924 = vadd.xlane.f32.xlu0 %v4923_v31  ;;  %v16186_v31 = vld [vmem:[%s22562_s7 + $0xf8] sm:$0xff] }
 0xac1   :  { %v19096_v48 = vpop.eup %19095 }
 0xac2   :  { %v19098_v28 = vpop.eup %19097  ;;  %v4932_v27 = vsel %vm1272_vm12, %v19096_v48, 0.0 }
 0xac3   :  { %4933 = vadd.xlane.f32.xlu1 %v4932_v27  ;;  %v4929_v6 = vsel %vm1272_vm12, %v19098_v28, 0.0  ;;  %v16183_v27 = vld [vmem:[%s22562_s7 + $0xe0] sm:$0xff] }
 0xac4   :  { %4930 = vadd.xlane.f32.xlu0 %v4929_v6  ;;  %v16182_v6 = vld [vmem:[%s22562_s7 + $0xd8] sm:$0xff] }
 0xac5   :  { %v19100_v51 = vpop.eup %19099 }
 0xac6   :  { %v4935_v52 = vsel %vm1272_vm12, %v19100_v51, 0.0 }
 0xac8   :  { %4936 = vadd.xlane.f32.xlu0 %v4935_v52  ;;  %v16180_v52 = vld [vmem:[%s22562_s7 + $0xc8] sm:$0xff] }
 0xb3c   :  { %v4916_v9 = vpop.xlane.xlu1 %4915 }
 0xb3d   :  { %19101 = vrcp.f32 %v4916_v9  ;;  %v16179_v9 = vld [vmem:[%s22562_s7 + $0xc0] sm:$0xff] }
 0xb40   :  { %v4919_v16 = vpop.xlane.xlu0 %4918 }
 0xb41   :  { %19103 = vrcp.f32 %v4919_v16  ;;  %v16134_v16 = vld [vmem:[%s22564_s9 + $0x28] sm:$0xff] }
 0xb44   :  { %v4922_v56 = vpop.xlane.xlu1 %4921 }
 0xb45   :  { %19105 = vrcp.f32 %v4922_v56  ;;  %v16133_v56 = vld [vmem:[%s22564_s9 + $0x20] sm:$0xff] }
 0xb48   :  { %v4928_v29 = vpop.xlane.xlu1 %4927 }
 0xb49   :  { %19107 = vrcp.f32 %v4928_v29  ;;  %v4925_v15 = vpop.xlane.xlu0 %4924  ;;  %v16168_v29 = vld [vmem:[%s22592_s27 + $0xf8] sm:$0xff] }
 0xb4a   :  { %v19102_v32 = vpop.eup %19101  ;;  %19109 = vrcp.f32 %v4925_v15 }
 0xb4b   :  { %v4946_v14 = vmul.f32 %v19102_v32, %v19086_v18  ;;  %v4232_v18 = vadd.f32 %v20240_v33, %v20250_v40 }
 0xb4c   :  { %v4934_v1 = vpop.xlane.xlu1 %4933 }
 0xb4d   :  { %19111 = vrcp.f32 %v4934_v1  ;;  %v4931_v35 = vpop.xlane.xlu0 %4930  ;;  %18027 = vmatmul.mubr.msk.f32.vlgmr.msra.gmra.mxu0 %vm1272_vm12, %v4946_v14 }
 0xb4e   :  { %v19104_v12 = vpop.eup %19103  ;;  %19113 = vrcp.f32 %v4931_v35  ;;  %18035 = vmatpush3.msra.mxu0 %v4222_v20  ;;  %18036 = vmatprep.mubr.msk.f32.mxu0 %vm19352_vm10, %v19351_v23  ;;  %v16167_v20 = vld [vmem:[%s22592_s27 + $0xf0] sm:$0xff]  ;;  %v16166_v35 = vld [vmem:[%s22592_s27 + $0xe8] sm:$0xff] }
 0xb4f   :  { %v4947_v26 = vmul.f32 %v19104_v12, %v19088_v43  ;;  %18044 = vmatprep.subr.mxu0 %v19351_v23 }
 0xb51   :  { %v4937_v62 = vpop.xlane.xlu0 %4936  ;;  %18032 = vmatmul.mubr.msk.f32.vlgmr.msra.gmra.mxu1 %vm1272_vm12, %v4947_v26  ;;  %v16165_v26 = vld [vmem:[%s22592_s27 + $0xe0] sm:$0xff] }
 0xb52   :  { %v19106_v59 = vpop.eup %19105  ;;  %19115 = vrcp.f32 %v4937_v62  ;;  %18040 = vmatpush3.msra.mxu1 %v20243_v34  ;;  %18041 = vmatprep.mubr.msk.f32.mxu1 %vm19352_vm10, %v19351_v23 }
 0xb53   :  { %v4948_v37 = vmul.f32 %v19106_v59, %v19090_v44  ;;  %18049 = vmatprep.subr.mxu1 %v19351_v23  ;;  %v16148_v44 = vld [vmem:[%s22591_s2 + $0xe8] sm:$0xff]  ;;  %v16164_v59 = vld [vmem:[%s22592_s27 + $0xd8] sm:$0xff] }
 0xb55   :  { %18037 = vmatmul.mubr.msk.f32.vlgmr.msra.gmra.mxu0 %vm1272_vm12, %v4948_v37 }
 0xb56   :  { %v19108_v0 = vpop.eup %19107  ;;  %18045 = vmatpush3.msra.mxu0 %v4232_v18  ;;  %18046 = vmatprep.mubr.msk.f32.mxu0 %vm19352_vm10, %v19351_v23 }
 0xb57   :  { %v19110_v36 = vpop.eup %19109  ;;  %18054 = vmatprep.subr.mxu0 %v19351_v23  ;;  %v4950_v34 = vmul.f32 %v19108_v0, %v19092_v41  ;;  %v16145_v41 = vld [vmem:[%s22591_s2 + $0xd0] sm:$0xff] }
 0xb58   :  { %v4949_v22 = vmul.f32 %v19110_v36, %v19094_v45  ;;  %v16144_v45 = vld [vmem:[%s22591_s2 + $0xc8] sm:$0xff]  ;;  %v16163_v0 = vld [vmem:[%s22592_s27 + $0xd0] sm:$0xff] }
 0xb59   :  { %18047 = vmatmul.mubr.msk.f32.vlgmr.msra.gmra.mxu0 %vm1272_vm12, %v4950_v34 }
 0xb5a   :  { %v19112_v38 = vpop.eup %19111  ;;  %18042 = vmatmul.mubr.msk.f32.vlgmr.msra.gmra.mxu1 %vm1272_vm12, %v4949_v22  ;;  %18055 = vmatpush3.msra.mxu0 %v4242_v30  ;;  %v16162_v30 = vld [vmem:[%s22592_s27 + $0xc8] sm:$0xff] }
 0xb5b   :  { %v19114_v40 = vpop.eup %19113  ;;  %18050 = vmatpush3.msra.mxu1 %v20248_v39  ;;  %18051 = vmatprep.mubr.msk.f32.mxu1 %vm19352_vm10, %v19351_v23  ;;  %v4952_v43 = vmul.f32 %v19112_v38, %v19096_v48  ;;  %v16185_v48 = vld [vmem:[%s22562_s7 + $0xf0] sm:$0xff] }
 0xb5c   :  { %18056 = vmatprep.mubr.msk.f32.mxu0 %vm19352_vm10, %v19351_v23  ;;  %18059 = vmatprep.subr.mxu1 %v19351_v23  ;;  %v4951_v33 = vmul.f32 %v19114_v40, %v19098_v28  ;;  %v16184_v28 = vld [vmem:[%s22562_s7 + $0xe8] sm:$0xff]  ;;  %v16161_v40 = vld [vmem:[%s22592_s27 + $0xc0] sm:$0xff] }
 0xb5d   :  { %18057 = vmatmul.mubr.msk.f32.vlgmr.msra.gmra.mxu0 %vm1272_vm12, %v4952_v43  ;;  %18064 = vmatprep.subr.mxu0 %v16134_v16 }
 0xb5e   :  { %18052 = vmatmul.mubr.msk.f32.vlgmr.msra.gmra.mxu1 %vm1272_vm12, %v4951_v33  ;;  %18065 = vmatpush3.msra.mxu0 %v16134_v16 }
 0xb5f   :  { %v19116_v61 = vpop.eup %19115  ;;  %18060 = vmatpush3.msra.mxu1 %v20253_v42  ;;  %18061 = vmatprep.mubr.msk.f32.mxu1 %vm19352_vm10, %v19351_v23  ;;  %v16147_v42 = vld [vmem:[%s22591_s2 + $0xe0] sm:$0xff] }
 0xb60   :  { %18080 = vmatprep.subr.mxu1 %v16150_v4  ;;  %v4953_v39 = vmul.f32 %v19116_v61, %v19100_v51  ;;  %v16181_v51 = vld [vmem:[%s22562_s7 + $0xd0] sm:$0xff]  ;;  %18066 = vmatprep.subr.mxu0 %v16133_v56 }
 0xb61   :  { %18067 = vmatpush3.msra.mxu0 %v16133_v56 }
 0xb62   :  { %18062 = vmatmul.mubr.msk.f32.vlgmr.msra.gmra.mxu1 %vm1272_vm12, %v4953_v39  ;;  %18108 = vmatprep.subr.mxu0 %v16168_v29 }
 0xb63   :  { %18081 = vmatpush3.msra.mxu1 %v16150_v4  ;;  %18096 = vmatprep.mubr.msk.f32.mxu1 %vm285_vm9, %v19574_v53 }
 0xb64   :  { %18082 = vmatprep.subr.mxu1 %v16149_v25 }
 0xb65   :  { %18083 = vmatpush3.msra.mxu1 %v16149_v25 }
 0xb66   :  { %18084 = vmatprep.subr.mxu1 %v16148_v44 }
 0xb67   :  { %18085 = vmatpush3.msra.mxu1 %v16148_v44 }
 0xb68   :  { %18086 = vmatprep.subr.mxu1 %v16147_v42 }
 0xb69   :  { %18087 = vmatpush3.msra.mxu1 %v16147_v42 }
 0xb6a   :  { %18088 = vmatprep.subr.mxu1 %v16146_v3 }
 0xb6b   :  { %18089 = vmatpush3.msra.mxu1 %v16146_v3 }
 0xb6c   :  { %18090 = vmatprep.subr.mxu1 %v16145_v41 }
 0xb6d   :  { %18091 = vmatpush3.msra.mxu1 %v16145_v41 }
 0xb6e   :  { %18092 = vmatprep.subr.mxu1 %v16144_v45 }
 0xb6f   :  { %18093 = vmatpush3.msra.mxu1 %v16144_v45 }
 0xb70   :  { %18094 = vmatprep.subr.mxu1 %v16143_v49 }
 0xb71   :  { %18095 = vmatpush3.msra.mxu1 %v16143_v49 }
 0xb72   :  { %18097 = vmatmul.mubr.msk.f32.vlgmr.msra.gmra.mxu1 %vm285_vm9, %v19576_v54  ;;  %18136 = vmatprep.subr.mxu1 %v16186_v31 }
 0xb73   :  { %18099 = vmatprep.mubr.msk.f32.mxu1 %vm285_vm9, %v19595_v60  ;;  %18137 = vmatpush3.msra.mxu1 %v16186_v31 }
 0xb74   :  { %18138 = vmatprep.subr.mxu1 %v16185_v48 }
 0xb75   :  { %18139 = vmatpush3.msra.mxu1 %v16185_v48 }
 0xb76   :  { %18100 = vmatmul.mubr.msk.f32.gmra.mxu1 %vm285_vm9, %v19600_v63  ;;  %18140 = vmatprep.subr.mxu1 %v16184_v28 }
 0xb77   :  { %18102 = vmatprep.mubr.msk.f32.mxu1 %vm285_vm9, %v19609_v2  ;;  %18141 = vmatpush3.msra.mxu1 %v16184_v28  ;;  %v20534_v28 = vld [vmem:[%s22563_s8 + $0x3] ss:$0 sm:$0xff] }
 0xb78   :  { %18142 = vmatprep.subr.mxu1 %v16183_v27 }
 0xb79   :  { %18143 = vmatpush3.msra.mxu1 %v16183_v27 }
 0xb7a   :  { %18103 = vmatmul.mubr.msk.f32.gmra.mxu1 %vm285_vm9, %v19624_v8  ;;  %18144 = vmatprep.subr.mxu1 %v16182_v6 }
 0xb7b   :  { %18105 = vmatprep.mubr.msk.f32.mxu1 %vm285_vm9, %v19633_v10  ;;  %18145 = vmatpush3.msra.mxu1 %v16182_v6 }
 0xb7c   :  { %18146 = vmatprep.subr.mxu1 %v16181_v51 }
 0xb7d   :  { %18147 = vmatpush3.msra.mxu1 %v16181_v51 }
 0xb7e   :  { %18106 = vmatmul.mubr.msk.f32.gmra.mxu1 %vm285_vm9, %v19645_v13  ;;  %18148 = vmatprep.subr.mxu1 %v16180_v52 }
 0xb7f   :  { %18149 = vmatpush3.msra.mxu1 %v16180_v52  ;;  %18152 = vmatprep.mubr.msk.f32.mxu1 %vm285_vm9, %v19574_v53 }
 0xb80   :  { %18150 = vmatprep.subr.mxu1 %v16179_v9 }
 0xb81   :  { %18151 = vmatpush3.msra.mxu1 %v16179_v9 }
 0xb82   :  { %18153 = vmatmul.mubr.msk.f32.vlgmr.msra.gmra.mxu1 %vm285_vm9, %v19576_v54  ;;  %18184 = vmatprep.subr.mxu1 %v19351_v23 }
 0xb83   :  { %18155 = vmatprep.mubr.msk.f32.mxu1 %vm285_vm9, %v19595_v60 }
 0xb86   :  { %18156 = vmatmul.mubr.msk.f32.gmra.mxu1 %vm285_vm9, %v19600_v63 }
 0xb87   :  { %18158 = vmatprep.mubr.msk.f32.mxu1 %vm285_vm9, %v19609_v2 }
 0xb8a   :  { %18159 = vmatmul.mubr.msk.f32.gmra.mxu1 %vm285_vm9, %v19624_v8 }
 0xb8b   :  { %18161 = vmatprep.mubr.msk.f32.mxu1 %vm285_vm9, %v19633_v10 }
 0xb8e   :  { %18162 = vmatmul.mubr.msk.f32.gmra.mxu1 %vm285_vm9, %v19645_v13 }
 0xb8f   :  { %18186 = vmatprep.mubr.msk.f32.mxu1 %vm19352_vm10, %v19351_v23 }
 0xc0d   :  { %v5023_v15 = vpop.f32.mrf.mxu0 }
 0xc0e   :  { %18068 = vmatprep.mubr.msk.f32.mxu0 %vm663_vm11, %v5023_v15 }
 0xc0f   :  { %v18028_v32 = vpop.f32.mrf.mxu0 }
 0xc11   :  { %v5096_v14 = vpop.f32.mrf.mxu1 }
 0xc12   :  { %18069 = vmatmul.mubr.msk.f32.vlgmr.msra.gmra.mxu0 %vm663_vm11, %v5096_v14 }
 0xc13   :  { %v18033_v1 = vpop.f32.mrf.mxu1  ;;  %18109 = vmatpush3.msra.mxu0 %v16168_v29 }
 0xc14   :  { %18110 = vmatprep.subr.mxu0 %v16167_v20 }
 0xc15   :  { %v5169_v12 = vpop.f32.mrf.mxu0  ;;  %18111 = vmatpush3.msra.mxu0 %v16167_v20 }
 0xc16   :  { %18071 = vmatprep.mubr.msk.f32.mxu0 %vm663_vm11, %v5169_v12  ;;  %18112 = vmatprep.subr.mxu0 %v16166_v35 }
 0xc17   :  { %v18038_v62 = vpop.f32.mrf.mxu0  ;;  %18113 = vmatpush3.msra.mxu0 %v16166_v35 }
 0xc18   :  { %18114 = vmatprep.subr.mxu0 %v16165_v26 }
 0xc19   :  { %v5315_v37 = vpop.f32.mrf.mxu0  ;;  %18115 = vmatpush3.msra.mxu0 %v16165_v26 }
 0xc1a   :  { %v5242_v18 = vpop.f32.mrf.mxu1  ;;  %18116 = vmatprep.subr.mxu0 %v16164_v59 }
 0xc1b   :  { %18072 = vmatmul.mubr.msk.f32.gmra.mxu0 %vm663_vm11, %v5242_v18  ;;  %v18048_v36 = vpop.f32.mrf.mxu0 }
 0xc1c   :  { %v18043_v34 = vpop.f32.mrf.mxu1  ;;  %18074 = vmatprep.mubr.msk.f32.mxu0 %vm663_vm11, %v5315_v37  ;;  %18117 = vmatpush3.msra.mxu0 %v16164_v59  ;;  %v16170_v36 = vld [vmem:[%s22561_s6 + $0x3] ss:$0 sm:$0xff] }
 0xc1d   :  { %v5461_v22 = vpop.f32.mrf.mxu0  ;;  %18118 = vmatprep.subr.mxu0 %v16163_v0 }
 0xc1e   :  { %v5388_v38 = vpop.f32.mrf.mxu1  ;;  %18119 = vmatpush3.msra.mxu0 %v16163_v0 }
 0xc1f   :  { %18075 = vmatmul.mubr.msk.f32.gmra.mxu0 %vm663_vm11, %v5388_v38  ;;  %v18058_v43 = vpop.f32.mrf.mxu0  ;;  %18120 = vmatprep.subr.mxu0 %v16162_v30 }
 0xc20   :  { %v18053_v33 = vpop.f32.mrf.mxu1  ;;  %18077 = vmatprep.mubr.msk.f32.mxu0 %vm663_vm11, %v5461_v22  ;;  %18121 = vmatpush3.msra.mxu0 %v16162_v30 }
 0xc21   :  { %18122 = vmatprep.subr.mxu0 %v16161_v40 }
 0xc22   :  { %v5534_v4 = vpop.f32.mrf.mxu1  ;;  %18123 = vmatpush3.msra.mxu0 %v16161_v40 }
 0xc23   :  { %18078 = vmatmul.mubr.msk.f32.gmra.mxu0 %vm663_vm11, %v5534_v4  ;;  %18164 = vmatprep.subr.mxu0 %v19351_v23 }
 0xc24   :  { %v18063_v61 = vpop.f32.mrf.mxu1  ;;  %18124 = vmatprep.mubr.msk.f32.mxu0 %vm285_vm9, %v19574_v53 }
 0xc27   :  { %18125 = vmatmul.mubr.msk.f32.vlgmr.msra.gmra.mxu0 %vm285_vm9, %v19576_v54 }
 0xc28   :  { %18127 = vmatprep.mubr.msk.f32.mxu0 %vm285_vm9, %v19595_v60 }
 0xc2b   :  { %18128 = vmatmul.mubr.msk.f32.gmra.mxu0 %vm285_vm9, %v19600_v63 }
 0xc2c   :  { %18130 = vmatprep.mubr.msk.f32.mxu0 %vm285_vm9, %v19609_v2 }
 0xc2f   :  { %18131 = vmatmul.mubr.msk.f32.gmra.mxu0 %vm285_vm9, %v19624_v8 }
 0xc30   :  { %18133 = vmatprep.mubr.msk.f32.mxu0 %vm285_vm9, %v19633_v10 }
 0xc32   :  { %v18098_v39 = vpop.f32.mrf.mxu1 }
 0xc33   :  { %18134 = vmatmul.mubr.msk.f32.gmra.mxu0 %vm285_vm9, %v19645_v13 }
 0xc34   :  { %v5761_v25 = vpop.f32.mrf.mxu1  ;;  %18166 = vmatprep.mubr.msk.f32.mxu0 %vm19352_vm10, %v19351_v23 }
 0xc36   :  { %v18101_v44 = vpop.f32.mrf.mxu1 }
 0xc38   :  { %v5771_v42 = vpop.f32.mrf.mxu1 }
 0xc3a   :  { %v20523_v3 = vpop.f32.mrf.mxu1 }
 0xc3c   :  { %v5781_v41 = vpop.f32.mrf.mxu1 }
 0xc3e   :  { %v20525_v45 = vpop.f32.mrf.mxu1 }
 0xc40   :  { %v5791_v49 = vpop.f32.mrf.mxu1 }
 0xc42   :  { %v20527_v31 = vpop.f32.mrf.mxu1 }
 0xc44   :  { %v20529_v48 = vpop.f32.mrf.mxu1 }
 0xc46   :  { %v18157_v27 = vpop.f32.mrf.mxu1 }
 0xc47   :  { %v20537_v6 = vadd.f32 %v18157_v27, %v20534_v28 }
 0xc48   :  { %v20539_v51 = vpop.f32.mrf.mxu1 }
 0xc4a   :  { %v18160_v52 = vpop.f32.mrf.mxu1 }
 0xc4b   :  { %v20542_v9 = vadd.f32 %v18160_v52, %v20534_v28 }
 0xc4c   :  { %v20544_v16 = vpop.f32.mrf.mxu1 }
 0xc4e   :  { %v18163_v56 = vpop.f32.mrf.mxu1 }
 0xc4f   :  { %v20547_v29 = vadd.f32 %v18163_v56, %v20534_v28 }
 0xcd2   :  { %v18070_v15 = vpop.f32.mrf.mxu0 }
 0xcd3   :  { %v20550_v32 = vadd.f32 %v18070_v15, %v20259_v46 }
 0xcd4   :  { %v20552_v14 = vpop.f32.mrf.mxu0 }
 0xcdb   :  { %v18073_v20 = vpop.f32.mrf.mxu0 }
 0xcdc   :  { %v20555_v1 = vadd.f32 %v18073_v20, %v20264_v50  ;;  %v16152_v50 = vld [vmem:[%s22594_s25 + $0x3] ss:$0 sm:$0xff] }
 0xcdd   :  { %v20557_v35 = vpop.f32.mrf.mxu0  ;;  %v5762_v0 = vadd.f32 %v16152_v50, %v5761_v25  ;;  %v5767_v22 = vadd.f32 %v18098_v39, %v16152_v50  ;;  %v5772_v4 = vadd.f32 %v16152_v50, %v5771_v42  ;;  %v5782_v61 = vadd.f32 %v16152_v50, %v5781_v41 }
 0xcde   :  { %v5777_v56 = vadd.f32 %v18101_v44, %v16152_v50 }
 0xcdf   :  { %v18076_v12 = vpop.f32.mrf.mxu0  ;;  %v6045_v33 = vmul.f32 0.25, %v5767_v22  ;;  %v6046_v15 = vmul.f32 0.25, %v5772_v4  ;;  %v6048_v20 = vmul.f32 0.25, %v5782_v61 }
 0xce0   :  { %v20560_v26 = vadd.f32 %v18076_v12, %v20269_v55  ;;  %v5792_v12 = vadd.f32 %v16152_v50, %v5791_v49  ;;  %v6047_v44 = vmul.f32 0.25, %v5777_v56  ;;  %v5787_v49 = vadd.f32 %v20523_v3, %v16152_v50 }
 0xce1   :  { %v20562_v62 = vpop.f32.mrf.mxu0 }
 0xce2   :  { %v6049_v3 = vmul.f32 0.25, %v5787_v49 }
 0xce3   :  { %v18079_v59 = vpop.f32.mrf.mxu0 }
 0xce4   :  { %v20565_v37 = vadd.f32 %v18079_v59, %v20274_v57  ;;  %v6044_v57 = vmul.f32 0.25, %v5762_v0  ;;  %v6006_v0 = vadd.f32 %v20534_v28, %v20529_v48 }
 0xce5   :  { %v20567_v46 = vpop.f32.mrf.mxu0 }
 0xce7   :  { %v18126_v18 = vpop.f32.mrf.mxu0 }
 0xce8   :  { %v5889_v40 = vadd.f32 %v18126_v18, %v16170_v36  ;;  %v6050_v18 = vmul.f32 0.25, %v5792_v12 }
 0xce9   :  { %v5883_v55 = vpop.f32.mrf.mxu0 }
 0xcea   :  { %v5884_v34 = vadd.f32 %v16170_v36, %v5883_v55 }
 0xceb   :  { %v18129_v30 = vpop.f32.mrf.mxu0 }
 0xcec   :  { %18165 = vmatpush3.xpose.msk.msra.mxu0 %vm663_vm11, %v5884_v34  ;;  %v5899_v42 = vadd.f32 %v18129_v30, %v16170_v36  ;;  %v5797_v34 = vadd.f32 %v20525_v45, %v16152_v50  ;;  %v6011_v45 = vadd.f32 %v20527_v31, %v20534_v28 }
 0xced   :  { %v5893_v38 = vpop.f32.mrf.mxu0  ;;  %18169 = vmatprep.subr.mxu0 %v19351_v23 }
 0xcee   :  { %v5894_v39 = vadd.f32 %v16170_v36, %v5893_v38  ;;  %v6051_v30 = vmul.f32 0.25, %v5797_v34 }
 0xcef   :  { %v18132_v43 = vpop.f32.mrf.mxu0  ;;  %18167 = vmatmul.mubr.msk.f32.vlgmr.msra.gmra.mxu0 %vm663_vm11, %v6044_v57 }
 0xcf0   :  { %18170 = vmatpush3.xpose.msk.msra.mxu0 %vm663_vm11, %v5889_v40  ;;  %18171 = vmatprep.mubr.msk.f32.mxu0 %vm19352_vm10, %v19351_v23  ;;  %v5909_v55 = vadd.f32 %v18132_v43, %v16170_v36  ;;  %v20625_v40 = vpop.f32.mrf.mxu1 }
 0xcf1   :  { %v5903_v25 = vpop.f32.mrf.mxu0  ;;  %18174 = vmatprep.subr.mxu0 %v19351_v23 }
 0xcf2   :  { %v5904_v27 = vadd.f32 %v16170_v36, %v5903_v25 }
 0xcf3   :  { %v18135_v52 = vpop.f32.mrf.mxu0  ;;  %18172 = vmatmul.mubr.msk.f32.vlgmr.msra.gmra.mxu0 %vm663_vm11, %v6045_v33 }
 0xcf4   :  { %18175 = vmatpush3.xpose.msk.msra.mxu0 %vm663_vm11, %v5894_v39  ;;  %18185 = vmatpush3.xpose.msk.msra.mxu1 %vm663_vm11, %v5904_v27  ;;  %v5919_v48 = vadd.f32 %v18135_v52, %v16170_v36 }
 0xcf5   :  { %v5913_v59 = vpop.f32.mrf.mxu0  ;;  %18176 = vmatprep.mubr.msk.f32.mxu0 %vm19352_vm10, %v19351_v23  ;;  %18179 = vmatprep.subr.mxu0 %v19351_v23 }
 0xcf6   :  { %v5914_v41 = vadd.f32 %v16170_v36, %v5913_v59  ;;  %18194 = vmatprep.subr.mxu1 %v19351_v23 }
 0xcf7   :  { %18177 = vmatmul.mubr.msk.f32.vlgmr.msra.gmra.mxu0 %vm663_vm11, %v6046_v15  ;;  %18187 = vmatmul.mubr.msk.f32.vlgmr.msra.gmra.mxu1 %vm663_vm11, %v6048_v20 }
 0xcf8   :  { %18180 = vmatpush3.xpose.msk.msra.mxu0 %vm663_vm11, %v5899_v42  ;;  %18195 = vmatpush3.xpose.msk.msra.mxu1 %vm663_vm11, %v5914_v41 }
 0xcf9   :  { %18181 = vmatprep.mubr.msk.f32.mxu0 %vm19352_vm10, %v19351_v23  ;;  %18196 = vmatprep.mubr.msk.f32.mxu1 %vm19352_vm10, %v19351_v23 }
 0xcfa   :  { %18189 = vmatprep.subr.mxu0 %v19351_v23  ;;  %18204 = vmatprep.subr.mxu1 %v19351_v23 }
 0xcfb   :  { %18182 = vmatmul.mubr.msk.f32.vlgmr.msra.gmra.mxu0 %vm663_vm11, %v6047_v44  ;;  %18197 = vmatmul.mubr.msk.f32.vlgmr.msra.gmra.mxu1 %vm663_vm11, %v6050_v18 }
 0xcfc   :  { %18190 = vmatpush3.xpose.msk.msra.mxu0 %vm663_vm11, %v5909_v55  ;;  %18205 = vmatpush3.msra.mxu1 %v6006_v0 }
 0xcfd   :  { %18191 = vmatprep.mubr.msk.f32.mxu0 %vm19352_vm10, %v19351_v23  ;;  %18199 = vmatprep.subr.mxu0 %v19351_v23 }
 0xcfe   :  { %18206 = vmatprep.mubr.msk.f32.mxu1 %vm19352_vm10, %v19351_v23  ;;  %18214 = vmatprep.subr.mxu1 %v19351_v23 }
 0xcff   :  { %18192 = vmatmul.mubr.msk.f32.vlgmr.msra.gmra.mxu0 %vm663_vm11, %v6049_v3 }
 0xd00   :  { %18200 = vmatpush3.xpose.msk.msra.mxu0 %vm663_vm11, %v5919_v48  ;;  %18201 = vmatprep.mubr.msk.f32.mxu0 %vm19352_vm10, %v19351_v23 }
 0xd01   :  { %18209 = vmatprep.subr.mxu0 %v19351_v23 }
 0xd03   :  { %18202 = vmatmul.mubr.msk.f32.vlgmr.msra.gmra.mxu0 %vm663_vm11, %v6051_v30 }
 0xd04   :  { %18210 = vmatpush3.msra.mxu0 %v6011_v45  ;;  %18211 = vmatprep.mubr.msk.f32.mxu0 %vm19352_vm10, %v19351_v23 }
 0xd05   :  { %18219 = vmatprep.subr.mxu0 %v19351_v23 }
 0xdaf   :  { %v6124_v50 = vpop.f32.mrf.mxu0 }
 0xdb0   :  { %v6660_v36 = vsel %vm1272_vm12, %v6124_v50, -inf }
 0xdb1   :  { %6661 = vmax.xlane.f32.xlu1 %v6660_v36  ;;  %v18168_v22 = vpop.f32.mrf.mxu0 }
 0xdb3   :  { %v6200_v57 = vpop.f32.mrf.mxu0 }
 0xdb4   :  { %v6663_v38 = vsel %vm1272_vm12, %v6200_v57, -inf }
 0xdb5   :  { %6664 = vmax.xlane.f32.xlu0 %v6663_v38  ;;  %v18173_v31 = vpop.f32.mrf.mxu0 }
 0xdb7   :  { %v6276_v43 = vpop.f32.mrf.mxu0  ;;  %v6428_v33 = vpop.f32.mrf.mxu1 }
 0xdb8   :  { %v6666_v4 = vsel %vm1272_vm12, %v6276_v43, -inf  ;;  %v6672_v52 = vsel %vm1272_vm12, %v6428_v33, -inf }
 0xdb9   :  { %v18188_v61 = vpop.f32.mrf.mxu1  ;;  %6667 = vmax.xlane.f32.xlu1 %v6666_v4  ;;  %v18178_v25 = vpop.f32.mrf.mxu0 }
 0xdbb   :  { %v6352_v39 = vpop.f32.mrf.mxu0  ;;  %v6580_v27 = vpop.f32.mrf.mxu1 }
 0xdbc   :  { %v6669_v56 = vsel %vm1272_vm12, %v6352_v39, -inf  ;;  %v6678_v59 = vsel %vm1272_vm12, %v6580_v27, -inf }
 0xdbd   :  { %v18198_v15 = vpop.f32.mrf.mxu1  ;;  %6673 = vmax.xlane.f32.xlu1 %v6672_v52  ;;  %6670 = vmax.xlane.f32.xlu0 %v6669_v56  ;;  %v18183_v20 = vpop.f32.mrf.mxu0 }
 0xdbf   :  { %v6504_v12 = vpop.f32.mrf.mxu0 }
 0xdc0   :  { %v6675_v42 = vsel %vm1272_vm12, %v6504_v12, -inf }
 0xdc1   :  { %6679 = vmax.xlane.f32.xlu1 %v6678_v59  ;;  %6676 = vmax.xlane.f32.xlu0 %v6675_v42  ;;  %v18193_v41 = vpop.f32.mrf.mxu0 }
 0xdc3   :  { %v6656_v44 = vpop.f32.mrf.mxu0 }
 0xdc4   :  { %v6681_v49 = vsel %vm1272_vm12, %v6656_v44, -inf }
 0xdc5   :  { %6682 = vmax.xlane.f32.xlu0 %v6681_v49  ;;  %v18203_v18 = vpop.f32.mrf.mxu0 }
 0xe3a   :  { %v6662_v0 = vpop.xlane.xlu1 %6661 }
 0xe3b   :  { %v6684_v55 = vsub.f32 %v6124_v50, %v6662_v0 }
 0xe3d   :  { %v6692_v3 = vmul.f32 1.442695, %v6684_v55 }
 0xe3e   :  { %v6665_v34 = vpop.xlane.xlu0 %6664 }
 0xe3f   :  { %19117 = vpow2.f32 %v6692_v3  ;;  %v6685_v48 = vsub.f32 %v6200_v57, %v6665_v34 }
 0xe41   :  { %v6694_v30 = vmul.f32 1.442695, %v6685_v48 }
 0xe42   :  { %v6668_v45 = vpop.xlane.xlu1 %6667 }
 0xe43   :  { %19119 = vpow2.f32 %v6694_v30  ;;  %v6686_v36 = vsub.f32 %v6276_v43, %v6668_v45 }
 0xe45   :  { %v6696_v22 = vmul.f32 1.442695, %v6686_v36 }
 0xe46   :  { %v6674_v38 = vpop.xlane.xlu1 %6673  ;;  %v6671_v31 = vpop.xlane.xlu0 %6670 }
 0xe47   :  { %19121 = vpow2.f32 %v6696_v22  ;;  %v6688_v4 = vsub.f32 %v6428_v33, %v6674_v38  ;;  %v6687_v61 = vsub.f32 %v6352_v39, %v6671_v31 }
 0xe49   :  { %v6700_v25 = vmul.f32 1.442695, %v6688_v4  ;;  %v6698_v52 = vmul.f32 1.442695, %v6687_v61 }
 0xe4a   :  { %v6680_v56 = vpop.xlane.xlu1 %6679  ;;  %v6677_v15 = vpop.xlane.xlu0 %6676 }
 0xe4b   :  { %19123 = vpow2.f32 %v6700_v25  ;;  %v6690_v50 = vsub.f32 %v6580_v27, %v6680_v56  ;;  %v6689_v20 = vsub.f32 %v6504_v12, %v6677_v15  ;;  %v6016_v15 = vadd.f32 %v20534_v28, %v20539_v51 }
 0xe4c   :  { %v19118_v59 = vpop.eup %19117  ;;  %19125 = vpow2.f32 %v6698_v52 }
 0xe4d   :  { %v6704_v57 = vmul.f32 1.442695, %v6690_v50  ;;  %v6702_v42 = vmul.f32 1.442695, %v6689_v20  ;;  %v6708_v41 = vsel %vm1272_vm12, %v19118_v59, 0.0 }
 0xe4e   :  { %6709 = vadd.xlane.f32.xlu1 %v6708_v41  ;;  %v6683_v43 = vpop.xlane.xlu0 %6682 }
 0xe4f   :  { %19127 = vpow2.f32 %v6704_v57  ;;  %v6691_v49 = vsub.f32 %v6656_v44, %v6683_v43  ;;  %v6026_v43 = vadd.f32 %v20534_v28, %v20544_v16 }
 0xe50   :  { %v19120_v18 = vpop.eup %19119  ;;  %19129 = vpow2.f32 %v6702_v42 }
 0xe51   :  { %v6706_v33 = vmul.f32 1.442695, %v6691_v49  ;;  %v6711_v39 = vsel %vm1272_vm12, %v19120_v18, 0.0 }
 0xe52   :  { %6712 = vadd.xlane.f32.xlu0 %v6711_v39 }
 0xe53   :  { %19131 = vpow2.f32 %v6706_v33 }
 0xe54   :  { %v19122_v0 = vpop.eup %19121 }
 0xe55   :  { %v6714_v27 = vsel %vm1272_vm12, %v19122_v0, 0.0 }
 0xe56   :  { %6715 = vadd.xlane.f32.xlu1 %v6714_v27 }
 0xe58   :  { %v19124_v12 = vpop.eup %19123 }
 0xe59   :  { %v19126_v55 = vpop.eup %19125  ;;  %v6720_v3 = vsel %vm1272_vm12, %v19124_v12, 0.0 }
 0xe5a   :  { %6721 = vadd.xlane.f32.xlu1 %v6720_v3  ;;  %v6717_v34 = vsel %vm1272_vm12, %v19126_v55, 0.0 }
 0xe5b   :  { %6718 = vadd.xlane.f32.xlu0 %v6717_v34 }
 0xe5c   :  { %v19128_v44 = vpop.eup %19127 }
 0xe5d   :  { %v19130_v48 = vpop.eup %19129  ;;  %v6726_v30 = vsel %vm1272_vm12, %v19128_v44, 0.0 }
 0xe5e   :  { %6727 = vadd.xlane.f32.xlu1 %v6726_v30  ;;  %v6723_v45 = vsel %vm1272_vm12, %v19130_v48, 0.0 }
 0xe5f   :  { %6724 = vadd.xlane.f32.xlu0 %v6723_v45 }
 0xe60   :  { %v19132_v36 = vpop.eup %19131 }
 0xe61   :  { %v6729_v22 = vsel %vm1272_vm12, %v19132_v36, 0.0 }
 0xe63   :  { %6730 = vadd.xlane.f32.xlu0 %v6729_v22 }
 0xed7   :  { %v6710_v38 = vpop.xlane.xlu1 %6709 }
 0xed8   :  { %19133 = vrcp.f32 %v6710_v38 }
 0xedb   :  { %v6713_v31 = vpop.xlane.xlu0 %6712 }
 0xedc   :  { %19135 = vrcp.f32 %v6713_v31 }
 0xedf   :  { %v6716_v4 = vpop.xlane.xlu1 %6715 }
 0xee0   :  { %19137 = vrcp.f32 %v6716_v4 }
 0xee3   :  { %v6722_v61 = vpop.xlane.xlu1 %6721 }
 0xee4   :  { %19139 = vrcp.f32 %v6722_v61  ;;  %v6719_v25 = vpop.xlane.xlu0 %6718 }
 0xee5   :  { %v19134_v52 = vpop.eup %19133  ;;  %19141 = vrcp.f32 %v6719_v25 }
 0xee6   :  { %v6740_v56 = vmul.f32 %v19134_v52, %v19118_v59 }
 0xee7   :  { %v6728_v50 = vpop.xlane.xlu1 %6727 }
 0xee8   :  { %19143 = vrcp.f32 %v6728_v50  ;;  %v6725_v20 = vpop.xlane.xlu0 %6724  ;;  %18207 = vmatmul.mubr.msk.f32.vlgmr.msra.gmra.mxu1 %vm1272_vm12, %v6740_v56 }
 0xee9   :  { %v19136_v57 = vpop.eup %19135  ;;  %19145 = vrcp.f32 %v6725_v20  ;;  %18215 = vmatpush3.msra.mxu1 %v6016_v15  ;;  %18216 = vmatprep.mubr.msk.f32.mxu1 %vm19352_vm10, %v19351_v23  ;;  %v19327_v15 = vld [vmem:[%s22565_s10] ss:$0 sm:$0xff] }
 0xeea   :  { %v6741_v42 = vmul.f32 %v19136_v57, %v19120_v18  ;;  %18224 = vmatprep.subr.mxu1 %v19351_v23  ;;  %v2082_v50 = vadd.f32 %v19327_v15, %v19970_v11 }
 0xeec   :  { %v6731_v41 = vpop.xlane.xlu0 %6730  ;;  %18212 = vmatmul.mubr.msk.f32.vlgmr.msra.gmra.mxu0 %vm1272_vm12, %v6741_v42  ;;  %v3876_v20 = vadd.f32 %v20261_v47, %v2082_v50 }
 0xeed   :  { %v19138_v59 = vpop.eup %19137  ;;  %19147 = vrcp.f32 %v6731_v41  ;;  %18220 = vmatpush3.msra.mxu0 %v20537_v6  ;;  %18221 = vmatprep.mubr.msk.f32.mxu0 %vm19352_vm10, %v19351_v23  ;;  %v6036_v6 = vadd.f32 %v20534_v28, %v20625_v40  ;;  %v16222_v40 = vld [vmem:[%s22564_s9 + $0x38] sm:$0xff] }
 0xeee   :  { %v6742_v51 = vmul.f32 %v19138_v59, %v19122_v0  ;;  %18229 = vmatprep.subr.mxu0 %v19351_v23  ;;  %v5670_v42 = vadd.f32 %v20552_v14, %v3876_v20  ;;  %v2086_v14 = vadd.f32 %v19327_v15, %v19978_v21 }
 0xef0   :  { %18217 = vmatmul.mubr.msk.f32.vlgmr.msra.gmra.mxu1 %vm1272_vm12, %v6742_v51 }
 0xef1   :  { %v19140_v49 = vpop.eup %19139  ;;  %18225 = vmatpush3.msra.mxu1 %v6026_v43  ;;  %18226 = vmatprep.mubr.msk.f32.mxu1 %vm19352_vm10, %v19351_v23 }
 0xef2   :  { %v19142_v18 = vpop.eup %19141  ;;  %v6744_v33 = vmul.f32 %v19140_v49, %v19124_v12  ;;  %18234 = vmatprep.subr.mxu1 %v19351_v23 }
 0xef3   :  { %v6743_v39 = vmul.f32 %v19142_v18, %v19126_v55  ;;  %v16221_v55 = vld [vmem:[%s22564_s9 + $0x30] sm:$0xff] }
 0xef4   :  { %18227 = vmatmul.mubr.msk.f32.vlgmr.msra.gmra.mxu1 %vm1272_vm12, %v6744_v33  ;;  %v2084_v33 = vadd.f32 %v19327_v15, %v19974_v17  ;;  %v2088_v17 = vadd.f32 %v19327_v15, %v19982_v24 }
 0xef5   :  { %v19144_v0 = vpop.eup %19143  ;;  %18222 = vmatmul.mubr.msk.f32.vlgmr.msra.gmra.mxu0 %vm1272_vm12, %v6743_v39  ;;  %18235 = vmatpush3.msra.mxu1 %v6036_v6 }
 0xef6   :  { %v19146_v16 = vpop.eup %19145  ;;  %v6746_v27 = vmul.f32 %v19144_v0, %v19128_v44  ;;  %18230 = vmatpush3.msra.mxu0 %v20542_v9  ;;  %18231 = vmatprep.mubr.msk.f32.mxu0 %vm19352_vm10, %v19351_v23  ;;  %v3878_v47 = vadd.f32 %v20266_v7, %v2084_v33  ;;  %v3880_v0 = vadd.f32 %v20271_v5, %v2086_v14 }
 0xef7   :  { %v6745_v12 = vmul.f32 %v19146_v16, %v19130_v48  ;;  %18236 = vmatprep.mubr.msk.f32.mxu1 %vm19352_vm10, %v19351_v23  ;;  %18239 = vmatprep.subr.mxu0 %v19351_v23 }
 0xef8   :  { %18237 = vmatmul.mubr.msk.f32.vlgmr.msra.gmra.mxu1 %vm1272_vm12, %v6746_v27  ;;  %18244 = vmatprep.subr.mxu1 %v16222_v40 }
 0xef9   :  { %18232 = vmatmul.mubr.msk.f32.vlgmr.msra.gmra.mxu0 %vm1272_vm12, %v6745_v12  ;;  %18245 = vmatpush3.msra.mxu1 %v16222_v40  ;;  %v5674_v12 = vadd.f32 %v20562_v62, %v3880_v0 }
 0xefa   :  { %v19148_v28 = vpop.eup %19147  ;;  %18240 = vmatpush3.msra.mxu0 %v20547_v29  ;;  %18241 = vmatprep.mubr.msk.f32.mxu0 %vm19352_vm10, %v19351_v23 }
 0xefb   :  { %v6747_v9 = vmul.f32 %v19148_v28, %v19132_v36  ;;  %18246 = vmatprep.subr.mxu1 %v16221_v55 }
 0xefc   :  { %18247 = vmatpush3.msra.mxu1 %v16221_v55 }
 0xefd   :  { %18242 = vmatmul.mubr.msk.f32.vlgmr.msra.gmra.mxu0 %vm1272_vm12, %v6747_v9 }
 0xefe   :  { %7731 = vmatprep.mubr.f32.mxu0 %v19351_v23 }
 0xfa8   :  { %v6817_v29 = vpop.f32.mrf.mxu1 }
 0xfa9   :  { %18248 = vmatprep.mubr.msk.f32.mxu1 %vm663_vm11, %v6817_v29 }
 0xfaa   :  { %v18208_v3 = vpop.f32.mrf.mxu1 }
 0xfac   :  { %v6890_v34 = vpop.f32.mrf.mxu0 }
 0xfad   :  { %18249 = vmatmul.mubr.msk.f32.vlgmr.msra.gmra.mxu1 %vm663_vm11, %v6890_v34 }
 0xfae   :  { %v18213_v44 = vpop.f32.mrf.mxu0 }
 0xfb0   :  { %v6963_v48 = vpop.f32.mrf.mxu1 }
 0xfb1   :  { %18251 = vmatprep.mubr.msk.f32.mxu1 %vm663_vm11, %v6963_v48 }
 0xfb2   :  { %v18218_v30 = vpop.f32.mrf.mxu1 }
 0xfb4   :  { %v7109_v45 = vpop.f32.mrf.mxu1 }
 0xfb5   :  { %v7036_v36 = vpop.f32.mrf.mxu0 }
 0xfb6   :  { %18252 = vmatmul.mubr.msk.f32.gmra.mxu1 %vm663_vm11, %v7036_v36  ;;  %v18228_v22 = vpop.f32.mrf.mxu1 }
 0xfb7   :  { %v18223_v38 = vpop.f32.mrf.mxu0  ;;  %18254 = vmatprep.mubr.msk.f32.mxu1 %vm663_vm11, %v7109_v45 }
 0xfb8   :  { %v7255_v31 = vpop.f32.mrf.mxu1 }
 0xfb9   :  { %v7182_v4 = vpop.f32.mrf.mxu0 }
 0xfba   :  { %18255 = vmatmul.mubr.msk.f32.gmra.mxu1 %vm663_vm11, %v7182_v4  ;;  %v18238_v61 = vpop.f32.mrf.mxu1 }
 0xfbb   :  { %v18233_v25 = vpop.f32.mrf.mxu0  ;;  %18257 = vmatprep.mubr.msk.f32.mxu1 %vm663_vm11, %v7255_v31 }
 0xfbd   :  { %v7328_v52 = vpop.f32.mrf.mxu0 }
 0xfbe   :  { %18258 = vmatmul.mubr.msk.f32.gmra.mxu1 %vm663_vm11, %v7328_v52 }
 0xfbf   :  { %v18243_v56 = vpop.f32.mrf.mxu0 }
0x106d   :  { %v18250_v57 = vpop.f32.mrf.mxu1 }
0x106e   :  { %v7465_v41 = vadd.f32 %v18250_v57, %v20550_v32  ;;  %v5672_v32 = vadd.f32 %v20557_v35, %v3878_v47 }
0x106f   :  { %v7425_v59 = vpop.f32.mrf.mxu1 }
0x1070   :  { %v7464_v51 = vadd.f32 %v7425_v59, %v5670_v42  ;;  %v7473_v43 = vadd.f32 %v7465_v41, %v19576_v54 }
0x1072   :  { %v7485_v49 = vsel %vm285_vm9, %v7473_v43, 0.0  ;;  %v7472_v18 = vadd.f32 %v7464_v51, %v19574_v53 }
0x1073   :  { %7486 = vadd.xlane.f32.xlu0 %v7485_v49 }
0x1074   :  { %v7482_v11 = vsel %vm285_vm9, %v7472_v18, 0.0 }
0x1075   :  { %7483 = vadd.xlane.f32.xlu1 %v7482_v11 }
0x1076   :  { %v18253_v6 = vpop.f32.mrf.mxu1 }
0x1077   :  { %v7467_v39 = vadd.f32 %v18253_v6, %v20555_v1  ;;  %v3882_v1 = vadd.f32 %v20276_v58, %v2088_v17 }
0x1078   :  { %v7435_v54 = vpop.f32.mrf.mxu1 }
0x1079   :  { %v7466_v16 = vadd.f32 %v7435_v54, %v5672_v32  ;;  %v7475_v53 = vadd.f32 %v7467_v39, %v19600_v63  ;;  %v5676_v40 = vadd.f32 %v20567_v46, %v3882_v1  ;;  %v7624_v1 = vld [vmem:[%s22568_s13 + $0x48] sm:$0xff] }
0x107a   :  { %v18256_v27 = vpop.f32.mrf.mxu1 }
0x107b   :  { %v7469_v7 = vadd.f32 %v18256_v27, %v20560_v26  ;;  %v7491_v28 = vsel %vm285_vm9, %v7475_v53, 0.0  ;;  %v7474_v21 = vadd.f32 %v7466_v16, %v19595_v60  ;;  %v7630_v27 = vld [vmem:[%s22568_s13 + $0x78] sm:$0xff] }
0x107c   :  { %7492 = vadd.xlane.f32.xlu0 %v7491_v28  ;;  %v7445_v35 = vpop.f32.mrf.mxu1  ;;  %7683 = vmatprep.subr.mxu0 %v7630_v27  ;;  %v7627_v28 = vld [vmem:[%s22568_s13 + $0x60] sm:$0xff] }
0x107d   :  { %v7468_v9 = vadd.f32 %v7445_v35, %v5674_v12  ;;  %v7488_v5 = vsel %vm285_vm9, %v7474_v21, 0.0  ;;  %v7477_v63 = vadd.f32 %v7469_v7, %v19624_v8  ;;  %v7629_v12 = vld [vmem:[%s22568_s13 + $0x70] sm:$0xff]  ;;  %v7628_v7 = vld [vmem:[%s22568_s13 + $0x68] sm:$0xff] }
0x107e   :  { %7489 = vadd.xlane.f32.xlu1 %v7488_v5  ;;  %v18259_v24 = vpop.f32.mrf.mxu1  ;;  %7684 = vmatpush1.msra.mxu0 %v7629_v12  ;;  %v7625_v35 = vld [vmem:[%s22568_s13 + $0x50] sm:$0xff]  ;;  %v7622_v5 = vld [vmem:[%s22568_s13 + $0x38] sm:$0xff] }
0x107f   :  { %v7471_v62 = vadd.f32 %v18259_v24, %v20565_v37  ;;  %v7497_v26 = vsel %vm285_vm9, %v7477_v63, 0.0  ;;  %v7476_v55 = vadd.f32 %v7468_v9, %v19609_v2  ;;  %7685 = vmatprep.subr.mxu0 %v7628_v7  ;;  %v7623_v9 = vld [vmem:[%s22568_s13 + $0x40] sm:$0xff]  ;;  %v7620_v24 = vld [vmem:[%s22568_s13 + $0x28] sm:$0xff] }
0x1080   :  { %7498 = vadd.xlane.f32.xlu0 %v7497_v26  ;;  %v7455_v60 = vpop.f32.mrf.mxu1  ;;  %7686 = vmatpush1.msra.mxu0 %v7627_v28  ;;  %v7617_v26 = vld [vmem:[%s22568_s13 + $0x10] sm:$0xff] }
0x1081   :  { %v7470_v29 = vadd.f32 %v7455_v60, %v5676_v40  ;;  %v7494_v58 = vsel %vm285_vm9, %v7476_v55, 0.0  ;;  %v7479_v3 = vadd.f32 %v7471_v62, %v19645_v13  ;;  %v7619_v40 = vld [vmem:[%s22568_s13 + $0x20] sm:$0xff]  ;;  %v7618_v62 = vld [vmem:[%s22568_s13 + $0x18] sm:$0xff] }
0x1082   :  { %7495 = vadd.xlane.f32.xlu1 %v7494_v58  ;;  %v7615_v60 = vld [vmem:[%s22568_s13] sm:$0xff]  ;;  %v7811_v58 = vld [vmem:[%s22570_s15 + $0x78] sm:$0xff] }
0x1083   :  { %v7503_v8 = vsel %vm285_vm9, %v7479_v3, 0.0  ;;  %v7478_v34 = vadd.f32 %v7470_v29, %v19633_v10  ;;  %v7827_v29 = vld [vmem:[%s22570_s15 + $0xf8] sm:$0xff] }
0x1084   :  { %7504 = vadd.xlane.f32.xlu0 %v7503_v8  ;;  %17039 = vmatprep.subr.mxu1 %v7827_v29  ;;  %v7810_v8 = vld [vmem:[%s22570_s15 + $0x70] sm:$0xff] }
0x1085   :  { %v7500_v46 = vsel %vm285_vm9, %v7478_v34, 0.0  ;;  %17040 = vmatpush3.msra.mxu1 %v7811_v58 }
0x1086   :  { %7501 = vadd.xlane.f32.xlu1 %v7500_v46  ;;  %v7809_v46 = vld [vmem:[%s22570_s15 + $0x68] sm:$0xff] }
0x10fc   :  { %v7487_v37 = vpop.xlane.xlu0 %7486 }
0x10fd   :  { %v7508_v44 = vmul.f32 0.015625, %v7487_v37  ;;  %v7824_v37 = vld [vmem:[%s22570_s15 + $0xe0] sm:$0xff] }
0x10fe   :  { %v7484_v48 = vpop.xlane.xlu1 %7483 }
0x10ff   :  { %v20724_v2 = vsub.f32 %v7473_v43, %v7508_v44  ;;  %v7507_v30 = vmul.f32 0.015625, %v7484_v48  ;;  %v7808_v44 = vld [vmem:[%s22570_s15 + $0x60] sm:$0xff]  ;;  %v7823_v48 = vld [vmem:[%s22570_s15 + $0xd8] sm:$0xff] }
0x1101   :  { %v20726_v45 = vsub.f32 %v7472_v18, %v7507_v30  ;;  %v7524_v13 = vmul.f32 %v20724_v2, %v20724_v2  ;;  %v7807_v30 = vld [vmem:[%s22570_s15 + $0x58] sm:$0xff] }
0x1103   :  { %v7534_v36 = vsel %vm285_vm9, %v7524_v13, 0.0  ;;  %v7523_v10 = vmul.f32 %v20726_v45, %v20726_v45  ;;  %v7822_v13 = vld [vmem:[%s22570_s15 + $0xd0] sm:$0xff] }
0x1104   :  { %7535 = vadd.xlane.f32.xlu0 %v7534_v36  ;;  %v7806_v36 = vld [vmem:[%s22570_s15 + $0x50] sm:$0xff] }
0x1105   :  { %v7493_v22 = vpop.xlane.xlu0 %7492  ;;  %v7531_v38 = vsel %vm285_vm9, %v7523_v10, 0.0  ;;  %v7821_v10 = vld [vmem:[%s22570_s15 + $0xc8] sm:$0xff] }
0x1106   :  { %v7510_v31 = vmul.f32 0.015625, %v7493_v22  ;;  %7532 = vadd.xlane.f32.xlu1 %v7531_v38  ;;  %v7805_v22 = vld [vmem:[%s22570_s15 + $0x48] sm:$0xff]  ;;  %v7820_v38 = vld [vmem:[%s22570_s15 + $0xc0] sm:$0xff] }
0x1107   :  { %v7490_v4 = vpop.xlane.xlu1 %7489 }
0x1108   :  { %v20734_v61 = vsub.f32 %v7475_v53, %v7510_v31  ;;  %v7509_v25 = vmul.f32 0.015625, %v7490_v4  ;;  %v7804_v31 = vld [vmem:[%s22570_s15 + $0x40] sm:$0xff]  ;;  %v7819_v4 = vld [vmem:[%s22570_s15 + $0xb8] sm:$0xff] }
0x1109   :  { %v7499_v52 = vpop.xlane.xlu0 %7498 }
0x110a   :  { %v20736_v56 = vsub.f32 %v7474_v21, %v7509_v25  ;;  %v7512_v15 = vmul.f32 0.015625, %v7499_v52  ;;  %v7526_v50 = vmul.f32 %v20734_v61, %v20734_v61  ;;  %v7626_v21 = vld [vmem:[%s22568_s13 + $0x58] sm:$0xff]  ;;  %v7818_v52 = vld [vmem:[%s22570_s15 + $0xb0] sm:$0xff] }
0x110b   :  { %v7496_v20 = vpop.xlane.xlu1 %7495  ;;  %7687 = vmatprep.subr.mxu0 %v7626_v21  ;;  %v7803_v25 = vld [vmem:[%s22570_s15 + $0x38] sm:$0xff] }
0x110c   :  { %v20740_v57 = vsub.f32 %v7477_v63, %v7512_v15  ;;  %v7511_v42 = vmul.f32 0.015625, %v7496_v20  ;;  %v7540_v41 = vsel %vm285_vm9, %v7526_v50, 0.0  ;;  %v7525_v59 = vmul.f32 %v20736_v56, %v20736_v56  ;;  %7688 = vmatpush1.msra.mxu0 %v7625_v35  ;;  %v7621_v63 = vld [vmem:[%s22568_s13 + $0x30] sm:$0xff]  ;;  %v7817_v50 = vld [vmem:[%s22570_s15 + $0xa8] sm:$0xff] }
0x110d   :  { %7541 = vadd.xlane.f32.xlu0 %v7540_v41  ;;  %v7505_v51 = vpop.xlane.xlu0 %7504  ;;  %7689 = vmatprep.subr.mxu0 %v7624_v1  ;;  %v7802_v15 = vld [vmem:[%s22570_s15 + $0x30] sm:$0xff]  ;;  %v7801_v20 = vld [vmem:[%s22570_s15 + $0x28] sm:$0xff]  ;;  %v7800_v41 = vld [vmem:[%s22570_s15 + $0x20] sm:$0xff] }
0x110e   :  { %v20745_v43 = vsub.f32 %v7476_v55, %v7511_v42  ;;  %v7514_v49 = vmul.f32 0.015625, %v7505_v51  ;;  %v7537_v18 = vsel %vm285_vm9, %v7525_v59, 0.0  ;;  %v7528_v33 = vmul.f32 %v20740_v57, %v20740_v57  ;;  %7690 = vmatpush1.msra.mxu0 %v7623_v9  ;;  %v7616_v55 = vld [vmem:[%s22568_s13 + $0x8] sm:$0xff]  ;;  %v7816_v42 = vld [vmem:[%s22570_s15 + $0xa0] sm:$0xff] }
0x110f   :  { %7538 = vadd.xlane.f32.xlu1 %v7537_v18  ;;  %v7502_v11 = vpop.xlane.xlu1 %7501  ;;  %7691 = vmatprep.subr.mxu0 %v7622_v5 }
0x1110   :  { %v20750_v47 = vsub.f32 %v7479_v3, %v7514_v49  ;;  %v7513_v6 = vmul.f32 0.015625, %v7502_v11  ;;  %v7546_v14 = vsel %vm285_vm9, %v7528_v33, 0.0  ;;  %v7527_v32 = vmul.f32 %v20745_v43, %v20745_v43  ;;  %7692 = vmatpush1.msra.mxu0 %v7621_v63  ;;  %v7826_v3 = vld [vmem:[%s22570_s15 + $0xf0] sm:$0xff] }
0x1111   :  { %7547 = vadd.xlane.f32.xlu0 %v7546_v14  ;;  %7693 = vmatprep.subr.mxu0 %v7620_v24 }
0x1112   :  { %v20755_v39 = vsub.f32 %v7478_v34, %v7513_v6  ;;  %v7543_v54 = vsel %vm285_vm9, %v7527_v32, 0.0  ;;  %v7530_v0 = vmul.f32 %v20750_v47, %v20750_v47  ;;  %7694 = vmatpush1.msra.mxu0 %v7619_v40  ;;  %v7825_v34 = vld [vmem:[%s22570_s15 + $0xe8] sm:$0xff]  ;;  %17041 = vmatprep.subr.mxu1 %v7826_v3  ;;  %v16231_v40 = vld [vmem:[%s22566_s11] ss:$0 sm:$0xff] }
0x1113   :  { %7544 = vadd.xlane.f32.xlu1 %v7543_v54  ;;  %7695 = vmatprep.subr.mxu0 %v7618_v62 }
0x1114   :  { %v7552_v16 = vsel %vm285_vm9, %v7530_v0, 0.0  ;;  %v7529_v53 = vmul.f32 %v20755_v39, %v20755_v39  ;;  %7696 = vmatpush1.msra.mxu0 %v7617_v26  ;;  %17042 = vmatpush3.msra.mxu1 %v7810_v8 }
0x1115   :  { %7553 = vadd.xlane.f32.xlu0 %v7552_v16  ;;  %7697 = vmatprep.subr.mxu0 %v7616_v55 }
0x1116   :  { %v7549_v17 = vsel %vm285_vm9, %v7529_v53, 0.0  ;;  %7698 = vmatpush1.msra.mxu0 %v7615_v60  ;;  %17043 = vmatprep.subr.mxu1 %v7825_v34  ;;  %v16232_v60 = vld [vmem:[%s22567_s12] ss:$0 sm:$0xff] }
0x1117   :  { %7550 = vadd.xlane.f32.xlu1 %v7549_v17  ;;  %17044 = vmatpush3.msra.mxu1 %v7809_v46 }
0x1118   :  { %17045 = vmatprep.subr.mxu1 %v7824_v37 }
0x1119   :  { %17046 = vmatpush3.msra.mxu1 %v7808_v44 }
0x111a   :  { %17047 = vmatprep.subr.mxu1 %v7823_v48 }
0x111b   :  { %17048 = vmatpush3.msra.mxu1 %v7807_v30 }
0x111c   :  { %17049 = vmatprep.subr.mxu1 %v7822_v13 }
0x111d   :  { %17050 = vmatpush3.msra.mxu1 %v7806_v36 }
0x111e   :  { %17051 = vmatprep.subr.mxu1 %v7821_v10 }
0x111f   :  { %17052 = vmatpush3.msra.mxu1 %v7805_v22 }
0x1120   :  { %17053 = vmatprep.subr.mxu1 %v7820_v38 }
0x1121   :  { %17054 = vmatpush3.msra.mxu1 %v7804_v31 }
0x1122   :  { %17055 = vmatprep.subr.mxu1 %v7819_v4 }
0x1123   :  { %17056 = vmatpush3.msra.mxu1 %v7803_v25 }
0x1124   :  { %17057 = vmatprep.subr.mxu1 %v7818_v52 }
0x1125   :  { %17058 = vmatpush3.msra.mxu1 %v7802_v15 }
0x1126   :  { %17059 = vmatprep.subr.mxu1 %v7817_v50 }
0x1127   :  { %17060 = vmatpush3.msra.mxu1 %v7801_v20  ;;  %v7799_v20 = vld [vmem:[%s22570_s15 + $0x18] sm:$0xff] }
0x1128   :  { %17061 = vmatprep.subr.mxu1 %v7816_v42  ;;  %v7814_v42 = vld [vmem:[%s22570_s15 + $0x90] sm:$0xff] }
0x1129   :  { %17062 = vmatpush3.msra.mxu1 %v7800_v41  ;;  %v7798_v41 = vld [vmem:[%s22570_s15 + $0x10] sm:$0xff] }
0x118d   :  { %v7536_v59 = vpop.xlane.xlu0 %7535 }
0x118e   :  { %v7556_v51 = vmul.f32 0.015625, %v7536_v59  ;;  %v7813_v59 = vld [vmem:[%s22570_s15 + $0x88] sm:$0xff] }
0x118f   :  { %v7533_v49 = vpop.xlane.xlu1 %7532 }
0x1190   :  { %v7564_v18 = vadd.f32 1e-05, %v7556_v51  ;;  %v7555_v33 = vmul.f32 0.015625, %v7533_v49  ;;  %v7797_v51 = vld [vmem:[%s22570_s15 + $0x8] sm:$0xff]  ;;  %v7812_v49 = vld [vmem:[%s22570_s15 + $0x80] sm:$0xff] }
0x1192   :  { %19149 = vrsqrt.f32 %v7564_v18  ;;  %v7563_v11 = vadd.f32 1e-05, %v7555_v33  ;;  %v7796_v18 = vld [vmem:[%s22570_s15] sm:$0xff]  ;;  %v20962_v33 = vshrl.u32 %v77_v19, 7 }
0x1194   :  { %19151 = vrsqrt.f32 %v7563_v11  ;;  %v7635_v11 = vsub.s32 0, %v20962_v33 }
0x1196   :  { %v7542_v6 = vpop.xlane.xlu0 %7541 }
0x1197   :  { %v7558_v14 = vmul.f32 0.015625, %v7542_v6  ;;  %v7631_v6 = vld [vmem:[%s22569_s14] sm:$0x3] }
0x1198   :  { %v7539_v32 = vpop.xlane.xlu1 %7538 }
0x1199   :  { %v7566_v54 = vadd.f32 1e-05, %v7558_v14  ;;  %v7557_v0 = vmul.f32 0.015625, %v7539_v32  ;;  %v7639_v14 = vsub.s32 1, %v20962_v33  ;;  %v7636_v32 = vrot.slane %v7631_v6, %v7635_v11 }
0x119a   :  { %v7548_v16 = vpop.xlane.xlu0 %7547 }
0x119b   :  { %19153 = vrsqrt.f32 %v7566_v54  ;;  %v7565_v53 = vadd.f32 1e-05, %v7557_v0  ;;  %v7560_v17 = vmul.f32 0.015625, %v7548_v16  ;;  %v7640_v54 = vrot.slane %v7631_v6, %v7639_v14  ;;  %v16241_v6 = vld [vmem:[%s22571_s16] ss:$0 sm:$0xff] }
0x119c   :  { %v7545_v27 = vpop.xlane.xlu1 %7544 }
0x119d   :  { %19155 = vrsqrt.f32 %v7565_v53  ;;  %v7559_v12 = vmul.f32 0.015625, %v7545_v27  ;;  %v7568_v28 = vadd.f32 1e-05, %v7560_v17 }
0x119e   :  { %v7554_v35 = vpop.xlane.xlu0 %7553 }
0x119f   :  { %v19150_v7 = vpop.eup %19149  ;;  %v7567_v21 = vadd.f32 1e-05, %v7559_v12  ;;  %v7562_v62 = vmul.f32 0.015625, %v7554_v35 }
0x11a0   :  { %v7551_v1 = vpop.xlane.xlu1 %7550  ;;  %v7580_v24 = vmul.f32 %v19150_v7, %v20724_v2 }
0x11a1   :  { %v19152_v9 = vpop.eup %19151  ;;  %19157 = vrsqrt.f32 %v7567_v21  ;;  %v7561_v5 = vmul.f32 0.015625, %v7551_v1  ;;  %v7570_v3 = vadd.f32 1e-05, %v7562_v62 }
0x11a2   :  { %v7579_v63 = vmul.f32 %v19152_v9, %v20726_v45  ;;  %19159 = vrsqrt.f32 %v7568_v28  ;;  %v7594_v58 = vmul.f32 %v16231_v40, %v7580_v24 }
0x11a3   :  { %v7569_v26 = vadd.f32 1e-05, %v7561_v5 }
0x11a4   :  { %v7593_v55 = vmul.f32 %v16231_v40, %v7579_v63  ;;  %v20897_v8 = vadd.f32 %v16232_v60, %v7594_v58 }
0x11a5   :  { %19161 = vrsqrt.f32 %v7569_v26 }
0x11a6   :  { %v20892_v29 = vadd.f32 %v16232_v60, %v7593_v55  ;;  %19163 = vrsqrt.f32 %v7570_v3 }
0x11a8   :  { %v19154_v45 = vpop.eup %19153  ;;  %16233 = vmatmul.mubr.msk.f32.vlgmr.msra.gmra.mxu0 %vm285_vm9, %v20892_v29 }
0x11a9   :  { %7737 = vmatprep.mubr.f32.mxu0 %v19351_v23  ;;  %v7582_v46 = vmul.f32 %v19154_v45, %v20734_v61 }
0x11aa   :  { %v19156_v2 = vpop.eup %19155 }
0x11ab   :  { %v7581_v34 = vmul.f32 %v19156_v2, %v20736_v56  ;;  %v7596_v30 = vmul.f32 %v16231_v40, %v7582_v46 }
0x11ac   :  { %16234 = vmatmul.mubr.msk.f32.gmra.mxu0 %vm285_vm9, %v20897_v8 }
0x11ad   :  { %7743 = vmatprep.mubr.f32.mxu0 %v19351_v23  ;;  %v7595_v37 = vmul.f32 %v16231_v40, %v7581_v34  ;;  %v20910_v56 = vadd.f32 %v16232_v60, %v7596_v30 }
0x11ae   :  { %v19158_v44 = vpop.eup %19157 }
0x11af   :  { %v20904_v48 = vadd.f32 %v16232_v60, %v7595_v37  ;;  %v7583_v13 = vmul.f32 %v19158_v44, %v20745_v43  ;;  %v19160_v36 = vpop.eup %19159 }
0x11b0   :  { %v7584_v10 = vmul.f32 %v19160_v36, %v20740_v57 }
0x11b1   :  { %16235 = vmatmul.mubr.msk.f32.gmra.mxu0 %vm285_vm9, %v20904_v48  ;;  %v7597_v61 = vmul.f32 %v16231_v40, %v7583_v13 }
0x11b2   :  { %7749 = vmatprep.mubr.f32.mxu0 %v19351_v23  ;;  %v19162_v22 = vpop.eup %19161  ;;  %v7598_v43 = vmul.f32 %v16231_v40, %v7584_v10 }
0x11b3   :  { %v20916_v38 = vadd.f32 %v16232_v60, %v7597_v61  ;;  %v7585_v31 = vmul.f32 %v19162_v22, %v20755_v39  ;;  %v19164_v4 = vpop.eup %19163 }
0x11b4   :  { %v20922_v25 = vadd.f32 %v16232_v60, %v7598_v43  ;;  %v7586_v52 = vmul.f32 %v19164_v4, %v20750_v47  ;;  %v7815_v47 = vld [vmem:[%s22570_s15 + $0x98] sm:$0xff] }
0x11b5   :  { %16236 = vmatmul.mubr.msk.f32.gmra.mxu0 %vm285_vm9, %v20910_v56  ;;  %v7599_v57 = vmul.f32 %v16231_v40, %v7585_v31  ;;  %17063 = vmatprep.subr.mxu1 %v7815_v47 }
0x11b6   :  { %7755 = vmatprep.mubr.f32.mxu0 %v19351_v23  ;;  %v7600_v50 = vmul.f32 %v16231_v40, %v7586_v52  ;;  %17064 = vmatpush3.msra.mxu1 %v7799_v20 }
0x11b7   :  { %v20928_v15 = vadd.f32 %v16232_v60, %v7599_v57  ;;  %17065 = vmatprep.subr.mxu1 %v7814_v42 }
0x11b8   :  { %v20933_v39 = vadd.f32 %v16232_v60, %v7600_v50  ;;  %17066 = vmatpush3.msra.mxu1 %v7798_v41 }
0x11b9   :  { %16237 = vmatmul.mubr.msk.f32.gmra.mxu0 %vm285_vm9, %v20916_v38  ;;  %17067 = vmatprep.subr.mxu1 %v7813_v59 }
0x11ba   :  { %7761 = vmatprep.mubr.f32.mxu0 %v19351_v23  ;;  %17068 = vmatpush3.msra.mxu1 %v7797_v51 }
0x11bb   :  { %17069 = vmatprep.subr.mxu1 %v7812_v49 }
0x11bc   :  { %17070 = vmatpush3.msra.mxu1 %v7796_v18 }
0x11bd   :  { %16238 = vmatmul.mubr.msk.f32.gmra.mxu0 %vm285_vm9, %v20922_v25 }
0x11be   :  { %7767 = vmatprep.mubr.f32.mxu0 %v19351_v23 }
0x11c1   :  { %16239 = vmatmul.mubr.msk.f32.gmra.mxu0 %vm285_vm9, %v20928_v15 }
0x11c2   :  { %7773 = vmatprep.mubr.f32.mxu0 %v19351_v23 }
0x11c5   :  { %16240 = vmatmul.mubr.msk.f32.gmra.mxu0 %vm285_vm9, %v20933_v39 }
0x1268   :  { %v7733_v0 = vpop.f32.mrf.mxu0 }
0x1269   :  { %v7734_v16 = vadd.f32 %v7733_v0, %v7636_v32 }
0x126a   :  { %v7735_v53 = vpop.f32.mrf.mxu0 }
0x126b   :  { %v7736_v17 = vadd.f32 %v7735_v53, %v7640_v54  ;;  %v7780_v12 = vmax.f32 %v7734_v16, 0.0 }
0x126c   :  { %v7739_v19 = vpop.f32.mrf.mxu0 }
0x126d   :  { %v7781_v27 = vmax.f32 %v7736_v17, 0.0  ;;  %v7740_v7 = vadd.f32 %v7739_v19, %v7636_v32 }
0x126e   :  { %v7741_v28 = vpop.f32.mrf.mxu0 }
0x126f   :  { %v7742_v21 = vadd.f32 %v7741_v28, %v7640_v54  ;;  %7899 = vmatprep.mubr.f32.mxu1 %v7781_v27  ;;  %v7782_v9 = vmax.f32 %v7740_v7, 0.0 }
0x1270   :  { %7900 = vmatmul.mubr.f32.vlgmr.msra.gmra.mxu1 %v7780_v12 }
0x1271   :  { %v7783_v35 = vmax.f32 %v7742_v21, 0.0  ;;  %v7745_v1 = vpop.f32.mrf.mxu0 }
0x1272   :  { %v7746_v5 = vadd.f32 %v7745_v1, %v7636_v32 }
0x1273   :  { %v7747_v63 = vpop.f32.mrf.mxu0  ;;  %7904 = vmatprep.mubr.f32.mxu1 %v7783_v35 }
0x1274   :  { %v7748_v24 = vadd.f32 %v7747_v63, %v7640_v54  ;;  %7905 = vmatmul.mubr.f32.gmra.mxu1 %v7782_v9  ;;  %v7784_v26 = vmax.f32 %v7746_v5, 0.0 }
0x1275   :  { %v7751_v40 = vpop.f32.mrf.mxu0 }
0x1276   :  { %v7785_v62 = vmax.f32 %v7748_v24, 0.0  ;;  %v7752_v55 = vadd.f32 %v7751_v40, %v7636_v32 }
0x1277   :  { %v7753_v60 = vpop.f32.mrf.mxu0 }
0x1278   :  { %v7754_v58 = vadd.f32 %v7753_v60, %v7640_v54  ;;  %7909 = vmatprep.mubr.f32.mxu1 %v7785_v62  ;;  %v7786_v2 = vmax.f32 %v7752_v55, 0.0 }
0x1279   :  { %v7757_v3 = vpop.f32.mrf.mxu0  ;;  %7910 = vmatmul.mubr.f32.gmra.mxu1 %v7784_v26 }
0x127a   :  { %v7787_v45 = vmax.f32 %v7754_v58, 0.0  ;;  %v7758_v34 = vadd.f32 %v7757_v3, %v7636_v32 }
0x127b   :  { %v7759_v46 = vpop.f32.mrf.mxu0 }
0x127c   :  { %v7760_v37 = vadd.f32 %v7759_v46, %v7640_v54  ;;  %7914 = vmatprep.mubr.f32.mxu1 %v7787_v45  ;;  %v7788_v13 = vmax.f32 %v7758_v34, 0.0 }
0x127d   :  { %v7763_v44 = vpop.f32.mrf.mxu0  ;;  %7915 = vmatmul.mubr.f32.gmra.mxu1 %v7786_v2 }
0x127e   :  { %v7789_v30 = vmax.f32 %v7760_v37, 0.0  ;;  %v7764_v36 = vadd.f32 %v7763_v44, %v7636_v32 }
0x127f   :  { %v7765_v61 = vpop.f32.mrf.mxu0 }
0x1280   :  { %v7766_v10 = vadd.f32 %v7765_v61, %v7640_v54  ;;  %7919 = vmatprep.mubr.f32.mxu1 %v7789_v30  ;;  %v7790_v31 = vmax.f32 %v7764_v36, 0.0 }
0x1281   :  { %v7769_v22 = vpop.f32.mrf.mxu0  ;;  %7920 = vmatmul.mubr.f32.gmra.mxu1 %v7788_v13 }
0x1282   :  { %v7791_v43 = vmax.f32 %v7766_v10, 0.0  ;;  %v7770_v4 = vadd.f32 %v7769_v22, %v7636_v32 }
0x1283   :  { %v7771_v57 = vpop.f32.mrf.mxu0 }
0x1284   :  { %v7772_v52 = vadd.f32 %v7771_v57, %v7640_v54  ;;  %7924 = vmatprep.mubr.f32.mxu1 %v7791_v43  ;;  %v7792_v20 = vmax.f32 %v7770_v4, 0.0 }
0x1285   :  { %v7775_v50 = vpop.f32.mrf.mxu0  ;;  %7925 = vmatmul.mubr.f32.gmra.mxu1 %v7790_v31 }
0x1286   :  { %v7793_v47 = vmax.f32 %v7772_v52, 0.0  ;;  %v7776_v42 = vadd.f32 %v7775_v50, %v7636_v32 }
0x1287   :  { %v7777_v41 = vpop.f32.mrf.mxu0 }
0x1288   :  { %v7778_v59 = vadd.f32 %v7777_v41, %v7640_v54  ;;  %7929 = vmatprep.mubr.f32.mxu1 %v7793_v47  ;;  %v7794_v49 = vmax.f32 %v7776_v42, 0.0 }
0x1289   :  { %7930 = vmatmul.mubr.f32.gmra.mxu1 %v7792_v20 }
0x128a   :  { %v7795_v51 = vmax.f32 %v7778_v59, 0.0 }
0x128c   :  { %7934 = vmatprep.mubr.f32.mxu1 %v7795_v51 }
0x128d   :  { %7935 = vmatmul.mubr.f32.gmra.mxu1 %v7794_v49 }
0x1330   :  { %v17071_v18 = vpop.f32.mrf.mxu1 }
0x1332   :  { %v17072_v0 = vpop.f32.mrf.mxu1 }
0x1333   :  { %v17073_v16 = vadd.f32 %v17072_v0, %v17071_v18 }
0x1334   :  { %v17074_v53 = vpop.f32.mrf.mxu1 }
0x1335   :  { %v7902_v17 = vadd.f32 %v17073_v16, %v16241_v6 }
0x1336   :  { %v17075_v19 = vpop.f32.mrf.mxu1 }
0x1337   :  { %v17076_v27 = vadd.f32 %v17075_v19, %v17074_v53  ;;  %v7940_v32 = vadd.f32 %v7902_v17, %v20892_v29 }
0x1339   :  { %v7907_v54 = vadd.f32 %v17076_v27, %v16241_v6  ;;  %v17077_v12 = vpop.f32.mrf.mxu1  ;;  %v7950_v7 = vsel %vm285_vm9, %v7940_v32, 0.0 }
0x133a   :  { %7951 = vadd.xlane.f32.xlu1 %v7950_v7 }
0x133b   :  { %v17078_v28 = vpop.f32.mrf.mxu1  ;;  %v7941_v21 = vadd.f32 %v7907_v54, %v20897_v8 }
0x133c   :  { %v17079_v35 = vadd.f32 %v17078_v28, %v17077_v12 }
0x133d   :  { %v17080_v1 = vpop.f32.mrf.mxu1  ;;  %v7953_v9 = vsel %vm285_vm9, %v7941_v21, 0.0 }
0x133e   :  { %v7912_v5 = vadd.f32 %v17079_v35, %v16241_v6  ;;  %7954 = vadd.xlane.f32.xlu0 %v7953_v9 }
0x133f   :  { %v17081_v63 = vpop.f32.mrf.mxu1 }
0x1340   :  { %v17082_v24 = vadd.f32 %v17081_v63, %v17080_v1  ;;  %v7942_v40 = vadd.f32 %v7912_v5, %v20904_v48 }
0x1341   :  { %v17083_v62 = vpop.f32.mrf.mxu1 }
0x1342   :  { %v7917_v29 = vadd.f32 %v17082_v24, %v16241_v6  ;;  %v7956_v26 = vsel %vm285_vm9, %v7942_v40, 0.0 }
0x1343   :  { %7957 = vadd.xlane.f32.xlu1 %v7956_v26  ;;  %v17084_v55 = vpop.f32.mrf.mxu1 }
0x1344   :  { %v17085_v60 = vadd.f32 %v17084_v55, %v17083_v62  ;;  %v7943_v58 = vadd.f32 %v7917_v29, %v20910_v56 }
0x1345   :  { %v17086_v8 = vpop.f32.mrf.mxu1 }
0x1346   :  { %v7922_v3 = vadd.f32 %v17085_v60, %v16241_v6  ;;  %v7959_v45 = vsel %vm285_vm9, %v7943_v58, 0.0 }
0x1347   :  { %7960 = vadd.xlane.f32.xlu0 %v7959_v45  ;;  %v17087_v2 = vpop.f32.mrf.mxu1 }
0x1348   :  { %v17088_v34 = vadd.f32 %v17087_v2, %v17086_v8  ;;  %v7944_v46 = vadd.f32 %v7922_v3, %v20916_v38  ;;  %v16252_v8 = vld [vmem:[%s22591_s2 + $0x138] sm:$0xff]  ;;  %v16251_v2 = vld [vmem:[%s22591_s2 + $0x130] sm:$0xff] }
0x1349   :  { %v17089_v37 = vpop.f32.mrf.mxu1  ;;  %v16288_v3 = vld [vmem:[%s22562_s7 + $0x138] sm:$0xff]  ;;  %18260 = vmatprep.subr.mxu0 %v16252_v8 }
0x134a   :  { %v7927_v48 = vadd.f32 %v17088_v34, %v16241_v6  ;;  %v7962_v44 = vsel %vm285_vm9, %v7944_v46, 0.0  ;;  %18316 = vmatprep.subr.mxu1 %v16288_v3  ;;  %18261 = vmatpush3.msra.mxu0 %v16252_v8  ;;  %v16287_v34 = vld [vmem:[%s22562_s7 + $0x130] sm:$0xff] }
0x134b   :  { %7963 = vadd.xlane.f32.xlu1 %v7962_v44  ;;  %v17090_v30 = vpop.f32.mrf.mxu1  ;;  %18317 = vmatpush3.msra.mxu1 %v16288_v3  ;;  %v16249_v44 = vld [vmem:[%s22591_s2 + $0x120] sm:$0xff] }
0x134c   :  { %v17091_v13 = vadd.f32 %v17090_v30, %v17089_v37  ;;  %v7945_v36 = vadd.f32 %v7927_v48, %v20922_v25  ;;  %18262 = vmatprep.subr.mxu0 %v16251_v2  ;;  %18318 = vmatprep.subr.mxu1 %v16287_v34  ;;  %v16250_v37 = vld [vmem:[%s22591_s2 + $0x128] sm:$0xff]  ;;  %v16285_v30 = vld [vmem:[%s22562_s7 + $0x120] sm:$0xff] }
0x134d   :  { %v17092_v61 = vpop.f32.mrf.mxu1  ;;  %18263 = vmatpush3.msra.mxu0 %v16251_v2  ;;  %v16286_v48 = vld [vmem:[%s22562_s7 + $0x128] sm:$0xff]  ;;  %18319 = vmatpush3.msra.mxu1 %v16287_v34 }
0x134e   :  { %v7932_v56 = vadd.f32 %v17091_v13, %v16241_v6  ;;  %v7965_v10 = vsel %vm285_vm9, %v7945_v36, 0.0  ;;  %18264 = vmatprep.subr.mxu0 %v16250_v37  ;;  %18320 = vmatprep.subr.mxu1 %v16286_v48  ;;  %v16248_v13 = vld [vmem:[%s22591_s2 + $0x118] sm:$0xff] }
0x134f   :  { %7966 = vadd.xlane.f32.xlu0 %v7965_v10  ;;  %v17093_v22 = vpop.f32.mrf.mxu1  ;;  %18265 = vmatpush3.msra.mxu0 %v16250_v37  ;;  %v16246_v10 = vld [vmem:[%s22591_s2 + $0x108] sm:$0xff]  ;;  %v16267_v37 = vld [vmem:[%s22592_s27 + $0x120] sm:$0xff] }
0x1350   :  { %v17094_v43 = vadd.f32 %v17093_v22, %v17092_v61  ;;  %v7946_v31 = vadd.f32 %v7932_v56, %v20928_v15  ;;  %18321 = vmatpush3.msra.mxu1 %v16286_v48  ;;  %18266 = vmatprep.subr.mxu0 %v16249_v44  ;;  %v16247_v61 = vld [vmem:[%s22591_s2 + $0x110] sm:$0xff]  ;;  %v16282_v22 = vld [vmem:[%s22562_s7 + $0x108] sm:$0xff] }
0x1351   :  { %18322 = vmatprep.subr.mxu1 %v16285_v30  ;;  %18267 = vmatpush3.msra.mxu0 %v16249_v44  ;;  %v16283_v56 = vld [vmem:[%s22562_s7 + $0x110] sm:$0xff] }
0x1352   :  { %v7937_v4 = vadd.f32 %v17094_v43, %v16241_v6  ;;  %v7968_v38 = vsel %vm285_vm9, %v7946_v31, 0.0  ;;  %18323 = vmatpush3.msra.mxu1 %v16285_v30  ;;  %18268 = vmatprep.subr.mxu0 %v16248_v13  ;;  %v16245_v43 = vld [vmem:[%s22591_s2 + $0x100] sm:$0xff] }
0x1353   :  { %7969 = vadd.xlane.f32.xlu1 %v7968_v38  ;;  %18269 = vmatpush3.msra.mxu0 %v16248_v13  ;;  %v16266_v13 = vld [vmem:[%s22592_s27 + $0x118] sm:$0xff] }
0x1354   :  { %v7947_v57 = vadd.f32 %v7937_v4, %v20933_v39  ;;  %18270 = vmatprep.subr.mxu0 %v16247_v61  ;;  %v16270_v4 = vld [vmem:[%s22592_s27 + $0x138] sm:$0xff] }
0x1355   :  { %18271 = vmatpush3.msra.mxu0 %v16247_v61  ;;  %v16265_v61 = vld [vmem:[%s22592_s27 + $0x110] sm:$0xff] }
0x1356   :  { %v7971_v52 = vsel %vm285_vm9, %v7947_v57, 0.0  ;;  %18272 = vmatprep.subr.mxu0 %v16246_v10 }
0x1357   :  { %7972 = vadd.xlane.f32.xlu0 %v7971_v52  ;;  %18273 = vmatpush3.msra.mxu0 %v16246_v10 }
0x1358   :  { %18274 = vmatprep.subr.mxu0 %v16245_v43 }
0x1359   :  { %18275 = vmatpush3.msra.mxu0 %v16245_v43 }
0x135a   :  { %18288 = vmatprep.subr.mxu0 %v16270_v4 }
0x13c3   :  { %v7952_v50 = vpop.xlane.xlu1 %7951 }
0x13c4   :  { %v7974_v25 = vmul.f32 0.015625, %v7952_v50 }
0x13c6   :  { %v20992_v47 = vsub.f32 %v7940_v32, %v7974_v25 }
0x13c7   :  { %v7955_v20 = vpop.xlane.xlu0 %7954 }
0x13c8   :  { %v7975_v42 = vmul.f32 0.015625, %v7955_v20  ;;  %v7990_v41 = vmul.f32 %v20992_v47, %v20992_v47 }
0x13ca   :  { %v20996_v59 = vsub.f32 %v7941_v21, %v7975_v42  ;;  %v7998_v15 = vsel %vm285_vm9, %v7990_v41, 0.0 }
0x13cb   :  { %7999 = vadd.xlane.f32.xlu1 %v7998_v15 }
0x13cc   :  { %v7958_v51 = vpop.xlane.xlu1 %7957  ;;  %v7991_v39 = vmul.f32 %v20996_v59, %v20996_v59 }
0x13cd   :  { %v7976_v49 = vmul.f32 0.015625, %v7958_v51 }
0x13ce   :  { %v8001_v18 = vsel %vm285_vm9, %v7991_v39, 0.0 }
0x13cf   :  { %v21002_v6 = vsub.f32 %v7942_v40, %v7976_v49  ;;  %8002 = vadd.xlane.f32.xlu0 %v8001_v18 }
0x13d0   :  { %v7961_v0 = vpop.xlane.xlu0 %7960 }
0x13d1   :  { %v7977_v16 = vmul.f32 0.015625, %v7961_v0  ;;  %v7992_v53 = vmul.f32 %v21002_v6, %v21002_v6 }
0x13d3   :  { %v21006_v17 = vsub.f32 %v7943_v58, %v7977_v16  ;;  %v8004_v19 = vsel %vm285_vm9, %v7992_v53, 0.0  ;;  %v21087_v16 = vld [vmem:[%s22572_s17] ss:$0 sm:$0xff] }
0x13d4   :  { %8005 = vadd.xlane.f32.xlu1 %v8004_v19  ;;  %v7964_v27 = vpop.xlane.xlu1 %7963 }
0x13d5   :  { %v7978_v32 = vmul.f32 0.015625, %v7964_v27  ;;  %v7993_v54 = vmul.f32 %v21006_v17, %v21006_v17  ;;  %v21093_v27 = vld [vmem:[%s22573_s18] ss:$0 sm:$0xff] }
0x13d7   :  { %v21011_v12 = vsub.f32 %v7944_v46, %v7978_v32  ;;  %v8007_v7 = vsel %vm285_vm9, %v7993_v54, 0.0 }
0x13d8   :  { %v7967_v28 = vpop.xlane.xlu0 %7966  ;;  %8008 = vadd.xlane.f32.xlu0 %v8007_v7 }
0x13d9   :  { %v7979_v21 = vmul.f32 0.015625, %v7967_v28  ;;  %v7994_v35 = vmul.f32 %v21011_v12, %v21011_v12 }
0x13db   :  { %v21016_v1 = vsub.f32 %v7945_v36, %v7979_v21  ;;  %v8010_v9 = vsel %vm285_vm9, %v7994_v35, 0.0  ;;  %v16284_v36 = vld [vmem:[%s22562_s7 + $0x118] sm:$0xff] }
0x13dc   :  { %8011 = vadd.xlane.f32.xlu1 %v8010_v9  ;;  %v7970_v5 = vpop.xlane.xlu1 %7969  ;;  %18324 = vmatprep.subr.mxu1 %v16284_v36 }
0x13dd   :  { %v7980_v63 = vmul.f32 0.015625, %v7970_v5  ;;  %v7995_v24 = vmul.f32 %v21016_v1, %v21016_v1  ;;  %18325 = vmatpush3.msra.mxu1 %v16284_v36 }
0x13de   :  { %18326 = vmatprep.subr.mxu1 %v16283_v56 }
0x13df   :  { %v21021_v40 = vsub.f32 %v7946_v31, %v7980_v63  ;;  %v8013_v62 = vsel %vm285_vm9, %v7995_v24, 0.0  ;;  %18327 = vmatpush3.msra.mxu1 %v16283_v56  ;;  %v16281_v31 = vld [vmem:[%s22562_s7 + $0x100] sm:$0xff] }
0x13e0   :  { %8014 = vadd.xlane.f32.xlu0 %v8013_v62  ;;  %v7973_v29 = vpop.xlane.xlu0 %7972  ;;  %18328 = vmatprep.subr.mxu1 %v16282_v22 }
0x13e1   :  { %v7981_v26 = vmul.f32 0.015625, %v7973_v29  ;;  %v7996_v55 = vmul.f32 %v21021_v40, %v21021_v40  ;;  %18329 = vmatpush3.msra.mxu1 %v16282_v22  ;;  %v16264_v22 = vld [vmem:[%s22592_s27 + $0x108] sm:$0xff] }
0x13e2   :  { %18330 = vmatprep.subr.mxu1 %v16281_v31 }
0x13e3   :  { %v21026_v60 = vsub.f32 %v7947_v57, %v7981_v26  ;;  %v8016_v58 = vsel %vm285_vm9, %v7996_v55, 0.0  ;;  %18331 = vmatpush3.msra.mxu1 %v16281_v31 }
0x13e4   :  { %8017 = vadd.xlane.f32.xlu1 %v8016_v58  ;;  %18349 = vmatprep.subr.mxu1 %v19351_v23 }
0x13e5   :  { %v7997_v45 = vmul.f32 %v21026_v60, %v21026_v60 }
0x13e7   :  { %v8019_v46 = vsel %vm285_vm9, %v7997_v45, 0.0 }
0x13e8   :  { %8020 = vadd.xlane.f32.xlu0 %v8019_v46 }
0x1454   :  { %v8000_v38 = vpop.xlane.xlu1 %7999 }
0x1455   :  { %v8022_v57 = vmul.f32 0.015625, %v8000_v38  ;;  %v16263_v38 = vld [vmem:[%s22592_s27 + $0x100] sm:$0xff] }
0x1457   :  { %v8030_v52 = vadd.f32 1e-05, %v8022_v57 }
0x1458   :  { %v8003_v50 = vpop.xlane.xlu0 %8002 }
0x1459   :  { %19165 = vrsqrt.f32 %v8030_v52  ;;  %v8023_v25 = vmul.f32 0.015625, %v8003_v50 }
0x145b   :  { %v8031_v20 = vadd.f32 1e-05, %v8023_v25 }
0x145d   :  { %19167 = vrsqrt.f32 %v8031_v20  ;;  %v8006_v42 = vpop.xlane.xlu1 %8005 }
0x145e   :  { %v8024_v41 = vmul.f32 0.015625, %v8006_v42 }
0x1460   :  { %v8032_v15 = vadd.f32 1e-05, %v8024_v41 }
0x1461   :  { %v8009_v51 = vpop.xlane.xlu0 %8008 }
0x1462   :  { %19169 = vrsqrt.f32 %v8032_v15  ;;  %v8025_v39 = vmul.f32 0.015625, %v8009_v51  ;;  %v21215_v15 = vld [vmem:[%s22563_s8 + $0x4] ss:$0 sm:$0xff] }
0x1464   :  { %v8033_v49 = vadd.f32 1e-05, %v8025_v39 }
0x1465   :  { %v8012_v18 = vpop.xlane.xlu1 %8011 }
0x1466   :  { %v19166_v0 = vpop.eup %19165  ;;  %19171 = vrsqrt.f32 %v8033_v49  ;;  %v8026_v53 = vmul.f32 0.015625, %v8012_v18 }
0x1467   :  { %v8046_v19 = vmul.f32 %v19166_v0, %v20992_v47 }
0x1468   :  { %v8034_v32 = vadd.f32 1e-05, %v8026_v53 }
0x1469   :  { %v8060_v54 = vmul.f32 %v21087_v16, %v8046_v19  ;;  %v8015_v7 = vpop.xlane.xlu0 %8014 }
0x146a   :  { %v19168_v28 = vpop.eup %19167  ;;  %19173 = vrsqrt.f32 %v8034_v32  ;;  %v8027_v21 = vmul.f32 0.015625, %v8015_v7 }
0x146b   :  { %v21097_v35 = vadd.f32 %v21093_v27, %v8060_v54  ;;  %v8047_v9 = vmul.f32 %v19168_v28, %v20996_v59  ;;  %v16269_v59 = vld [vmem:[%s22592_s27 + $0x130] sm:$0xff] }
0x146c   :  { %v8035_v5 = vadd.f32 1e-05, %v8027_v21  ;;  %v16254_v21 = vld [vmem:[%s22594_s25 + $0x4] ss:$0 sm:$0xff] }
0x146d   :  { %v8061_v47 = vmul.f32 %v21087_v16, %v8047_v9  ;;  %v8018_v63 = vpop.xlane.xlu1 %8017  ;;  %18276 = vmatprep.mubr.msk.f32.mxu0 %vm285_vm9, %v21097_v35  ;;  %18332 = vmatprep.mubr.msk.f32.mxu1 %vm285_vm9, %v21097_v35 }
0x146e   :  { %19175 = vrsqrt.f32 %v8035_v5  ;;  %v8028_v24 = vmul.f32 0.015625, %v8018_v63 }
0x146f   :  { %v19170_v62 = vpop.eup %19169  ;;  %v21106_v29 = vadd.f32 %v21093_v27, %v8061_v47  ;;  %v16272_v47 = vld [vmem:[%s22561_s6 + $0x4] ss:$0 sm:$0xff] }
0x1470   :  { %v8048_v26 = vmul.f32 %v19170_v62, %v21002_v6  ;;  %v8036_v55 = vadd.f32 1e-05, %v8028_v24  ;;  %v16268_v6 = vld [vmem:[%s22592_s27 + $0x128] sm:$0xff] }
0x1471   :  { %v8021_v58 = vpop.xlane.xlu0 %8020  ;;  %18277 = vmatmul.mubr.msk.f32.vlgmr.msra.gmra.mxu0 %vm285_vm9, %v21106_v29  ;;  %18333 = vmatmul.mubr.msk.f32.vlgmr.msra.gmra.mxu1 %vm285_vm9, %v21106_v29 }
0x1472   :  { %v8062_v8 = vmul.f32 %v21087_v16, %v8048_v26  ;;  %19177 = vrsqrt.f32 %v8036_v55  ;;  %v8029_v3 = vmul.f32 0.015625, %v8021_v58  ;;  %18289 = vmatpush3.msra.mxu0 %v16270_v4 }
0x1473   :  { %v19172_v45 = vpop.eup %19171  ;;  %18290 = vmatprep.subr.mxu0 %v16269_v59 }
0x1474   :  { %v21121_v2 = vadd.f32 %v21093_v27, %v8062_v8  ;;  %v8049_v34 = vmul.f32 %v19172_v45, %v21006_v17  ;;  %v8037_v46 = vadd.f32 1e-05, %v8029_v3  ;;  %18291 = vmatpush3.msra.mxu0 %v16269_v59 }
0x1475   :  { %18292 = vmatprep.subr.mxu0 %v16268_v6 }
0x1476   :  { %v8063_v48 = vmul.f32 %v21087_v16, %v8049_v34  ;;  %19179 = vrsqrt.f32 %v8037_v46  ;;  %18279 = vmatprep.mubr.msk.f32.mxu0 %vm285_vm9, %v21121_v2  ;;  %18335 = vmatprep.mubr.msk.f32.mxu1 %vm285_vm9, %v21121_v2 }
0x1477   :  { %v19174_v44 = vpop.eup %19173  ;;  %18293 = vmatpush3.msra.mxu0 %v16268_v6 }
0x1478   :  { %v21133_v17 = vadd.f32 %v21093_v27, %v8063_v48  ;;  %v8050_v30 = vmul.f32 %v19174_v44, %v21011_v12  ;;  %18294 = vmatprep.subr.mxu0 %v16267_v37 }
0x1479   :  { %18295 = vmatpush3.msra.mxu0 %v16267_v37 }
0x147a   :  { %v8064_v36 = vmul.f32 %v21087_v16, %v8050_v30  ;;  %18280 = vmatmul.mubr.msk.f32.gmra.mxu0 %vm285_vm9, %v21133_v17  ;;  %18336 = vmatmul.mubr.msk.f32.gmra.mxu1 %vm285_vm9, %v21133_v17 }
0x147b   :  { %v19176_v56 = vpop.eup %19175  ;;  %18296 = vmatprep.subr.mxu0 %v16266_v13 }
0x147c   :  { %v21148_v12 = vadd.f32 %v21093_v27, %v8064_v36  ;;  %v8051_v10 = vmul.f32 %v19176_v56, %v21016_v1  ;;  %18297 = vmatpush3.msra.mxu0 %v16266_v13 }
0x147d   :  { %18298 = vmatprep.subr.mxu0 %v16265_v61 }
0x147e   :  { %v8065_v43 = vmul.f32 %v21087_v16, %v8051_v10  ;;  %18282 = vmatprep.mubr.msk.f32.mxu0 %vm285_vm9, %v21148_v12  ;;  %18338 = vmatprep.mubr.msk.f32.mxu1 %vm285_vm9, %v21148_v12 }
0x147f   :  { %v19178_v31 = vpop.eup %19177  ;;  %18299 = vmatpush3.msra.mxu0 %v16265_v61 }
0x1480   :  { %v21160_v4 = vadd.f32 %v21093_v27, %v8065_v43  ;;  %v8052_v1 = vmul.f32 %v19178_v31, %v21021_v40  ;;  %18300 = vmatprep.subr.mxu0 %v16264_v22 }
0x1481   :  { %18301 = vmatpush3.msra.mxu0 %v16264_v22 }
0x1482   :  { %v8066_v57 = vmul.f32 %v21087_v16, %v8052_v1  ;;  %18283 = vmatmul.mubr.msk.f32.gmra.mxu0 %vm285_vm9, %v21160_v4  ;;  %18339 = vmatmul.mubr.msk.f32.gmra.mxu1 %vm285_vm9, %v21160_v4 }
0x1483   :  { %v19180_v52 = vpop.eup %19179  ;;  %18302 = vmatprep.subr.mxu0 %v16263_v38 }
0x1484   :  { %v21172_v50 = vadd.f32 %v21093_v27, %v8066_v57  ;;  %v8053_v40 = vmul.f32 %v19180_v52, %v21026_v60  ;;  %18303 = vmatpush3.msra.mxu0 %v16263_v38 }
0x1485   :  { %18344 = vmatprep.subr.mxu0 %v19351_v23 }
0x1486   :  { %v8067_v25 = vmul.f32 %v21087_v16, %v8053_v40  ;;  %18285 = vmatprep.mubr.msk.f32.mxu0 %vm285_vm9, %v21172_v50  ;;  %18341 = vmatprep.mubr.msk.f32.mxu1 %vm285_vm9, %v21172_v50 }
0x1488   :  { %v21182_v20 = vadd.f32 %v21093_v27, %v8067_v25 }
0x148a   :  { %18286 = vmatmul.mubr.msk.f32.gmra.mxu0 %vm285_vm9, %v21182_v20  ;;  %18342 = vmatmul.mubr.msk.f32.gmra.mxu1 %vm285_vm9, %v21182_v20 }
0x148b   :  { %18304 = vmatprep.mubr.msk.f32.mxu0 %vm285_vm9, %v21097_v35  ;;  %18351 = vmatprep.mubr.msk.f32.mxu1 %vm19352_vm10, %v19351_v23 }
0x148e   :  { %18305 = vmatmul.mubr.msk.f32.vlgmr.msra.gmra.mxu0 %vm285_vm9, %v21106_v29 }
0x148f   :  { %18307 = vmatprep.mubr.msk.f32.mxu0 %vm285_vm9, %v21121_v2 }
0x1492   :  { %18308 = vmatmul.mubr.msk.f32.gmra.mxu0 %vm285_vm9, %v21133_v17 }
0x1493   :  { %18310 = vmatprep.mubr.msk.f32.mxu0 %vm285_vm9, %v21148_v12 }
0x1496   :  { %18311 = vmatmul.mubr.msk.f32.gmra.mxu0 %vm285_vm9, %v21160_v4 }
0x1497   :  { %18313 = vmatprep.mubr.msk.f32.mxu0 %vm285_vm9, %v21172_v50 }
0x149a   :  { %18314 = vmatmul.mubr.msk.f32.gmra.mxu0 %vm285_vm9, %v21182_v20 }
0x149b   :  { %18346 = vmatprep.mubr.msk.f32.mxu0 %vm19352_vm10, %v19351_v23 }
0x1531   :  { %v21208_v60 = vpop.f32.mrf.mxu1  ;;  %v18278_v42 = vpop.f32.mrf.mxu0 }
0x1532   :  { %v8197_v63 = vadd.f32 %v18278_v42, %v16254_v21  ;;  %v8441_v42 = vadd.f32 %v21208_v60, %v21215_v15 }
0x1533   :  { %v21210_v41 = vpop.f32.mrf.mxu1  ;;  %v8191_v49 = vpop.f32.mrf.mxu0 }
0x1534   :  { %v8192_v26 = vadd.f32 %v16254_v21, %v8191_v49  ;;  %v8475_v58 = vmul.f32 0.25, %v8197_v63  ;;  %v8436_v49 = vadd.f32 %v21215_v15, %v21210_v41 }
0x1536   :  { %v8474_v45 = vmul.f32 0.25, %v8192_v26 }
0x153a   :  { %v18337_v51 = vpop.f32.mrf.mxu1  ;;  %v18281_v18 = vpop.f32.mrf.mxu0 }
0x153b   :  { %v21218_v39 = vadd.f32 %v18337_v51, %v21215_v15  ;;  %v8207_v8 = vadd.f32 %v18281_v18, %v16254_v21 }
0x153c   :  { %v21220_v0 = vpop.f32.mrf.mxu1  ;;  %v8201_v16 = vpop.f32.mrf.mxu0 }
0x153d   :  { %v8202_v34 = vadd.f32 %v16254_v21, %v8201_v16  ;;  %v8477_v48 = vmul.f32 0.25, %v8207_v8 }
0x153f   :  { %v8476_v36 = vmul.f32 0.25, %v8202_v34 }
0x1542   :  { %v18340_v53 = vpop.f32.mrf.mxu1  ;;  %v18284_v27 = vpop.f32.mrf.mxu0 }
0x1543   :  { %v21223_v19 = vadd.f32 %v18340_v53, %v21215_v15  ;;  %v8217_v44 = vadd.f32 %v18284_v27, %v16254_v21 }
0x1544   :  { %v8211_v32 = vpop.f32.mrf.mxu0  ;;  %v21225_v54 = vpop.f32.mrf.mxu1 }
0x1545   :  { %v8212_v61 = vadd.f32 %v16254_v21, %v8211_v32  ;;  %v8479_v22 = vmul.f32 0.25, %v8217_v44 }
0x1547   :  { %v8478_v38 = vmul.f32 0.25, %v8212_v61 }
0x154a   :  { %v18287_v7 = vpop.f32.mrf.mxu0  ;;  %v18343_v28 = vpop.f32.mrf.mxu1 }
0x154b   :  { %v21231_v9 = vadd.f32 %v18343_v28, %v21215_v15  ;;  %v8227_v43 = vadd.f32 %v18287_v7, %v16254_v21 }
0x154c   :  { %v8221_v5 = vpop.f32.mrf.mxu0  ;;  %v21282_v60 = vpop.f32.mrf.mxu1 }
0x154d   :  { %v8222_v57 = vadd.f32 %v16254_v21, %v8221_v5  ;;  %v8481_v25 = vmul.f32 0.25, %v8227_v43 }
0x154e   :  { %v18306_v24 = vpop.f32.mrf.mxu0 }
0x154f   :  { %v8319_v62 = vadd.f32 %v18306_v24, %v16272_v47  ;;  %v8480_v51 = vmul.f32 0.25, %v8222_v57 }
0x1550   :  { %v8313_v55 = vpop.f32.mrf.mxu0 }
0x1551   :  { %v8314_v59 = vadd.f32 %v16272_v47, %v8313_v55  ;;  %18350 = vmatpush3.xpose.msk.msra.mxu1 %vm663_vm11, %v8319_v62 }
0x1552   :  { %v18309_v3 = vpop.f32.mrf.mxu0  ;;  %18359 = vmatprep.subr.mxu1 %v19351_v23 }
0x1553   :  { %v8329_v6 = vadd.f32 %v18309_v3, %v16272_v47  ;;  %18345 = vmatpush3.xpose.msk.msra.mxu0 %vm663_vm11, %v8314_v59 }
0x1554   :  { %v8323_v46 = vpop.f32.mrf.mxu0  ;;  %18352 = vmatmul.mubr.msk.f32.vlgmr.msra.gmra.mxu1 %vm663_vm11, %v8475_v58  ;;  %18354 = vmatprep.subr.mxu0 %v19351_v23 }
0x1555   :  { %v8324_v37 = vadd.f32 %v16272_v47, %v8323_v46  ;;  %18360 = vmatpush3.xpose.msk.msra.mxu1 %vm663_vm11, %v8329_v6  ;;  %18361 = vmatprep.mubr.msk.f32.mxu1 %vm19352_vm10, %v19351_v23 }
0x1556   :  { %v18312_v30 = vpop.f32.mrf.mxu0  ;;  %18347 = vmatmul.mubr.msk.f32.vlgmr.msra.gmra.mxu0 %vm663_vm11, %v8474_v45  ;;  %18369 = vmatprep.subr.mxu1 %v19351_v23 }
0x1557   :  { %v8339_v13 = vadd.f32 %v18312_v30, %v16272_v47  ;;  %18355 = vmatpush3.xpose.msk.msra.mxu0 %vm663_vm11, %v8324_v37  ;;  %18356 = vmatprep.mubr.msk.f32.mxu0 %vm19352_vm10, %v19351_v23 }
0x1558   :  { %v8333_v56 = vpop.f32.mrf.mxu0  ;;  %18362 = vmatmul.mubr.msk.f32.vlgmr.msra.gmra.mxu1 %vm663_vm11, %v8477_v48  ;;  %18364 = vmatprep.subr.mxu0 %v19351_v23 }
0x1559   :  { %v8334_v10 = vadd.f32 %v16272_v47, %v8333_v56  ;;  %18370 = vmatpush3.xpose.msk.msra.mxu1 %vm663_vm11, %v8339_v13  ;;  %18371 = vmatprep.mubr.msk.f32.mxu1 %vm19352_vm10, %v19351_v23 }
0x155a   :  { %v18315_v31 = vpop.f32.mrf.mxu0  ;;  %18357 = vmatmul.mubr.msk.f32.vlgmr.msra.gmra.mxu0 %vm663_vm11, %v8476_v36  ;;  %18379 = vmatprep.subr.mxu1 %v19351_v23 }
0x155b   :  { %v8349_v1 = vadd.f32 %v18315_v31, %v16272_v47  ;;  %18365 = vmatpush3.xpose.msk.msra.mxu0 %vm663_vm11, %v8334_v10  ;;  %18366 = vmatprep.mubr.msk.f32.mxu0 %vm19352_vm10, %v19351_v23 }
0x155c   :  { %v8343_v52 = vpop.f32.mrf.mxu0  ;;  %18372 = vmatmul.mubr.msk.f32.vlgmr.msra.gmra.mxu1 %vm663_vm11, %v8479_v22  ;;  %18374 = vmatprep.subr.mxu0 %v19351_v23 }
0x155d   :  { %v8344_v40 = vadd.f32 %v16272_v47, %v8343_v52  ;;  %18380 = vmatpush3.xpose.msk.msra.mxu1 %vm663_vm11, %v8349_v1  ;;  %18381 = vmatprep.mubr.msk.f32.mxu1 %vm19352_vm10, %v19351_v23 }
0x155e   :  { %18367 = vmatmul.mubr.msk.f32.vlgmr.msra.gmra.mxu0 %vm663_vm11, %v8478_v38  ;;  %18389 = vmatprep.subr.mxu1 %v19351_v23 }
0x155f   :  { %18375 = vmatpush3.xpose.msk.msra.mxu0 %vm663_vm11, %v8344_v40  ;;  %18376 = vmatprep.mubr.msk.f32.mxu0 %vm19352_vm10, %v19351_v23 }
0x1560   :  { %18382 = vmatmul.mubr.msk.f32.vlgmr.msra.gmra.mxu1 %vm663_vm11, %v8481_v25  ;;  %18384 = vmatprep.subr.mxu0 %v19351_v23 }
0x1561   :  { %18390 = vmatpush3.msra.mxu1 %v8441_v42  ;;  %18391 = vmatprep.mubr.msk.f32.mxu1 %vm19352_vm10, %v19351_v23 }
0x1562   :  { %18377 = vmatmul.mubr.msk.f32.vlgmr.msra.gmra.mxu0 %vm663_vm11, %v8480_v51  ;;  %18399 = vmatprep.subr.mxu1 %v19351_v23 }
0x1563   :  { %18385 = vmatpush3.msra.mxu0 %v8436_v49  ;;  %18386 = vmatprep.mubr.msk.f32.mxu0 %vm19352_vm10, %v19351_v23 }
0x1564   :  { %18394 = vmatprep.subr.mxu0 %v19351_v23 }
0x1614   :  { %v8630_v18 = vpop.f32.mrf.mxu1 }
0x1615   :  { %v9093_v16 = vsel %vm1272_vm12, %v8630_v18, -inf }
0x1616   :  { %9094 = vmax.xlane.f32.xlu0 %v9093_v16  ;;  %v8554_v41 = vpop.f32.mrf.mxu0  ;;  %v18353_v53 = vpop.f32.mrf.mxu1 }
0x1617   :  { %v9090_v27 = vsel %vm1272_vm12, %v8554_v41, -inf }
0x1618   :  { %v8782_v32 = vpop.f32.mrf.mxu1  ;;  %9091 = vmax.xlane.f32.xlu1 %v9090_v27  ;;  %v18348_v7 = vpop.f32.mrf.mxu0 }
0x1619   :  { %v9099_v28 = vsel %vm1272_vm12, %v8782_v32, -inf }
0x161a   :  { %9100 = vmax.xlane.f32.xlu0 %v9099_v28  ;;  %v8706_v21 = vpop.f32.mrf.mxu0  ;;  %v18363_v5 = vpop.f32.mrf.mxu1 }
0x161b   :  { %v9096_v47 = vsel %vm1272_vm12, %v8706_v21, -inf }
0x161c   :  { %v8934_v63 = vpop.f32.mrf.mxu1  ;;  %9097 = vmax.xlane.f32.xlu1 %v9096_v47  ;;  %v18358_v24 = vpop.f32.mrf.mxu0 }
0x161d   :  { %v9105_v62 = vsel %vm1272_vm12, %v8934_v63, -inf }
0x161e   :  { %9106 = vmax.xlane.f32.xlu0 %v9105_v62  ;;  %v8858_v26 = vpop.f32.mrf.mxu0  ;;  %v18373_v55 = vpop.f32.mrf.mxu1 }
0x161f   :  { %v9102_v59 = vsel %vm1272_vm12, %v8858_v26, -inf }
0x1620   :  { %v9086_v58 = vpop.f32.mrf.mxu1  ;;  %9103 = vmax.xlane.f32.xlu1 %v9102_v59  ;;  %v18368_v8 = vpop.f32.mrf.mxu0 }
0x1621   :  { %v9111_v3 = vsel %vm1272_vm12, %v9086_v58, -inf }
0x1622   :  { %9112 = vmax.xlane.f32.xlu0 %v9111_v3  ;;  %v9010_v6 = vpop.f32.mrf.mxu0  ;;  %v18383_v45 = vpop.f32.mrf.mxu1 }
0x1623   :  { %v9108_v34 = vsel %vm1272_vm12, %v9010_v6, -inf }
0x1624   :  { %9109 = vmax.xlane.f32.xlu1 %v9108_v34  ;;  %v18378_v46 = vpop.f32.mrf.mxu0 }
0x169f   :  { %v9095_v37 = vpop.xlane.xlu0 %9094 }
0x16a0   :  { %v9115_v48 = vsub.f32 %v8630_v18, %v9095_v37 }
0x16a1   :  { %v9092_v44 = vpop.xlane.xlu1 %9091 }
0x16a2   :  { %v9124_v30 = vmul.f32 1.442695, %v9115_v48  ;;  %v9114_v13 = vsub.f32 %v8554_v41, %v9092_v44 }
0x16a3   :  { %v9101_v36 = vpop.xlane.xlu0 %9100 }
0x16a4   :  { %19181 = vpow2.f32 %v9124_v30  ;;  %v9122_v61 = vmul.f32 1.442695, %v9114_v13  ;;  %v9117_v56 = vsub.f32 %v8782_v32, %v9101_v36 }
0x16a5   :  { %v9098_v10 = vpop.xlane.xlu1 %9097 }
0x16a6   :  { %19183 = vpow2.f32 %v9122_v61  ;;  %v9128_v22 = vmul.f32 1.442695, %v9117_v56  ;;  %v9116_v43 = vsub.f32 %v8706_v21, %v9098_v10  ;;  %v8446_v10 = vadd.f32 %v21215_v15, %v21220_v0 }
0x16a7   :  { %v9107_v31 = vpop.xlane.xlu0 %9106 }
0x16a8   :  { %19185 = vpow2.f32 %v9128_v22  ;;  %v9126_v1 = vmul.f32 1.442695, %v9116_v43  ;;  %v9119_v38 = vsub.f32 %v8934_v63, %v9107_v31 }
0x16a9   :  { %v9104_v57 = vpop.xlane.xlu1 %9103 }
0x16aa   :  { %19187 = vpow2.f32 %v9126_v1  ;;  %v9132_v52 = vmul.f32 1.442695, %v9119_v38  ;;  %v9118_v40 = vsub.f32 %v8858_v26, %v9104_v57  ;;  %v16341_v57 = vld [vmem:[%s22591_s2 + $0x178] sm:$0xff] }
0x16ab   :  { %v9113_v25 = vpop.xlane.xlu0 %9112 }
0x16ac   :  { %19189 = vpow2.f32 %v9132_v52  ;;  %v9130_v42 = vmul.f32 1.442695, %v9118_v40  ;;  %v9121_v51 = vsub.f32 %v9086_v58, %v9113_v25  ;;  %v8466_v52 = vadd.f32 %v21215_v15, %v21282_v60  ;;  %v16338_v60 = vld [vmem:[%s22591_s2 + $0x160] sm:$0xff] }
0x16ad   :  { %v9110_v49 = vpop.xlane.xlu1 %9109 }
0x16ae   :  { %19191 = vpow2.f32 %v9130_v42  ;;  %v9136_v18 = vmul.f32 1.442695, %v9121_v51  ;;  %v9120_v16 = vsub.f32 %v9010_v6, %v9110_v49  ;;  %v16340_v42 = vld [vmem:[%s22591_s2 + $0x170] sm:$0xff]  ;;  %v16337_v51 = vld [vmem:[%s22591_s2 + $0x158] sm:$0xff] }
0x16af   :  { %v16336_v49 = vld [vmem:[%s22591_s2 + $0x150] sm:$0xff] }
0x16b0   :  { %19193 = vpow2.f32 %v9136_v18  ;;  %v9134_v41 = vmul.f32 1.442695, %v9120_v16  ;;  %v16335_v18 = vld [vmem:[%s22591_s2 + $0x148] sm:$0xff]  ;;  %v16334_v16 = vld [vmem:[%s22591_s2 + $0x140] sm:$0xff] }
0x16b1   :  { %v19182_v53 = vpop.eup %19181 }
0x16b2   :  { %19195 = vpow2.f32 %v9134_v41  ;;  %v9141_v27 = vsel %vm1272_vm12, %v19182_v53, 0.0  ;;  %v16377_v41 = vld [vmem:[%s22562_s7 + $0x178] sm:$0xff] }
0x16b3   :  { %v19184_v32 = vpop.eup %19183  ;;  %9142 = vadd.xlane.f32.xlu0 %v9141_v27  ;;  %v16375_v27 = vld [vmem:[%s22562_s7 + $0x168] sm:$0xff] }
0x16b4   :  { %v9138_v7 = vsel %vm1272_vm12, %v19184_v32, 0.0 }
0x16b5   :  { %v19186_v28 = vpop.eup %19185  ;;  %9139 = vadd.xlane.f32.xlu1 %v9138_v7  ;;  %v16373_v7 = vld [vmem:[%s22562_s7 + $0x158] sm:$0xff] }
0x16b6   :  { %v9147_v21 = vsel %vm1272_vm12, %v19186_v28, 0.0 }
0x16b7   :  { %v19188_v5 = vpop.eup %19187  ;;  %9148 = vadd.xlane.f32.xlu0 %v9147_v21  ;;  %v16371_v21 = vld [vmem:[%s22562_s7 + $0x148] sm:$0xff] }
0x16b8   :  { %v9144_v47 = vsel %vm1272_vm12, %v19188_v5, 0.0 }
0x16b9   :  { %v19190_v63 = vpop.eup %19189  ;;  %9145 = vadd.xlane.f32.xlu1 %v9144_v47  ;;  %v16324_v47 = vld [vmem:[%s22564_s9 + $0x48] sm:$0xff] }
0x16ba   :  { %v9153_v24 = vsel %vm1272_vm12, %v19190_v63, 0.0 }
0x16bb   :  { %v19192_v62 = vpop.eup %19191  ;;  %9154 = vadd.xlane.f32.xlu0 %v9153_v24  ;;  %v16359_v24 = vld [vmem:[%s22592_s27 + $0x178] sm:$0xff] }
0x16bc   :  { %v9150_v26 = vsel %vm1272_vm12, %v19192_v62, 0.0 }
0x16bd   :  { %v19194_v55 = vpop.eup %19193  ;;  %9151 = vadd.xlane.f32.xlu1 %v9150_v26 }
0x16be   :  { %v9159_v59 = vsel %vm1272_vm12, %v19194_v55, 0.0 }
0x16bf   :  { %v21299_v58 = vpop.eup %19195  ;;  %9160 = vadd.xlane.f32.xlu0 %v9159_v59  ;;  %v16358_v59 = vld [vmem:[%s22592_s27 + $0x170] sm:$0xff] }
0x16c0   :  { %v9156_v8 = vsel %vm1272_vm12, %v21299_v58, 0.0 }
0x16c1   :  { %9157 = vadd.xlane.f32.xlu1 %v9156_v8 }
0x173c   :  { %v9143_v3 = vpop.xlane.xlu0 %9142 }
0x173d   :  { %19197 = vrcp.f32 %v9143_v3  ;;  %v16357_v3 = vld [vmem:[%s22592_s27 + $0x168] sm:$0xff] }
0x173e   :  { %v9140_v6 = vpop.xlane.xlu1 %9139 }
0x173f   :  { %19199 = vrcp.f32 %v9140_v6 }
0x1740   :  { %v9149_v45 = vpop.xlane.xlu0 %9148 }
0x1741   :  { %19201 = vrcp.f32 %v9149_v45 }
0x1742   :  { %v9146_v34 = vpop.xlane.xlu1 %9145 }
0x1743   :  { %19203 = vrcp.f32 %v9146_v34  ;;  %v16356_v34 = vld [vmem:[%s22592_s27 + $0x160] sm:$0xff] }
0x1744   :  { %v9155_v46 = vpop.xlane.xlu0 %9154 }
0x1745   :  { %19205 = vrcp.f32 %v9155_v46 }
0x1746   :  { %v9152_v37 = vpop.xlane.xlu1 %9151 }
0x1747   :  { %19207 = vrcp.f32 %v9152_v37 }
0x1748   :  { %v9161_v48 = vpop.xlane.xlu0 %9160 }
0x1749   :  { %19209 = vrcp.f32 %v9161_v48  ;;  %v16355_v48 = vld [vmem:[%s22592_s27 + $0x158] sm:$0xff] }
0x174a   :  { %v19198_v44 = vpop.eup %19197  ;;  %v9158_v30 = vpop.xlane.xlu1 %9157 }
0x174b   :  { %v9171_v13 = vmul.f32 %v19198_v44, %v19182_v53  ;;  %19211 = vrcp.f32 %v9158_v30  ;;  %v16376_v53 = vld [vmem:[%s22562_s7 + $0x170] sm:$0xff] }
0x174c   :  { %v19200_v36 = vpop.eup %19199 }
0x174d   :  { %v9170_v61 = vmul.f32 %v19200_v36, %v19184_v32  ;;  %18392 = vmatmul.mubr.msk.f32.vlgmr.msra.gmra.mxu1 %vm1272_vm12, %v9171_v13  ;;  %v16374_v32 = vld [vmem:[%s22562_s7 + $0x160] sm:$0xff]  ;;  %v16354_v13 = vld [vmem:[%s22592_s27 + $0x150] sm:$0xff] }
0x174e   :  { %v19202_v56 = vpop.eup %19201  ;;  %18400 = vmatpush3.msra.mxu1 %v21218_v39  ;;  %18401 = vmatprep.mubr.msk.f32.mxu1 %vm19352_vm10, %v19351_v23  ;;  %v8456_v39 = vadd.f32 %v21215_v15, %v21225_v54 }
0x174f   :  { %v9173_v22 = vmul.f32 %v19202_v56, %v19186_v28  ;;  %18387 = vmatmul.mubr.msk.f32.vlgmr.msra.gmra.mxu0 %vm1272_vm12, %v9170_v61  ;;  %18409 = vmatprep.subr.mxu1 %v19351_v23  ;;  %v16372_v28 = vld [vmem:[%s22562_s7 + $0x150] sm:$0xff]  ;;  %v16353_v56 = vld [vmem:[%s22592_s27 + $0x148] sm:$0xff] }
0x1750   :  { %v19204_v43 = vpop.eup %19203  ;;  %18395 = vmatpush3.msra.mxu0 %v8446_v10  ;;  %18396 = vmatprep.mubr.msk.f32.mxu0 %vm19352_vm10, %v19351_v23 }
0x1751   :  { %v9172_v31 = vmul.f32 %v19204_v43, %v19188_v5  ;;  %18402 = vmatmul.mubr.msk.f32.vlgmr.msra.gmra.mxu1 %vm1272_vm12, %v9173_v22  ;;  %18404 = vmatprep.subr.mxu0 %v19351_v23  ;;  %v16370_v5 = vld [vmem:[%s22562_s7 + $0x140] sm:$0xff] }
0x1752   :  { %v19206_v0 = vpop.eup %19205  ;;  %18410 = vmatpush3.msra.mxu1 %v21223_v19  ;;  %18411 = vmatprep.mubr.msk.f32.mxu1 %vm19352_vm10, %v19351_v23  ;;  %v16352_v43 = vld [vmem:[%s22592_s27 + $0x140] sm:$0xff] }
0x1753   :  { %v9175_v1 = vmul.f32 %v19206_v0, %v19190_v63  ;;  %18397 = vmatmul.mubr.msk.f32.vlgmr.msra.gmra.mxu0 %vm1272_vm12, %v9172_v31  ;;  %18419 = vmatprep.subr.mxu1 %v19351_v23  ;;  %v16323_v63 = vld [vmem:[%s22564_s9 + $0x40] sm:$0xff] }
0x1754   :  { %v19208_v38 = vpop.eup %19207  ;;  %18405 = vmatpush3.msra.mxu0 %v8456_v39  ;;  %18406 = vmatprep.mubr.msk.f32.mxu0 %vm19352_vm10, %v19351_v23 }
0x1755   :  { %v9174_v54 = vmul.f32 %v19208_v38, %v19192_v62  ;;  %18412 = vmatmul.mubr.msk.f32.vlgmr.msra.gmra.mxu1 %vm1272_vm12, %v9175_v1  ;;  %18414 = vmatprep.subr.mxu0 %v19351_v23 }
0x1756   :  { %v19210_v19 = vpop.eup %19209  ;;  %18420 = vmatpush3.msra.mxu1 %v21231_v9  ;;  %18421 = vmatprep.mubr.msk.f32.mxu1 %vm19352_vm10, %v19351_v23  ;;  %v16339_v9 = vld [vmem:[%s22591_s2 + $0x168] sm:$0xff] }
0x1757   :  { %v9177_v40 = vmul.f32 %v19210_v19, %v19194_v55  ;;  %18407 = vmatmul.mubr.msk.f32.vlgmr.msra.gmra.mxu0 %vm1272_vm12, %v9174_v54  ;;  %18440 = vmatprep.subr.mxu1 %v16341_v57 }
0x1758   :  { %v19212_v25 = vpop.eup %19211  ;;  %18415 = vmatpush3.msra.mxu0 %v8466_v52  ;;  %18416 = vmatprep.mubr.msk.f32.mxu0 %vm19352_vm10, %v19351_v23 }
0x1759   :  { %v9176_v15 = vmul.f32 %v19212_v25, %v21299_v58  ;;  %18422 = vmatmul.mubr.msk.f32.vlgmr.msra.gmra.mxu1 %vm1272_vm12, %v9177_v40  ;;  %18424 = vmatprep.subr.mxu0 %v16324_v47 }
0x175a   :  { %18441 = vmatpush3.msra.mxu1 %v16341_v57  ;;  %18456 = vmatprep.mubr.msk.f32.mxu1 %vm285_vm9, %v21097_v35 }
0x175b   :  { %18442 = vmatprep.subr.mxu1 %v16340_v42  ;;  %18417 = vmatmul.mubr.msk.f32.vlgmr.msra.gmra.mxu0 %vm1272_vm12, %v9176_v15 }
0x175c   :  { %18443 = vmatpush3.msra.mxu1 %v16340_v42  ;;  %18425 = vmatpush3.msra.mxu0 %v16324_v47  ;;  %v21488_v42 = vld [vmem:[%s22563_s8 + $0x5] ss:$0 sm:$0xff] }
0x175d   :  { %18444 = vmatprep.subr.mxu1 %v16339_v9  ;;  %18426 = vmatprep.subr.mxu0 %v16323_v63 }
0x175e   :  { %18445 = vmatpush3.msra.mxu1 %v16339_v9  ;;  %18427 = vmatpush3.msra.mxu0 %v16323_v63 }
0x175f   :  { %18446 = vmatprep.subr.mxu1 %v16338_v60  ;;  %18468 = vmatprep.subr.mxu0 %v16359_v24 }
0x1760   :  { %18447 = vmatpush3.msra.mxu1 %v16338_v60 }
0x1761   :  { %18448 = vmatprep.subr.mxu1 %v16337_v51 }
0x1762   :  { %18449 = vmatpush3.msra.mxu1 %v16337_v51 }
0x1763   :  { %18450 = vmatprep.subr.mxu1 %v16336_v49 }
0x1764   :  { %18451 = vmatpush3.msra.mxu1 %v16336_v49 }
0x1765   :  { %18452 = vmatprep.subr.mxu1 %v16335_v18 }
0x1766   :  { %18453 = vmatpush3.msra.mxu1 %v16335_v18 }
0x1767   :  { %18454 = vmatprep.subr.mxu1 %v16334_v16 }
0x1768   :  { %18455 = vmatpush3.msra.mxu1 %v16334_v16 }
0x1769   :  { %18457 = vmatmul.mubr.msk.f32.vlgmr.msra.gmra.mxu1 %vm285_vm9, %v21106_v29  ;;  %18496 = vmatprep.subr.mxu1 %v16377_v41 }
0x176a   :  { %18459 = vmatprep.mubr.msk.f32.mxu1 %vm285_vm9, %v21121_v2  ;;  %18497 = vmatpush3.msra.mxu1 %v16377_v41 }
0x176b   :  { %18498 = vmatprep.subr.mxu1 %v16376_v53 }
0x176c   :  { %18499 = vmatpush3.msra.mxu1 %v16376_v53 }
0x176d   :  { %18460 = vmatmul.mubr.msk.f32.gmra.mxu1 %vm285_vm9, %v21133_v17  ;;  %18500 = vmatprep.subr.mxu1 %v16375_v27 }
0x176e   :  { %18462 = vmatprep.mubr.msk.f32.mxu1 %vm285_vm9, %v21148_v12  ;;  %18501 = vmatpush3.msra.mxu1 %v16375_v27 }
0x176f   :  { %18502 = vmatprep.subr.mxu1 %v16374_v32 }
0x1770   :  { %18503 = vmatpush3.msra.mxu1 %v16374_v32 }
0x1771   :  { %18463 = vmatmul.mubr.msk.f32.gmra.mxu1 %vm285_vm9, %v21160_v4  ;;  %18504 = vmatprep.subr.mxu1 %v16373_v7 }
0x1772   :  { %18465 = vmatprep.mubr.msk.f32.mxu1 %vm285_vm9, %v21172_v50  ;;  %18505 = vmatpush3.msra.mxu1 %v16373_v7 }
0x1773   :  { %18506 = vmatprep.subr.mxu1 %v16372_v28 }
0x1774   :  { %18507 = vmatpush3.msra.mxu1 %v16372_v28 }
0x1775   :  { %18466 = vmatmul.mubr.msk.f32.gmra.mxu1 %vm285_vm9, %v21182_v20  ;;  %18508 = vmatprep.subr.mxu1 %v16371_v21 }
0x1776   :  { %18509 = vmatpush3.msra.mxu1 %v16371_v21  ;;  %18512 = vmatprep.mubr.msk.f32.mxu1 %vm285_vm9, %v21097_v35 }
0x1777   :  { %18510 = vmatprep.subr.mxu1 %v16370_v5 }
0x1778   :  { %18511 = vmatpush3.msra.mxu1 %v16370_v5 }
0x1779   :  { %18513 = vmatmul.mubr.msk.f32.vlgmr.msra.gmra.mxu1 %vm285_vm9, %v21106_v29  ;;  %18544 = vmatprep.subr.mxu1 %v19351_v23 }
0x177a   :  { %18515 = vmatprep.mubr.msk.f32.mxu1 %vm285_vm9, %v21121_v2 }
0x177d   :  { %18516 = vmatmul.mubr.msk.f32.gmra.mxu1 %vm285_vm9, %v21133_v17 }
0x177e   :  { %18518 = vmatprep.mubr.msk.f32.mxu1 %vm285_vm9, %v21148_v12 }
0x1781   :  { %18519 = vmatmul.mubr.msk.f32.gmra.mxu1 %vm285_vm9, %v21160_v4 }
0x1782   :  { %18521 = vmatprep.mubr.msk.f32.mxu1 %vm285_vm9, %v21172_v50 }
0x1785   :  { %18522 = vmatmul.mubr.msk.f32.gmra.mxu1 %vm285_vm9, %v21182_v20 }
0x1786   :  { %18546 = vmatprep.mubr.msk.f32.mxu1 %vm19352_vm10, %v19351_v23 }
0x180d   :  { %v9320_v62 = vpop.f32.mrf.mxu1 }
0x180f   :  { %v9247_v26 = vpop.f32.mrf.mxu0  ;;  %v18393_v55 = vpop.f32.mrf.mxu1 }
0x1810   :  { %18428 = vmatprep.mubr.msk.f32.mxu0 %vm663_vm11, %v9247_v26  ;;  %v16343_v26 = vld [vmem:[%s22594_s25 + $0x5] ss:$0 sm:$0xff] }
0x1811   :  { %v18388_v58 = vpop.f32.mrf.mxu0  ;;  %v9466_v8 = vpop.f32.mrf.mxu1  ;;  %18429 = vmatmul.mubr.msk.f32.vlgmr.msra.gmra.mxu0 %vm663_vm11, %v9320_v62 }
0x1812   :  { %18469 = vmatpush3.msra.mxu0 %v16359_v24 }
0x1813   :  { %v9393_v6 = vpop.f32.mrf.mxu0  ;;  %v18403_v45 = vpop.f32.mrf.mxu1  ;;  %18470 = vmatprep.subr.mxu0 %v16358_v59 }
0x1814   :  { %18431 = vmatprep.mubr.msk.f32.mxu0 %vm663_vm11, %v9393_v6  ;;  %18471 = vmatpush3.msra.mxu0 %v16358_v59  ;;  %v16361_v59 = vld [vmem:[%s22561_s6 + $0x5] ss:$0 sm:$0xff] }
0x1815   :  { %v18398_v46 = vpop.f32.mrf.mxu0  ;;  %v9612_v37 = vpop.f32.mrf.mxu1  ;;  %18432 = vmatmul.mubr.msk.f32.gmra.mxu0 %vm663_vm11, %v9466_v8  ;;  %18472 = vmatprep.subr.mxu0 %v16357_v3 }
0x1816   :  { %18473 = vmatpush3.msra.mxu0 %v16357_v3 }
0x1817   :  { %v9539_v44 = vpop.f32.mrf.mxu0  ;;  %v18413_v30 = vpop.f32.mrf.mxu1  ;;  %18474 = vmatprep.subr.mxu0 %v16356_v34 }
0x1818   :  { %18434 = vmatprep.mubr.msk.f32.mxu0 %vm663_vm11, %v9539_v44  ;;  %18475 = vmatpush3.msra.mxu0 %v16356_v34 }
0x1819   :  { %v18408_v36 = vpop.f32.mrf.mxu0  ;;  %v9758_v61 = vpop.f32.mrf.mxu1  ;;  %18435 = vmatmul.mubr.msk.f32.gmra.mxu0 %vm663_vm11, %v9612_v37  ;;  %18476 = vmatprep.subr.mxu0 %v16355_v48 }
0x181a   :  { %18477 = vmatpush3.msra.mxu0 %v16355_v48 }
0x181b   :  { %v9685_v10 = vpop.f32.mrf.mxu0  ;;  %v18423_v22 = vpop.f32.mrf.mxu1  ;;  %18478 = vmatprep.subr.mxu0 %v16354_v13 }
0x181c   :  { %18437 = vmatprep.mubr.msk.f32.mxu0 %vm663_vm11, %v9685_v10  ;;  %18479 = vmatpush3.msra.mxu0 %v16354_v13 }
0x181d   :  { %v18418_v31 = vpop.f32.mrf.mxu0  ;;  %18438 = vmatmul.mubr.msk.f32.gmra.mxu0 %vm663_vm11, %v9758_v61  ;;  %18480 = vmatprep.subr.mxu0 %v16353_v56 }
0x181e   :  { %18481 = vmatpush3.msra.mxu0 %v16353_v56  ;;  %18484 = vmatprep.mubr.msk.f32.mxu0 %vm285_vm9, %v21097_v35 }
0x181f   :  { %18482 = vmatprep.subr.mxu0 %v16352_v43 }
0x1820   :  { %18483 = vmatpush3.msra.mxu0 %v16352_v43 }
0x1821   :  { %18485 = vmatmul.mubr.msk.f32.vlgmr.msra.gmra.mxu0 %vm285_vm9, %v21106_v29  ;;  %18524 = vmatprep.subr.mxu0 %v19351_v23 }
0x1822   :  { %18487 = vmatprep.mubr.msk.f32.mxu0 %vm285_vm9, %v21121_v2 }
0x1825   :  { %18488 = vmatmul.mubr.msk.f32.gmra.mxu0 %vm285_vm9, %v21133_v17 }
0x1826   :  { %18490 = vmatprep.mubr.msk.f32.mxu0 %vm285_vm9, %v21148_v12 }
0x1829   :  { %v18458_v0 = vpop.f32.mrf.mxu1  ;;  %18491 = vmatmul.mubr.msk.f32.gmra.mxu0 %vm285_vm9, %v21160_v4 }
0x182a   :  { %18493 = vmatprep.mubr.msk.f32.mxu0 %vm285_vm9, %v21172_v50  ;;  %v9997_v6 = vadd.f32 %v18458_v0, %v16343_v26 }
0x182b   :  { %v9991_v39 = vpop.f32.mrf.mxu1 }
0x182c   :  { %v9992_v55 = vadd.f32 %v16343_v26, %v9991_v39  ;;  %v10275_v48 = vmul.f32 0.25, %v9997_v6 }
0x182d   :  { %v18461_v1 = vpop.f32.mrf.mxu1  ;;  %18494 = vmatmul.mubr.msk.f32.gmra.mxu0 %vm285_vm9, %v21182_v20 }
0x182e   :  { %18526 = vmatprep.mubr.msk.f32.mxu0 %vm19352_vm10, %v19351_v23  ;;  %v10274_v45 = vmul.f32 0.25, %v9992_v55  ;;  %v10007_v10 = vadd.f32 %v18461_v1, %v16343_v26 }
0x182f   :  { %v10001_v38 = vpop.f32.mrf.mxu1 }
0x1830   :  { %v10002_v44 = vadd.f32 %v16343_v26, %v10001_v38  ;;  %v10277_v1 = vmul.f32 0.25, %v10007_v10 }
0x1831   :  { %v21477_v57 = vpop.f32.mrf.mxu1 }
0x1832   :  { %v10276_v22 = vmul.f32 0.25, %v10002_v44 }
0x1833   :  { %v10011_v54 = vpop.f32.mrf.mxu1 }
0x1834   :  { %v10012_v30 = vadd.f32 %v16343_v26, %v10011_v54  ;;  %v10017_v54 = vadd.f32 %v21477_v57, %v16343_v26 }
0x1835   :  { %v21479_v19 = vpop.f32.mrf.mxu1 }
0x1836   :  { %v10278_v43 = vmul.f32 0.25, %v10012_v30  ;;  %v10279_v57 = vmul.f32 0.25, %v10017_v54 }
0x1837   :  { %v10021_v52 = vpop.f32.mrf.mxu1 }
0x1838   :  { %v10022_v31 = vadd.f32 %v16343_v26, %v10021_v52 }
0x1839   :  { %v21481_v40 = vpop.f32.mrf.mxu1 }
0x183a   :  { %v10280_v52 = vmul.f32 0.25, %v10022_v31 }
0x183b   :  { %v21483_v25 = vpop.f32.mrf.mxu1 }
0x183d   :  { %v18517_v15 = vpop.f32.mrf.mxu1 }
0x183e   :  { %v21491_v9 = vadd.f32 %v18517_v15, %v21488_v42  ;;  %v10236_v15 = vadd.f32 %v21488_v42, %v21483_v25 }
0x183f   :  { %v10245_v60 = vpop.f32.mrf.mxu1 }
0x1840   :  { %v21494_v51 = vadd.f32 %v21488_v42, %v10245_v60 }
0x1841   :  { %v18520_v49 = vpop.f32.mrf.mxu1 }
0x1842   :  { %v21497_v18 = vadd.f32 %v18520_v49, %v21488_v42  ;;  %v10027_v49 = vadd.f32 %v21479_v19, %v16343_v26  ;;  %v10241_v19 = vadd.f32 %v21481_v40, %v21488_v42 }
0x1843   :  { %v10255_v16 = vpop.f32.mrf.mxu1 }
0x1844   :  { %v21500_v41 = vadd.f32 %v21488_v42, %v10255_v16  ;;  %v10281_v16 = vmul.f32 0.25, %v10027_v49 }
0x1845   :  { %v18523_v53 = vpop.f32.mrf.mxu1 }
0x1846   :  { %v21503_v27 = vadd.f32 %v18523_v53, %v21488_v42 }
0x18d1   :  { %v21505_v32 = vpop.f32.mrf.mxu0 }
0x18d3   :  { %v21507_v7 = vpop.f32.mrf.mxu0 }
0x18d5   :  { %v21509_v28 = vpop.f32.mrf.mxu0 }
0x18d7   :  { %v21511_v21 = vpop.f32.mrf.mxu0 }
0x18d9   :  { %v21513_v5 = vpop.f32.mrf.mxu0 }
0x18db   :  { %v21515_v47 = vpop.f32.mrf.mxu0 }
0x18dd   :  { %v21517_v63 = vpop.f32.mrf.mxu0 }
0x18df   :  { %v21519_v24 = vpop.f32.mrf.mxu0 }
0x18e1   :  { %v18486_v62 = vpop.f32.mrf.mxu0 }
0x18e2   :  { %v10119_v46 = vadd.f32 %v18486_v62, %v16361_v59 }
0x18e3   :  { %v10113_v58 = vpop.f32.mrf.mxu0 }
0x18e4   :  { %v10114_v8 = vadd.f32 %v16361_v59, %v10113_v58  ;;  %v21577_v58 = vpop.f32.mrf.mxu1 }
0x18e5   :  { %v18489_v3 = vpop.f32.mrf.mxu0 }
0x18e6   :  { %18525 = vmatpush3.xpose.msk.msra.mxu0 %vm663_vm11, %v10114_v8  ;;  %v10129_v39 = vadd.f32 %v18489_v3, %v16361_v59 }
0x18e7   :  { %v10123_v34 = vpop.f32.mrf.mxu0  ;;  %18529 = vmatprep.subr.mxu0 %v19351_v23 }
0x18e8   :  { %v10124_v36 = vadd.f32 %v16361_v59, %v10123_v34 }
0x18e9   :  { %v18492_v37 = vpop.f32.mrf.mxu0  ;;  %18527 = vmatmul.mubr.msk.f32.vlgmr.msra.gmra.mxu0 %vm663_vm11, %v10274_v45 }
0x18ea   :  { %18530 = vmatpush3.xpose.msk.msra.mxu0 %vm663_vm11, %v10119_v46  ;;  %18531 = vmatprep.mubr.msk.f32.mxu0 %vm19352_vm10, %v19351_v23  ;;  %v10139_v60 = vadd.f32 %v18492_v37, %v16361_v59 }
0x18eb   :  { %v10133_v13 = vpop.f32.mrf.mxu0  ;;  %18534 = vmatprep.subr.mxu0 %v19351_v23 }
0x18ec   :  { %v10134_v61 = vadd.f32 %v16361_v59, %v10133_v13 }
0x18ed   :  { %v18495_v56 = vpop.f32.mrf.mxu0  ;;  %18532 = vmatmul.mubr.msk.f32.vlgmr.msra.gmra.mxu0 %vm663_vm11, %v10275_v48 }
0x18ee   :  { %18535 = vmatpush3.xpose.msk.msra.mxu0 %vm663_vm11, %v10124_v36  ;;  %18545 = vmatpush3.xpose.msk.msra.mxu1 %vm663_vm11, %v10134_v61  ;;  %v10149_v25 = vadd.f32 %v18495_v56, %v16361_v59 }
0x18ef   :  { %v10143_v0 = vpop.f32.mrf.mxu0  ;;  %18536 = vmatprep.mubr.msk.f32.mxu0 %vm19352_vm10, %v19351_v23  ;;  %18539 = vmatprep.subr.mxu0 %v19351_v23 }
0x18f0   :  { %v10144_v38 = vadd.f32 %v16361_v59, %v10143_v0  ;;  %18554 = vmatprep.subr.mxu1 %v19351_v23 }
0x18f1   :  { %18537 = vmatmul.mubr.msk.f32.vlgmr.msra.gmra.mxu0 %vm663_vm11, %v10276_v22  ;;  %18547 = vmatmul.mubr.msk.f32.vlgmr.msra.gmra.mxu1 %vm663_vm11, %v10278_v43 }
0x18f2   :  { %18540 = vmatpush3.xpose.msk.msra.mxu0 %vm663_vm11, %v10129_v39  ;;  %18555 = vmatpush3.xpose.msk.msra.mxu1 %vm663_vm11, %v10144_v38 }
0x18f3   :  { %18541 = vmatprep.mubr.msk.f32.mxu0 %vm19352_vm10, %v19351_v23  ;;  %18556 = vmatprep.mubr.msk.f32.mxu1 %vm19352_vm10, %v19351_v23 }
0x18f4   :  { %18549 = vmatprep.subr.mxu0 %v19351_v23  ;;  %18564 = vmatprep.subr.mxu1 %v19351_v23 }
0x18f5   :  { %18542 = vmatmul.mubr.msk.f32.vlgmr.msra.gmra.mxu0 %vm663_vm11, %v10277_v1  ;;  %18557 = vmatmul.mubr.msk.f32.vlgmr.msra.gmra.mxu1 %vm663_vm11, %v10280_v52 }
0x18f6   :  { %18550 = vmatpush3.xpose.msk.msra.mxu0 %vm663_vm11, %v10139_v60  ;;  %18565 = vmatpush3.msra.mxu1 %v10236_v15 }
0x18f7   :  { %18551 = vmatprep.mubr.msk.f32.mxu0 %vm19352_vm10, %v19351_v23  ;;  %18559 = vmatprep.subr.mxu0 %v19351_v23 }
0x18f8   :  { %18566 = vmatprep.mubr.msk.f32.mxu1 %vm19352_vm10, %v19351_v23  ;;  %18574 = vmatprep.subr.mxu1 %v19351_v23 }
0x18f9   :  { %18552 = vmatmul.mubr.msk.f32.vlgmr.msra.gmra.mxu0 %vm663_vm11, %v10279_v57 }
0x18fa   :  { %18560 = vmatpush3.xpose.msk.msra.mxu0 %vm663_vm11, %v10149_v25  ;;  %18561 = vmatprep.mubr.msk.f32.mxu0 %vm19352_vm10, %v19351_v23 }
0x18fb   :  { %18569 = vmatprep.subr.mxu0 %v19351_v23 }
0x18fd   :  { %18562 = vmatmul.mubr.msk.f32.vlgmr.msra.gmra.mxu0 %vm663_vm11, %v10281_v16 }
0x18fe   :  { %18570 = vmatpush3.msra.mxu0 %v10241_v19  ;;  %18571 = vmatprep.mubr.msk.f32.mxu0 %vm19352_vm10, %v19351_v23 }
0x18ff   :  { %18579 = vmatprep.subr.mxu0 %v19351_v23 }
0x19a9   :  { %v10354_v53 = vpop.f32.mrf.mxu0 }
0x19aa   :  { %v10890_v62 = vsel %vm1272_vm12, %v10354_v53, -inf }
0x19ab   :  { %10891 = vmax.xlane.f32.xlu1 %v10890_v62  ;;  %v18528_v26 = vpop.f32.mrf.mxu0 }
0x19ad   :  { %v10430_v55 = vpop.f32.mrf.mxu0 }
0x19ae   :  { %v10893_v59 = vsel %vm1272_vm12, %v10430_v55, -inf }
0x19af   :  { %10894 = vmax.xlane.f32.xlu0 %v10893_v59  ;;  %v18533_v40 = vpop.f32.mrf.mxu0 }
0x19b1   :  { %v10506_v8 = vpop.f32.mrf.mxu0  ;;  %v10658_v3 = vpop.f32.mrf.mxu1 }
0x19b2   :  { %v10896_v6 = vsel %vm1272_vm12, %v10506_v8, -inf  ;;  %v10902_v48 = vsel %vm1272_vm12, %v10658_v3, -inf }
0x19b3   :  { %v18548_v45 = vpop.f32.mrf.mxu1  ;;  %10897 = vmax.xlane.f32.xlu1 %v10896_v6  ;;  %v18538_v34 = vpop.f32.mrf.mxu0 }
0x19b5   :  { %v10582_v46 = vpop.f32.mrf.mxu0  ;;  %v10810_v37 = vpop.f32.mrf.mxu1 }
0x19b6   :  { %v10899_v44 = vsel %vm1272_vm12, %v10582_v46, -inf  ;;  %v10908_v61 = vsel %vm1272_vm12, %v10810_v37, -inf }
0x19b7   :  { %v18558_v30 = vpop.f32.mrf.mxu1  ;;  %10903 = vmax.xlane.f32.xlu1 %v10902_v48  ;;  %10900 = vmax.xlane.f32.xlu0 %v10899_v44  ;;  %v18543_v13 = vpop.f32.mrf.mxu0 }
0x19b9   :  { %v10734_v36 = vpop.f32.mrf.mxu0 }
0x19ba   :  { %v10905_v56 = vsel %vm1272_vm12, %v10734_v36, -inf }
0x19bb   :  { %10909 = vmax.xlane.f32.xlu1 %v10908_v61  ;;  %10906 = vmax.xlane.f32.xlu0 %v10905_v56  ;;  %v18553_v10 = vpop.f32.mrf.mxu0 }
0x19bd   :  { %v10886_v22 = vpop.f32.mrf.mxu0 }
0x19be   :  { %v10911_v43 = vsel %vm1272_vm12, %v10886_v22, -inf }
0x19bf   :  { %10912 = vmax.xlane.f32.xlu0 %v10911_v43  ;;  %v18563_v31 = vpop.f32.mrf.mxu0 }
0x1a34   :  { %v10892_v0 = vpop.xlane.xlu1 %10891 }
0x1a35   :  { %v10914_v39 = vsub.f32 %v10354_v53, %v10892_v0 }
0x1a37   :  { %v10922_v38 = vmul.f32 1.442695, %v10914_v39 }
0x1a38   :  { %v10895_v1 = vpop.xlane.xlu0 %10894 }
0x1a39   :  { %19213 = vpow2.f32 %v10922_v38  ;;  %v10915_v54 = vsub.f32 %v10430_v55, %v10895_v1 }
0x1a3b   :  { %v10924_v52 = vmul.f32 1.442695, %v10915_v54 }
0x1a3c   :  { %v10898_v15 = vpop.xlane.xlu1 %10897 }
0x1a3d   :  { %19215 = vpow2.f32 %v10924_v52  ;;  %v10916_v60 = vsub.f32 %v10506_v8, %v10898_v15 }
0x1a3f   :  { %v10926_v57 = vmul.f32 1.442695, %v10916_v60 }
0x1a40   :  { %v10904_v49 = vpop.xlane.xlu1 %10903  ;;  %v10901_v25 = vpop.xlane.xlu0 %10900 }
0x1a41   :  { %19217 = vpow2.f32 %v10926_v57  ;;  %v10918_v16 = vsub.f32 %v10658_v3, %v10904_v49  ;;  %v10917_v19 = vsub.f32 %v10582_v46, %v10901_v25 }
0x1a43   :  { %v10930_v62 = vmul.f32 1.442695, %v10918_v16  ;;  %v10928_v26 = vmul.f32 1.442695, %v10917_v19 }
0x1a44   :  { %v10910_v59 = vpop.xlane.xlu1 %10909  ;;  %v10907_v40 = vpop.xlane.xlu0 %10906 }
0x1a45   :  { %19219 = vpow2.f32 %v10930_v62  ;;  %v10920_v53 = vsub.f32 %v10810_v37, %v10910_v59  ;;  %v10919_v6 = vsub.f32 %v10734_v36, %v10907_v40 }
0x1a46   :  { %v19214_v45 = vpop.eup %19213  ;;  %19221 = vpow2.f32 %v10928_v26 }
0x1a47   :  { %v10934_v55 = vmul.f32 1.442695, %v10920_v53  ;;  %v10932_v34 = vmul.f32 1.442695, %v10919_v6  ;;  %v10938_v48 = vsel %vm1272_vm12, %v19214_v45, 0.0 }
0x1a48   :  { %10939 = vadd.xlane.f32.xlu1 %v10938_v48  ;;  %v10913_v8 = vpop.xlane.xlu0 %10912 }
0x1a49   :  { %19223 = vpow2.f32 %v10934_v55  ;;  %v10921_v44 = vsub.f32 %v10886_v22, %v10913_v8  ;;  %v16428_v8 = vld [vmem:[%s22591_s2 + $0x1b0] sm:$0xff] }
0x1a4a   :  { %v19216_v30 = vpop.eup %19215  ;;  %19225 = vpow2.f32 %v10932_v34 }
0x1a4b   :  { %v10936_v3 = vmul.f32 1.442695, %v10921_v44  ;;  %v10941_v46 = vsel %vm1272_vm12, %v19216_v30, 0.0  ;;  %v16427_v44 = vld [vmem:[%s22591_s2 + $0x1a8] sm:$0xff] }
0x1a4c   :  { %10942 = vadd.xlane.f32.xlu0 %v10941_v46  ;;  %v16423_v46 = vld [vmem:[%s22591_s2 + $0x188] sm:$0xff] }
0x1a4d   :  { %19227 = vpow2.f32 %v10936_v3  ;;  %v16424_v3 = vld [vmem:[%s22591_s2 + $0x190] sm:$0xff] }
0x1a4e   :  { %v19218_v13 = vpop.eup %19217 }
0x1a4f   :  { %v10944_v37 = vsel %vm1272_vm12, %v19218_v13, 0.0 }
0x1a50   :  { %10945 = vadd.xlane.f32.xlu1 %v10944_v37  ;;  %v16465_v37 = vld [vmem:[%s22562_s7 + $0x1b8] sm:$0xff] }
0x1a52   :  { %v19220_v36 = vpop.eup %19219 }
0x1a53   :  { %v19222_v61 = vpop.eup %19221  ;;  %v10950_v56 = vsel %vm1272_vm12, %v19220_v36, 0.0 }
0x1a54   :  { %10951 = vadd.xlane.f32.xlu1 %v10950_v56  ;;  %v10947_v10 = vsel %vm1272_vm12, %v19222_v61, 0.0  ;;  %v16462_v56 = vld [vmem:[%s22562_s7 + $0x1a0] sm:$0xff] }
0x1a55   :  { %10948 = vadd.xlane.f32.xlu0 %v10947_v10  ;;  %v16461_v10 = vld [vmem:[%s22562_s7 + $0x198] sm:$0xff] }
0x1a56   :  { %v19224_v22 = vpop.eup %19223 }
0x1a57   :  { %v19226_v43 = vpop.eup %19225  ;;  %v10956_v31 = vsel %vm1272_vm12, %v19224_v22, 0.0 }
0x1a58   :  { %10957 = vadd.xlane.f32.xlu1 %v10956_v31  ;;  %v10953_v0 = vsel %vm1272_vm12, %v19226_v43, 0.0  ;;  %v16458_v31 = vld [vmem:[%s22562_s7 + $0x180] sm:$0xff] }
0x1a59   :  { %10954 = vadd.xlane.f32.xlu0 %v10953_v0  ;;  %v16413_v0 = vld [vmem:[%s22564_s9 + $0x58] sm:$0xff] }
0x1a5a   :  { %v19228_v39 = vpop.eup %19227 }
0x1a5b   :  { %v10959_v38 = vsel %vm1272_vm12, %v19228_v39, 0.0 }
0x1a5d   :  { %10960 = vadd.xlane.f32.xlu0 %v10959_v38  ;;  %v16447_v38 = vld [vmem:[%s22592_s27 + $0x1b8] sm:$0xff] }
0x1ad1   :  { %v10940_v1 = vpop.xlane.xlu1 %10939 }
0x1ad2   :  { %19229 = vrcp.f32 %v10940_v1 }
0x1ad5   :  { %v10943_v54 = vpop.xlane.xlu0 %10942 }
0x1ad6   :  { %19231 = vrcp.f32 %v10943_v54 }
0x1ad9   :  { %v10946_v52 = vpop.xlane.xlu1 %10945 }
0x1ada   :  { %19233 = vrcp.f32 %v10946_v52 }
0x1add   :  { %v10952_v15 = vpop.xlane.xlu1 %10951 }
0x1ade   :  { %19235 = vrcp.f32 %v10952_v15  ;;  %v10949_v60 = vpop.xlane.xlu0 %10948  ;;  %v16446_v15 = vld [vmem:[%s22592_s27 + $0x1b0] sm:$0xff] }
0x1adf   :  { %v19230_v57 = vpop.eup %19229  ;;  %19237 = vrcp.f32 %v10949_v60 }
0x1ae0   :  { %v10970_v49 = vmul.f32 %v19230_v57, %v19214_v45  ;;  %v16445_v57 = vld [vmem:[%s22592_s27 + $0x1a8] sm:$0xff] }
0x1ae1   :  { %v10958_v25 = vpop.xlane.xlu1 %10957 }
0x1ae2   :  { %19239 = vrcp.f32 %v10958_v25  ;;  %v10955_v16 = vpop.xlane.xlu0 %10954  ;;  %18567 = vmatmul.mubr.msk.f32.vlgmr.msra.gmra.mxu1 %vm1272_vm12, %v10970_v49  ;;  %v16444_v25 = vld [vmem:[%s22592_s27 + $0x1a0] sm:$0xff] }
0x1ae3   :  { %v19232_v19 = vpop.eup %19231  ;;  %19241 = vrcp.f32 %v10955_v16  ;;  %18575 = vmatpush3.msra.mxu1 %v21494_v51  ;;  %18576 = vmatprep.mubr.msk.f32.mxu1 %vm19352_vm10, %v19351_v23 }
0x1ae4   :  { %v10971_v62 = vmul.f32 %v19232_v19, %v19216_v30  ;;  %18584 = vmatprep.subr.mxu1 %v19351_v23  ;;  %v16425_v30 = vld [vmem:[%s22591_s2 + $0x198] sm:$0xff] }
0x1ae5   :  { %v16443_v19 = vld [vmem:[%s22592_s27 + $0x198] sm:$0xff] }
0x1ae6   :  { %v10961_v26 = vpop.xlane.xlu0 %10960  ;;  %18572 = vmatmul.mubr.msk.f32.vlgmr.msra.gmra.mxu0 %vm1272_vm12, %v10971_v62 }
0x1ae7   :  { %v19234_v59 = vpop.eup %19233  ;;  %19243 = vrcp.f32 %v10961_v26  ;;  %18580 = vmatpush3.msra.mxu0 %v21491_v9  ;;  %18581 = vmatprep.mubr.msk.f32.mxu0 %vm19352_vm10, %v19351_v23  ;;  %v10266_v9 = vadd.f32 %v21488_v42, %v21577_v58  ;;  %v16429_v42 = vld [vmem:[%s22591_s2 + $0x1b8] sm:$0xff] }
0x1ae8   :  { %v10972_v40 = vmul.f32 %v19234_v59, %v19218_v13  ;;  %18589 = vmatprep.subr.mxu0 %v19351_v23  ;;  %v16422_v13 = vld [vmem:[%s22591_s2 + $0x180] sm:$0xff]  ;;  %v16442_v59 = vld [vmem:[%s22592_s27 + $0x190] sm:$0xff] }
0x1aea   :  { %18577 = vmatmul.mubr.msk.f32.vlgmr.msra.gmra.mxu1 %vm1272_vm12, %v10972_v40 }
0x1aeb   :  { %v19236_v51 = vpop.eup %19235  ;;  %18585 = vmatpush3.msra.mxu1 %v21500_v41  ;;  %18586 = vmatprep.mubr.msk.f32.mxu1 %vm19352_vm10, %v19351_v23 }
0x1aec   :  { %v19238_v53 = vpop.eup %19237  ;;  %v10974_v6 = vmul.f32 %v19236_v51, %v19220_v36  ;;  %18594 = vmatprep.subr.mxu1 %v19351_v23  ;;  %v16464_v36 = vld [vmem:[%s22562_s7 + $0x1b0] sm:$0xff] }
0x1aed   :  { %v10973_v45 = vmul.f32 %v19238_v53, %v19222_v61  ;;  %v16463_v61 = vld [vmem:[%s22562_s7 + $0x1a8] sm:$0xff] }
0x1aee   :  { %18587 = vmatmul.mubr.msk.f32.vlgmr.msra.gmra.mxu1 %vm1272_vm12, %v10974_v6  ;;  %v16441_v53 = vld [vmem:[%s22592_s27 + $0x188] sm:$0xff] }
0x1aef   :  { %v19240_v55 = vpop.eup %19239  ;;  %18582 = vmatmul.mubr.msk.f32.vlgmr.msra.gmra.mxu0 %vm1272_vm12, %v10973_v45  ;;  %18595 = vmatpush3.msra.mxu1 %v10266_v9  ;;  %v16440_v45 = vld [vmem:[%s22592_s27 + $0x180] sm:$0xff] }
0x1af0   :  { %v19242_v34 = vpop.eup %19241  ;;  %v10976_v48 = vmul.f32 %v19240_v55, %v19224_v22  ;;  %18590 = vmatpush3.msra.mxu0 %v21497_v18  ;;  %18591 = vmatprep.mubr.msk.f32.mxu0 %vm19352_vm10, %v19351_v23  ;;  %v16460_v22 = vld [vmem:[%s22562_s7 + $0x190] sm:$0xff] }
0x1af1   :  { %v10975_v41 = vmul.f32 %v19242_v34, %v19226_v43  ;;  %18596 = vmatprep.mubr.msk.f32.mxu1 %vm19352_vm10, %v19351_v23  ;;  %18599 = vmatprep.subr.mxu0 %v19351_v23  ;;  %v16459_v43 = vld [vmem:[%s22562_s7 + $0x188] sm:$0xff] }
0x1af2   :  { %18597 = vmatmul.mubr.msk.f32.vlgmr.msra.gmra.mxu1 %vm1272_vm12, %v10976_v48  ;;  %18604 = vmatprep.subr.mxu1 %v16413_v0 }
0x1af3   :  { %18592 = vmatmul.mubr.msk.f32.vlgmr.msra.gmra.mxu0 %vm1272_vm12, %v10975_v41  ;;  %18605 = vmatpush3.msra.mxu1 %v16413_v0 }
0x1af4   :  { %v19244_v58 = vpop.eup %19243  ;;  %18600 = vmatpush3.msra.mxu0 %v21503_v27  ;;  %18601 = vmatprep.mubr.msk.f32.mxu0 %vm19352_vm10, %v19351_v23  ;;  %v16426_v27 = vld [vmem:[%s22591_s2 + $0x1a0] sm:$0xff] }
0x1af5   :  { %v10977_v18 = vmul.f32 %v19244_v58, %v19228_v39  ;;  %18620 = vmatprep.subr.mxu0 %v16429_v42  ;;  %v16412_v39 = vld [vmem:[%s22564_s9 + $0x50] sm:$0xff] }
0x1af6   :  { %18606 = vmatprep.subr.mxu1 %v16412_v39 }
0x1af7   :  { %18602 = vmatmul.mubr.msk.f32.vlgmr.msra.gmra.mxu0 %vm1272_vm12, %v10977_v18  ;;  %18607 = vmatpush3.msra.mxu1 %v16412_v39 }
0x1af8   :  { %18621 = vmatpush3.msra.mxu0 %v16429_v42  ;;  %18636 = vmatprep.mubr.msk.f32.mxu0 %vm285_vm9, %v21097_v35 }
0x1af9   :  { %18622 = vmatprep.subr.mxu0 %v16428_v8  ;;  %18648 = vmatprep.subr.mxu1 %v16447_v38 }
0x1afa   :  { %18623 = vmatpush3.msra.mxu0 %v16428_v8 }
0x1afb   :  { %18624 = vmatprep.subr.mxu0 %v16427_v44 }
0x1afc   :  { %18625 = vmatpush3.msra.mxu0 %v16427_v44 }
0x1afd   :  { %18626 = vmatprep.subr.mxu0 %v16426_v27 }
0x1afe   :  { %18627 = vmatpush3.msra.mxu0 %v16426_v27 }
0x1aff   :  { %18628 = vmatprep.subr.mxu0 %v16425_v30 }
0x1b00   :  { %18629 = vmatpush3.msra.mxu0 %v16425_v30 }
0x1b01   :  { %18630 = vmatprep.subr.mxu0 %v16424_v3 }
0x1b02   :  { %18631 = vmatpush3.msra.mxu0 %v16424_v3 }
0x1b03   :  { %18632 = vmatprep.subr.mxu0 %v16423_v46 }
0x1b04   :  { %18633 = vmatpush3.msra.mxu0 %v16423_v46 }
0x1b05   :  { %18634 = vmatprep.subr.mxu0 %v16422_v13 }
0x1b06   :  { %18635 = vmatpush3.msra.mxu0 %v16422_v13 }
0x1b07   :  { %18637 = vmatmul.mubr.msk.f32.vlgmr.msra.gmra.mxu0 %vm285_vm9, %v21106_v29  ;;  %18676 = vmatprep.subr.mxu0 %v16465_v37 }
0x1b08   :  { %18639 = vmatprep.mubr.msk.f32.mxu0 %vm285_vm9, %v21121_v2  ;;  %18677 = vmatpush3.msra.mxu0 %v16465_v37  ;;  %v21779_v37 = vld [vmem:[%s22563_s8 + $0x6] ss:$0 sm:$0xff] }
0x1b09   :  { %18678 = vmatprep.subr.mxu0 %v16464_v36 }
0x1b0a   :  { %18679 = vmatpush3.msra.mxu0 %v16464_v36 }
0x1b0b   :  { %18640 = vmatmul.mubr.msk.f32.gmra.mxu0 %vm285_vm9, %v21133_v17  ;;  %18680 = vmatprep.subr.mxu0 %v16463_v61 }
0x1b0c   :  { %18642 = vmatprep.mubr.msk.f32.mxu0 %vm285_vm9, %v21148_v12  ;;  %18681 = vmatpush3.msra.mxu0 %v16463_v61 }
0x1b0d   :  { %18682 = vmatprep.subr.mxu0 %v16462_v56 }
0x1b0e   :  { %18683 = vmatpush3.msra.mxu0 %v16462_v56 }
0x1b0f   :  { %18643 = vmatmul.mubr.msk.f32.gmra.mxu0 %vm285_vm9, %v21160_v4  ;;  %18684 = vmatprep.subr.mxu0 %v16461_v10 }
0x1b10   :  { %18645 = vmatprep.mubr.msk.f32.mxu0 %vm285_vm9, %v21172_v50  ;;  %18685 = vmatpush3.msra.mxu0 %v16461_v10 }
0x1b11   :  { %18686 = vmatprep.subr.mxu0 %v16460_v22 }
0x1b12   :  { %18687 = vmatpush3.msra.mxu0 %v16460_v22 }
0x1b13   :  { %18646 = vmatmul.mubr.msk.f32.gmra.mxu0 %vm285_vm9, %v21182_v20  ;;  %18688 = vmatprep.subr.mxu0 %v16459_v43 }
0x1b14   :  { %18689 = vmatpush3.msra.mxu0 %v16459_v43  ;;  %18692 = vmatprep.mubr.msk.f32.mxu0 %vm285_vm9, %v21097_v35 }
0x1b15   :  { %18690 = vmatprep.subr.mxu0 %v16458_v31 }
0x1b16   :  { %18691 = vmatpush3.msra.mxu0 %v16458_v31 }
0x1b17   :  { %18693 = vmatmul.mubr.msk.f32.vlgmr.msra.gmra.mxu0 %vm285_vm9, %v21106_v29  ;;  %18724 = vmatprep.subr.mxu0 %v19351_v23 }
0x1b18   :  { %18695 = vmatprep.mubr.msk.f32.mxu0 %vm285_vm9, %v21121_v2 }
0x1b1b   :  { %18696 = vmatmul.mubr.msk.f32.gmra.mxu0 %vm285_vm9, %v21133_v17 }
0x1b1c   :  { %18698 = vmatprep.mubr.msk.f32.mxu0 %vm285_vm9, %v21148_v12 }
0x1b1f   :  { %18699 = vmatmul.mubr.msk.f32.gmra.mxu0 %vm285_vm9, %v21160_v4 }
0x1b20   :  { %18701 = vmatprep.mubr.msk.f32.mxu0 %vm285_vm9, %v21172_v50 }
0x1b23   :  { %18702 = vmatmul.mubr.msk.f32.gmra.mxu0 %vm285_vm9, %v21182_v20 }
0x1b24   :  { %18726 = vmatprep.mubr.msk.f32.mxu0 %vm19352_vm10, %v19351_v23 }
0x1ba2   :  { %v11047_v1 = vpop.f32.mrf.mxu1 }
0x1ba3   :  { %18608 = vmatprep.mubr.msk.f32.mxu1 %vm663_vm11, %v11047_v1  ;;  %v21799_v1 = vld [vmem:[%s22565_s10 + $0x1] ss:$0 sm:$0xff] }
0x1ba4   :  { %v18568_v54 = vpop.f32.mrf.mxu1 }
0x1ba5   :  { %v9901_v54 = vadd.f32 %v21505_v32, %v21799_v1 }
0x1ba6   :  { %v11120_v52 = vpop.f32.mrf.mxu0 }
0x1ba7   :  { %18609 = vmatmul.mubr.msk.f32.vlgmr.msra.gmra.mxu1 %vm663_vm11, %v11120_v52 }
0x1ba8   :  { %v18573_v60 = vpop.f32.mrf.mxu0  ;;  %18649 = vmatpush3.msra.mxu1 %v16447_v38 }
0x1ba9   :  { %18650 = vmatprep.subr.mxu1 %v16446_v15 }
0x1baa   :  { %v11193_v49 = vpop.f32.mrf.mxu1  ;;  %18651 = vmatpush3.msra.mxu1 %v16446_v15 }
0x1bab   :  { %18611 = vmatprep.mubr.msk.f32.mxu1 %vm663_vm11, %v11193_v49  ;;  %18652 = vmatprep.subr.mxu1 %v16445_v57 }
0x1bac   :  { %v18578_v16 = vpop.f32.mrf.mxu1  ;;  %18653 = vmatpush3.msra.mxu1 %v16445_v57  ;;  %v9903_v57 = vadd.f32 %v21509_v28, %v21799_v1  ;;  %v9906_v28 = vadd.f32 %v21799_v1, %v21519_v24 }
0x1bad   :  { %18654 = vmatprep.subr.mxu1 %v16444_v25 }
0x1bae   :  { %v11339_v62 = vpop.f32.mrf.mxu1  ;;  %18655 = vmatpush3.msra.mxu1 %v16444_v25 }
0x1baf   :  { %v11266_v26 = vpop.f32.mrf.mxu0  ;;  %18656 = vmatprep.subr.mxu1 %v16443_v19 }
0x1bb0   :  { %18612 = vmatmul.mubr.msk.f32.gmra.mxu1 %vm663_vm11, %v11266_v26  ;;  %v18588_v40 = vpop.f32.mrf.mxu1 }
0x1bb1   :  { %v18583_v51 = vpop.f32.mrf.mxu0  ;;  %18614 = vmatprep.mubr.msk.f32.mxu1 %vm663_vm11, %v11339_v62  ;;  %18657 = vmatpush3.msra.mxu1 %v16443_v19  ;;  %v9905_v19 = vadd.f32 %v21513_v5, %v21799_v1  ;;  %v16431_v5 = vld [vmem:[%s22594_s25 + $0x6] ss:$0 sm:$0xff] }
0x1bb2   :  { %v11485_v6 = vpop.f32.mrf.mxu1  ;;  %18658 = vmatprep.subr.mxu1 %v16442_v59 }
0x1bb3   :  { %v11412_v9 = vpop.f32.mrf.mxu0  ;;  %18659 = vmatpush3.msra.mxu1 %v16442_v59  ;;  %v9907_v59 = vadd.f32 %v21517_v63, %v21799_v1 }
0x1bb4   :  { %18615 = vmatmul.mubr.msk.f32.gmra.mxu1 %vm663_vm11, %v11412_v9  ;;  %v18598_v55 = vpop.f32.mrf.mxu1  ;;  %18660 = vmatprep.subr.mxu1 %v16441_v53 }
0x1bb5   :  { %v18593_v34 = vpop.f32.mrf.mxu0  ;;  %18617 = vmatprep.mubr.msk.f32.mxu1 %vm663_vm11, %v11485_v6  ;;  %18661 = vmatpush3.msra.mxu1 %v16441_v53  ;;  %v16449_v55 = vld [vmem:[%s22561_s6 + $0x6] ss:$0 sm:$0xff] }
0x1bb6   :  { %18662 = vmatprep.subr.mxu1 %v16440_v45 }
0x1bb7   :  { %v11558_v48 = vpop.f32.mrf.mxu0  ;;  %18663 = vmatpush3.msra.mxu1 %v16440_v45 }
0x1bb8   :  { %18618 = vmatmul.mubr.msk.f32.gmra.mxu1 %vm663_vm11, %v11558_v48  ;;  %18704 = vmatprep.subr.mxu1 %v19351_v23 }
0x1bb9   :  { %v18603_v41 = vpop.f32.mrf.mxu0  ;;  %18664 = vmatprep.mubr.msk.f32.mxu1 %vm285_vm9, %v21097_v35 }
0x1bbc   :  { %18665 = vmatmul.mubr.msk.f32.vlgmr.msra.gmra.mxu1 %vm285_vm9, %v21106_v29 }
0x1bbd   :  { %18667 = vmatprep.mubr.msk.f32.mxu1 %vm285_vm9, %v21121_v2 }
0x1bc0   :  { %18668 = vmatmul.mubr.msk.f32.gmra.mxu1 %vm285_vm9, %v21133_v17 }
0x1bc1   :  { %18670 = vmatprep.mubr.msk.f32.mxu1 %vm285_vm9, %v21148_v12 }
0x1bc4   :  { %18671 = vmatmul.mubr.msk.f32.gmra.mxu1 %vm285_vm9, %v21160_v4 }
0x1bc5   :  { %18673 = vmatprep.mubr.msk.f32.mxu1 %vm285_vm9, %v21172_v50 }
0x1bc7   :  { %v18638_v42 = vpop.f32.mrf.mxu0 }
0x1bc8   :  { %18674 = vmatmul.mubr.msk.f32.gmra.mxu1 %vm285_vm9, %v21182_v20  ;;  %v11791_v24 = vadd.f32 %v18638_v42, %v16431_v5 }
0x1bc9   :  { %v11785_v58 = vpop.f32.mrf.mxu0  ;;  %18706 = vmatprep.mubr.msk.f32.mxu1 %vm19352_vm10, %v19351_v23 }
0x1bca   :  { %v11786_v45 = vadd.f32 %v16431_v5, %v11785_v58  ;;  %v12069_v58 = vmul.f32 0.25, %v11791_v24 }
0x1bcb   :  { %v21764_v18 = vpop.f32.mrf.mxu0 }
0x1bcc   :  { %v12068_v41 = vmul.f32 0.25, %v11786_v45 }
0x1bcd   :  { %v11795_v8 = vpop.f32.mrf.mxu0 }
0x1bcf   :  { %v21766_v44 = vpop.f32.mrf.mxu0 }
0x1bd1   :  { %v11805_v27 = vpop.f32.mrf.mxu0 }
0x1bd3   :  { %v21768_v30 = vpop.f32.mrf.mxu0 }
0x1bd4   :  { %v11821_v45 = vadd.f32 %v21768_v30, %v16431_v5 }
0x1bd5   :  { %v21770_v3 = vpop.f32.mrf.mxu0 }
0x1bd7   :  { %v21772_v46 = vpop.f32.mrf.mxu0 }
0x1bd8   :  { %v12035_v30 = vadd.f32 %v21772_v46, %v21779_v37 }
0x1bd9   :  { %v21774_v13 = vpop.f32.mrf.mxu0 }
0x1bdb   :  { %v18697_v36 = vpop.f32.mrf.mxu0 }
0x1bdc   :  { %v21782_v61 = vadd.f32 %v18697_v36, %v21779_v37 }
0x1bdd   :  { %v12039_v56 = vpop.f32.mrf.mxu0 }
0x1bde   :  { %v21785_v10 = vadd.f32 %v21779_v37, %v12039_v56 }
0x1bdf   :  { %v18700_v22 = vpop.f32.mrf.mxu0 }
0x1be0   :  { %v21788_v43 = vadd.f32 %v18700_v22, %v21779_v37 }
0x1be1   :  { %v12049_v31 = vpop.f32.mrf.mxu0 }
0x1be2   :  { %v21791_v0 = vadd.f32 %v21779_v37, %v12049_v31  ;;  %v11796_v31 = vadd.f32 %v16431_v5, %v11795_v8 }
0x1be3   :  { %v18703_v39 = vpop.f32.mrf.mxu0 }
0x1be4   :  { %v21794_v38 = vadd.f32 %v18703_v39, %v21779_v37  ;;  %v11806_v39 = vadd.f32 %v16431_v5, %v11805_v27 }
0x1c67   :  { %v18610_v52 = vpop.f32.mrf.mxu1 }
0x1c68   :  { %v21803_v15 = vadd.f32 %v18610_v52, %v9901_v54 }
0x1c69   :  { %v21805_v60 = vpop.f32.mrf.mxu1 }
0x1c70   :  { %v18613_v49 = vpop.f32.mrf.mxu1 }
0x1c71   :  { %v21809_v25 = vadd.f32 %v18613_v49, %v9903_v57  ;;  %v11801_v49 = vadd.f32 %v21764_v18, %v16431_v5 }
0x1c72   :  { %v21811_v16 = vpop.f32.mrf.mxu1 }
0x1c73   :  { %v12071_v18 = vmul.f32 0.25, %v11801_v49 }
0x1c74   :  { %v18616_v62 = vpop.f32.mrf.mxu1 }
0x1c75   :  { %v21815_v26 = vadd.f32 %v18616_v62, %v9905_v19  ;;  %v12070_v19 = vmul.f32 0.25, %v11796_v31  ;;  %v12072_v62 = vmul.f32 0.25, %v11806_v39 }
0x1c76   :  { %v21817_v32 = vpop.f32.mrf.mxu1 }
0x1c78   :  { %v18619_v40 = vpop.f32.mrf.mxu1 }
0x1c79   :  { %v21823_v51 = vadd.f32 %v18619_v40, %v9907_v59  ;;  %v11816_v59 = vadd.f32 %v16431_v5, %v21770_v3  ;;  %v11811_v3 = vadd.f32 %v21766_v44, %v16431_v5 }
0x1c7a   :  { %v11685_v53 = vpop.f32.mrf.mxu1 }
0x1c7b   :  { %v21825_v6 = vadd.f32 %v11685_v53, %v9906_v28  ;;  %v12074_v28 = vmul.f32 0.25, %v11816_v59  ;;  %v12030_v53 = vadd.f32 %v21779_v37, %v21774_v13  ;;  %v12073_v44 = vmul.f32 0.25, %v11811_v3 }
0x1c7c   :  { %v18666_v9 = vpop.f32.mrf.mxu1 }
0x1c7d   :  { %v11913_v56 = vadd.f32 %v18666_v9, %v16449_v55 }
0x1c7e   :  { %v11907_v63 = vpop.f32.mrf.mxu1 }
0x1c7f   :  { %v11908_v34 = vadd.f32 %v16449_v55, %v11907_v63  ;;  %v12075_v63 = vmul.f32 0.25, %v11821_v45 }
0x1c80   :  { %v18669_v48 = vpop.f32.mrf.mxu1 }
0x1c81   :  { %18705 = vmatpush3.xpose.msk.msra.mxu1 %vm663_vm11, %v11908_v34  ;;  %v11923_v27 = vadd.f32 %v18669_v48, %v16449_v55 }
0x1c82   :  { %v11917_v36 = vpop.f32.mrf.mxu1  ;;  %18709 = vmatprep.subr.mxu1 %v19351_v23 }
0x1c83   :  { %v11918_v42 = vadd.f32 %v16449_v55, %v11917_v36 }
0x1c84   :  { %v18672_v22 = vpop.f32.mrf.mxu1  ;;  %18707 = vmatmul.mubr.msk.f32.vlgmr.msra.gmra.mxu1 %vm663_vm11, %v12068_v41  ;;  %v21885_v41 = vpop.f32.mrf.mxu0 }
0x1c85   :  { %18710 = vmatpush3.xpose.msk.msra.mxu1 %vm663_vm11, %v11913_v56  ;;  %18711 = vmatprep.mubr.msk.f32.mxu1 %vm19352_vm10, %v19351_v23  ;;  %v11933_v9 = vadd.f32 %v18672_v22, %v16449_v55 }
0x1c86   :  { %v11927_v54 = vpop.f32.mrf.mxu1  ;;  %18714 = vmatprep.subr.mxu1 %v19351_v23 }
0x1c87   :  { %v11928_v52 = vadd.f32 %v16449_v55, %v11927_v54 }
0x1c88   :  { %v18675_v57 = vpop.f32.mrf.mxu1  ;;  %18712 = vmatmul.mubr.msk.f32.vlgmr.msra.gmra.mxu1 %vm663_vm11, %v12069_v58 }
0x1c89   :  { %18715 = vmatpush3.xpose.msk.msra.mxu1 %vm663_vm11, %v11918_v42  ;;  %18725 = vmatpush3.xpose.msk.msra.mxu0 %vm663_vm11, %v11928_v52  ;;  %v11943_v13 = vadd.f32 %v18675_v57, %v16449_v55 }
0x1c8a   :  { %v11937_v8 = vpop.f32.mrf.mxu1  ;;  %18716 = vmatprep.mubr.msk.f32.mxu1 %vm19352_vm10, %v19351_v23  ;;  %18719 = vmatprep.subr.mxu1 %v19351_v23 }
0x1c8b   :  { %v11938_v40 = vadd.f32 %v16449_v55, %v11937_v8  ;;  %18734 = vmatprep.subr.mxu0 %v19351_v23 }
0x1c8c   :  { %18717 = vmatmul.mubr.msk.f32.vlgmr.msra.gmra.mxu1 %vm663_vm11, %v12070_v19  ;;  %18727 = vmatmul.mubr.msk.f32.vlgmr.msra.gmra.mxu0 %vm663_vm11, %v12072_v62 }
0x1c8d   :  { %18720 = vmatpush3.xpose.msk.msra.mxu1 %vm663_vm11, %v11923_v27  ;;  %18735 = vmatpush3.xpose.msk.msra.mxu0 %vm663_vm11, %v11938_v40 }
0x1c8e   :  { %18721 = vmatprep.mubr.msk.f32.mxu1 %vm19352_vm10, %v19351_v23  ;;  %18736 = vmatprep.mubr.msk.f32.mxu0 %vm19352_vm10, %v19351_v23 }
0x1c8f   :  { %18729 = vmatprep.subr.mxu1 %v19351_v23  ;;  %18744 = vmatprep.subr.mxu0 %v19351_v23 }
0x1c90   :  { %18722 = vmatmul.mubr.msk.f32.vlgmr.msra.gmra.mxu1 %vm663_vm11, %v12071_v18  ;;  %18737 = vmatmul.mubr.msk.f32.vlgmr.msra.gmra.mxu0 %vm663_vm11, %v12074_v28 }
0x1c91   :  { %18730 = vmatpush3.xpose.msk.msra.mxu1 %vm663_vm11, %v11933_v9  ;;  %18745 = vmatpush3.msra.mxu0 %v12030_v53 }
0x1c92   :  { %18731 = vmatprep.mubr.msk.f32.mxu1 %vm19352_vm10, %v19351_v23  ;;  %18739 = vmatprep.subr.mxu1 %v19351_v23 }
0x1c93   :  { %18746 = vmatprep.mubr.msk.f32.mxu0 %vm19352_vm10, %v19351_v23  ;;  %18754 = vmatprep.subr.mxu0 %v19351_v23 }
0x1c94   :  { %18732 = vmatmul.mubr.msk.f32.vlgmr.msra.gmra.mxu1 %vm663_vm11, %v12073_v44 }
0x1c95   :  { %18740 = vmatpush3.xpose.msk.msra.mxu1 %vm663_vm11, %v11943_v13  ;;  %18741 = vmatprep.mubr.msk.f32.mxu1 %vm19352_vm10, %v19351_v23 }
0x1c96   :  { %18749 = vmatprep.subr.mxu1 %v19351_v23 }
0x1c98   :  { %18742 = vmatmul.mubr.msk.f32.vlgmr.msra.gmra.mxu1 %vm663_vm11, %v12075_v63 }
0x1c99   :  { %18750 = vmatpush3.msra.mxu1 %v12035_v30  ;;  %18751 = vmatprep.mubr.msk.f32.mxu1 %vm19352_vm10, %v19351_v23 }
0x1c9a   :  { %18759 = vmatprep.subr.mxu1 %v19351_v23 }
0x1d44   :  { %v12148_v5 = vpop.f32.mrf.mxu1 }
0x1d45   :  { %v12684_v55 = vsel %vm1272_vm12, %v12148_v5, -inf }
0x1d46   :  { %12685 = vmax.xlane.f32.xlu1 %v12684_v55  ;;  %v18708_v34 = vpop.f32.mrf.mxu1 }
0x1d48   :  { %v12224_v48 = vpop.f32.mrf.mxu1 }
0x1d49   :  { %v12687_v24 = vsel %vm1272_vm12, %v12224_v48, -inf }
0x1d4a   :  { %12688 = vmax.xlane.f32.xlu0 %v12687_v24  ;;  %v18713_v46 = vpop.f32.mrf.mxu1 }
0x1d4c   :  { %v12300_v36 = vpop.f32.mrf.mxu1  ;;  %v12452_v56 = vpop.f32.mrf.mxu0 }
0x1d4d   :  { %v12690_v22 = vsel %vm1272_vm12, %v12300_v36, -inf  ;;  %v12696_v42 = vsel %vm1272_vm12, %v12452_v56, -inf }
0x1d4e   :  { %v18728_v58 = vpop.f32.mrf.mxu0  ;;  %12691 = vmax.xlane.f32.xlu1 %v12690_v22  ;;  %v18718_v31 = vpop.f32.mrf.mxu1 }
0x1d50   :  { %v12376_v39 = vpop.f32.mrf.mxu1  ;;  %v12604_v54 = vpop.f32.mrf.mxu0 }
0x1d51   :  { %v12693_v52 = vsel %vm1272_vm12, %v12376_v39, -inf  ;;  %v12702_v62 = vsel %vm1272_vm12, %v12604_v54, -inf }
0x1d52   :  { %v18738_v57 = vpop.f32.mrf.mxu0  ;;  %12697 = vmax.xlane.f32.xlu1 %v12696_v42  ;;  %12694 = vmax.xlane.f32.xlu0 %v12693_v52  ;;  %v18723_v49 = vpop.f32.mrf.mxu1 }
0x1d54   :  { %v12528_v19 = vpop.f32.mrf.mxu1 }
0x1d55   :  { %v12699_v59 = vsel %vm1272_vm12, %v12528_v19, -inf }
0x1d56   :  { %12703 = vmax.xlane.f32.xlu1 %v12702_v62  ;;  %12700 = vmax.xlane.f32.xlu0 %v12699_v59  ;;  %v18733_v8 = vpop.f32.mrf.mxu1 }
0x1d58   :  { %v12680_v27 = vpop.f32.mrf.mxu1 }
0x1d59   :  { %v12705_v40 = vsel %vm1272_vm12, %v12680_v27, -inf }
0x1d5a   :  { %12706 = vmax.xlane.f32.xlu0 %v12705_v40  ;;  %v18743_v18 = vpop.f32.mrf.mxu1 }
0x1dcf   :  { %v12686_v3 = vpop.xlane.xlu1 %12685 }
0x1dd0   :  { %v12708_v28 = vsub.f32 %v12148_v5, %v12686_v3 }
0x1dd2   :  { %v12716_v53 = vmul.f32 1.442695, %v12708_v28 }
0x1dd3   :  { %v12689_v9 = vpop.xlane.xlu0 %12688 }
0x1dd4   :  { %19245 = vpow2.f32 %v12716_v53  ;;  %v12709_v44 = vsub.f32 %v12224_v48, %v12689_v9 }
0x1dd6   :  { %v12718_v45 = vmul.f32 1.442695, %v12709_v44 }
0x1dd7   :  { %v12692_v13 = vpop.xlane.xlu1 %12691 }
0x1dd8   :  { %19247 = vpow2.f32 %v12718_v45  ;;  %v12710_v63 = vsub.f32 %v12300_v36, %v12692_v13 }
0x1dda   :  { %v12720_v30 = vmul.f32 1.442695, %v12710_v63 }
0x1ddb   :  { %v12698_v55 = vpop.xlane.xlu1 %12697  ;;  %v12695_v34 = vpop.xlane.xlu0 %12694 }
0x1ddc   :  { %19249 = vpow2.f32 %v12720_v30  ;;  %v12712_v24 = vsub.f32 %v12452_v56, %v12698_v55  ;;  %v12711_v46 = vsub.f32 %v12376_v39, %v12695_v34 }
0x1dde   :  { %v12724_v22 = vmul.f32 1.442695, %v12712_v24  ;;  %v12722_v58 = vmul.f32 1.442695, %v12711_v46 }
0x1ddf   :  { %v12704_v31 = vpop.xlane.xlu1 %12703  ;;  %v12701_v42 = vpop.xlane.xlu0 %12700 }
0x1de0   :  { %19251 = vpow2.f32 %v12724_v22  ;;  %v12714_v5 = vsub.f32 %v12604_v54, %v12704_v31  ;;  %v12713_v52 = vsub.f32 %v12528_v19, %v12701_v42 }
0x1de1   :  { %v19246_v57 = vpop.eup %19245  ;;  %19253 = vpow2.f32 %v12722_v58 }
0x1de2   :  { %v12728_v48 = vmul.f32 1.442695, %v12714_v5  ;;  %v12726_v49 = vmul.f32 1.442695, %v12713_v52  ;;  %v12732_v62 = vsel %vm1272_vm12, %v19246_v57, 0.0 }
0x1de3   :  { %12733 = vadd.xlane.f32.xlu1 %v12732_v62  ;;  %v12707_v36 = vpop.xlane.xlu0 %12706 }
0x1de4   :  { %19255 = vpow2.f32 %v12728_v48  ;;  %v12715_v59 = vsub.f32 %v12680_v27, %v12707_v36 }
0x1de5   :  { %v19248_v8 = vpop.eup %19247  ;;  %19257 = vpow2.f32 %v12726_v49 }
0x1de6   :  { %v12730_v56 = vmul.f32 1.442695, %v12715_v59  ;;  %v12735_v39 = vsel %vm1272_vm12, %v19248_v8, 0.0 }
0x1de7   :  { %12736 = vadd.xlane.f32.xlu0 %v12735_v39  ;;  %v16516_v39 = vld [vmem:[%s22591_s2 + $0x1f0] sm:$0xff] }
0x1de8   :  { %19259 = vpow2.f32 %v12730_v56 }
0x1de9   :  { %v19250_v40 = vpop.eup %19249 }
0x1dea   :  { %v12738_v54 = vsel %vm1272_vm12, %v19250_v40, 0.0 }
0x1deb   :  { %12739 = vadd.xlane.f32.xlu1 %v12738_v54  ;;  %v16513_v54 = vld [vmem:[%s22591_s2 + $0x1d8] sm:$0xff] }
0x1ded   :  { %v19252_v19 = vpop.eup %19251 }
0x1dee   :  { %v19254_v18 = vpop.eup %19253  ;;  %v12744_v3 = vsel %vm1272_vm12, %v19252_v19, 0.0 }
0x1def   :  { %12745 = vadd.xlane.f32.xlu1 %v12744_v3  ;;  %v12741_v28 = vsel %vm1272_vm12, %v19254_v18, 0.0  ;;  %v16510_v3 = vld [vmem:[%s22591_s2 + $0x1c0] sm:$0xff] }
0x1df0   :  { %12742 = vadd.xlane.f32.xlu0 %v12741_v28  ;;  %v16553_v28 = vld [vmem:[%s22562_s7 + $0x1f8] sm:$0xff] }
0x1df1   :  { %v19256_v27 = vpop.eup %19255 }
0x1df2   :  { %v19258_v53 = vpop.eup %19257  ;;  %v12750_v9 = vsel %vm1272_vm12, %v19256_v27, 0.0 }
0x1df3   :  { %12751 = vadd.xlane.f32.xlu1 %v12750_v9  ;;  %v12747_v44 = vsel %vm1272_vm12, %v19258_v53, 0.0  ;;  %v16550_v9 = vld [vmem:[%s22562_s7 + $0x1e0] sm:$0xff] }
0x1df4   :  { %12748 = vadd.xlane.f32.xlu0 %v12747_v44  ;;  %v16549_v44 = vld [vmem:[%s22562_s7 + $0x1d8] sm:$0xff] }
0x1df5   :  { %v19260_v45 = vpop.eup %19259 }
0x1df6   :  { %v12753_v13 = vsel %vm1272_vm12, %v19260_v45, 0.0 }
0x1df8   :  { %12754 = vadd.xlane.f32.xlu0 %v12753_v13  ;;  %v16547_v13 = vld [vmem:[%s22562_s7 + $0x1c8] sm:$0xff] }
0x1e6c   :  { %v12734_v63 = vpop.xlane.xlu1 %12733 }
0x1e6d   :  { %19261 = vrcp.f32 %v12734_v63  ;;  %v16546_v63 = vld [vmem:[%s22562_s7 + $0x1c0] sm:$0xff] }
0x1e70   :  { %v12737_v30 = vpop.xlane.xlu0 %12736 }
0x1e71   :  { %19263 = vrcp.f32 %v12737_v30  ;;  %v16501_v30 = vld [vmem:[%s22564_s9 + $0x68] sm:$0xff] }
0x1e74   :  { %v12740_v55 = vpop.xlane.xlu1 %12739 }
0x1e75   :  { %19265 = vrcp.f32 %v12740_v55  ;;  %v16500_v55 = vld [vmem:[%s22564_s9 + $0x60] sm:$0xff] }
0x1e78   :  { %v12746_v34 = vpop.xlane.xlu1 %12745 }
0x1e79   :  { %19267 = vrcp.f32 %v12746_v34  ;;  %v12743_v24 = vpop.xlane.xlu0 %12742  ;;  %v16535_v34 = vld [vmem:[%s22592_s27 + $0x1f8] sm:$0xff] }
0x1e7a   :  { %v19262_v46 = vpop.eup %19261  ;;  %19269 = vrcp.f32 %v12743_v24 }
0x1e7b   :  { %v12764_v22 = vmul.f32 %v19262_v46, %v19246_v57 }
0x1e7c   :  { %v12752_v58 = vpop.xlane.xlu1 %12751 }
0x1e7d   :  { %19271 = vrcp.f32 %v12752_v58  ;;  %v12749_v31 = vpop.xlane.xlu0 %12748  ;;  %18747 = vmatmul.mubr.msk.f32.vlgmr.msra.gmra.mxu0 %vm1272_vm12, %v12764_v22  ;;  %v16534_v58 = vld [vmem:[%s22592_s27 + $0x1f0] sm:$0xff] }
0x1e7e   :  { %v19264_v42 = vpop.eup %19263  ;;  %19273 = vrcp.f32 %v12749_v31  ;;  %18755 = vmatpush3.msra.mxu0 %v21785_v10  ;;  %18756 = vmatprep.mubr.msk.f32.mxu0 %vm19352_vm10, %v19351_v23 }
0x1e7f   :  { %v12765_v5 = vmul.f32 %v19264_v42, %v19248_v8  ;;  %18764 = vmatprep.subr.mxu0 %v19351_v23  ;;  %v16533_v42 = vld [vmem:[%s22592_s27 + $0x1e8] sm:$0xff] }
0x1e81   :  { %v12755_v52 = vpop.xlane.xlu0 %12754  ;;  %18752 = vmatmul.mubr.msk.f32.vlgmr.msra.gmra.mxu1 %vm1272_vm12, %v12765_v5 }
0x1e82   :  { %v19266_v48 = vpop.eup %19265  ;;  %19275 = vrcp.f32 %v12755_v52  ;;  %18760 = vmatpush3.msra.mxu1 %v21782_v61  ;;  %18761 = vmatprep.mubr.msk.f32.mxu1 %vm19352_vm10, %v19351_v23  ;;  %v12060_v61 = vadd.f32 %v21779_v37, %v21885_v41  ;;  %v16517_v37 = vld [vmem:[%s22591_s2 + $0x1f8] sm:$0xff]  ;;  %v16532_v52 = vld [vmem:[%s22592_s27 + $0x1e0] sm:$0xff] }
0x1e83   :  { %v12766_v57 = vmul.f32 %v19266_v48, %v19250_v40  ;;  %18769 = vmatprep.subr.mxu1 %v19351_v23  ;;  %v16515_v40 = vld [vmem:[%s22591_s2 + $0x1e8] sm:$0xff] }
0x1e85   :  { %18757 = vmatmul.mubr.msk.f32.vlgmr.msra.gmra.mxu0 %vm1272_vm12, %v12766_v57  ;;  %v16531_v57 = vld [vmem:[%s22592_s27 + $0x1d8] sm:$0xff] }
0x1e86   :  { %v19268_v10 = vpop.eup %19267  ;;  %18765 = vmatpush3.msra.mxu0 %v21791_v0  ;;  %18766 = vmatprep.mubr.msk.f32.mxu0 %vm19352_vm10, %v19351_v23 }
0x1e87   :  { %v19270_v49 = vpop.eup %19269  ;;  %v12768_v62 = vmul.f32 %v19268_v10, %v19252_v19  ;;  %18774 = vmatprep.subr.mxu0 %v19351_v23  ;;  %v16512_v19 = vld [vmem:[%s22591_s2 + $0x1d0] sm:$0xff] }
0x1e88   :  { %v12767_v36 = vmul.f32 %v19270_v49, %v19254_v18  ;;  %v16511_v18 = vld [vmem:[%s22591_s2 + $0x1c8] sm:$0xff] }
0x1e89   :  { %18767 = vmatmul.mubr.msk.f32.vlgmr.msra.gmra.mxu0 %vm1272_vm12, %v12768_v62  ;;  %v16530_v62 = vld [vmem:[%s22592_s27 + $0x1d0] sm:$0xff] }
0x1e8a   :  { %v19272_v59 = vpop.eup %19271  ;;  %18762 = vmatmul.mubr.msk.f32.vlgmr.msra.gmra.mxu1 %vm1272_vm12, %v12767_v36  ;;  %18775 = vmatpush3.msra.mxu0 %v12060_v61 }
0x1e8b   :  { %v19274_v8 = vpop.eup %19273  ;;  %v12770_v56 = vmul.f32 %v19272_v59, %v19256_v27  ;;  %18770 = vmatpush3.msra.mxu1 %v21788_v43  ;;  %18771 = vmatprep.mubr.msk.f32.mxu1 %vm19352_vm10, %v19351_v23  ;;  %v16552_v27 = vld [vmem:[%s22562_s7 + $0x1f0] sm:$0xff]  ;;  %v16529_v59 = vld [vmem:[%s22592_s27 + $0x1c8] sm:$0xff] }
0x1e8c   :  { %v12769_v0 = vmul.f32 %v19274_v8, %v19258_v53  ;;  %18776 = vmatprep.mubr.msk.f32.mxu0 %vm19352_vm10, %v19351_v23  ;;  %18779 = vmatprep.subr.mxu1 %v19351_v23  ;;  %v16551_v53 = vld [vmem:[%s22562_s7 + $0x1e8] sm:$0xff] }
0x1e8d   :  { %18777 = vmatmul.mubr.msk.f32.vlgmr.msra.gmra.mxu0 %vm1272_vm12, %v12770_v56  ;;  %18784 = vmatprep.subr.mxu0 %v16501_v30 }
0x1e8e   :  { %18772 = vmatmul.mubr.msk.f32.vlgmr.msra.gmra.mxu1 %vm1272_vm12, %v12769_v0  ;;  %18785 = vmatpush3.msra.mxu0 %v16501_v30  ;;  %v16528_v0 = vld [vmem:[%s22592_s27 + $0x1c0] sm:$0xff] }
0x1e8f   :  { %v19276_v41 = vpop.eup %19275  ;;  %18780 = vmatpush3.msra.mxu1 %v21794_v38  ;;  %18781 = vmatprep.mubr.msk.f32.mxu1 %vm19352_vm10, %v19351_v23  ;;  %v16514_v38 = vld [vmem:[%s22591_s2 + $0x1e0] sm:$0xff] }
0x1e90   :  { %v12771_v43 = vmul.f32 %v19276_v41, %v19260_v45  ;;  %18800 = vmatprep.subr.mxu1 %v16517_v37  ;;  %v16548_v45 = vld [vmem:[%s22562_s7 + $0x1d0] sm:$0xff]  ;;  %18786 = vmatprep.subr.mxu0 %v16500_v55 }
0x1e91   :  { %18787 = vmatpush3.msra.mxu0 %v16500_v55 }
0x1e92   :  { %18782 = vmatmul.mubr.msk.f32.vlgmr.msra.gmra.mxu1 %vm1272_vm12, %v12771_v43  ;;  %18828 = vmatprep.subr.mxu0 %v16535_v34 }
0x1e93   :  { %18801 = vmatpush3.msra.mxu1 %v16517_v37  ;;  %18816 = vmatprep.mubr.msk.f32.mxu1 %vm285_vm9, %v21097_v35 }
0x1e94   :  { %18802 = vmatprep.subr.mxu1 %v16516_v39 }
0x1e95   :  { %18803 = vmatpush3.msra.mxu1 %v16516_v39 }
0x1e96   :  { %18804 = vmatprep.subr.mxu1 %v16515_v40 }
0x1e97   :  { %18805 = vmatpush3.msra.mxu1 %v16515_v40 }
0x1e98   :  { %18806 = vmatprep.subr.mxu1 %v16514_v38 }
0x1e99   :  { %18807 = vmatpush3.msra.mxu1 %v16514_v38 }
0x1e9a   :  { %18808 = vmatprep.subr.mxu1 %v16513_v54 }
0x1e9b   :  { %18809 = vmatpush3.msra.mxu1 %v16513_v54 }
0x1e9c   :  { %18810 = vmatprep.subr.mxu1 %v16512_v19 }
0x1e9d   :  { %18811 = vmatpush3.msra.mxu1 %v16512_v19 }
0x1e9e   :  { %18812 = vmatprep.subr.mxu1 %v16511_v18 }
0x1e9f   :  { %18813 = vmatpush3.msra.mxu1 %v16511_v18 }
0x1ea0   :  { %18814 = vmatprep.subr.mxu1 %v16510_v3 }
0x1ea1   :  { %18815 = vmatpush3.msra.mxu1 %v16510_v3 }
0x1ea2   :  { %18817 = vmatmul.mubr.msk.f32.vlgmr.msra.gmra.mxu1 %vm285_vm9, %v21106_v29  ;;  %18856 = vmatprep.subr.mxu1 %v16553_v28 }
0x1ea3   :  { %18819 = vmatprep.mubr.msk.f32.mxu1 %vm285_vm9, %v21121_v2  ;;  %18857 = vmatpush3.msra.mxu1 %v16553_v28 }
0x1ea4   :  { %18858 = vmatprep.subr.mxu1 %v16552_v27 }
0x1ea5   :  { %18859 = vmatpush3.msra.mxu1 %v16552_v27 }
0x1ea6   :  { %18820 = vmatmul.mubr.msk.f32.gmra.mxu1 %vm285_vm9, %v21133_v17  ;;  %18860 = vmatprep.subr.mxu1 %v16551_v53 }
0x1ea7   :  { %18822 = vmatprep.mubr.msk.f32.mxu1 %vm285_vm9, %v21148_v12  ;;  %18861 = vmatpush3.msra.mxu1 %v16551_v53 }
0x1ea8   :  { %18862 = vmatprep.subr.mxu1 %v16550_v9 }
0x1ea9   :  { %18863 = vmatpush3.msra.mxu1 %v16550_v9 }
0x1eaa   :  { %18823 = vmatmul.mubr.msk.f32.gmra.mxu1 %vm285_vm9, %v21160_v4  ;;  %18864 = vmatprep.subr.mxu1 %v16549_v44 }
0x1eab   :  { %18825 = vmatprep.mubr.msk.f32.mxu1 %vm285_vm9, %v21172_v50  ;;  %18865 = vmatpush3.msra.mxu1 %v16549_v44  ;;  %v22087_v44 = vld [vmem:[%s22563_s8 + $0x7] ss:$0 sm:$0xff] }
0x1eac   :  { %18866 = vmatprep.subr.mxu1 %v16548_v45 }
0x1ead   :  { %18867 = vmatpush3.msra.mxu1 %v16548_v45 }
0x1eae   :  { %18826 = vmatmul.mubr.msk.f32.gmra.mxu1 %vm285_vm9, %v21182_v20  ;;  %18868 = vmatprep.subr.mxu1 %v16547_v13 }
0x1eaf   :  { %18869 = vmatpush3.msra.mxu1 %v16547_v13  ;;  %18872 = vmatprep.mubr.msk.f32.mxu1 %vm285_vm9, %v21097_v35 }
0x1eb0   :  { %18870 = vmatprep.subr.mxu1 %v16546_v63 }
0x1eb1   :  { %18871 = vmatpush3.msra.mxu1 %v16546_v63 }
0x1eb2   :  { %18873 = vmatmul.mubr.msk.f32.vlgmr.msra.gmra.mxu1 %vm285_vm9, %v21106_v29  ;;  %18904 = vmatprep.subr.mxu1 %v19351_v23 }
0x1eb3   :  { %18875 = vmatprep.mubr.msk.f32.mxu1 %vm285_vm9, %v21121_v2 }
0x1eb6   :  { %18876 = vmatmul.mubr.msk.f32.gmra.mxu1 %vm285_vm9, %v21133_v17 }
0x1eb7   :  { %18878 = vmatprep.mubr.msk.f32.mxu1 %vm285_vm9, %v21148_v12 }
0x1eba   :  { %18879 = vmatmul.mubr.msk.f32.gmra.mxu1 %vm285_vm9, %v21160_v4 }
0x1ebb   :  { %18881 = vmatprep.mubr.msk.f32.mxu1 %vm285_vm9, %v21172_v50 }
0x1ebe   :  { %18882 = vmatmul.mubr.msk.f32.gmra.mxu1 %vm285_vm9, %v21182_v20 }
0x1ebf   :  { %18906 = vmatprep.mubr.msk.f32.mxu1 %vm19352_vm10, %v19351_v23 }
0x1f3d   :  { %v12841_v24 = vpop.f32.mrf.mxu0 }
0x1f3e   :  { %18788 = vmatprep.mubr.msk.f32.mxu0 %vm663_vm11, %v12841_v24 }
0x1f3f   :  { %v18748_v46 = vpop.f32.mrf.mxu0 }
0x1f41   :  { %v12914_v22 = vpop.f32.mrf.mxu1 }
0x1f42   :  { %18789 = vmatmul.mubr.msk.f32.vlgmr.msra.gmra.mxu0 %vm663_vm11, %v12914_v22 }
0x1f43   :  { %v18753_v31 = vpop.f32.mrf.mxu1  ;;  %18829 = vmatpush3.msra.mxu0 %v16535_v34 }
0x1f44   :  { %18830 = vmatprep.subr.mxu0 %v16534_v58  ;;  %v9900_v31 = vadd.f32 %v21799_v1, %v21507_v7  ;;  %v9904_v7 = vadd.f32 %v21799_v1, %v21515_v47 }
0x1f45   :  { %v12987_v5 = vpop.f32.mrf.mxu0  ;;  %18831 = vmatpush3.msra.mxu0 %v16534_v58 }
0x1f46   :  { %18791 = vmatprep.mubr.msk.f32.mxu0 %vm663_vm11, %v12987_v5  ;;  %18832 = vmatprep.subr.mxu0 %v16533_v42  ;;  %v11694_v5 = vadd.f32 %v21805_v60, %v9900_v31 }
0x1f47   :  { %v18758_v48 = vpop.f32.mrf.mxu0  ;;  %18833 = vmatpush3.msra.mxu0 %v16533_v42 }
0x1f48   :  { %18834 = vmatprep.subr.mxu0 %v16532_v52 }
0x1f49   :  { %v13133_v10 = vpop.f32.mrf.mxu0  ;;  %18835 = vmatpush3.msra.mxu0 %v16532_v52 }
0x1f4a   :  { %v13060_v49 = vpop.f32.mrf.mxu1  ;;  %18836 = vmatprep.subr.mxu0 %v16531_v57 }
0x1f4b   :  { %18792 = vmatmul.mubr.msk.f32.gmra.mxu0 %vm663_vm11, %v13060_v49  ;;  %v18768_v61 = vpop.f32.mrf.mxu0 }
0x1f4c   :  { %v18763_v36 = vpop.f32.mrf.mxu1  ;;  %18794 = vmatprep.mubr.msk.f32.mxu0 %vm663_vm11, %v13133_v10  ;;  %18837 = vmatpush3.msra.mxu0 %v16531_v57  ;;  %v9902_v10 = vadd.f32 %v21799_v1, %v21511_v21  ;;  %v16519_v1 = vld [vmem:[%s22594_s25 + $0x7] ss:$0 sm:$0xff] }
0x1f4d   :  { %v13279_v8 = vpop.f32.mrf.mxu0  ;;  %18838 = vmatprep.subr.mxu0 %v16530_v62 }
0x1f4e   :  { %v13206_v56 = vpop.f32.mrf.mxu1  ;;  %18839 = vmatpush3.msra.mxu0 %v16530_v62  ;;  %v11696_v62 = vadd.f32 %v21811_v16, %v9902_v10 }
0x1f4f   :  { %18795 = vmatmul.mubr.msk.f32.gmra.mxu0 %vm663_vm11, %v13206_v56  ;;  %v18778_v37 = vpop.f32.mrf.mxu0  ;;  %18840 = vmatprep.subr.mxu0 %v16529_v59 }
0x1f50   :  { %v18773_v41 = vpop.f32.mrf.mxu1  ;;  %18797 = vmatprep.mubr.msk.f32.mxu0 %vm663_vm11, %v13279_v8  ;;  %18841 = vmatpush3.msra.mxu0 %v16529_v59  ;;  %v11698_v59 = vadd.f32 %v21817_v32, %v9904_v7 }
0x1f51   :  { %18842 = vmatprep.subr.mxu0 %v16528_v0 }
0x1f52   :  { %v13352_v43 = vpop.f32.mrf.mxu1  ;;  %18843 = vmatpush3.msra.mxu0 %v16528_v0 }
0x1f53   :  { %18798 = vmatmul.mubr.msk.f32.gmra.mxu0 %vm663_vm11, %v13352_v43  ;;  %18884 = vmatprep.subr.mxu0 %v19351_v23 }
0x1f54   :  { %v18783_v39 = vpop.f32.mrf.mxu1  ;;  %18844 = vmatprep.mubr.msk.f32.mxu0 %vm285_vm9, %v21097_v35 }
0x1f57   :  { %18845 = vmatmul.mubr.msk.f32.vlgmr.msra.gmra.mxu0 %vm285_vm9, %v21106_v29 }
0x1f58   :  { %18847 = vmatprep.mubr.msk.f32.mxu0 %vm285_vm9, %v21121_v2 }
0x1f5b   :  { %18848 = vmatmul.mubr.msk.f32.gmra.mxu0 %vm285_vm9, %v21133_v17 }
0x1f5c   :  { %18850 = vmatprep.mubr.msk.f32.mxu0 %vm285_vm9, %v21148_v12 }
0x1f5f   :  { %18851 = vmatmul.mubr.msk.f32.gmra.mxu0 %vm285_vm9, %v21160_v4 }
0x1f60   :  { %18853 = vmatprep.mubr.msk.f32.mxu0 %vm285_vm9, %v21172_v50 }
0x1f62   :  { %v18818_v40 = vpop.f32.mrf.mxu1 }
0x1f63   :  { %18854 = vmatmul.mubr.msk.f32.gmra.mxu0 %vm285_vm9, %v21182_v20 }
0x1f64   :  { %v13579_v38 = vpop.f32.mrf.mxu1  ;;  %18886 = vmatprep.mubr.msk.f32.mxu0 %vm19352_vm10, %v19351_v23 }
0x1f65   :  { %v13580_v32 = vadd.f32 %v16519_v1, %v13579_v38 }
0x1f66   :  { %v22072_v54 = vpop.f32.mrf.mxu1 }
0x1f68   :  { %v13589_v19 = vpop.f32.mrf.mxu1 }
0x1f6a   :  { %v22074_v18 = vpop.f32.mrf.mxu1 }
0x1f6c   :  { %v13599_v3 = vpop.f32.mrf.mxu1 }
0x1f6e   :  { %v22076_v28 = vpop.f32.mrf.mxu1 }
0x1f70   :  { %v22078_v27 = vpop.f32.mrf.mxu1 }
0x1f72   :  { %v22080_v53 = vpop.f32.mrf.mxu1 }
0x1f74   :  { %v22082_v9 = vpop.f32.mrf.mxu1 }
0x1f76   :  { %v18877_v45 = vpop.f32.mrf.mxu1 }
0x1f77   :  { %v22090_v13 = vadd.f32 %v18877_v45, %v22087_v44  ;;  %v13862_v45 = vmul.f32 0.25, %v13580_v32 }
0x1f78   :  { %v13833_v63 = vpop.f32.mrf.mxu1 }
0x1f79   :  { %v22093_v30 = vadd.f32 %v22087_v44, %v13833_v63 }
0x1f7a   :  { %v18880_v55 = vpop.f32.mrf.mxu1 }
0x1f7b   :  { %v22096_v34 = vadd.f32 %v18880_v55, %v22087_v44 }
0x1f7c   :  { %v13843_v24 = vpop.f32.mrf.mxu1 }
0x1f7d   :  { %v22099_v46 = vadd.f32 %v22087_v44, %v13843_v24  ;;  %v13590_v24 = vadd.f32 %v16519_v1, %v13589_v19 }
0x1f7e   :  { %v18883_v22 = vpop.f32.mrf.mxu1 }
0x1f7f   :  { %v22102_v58 = vadd.f32 %v18883_v22, %v22087_v44  ;;  %v13600_v22 = vadd.f32 %v16519_v1, %v13599_v3  ;;  %v13864_v10 = vmul.f32 0.25, %v13590_v24 }
0x2002   :  { %v18790_v42 = vpop.f32.mrf.mxu0 }
0x2003   :  { %v22108_v52 = vadd.f32 %v18790_v42, %v21803_v15 }
0x2004   :  { %v13449_v48 = vpop.f32.mrf.mxu0 }
0x2005   :  { %v22110_v57 = vadd.f32 %v13449_v48, %v11694_v5  ;;  %v13595_v48 = vadd.f32 %v22072_v54, %v16519_v1 }
0x2007   :  { %v13865_v54 = vmul.f32 0.25, %v13595_v48 }
0x200b   :  { %v18793_v49 = vpop.f32.mrf.mxu0 }
0x200c   :  { %v22116_v61 = vadd.f32 %v18793_v49, %v21809_v25  ;;  %v13866_v49 = vmul.f32 0.25, %v13600_v22 }
0x200d   :  { %v13459_v36 = vpop.f32.mrf.mxu0 }
0x200e   :  { %v22120_v60 = vadd.f32 %v13459_v36, %v11696_v62  ;;  %v13610_v62 = vadd.f32 %v16519_v1, %v22078_v27  ;;  %v13605_v27 = vadd.f32 %v22074_v18, %v16519_v1 }
0x200f   :  { %v18796_v15 = vpop.f32.mrf.mxu0 }
0x2010   :  { %v22124_v8 = vadd.f32 %v18796_v15, %v21815_v26  ;;  %v16537_v26 = vld [vmem:[%s22561_s6 + $0x7] ss:$0 sm:$0xff]  ;;  %v13868_v7 = vmul.f32 0.25, %v13610_v62  ;;  %v13824_v15 = vadd.f32 %v22087_v44, %v22082_v9  ;;  %v13867_v18 = vmul.f32 0.25, %v13605_v27 }
0x2011   :  { %v13469_v56 = vpop.f32.mrf.mxu0 }
0x2012   :  { %v22126_v21 = vadd.f32 %v13469_v56, %v11698_v59  ;;  %v13615_v56 = vadd.f32 %v22076_v28, %v16519_v1  ;;  %v13829_v28 = vadd.f32 %v22080_v53, %v22087_v44 }
0x2013   :  { %v18799_v0 = vpop.f32.mrf.mxu0 }
0x2014   :  { %v22129_v16 = vadd.f32 %v18799_v0, %v21823_v51  ;;  %v13585_v51 = vadd.f32 %v18818_v40, %v16519_v1  ;;  %v13869_v0 = vmul.f32 0.25, %v13615_v56 }
0x2015   :  { %v13479_v25 = vpop.f32.mrf.mxu0 }
0x2016   :  { %v22132_v37 = vadd.f32 %v13479_v25, %v21825_v6  ;;  %v13863_v38 = vmul.f32 0.25, %v13585_v51 }
0x2017   :  { %v18846_v47 = vpop.f32.mrf.mxu0 }
0x2018   :  { %v13707_v6 = vadd.f32 %v18846_v47, %v16537_v26 }
0x2019   :  { %v13701_v41 = vpop.f32.mrf.mxu0 }
0x201a   :  { %v13702_v43 = vadd.f32 %v16537_v26, %v13701_v41  ;;  %v22192_v41 = vpop.f32.mrf.mxu1 }
0x201b   :  { %v18849_v39 = vpop.f32.mrf.mxu0 }
0x201c   :  { %18885 = vmatpush3.xpose.msk.msra.mxu0 %vm663_vm11, %v13702_v43  ;;  %v13717_v3 = vadd.f32 %v18849_v39, %v16537_v26 }
0x201d   :  { %v13711_v63 = vpop.f32.mrf.mxu0  ;;  %18889 = vmatprep.subr.mxu0 %v19351_v23 }
0x201e   :  { %v13712_v40 = vadd.f32 %v16537_v26, %v13711_v63 }
0x201f   :  { %v18852_v55 = vpop.f32.mrf.mxu0  ;;  %18887 = vmatmul.mubr.msk.f32.vlgmr.msra.gmra.mxu0 %vm663_vm11, %v13862_v45 }
0x2020   :  { %18890 = vmatpush3.xpose.msk.msra.mxu0 %vm663_vm11, %v13707_v6  ;;  %18891 = vmatprep.mubr.msk.f32.mxu0 %vm19352_vm10, %v19351_v23  ;;  %v13727_v59 = vadd.f32 %v18852_v55, %v16537_v26 }
0x2021   :  { %v13721_v31 = vpop.f32.mrf.mxu0  ;;  %18894 = vmatprep.subr.mxu0 %v19351_v23 }
0x2022   :  { %v13722_v42 = vadd.f32 %v16537_v26, %v13721_v31 }
0x2023   :  { %v18855_v5 = vpop.f32.mrf.mxu0  ;;  %18892 = vmatmul.mubr.msk.f32.vlgmr.msra.gmra.mxu0 %vm663_vm11, %v13863_v38 }
0x2024   :  { %18895 = vmatpush3.xpose.msk.msra.mxu0 %vm663_vm11, %v13712_v40  ;;  %18905 = vmatpush3.xpose.msk.msra.mxu1 %vm663_vm11, %v13722_v42  ;;  %v13737_v9 = vadd.f32 %v18855_v5, %v16537_v26 }
0x2025   :  { %v13731_v19 = vpop.f32.mrf.mxu0  ;;  %18896 = vmatprep.mubr.msk.f32.mxu0 %vm19352_vm10, %v19351_v23  ;;  %18899 = vmatprep.subr.mxu0 %v19351_v23 }
0x2026   :  { %v13732_v36 = vadd.f32 %v16537_v26, %v13731_v19  ;;  %18914 = vmatprep.subr.mxu1 %v19351_v23 }
0x2027   :  { %18897 = vmatmul.mubr.msk.f32.vlgmr.msra.gmra.mxu0 %vm663_vm11, %v13864_v10  ;;  %18907 = vmatmul.mubr.msk.f32.vlgmr.msra.gmra.mxu1 %vm663_vm11, %v13866_v49 }
0x2028   :  { %18900 = vmatpush3.xpose.msk.msra.mxu0 %vm663_vm11, %v13717_v3  ;;  %18915 = vmatpush3.xpose.msk.msra.mxu1 %vm663_vm11, %v13732_v36 }
0x2029   :  { %18901 = vmatprep.mubr.msk.f32.mxu0 %vm19352_vm10, %v19351_v23  ;;  %18916 = vmatprep.mubr.msk.f32.mxu1 %vm19352_vm10, %v19351_v23 }
0x202a   :  { %18909 = vmatprep.subr.mxu0 %v19351_v23  ;;  %18924 = vmatprep.subr.mxu1 %v19351_v23 }
0x202b   :  { %18902 = vmatmul.mubr.msk.f32.vlgmr.msra.gmra.mxu0 %vm663_vm11, %v13865_v54  ;;  %18917 = vmatmul.mubr.msk.f32.vlgmr.msra.gmra.mxu1 %vm663_vm11, %v13868_v7 }
0x202c   :  { %18910 = vmatpush3.xpose.msk.msra.mxu0 %vm663_vm11, %v13727_v59  ;;  %18925 = vmatpush3.msra.mxu1 %v13824_v15 }
0x202d   :  { %18911 = vmatprep.mubr.msk.f32.mxu0 %vm19352_vm10, %v19351_v23  ;;  %18919 = vmatprep.subr.mxu0 %v19351_v23 }
0x202e   :  { %18926 = vmatprep.mubr.msk.f32.mxu1 %vm19352_vm10, %v19351_v23  ;;  %18934 = vmatprep.subr.mxu1 %v19351_v23 }
0x202f   :  { %18912 = vmatmul.mubr.msk.f32.vlgmr.msra.gmra.mxu0 %vm663_vm11, %v13867_v18 }
0x2030   :  { %18920 = vmatpush3.xpose.msk.msra.mxu0 %vm663_vm11, %v13737_v9  ;;  %18921 = vmatprep.mubr.msk.f32.mxu0 %vm19352_vm10, %v19351_v23 }
0x2031   :  { %18929 = vmatprep.subr.mxu0 %v19351_v23 }
0x2033   :  { %18922 = vmatmul.mubr.msk.f32.vlgmr.msra.gmra.mxu0 %vm663_vm11, %v13869_v0 }
0x2034   :  { %18930 = vmatpush3.msra.mxu0 %v13829_v28  ;;  %18931 = vmatprep.mubr.msk.f32.mxu0 %vm19352_vm10, %v19351_v23 }
0x2035   :  { %18939 = vmatprep.subr.mxu0 %v19351_v23 }
0x20df   :  { %v13942_v25 = vpop.f32.mrf.mxu0 }
0x20e0   :  { %v14478_v47 = vsel %vm1272_vm12, %v13942_v25, -inf }
0x20e1   :  { %14479 = vmax.xlane.f32.xlu1 %v14478_v47  ;;  %v18888_v1 = vpop.f32.mrf.mxu0 }
0x20e3   :  { %v14018_v32 = vpop.f32.mrf.mxu0 }
0x20e4   :  { %v14481_v26 = vsel %vm1272_vm12, %v14018_v32, -inf }
0x20e5   :  { %14482 = vmax.xlane.f32.xlu0 %v14481_v26  ;;  %v18893_v53 = vpop.f32.mrf.mxu0 }
0x20e7   :  { %v14094_v43 = vpop.f32.mrf.mxu0  ;;  %v14246_v39 = vpop.f32.mrf.mxu1 }
0x20e8   :  { %v14484_v51 = vsel %vm1272_vm12, %v14094_v43, -inf  ;;  %v14490_v38 = vsel %vm1272_vm12, %v14246_v39, -inf }
0x20e9   :  { %v18908_v45 = vpop.f32.mrf.mxu1  ;;  %14485 = vmax.xlane.f32.xlu1 %v14484_v51  ;;  %v18898_v63 = vpop.f32.mrf.mxu0 }
0x20eb   :  { %v14170_v6 = vpop.f32.mrf.mxu0  ;;  %v14398_v55 = vpop.f32.mrf.mxu1 }
0x20ec   :  { %v14487_v24 = vsel %vm1272_vm12, %v14170_v6, -inf  ;;  %v14496_v42 = vsel %vm1272_vm12, %v14398_v55, -inf }
0x20ed   :  { %v18918_v22 = vpop.f32.mrf.mxu1  ;;  %14491 = vmax.xlane.f32.xlu1 %v14490_v38  ;;  %14488 = vmax.xlane.f32.xlu0 %v14487_v24  ;;  %v18903_v31 = vpop.f32.mrf.mxu0 }
0x20ef   :  { %v14322_v40 = vpop.f32.mrf.mxu0 }
0x20f0   :  { %v14493_v5 = vsel %vm1272_vm12, %v14322_v40, -inf }
0x20f1   :  { %14497 = vmax.xlane.f32.xlu1 %v14496_v42  ;;  %14494 = vmax.xlane.f32.xlu0 %v14493_v5  ;;  %v18913_v48 = vpop.f32.mrf.mxu0 }
0x20f3   :  { %v14474_v10 = vpop.f32.mrf.mxu0 }
0x20f4   :  { %v14499_v49 = vsel %vm1272_vm12, %v14474_v10, -inf }
0x20f5   :  { %14500 = vmax.xlane.f32.xlu0 %v14499_v49  ;;  %v18923_v62 = vpop.f32.mrf.mxu0 }
0x216a   :  { %v14480_v19 = vpop.xlane.xlu1 %14479 }
0x216b   :  { %v14502_v3 = vsub.f32 %v13942_v25, %v14480_v19 }
0x216d   :  { %v14510_v36 = vmul.f32 1.442695, %v14502_v3 }
0x216e   :  { %v14483_v54 = vpop.xlane.xlu0 %14482 }
0x216f   :  { %19277 = vpow2.f32 %v14510_v36  ;;  %v14503_v27 = vsub.f32 %v14018_v32, %v14483_v54 }
0x2171   :  { %v14512_v7 = vmul.f32 1.442695, %v14503_v27 }
0x2172   :  { %v14486_v15 = vpop.xlane.xlu1 %14485 }
0x2173   :  { %19279 = vpow2.f32 %v14512_v7  ;;  %v14504_v59 = vsub.f32 %v14094_v43, %v14486_v15 }
0x2175   :  { %v14514_v18 = vmul.f32 1.442695, %v14504_v59 }
0x2176   :  { %v14492_v56 = vpop.xlane.xlu1 %14491  ;;  %v14489_v9 = vpop.xlane.xlu0 %14488 }
0x2177   :  { %19281 = vpow2.f32 %v14514_v18  ;;  %v14506_v0 = vsub.f32 %v14246_v39, %v14492_v56  ;;  %v14505_v28 = vsub.f32 %v14170_v6, %v14489_v9 }
0x2179   :  { %v14518_v47 = vmul.f32 1.442695, %v14506_v0  ;;  %v14516_v1 = vmul.f32 1.442695, %v14505_v28 }
0x217a   :  { %v14498_v26 = vpop.xlane.xlu1 %14497  ;;  %v14495_v53 = vpop.xlane.xlu0 %14494 }
0x217b   :  { %19283 = vpow2.f32 %v14518_v47  ;;  %v14508_v25 = vsub.f32 %v14398_v55, %v14498_v26  ;;  %v14507_v51 = vsub.f32 %v14322_v40, %v14495_v53 }
0x217c   :  { %v19278_v45 = vpop.eup %19277  ;;  %19285 = vpow2.f32 %v14516_v1 }
0x217d   :  { %v14522_v32 = vmul.f32 1.442695, %v14508_v25  ;;  %v14520_v63 = vmul.f32 1.442695, %v14507_v51  ;;  %v14526_v38 = vsel %vm1272_vm12, %v19278_v45, 0.0 }
0x217e   :  { %14527 = vadd.xlane.f32.xlu1 %v14526_v38  ;;  %v14501_v43 = vpop.xlane.xlu0 %14500 }
0x217f   :  { %19287 = vpow2.f32 %v14522_v32  ;;  %v14509_v24 = vsub.f32 %v14474_v10, %v14501_v43  ;;  %v16588_v43 = vld [vmem:[%s22564_s9 + $0x70] sm:$0xff] }
0x2180   :  { %v19280_v22 = vpop.eup %19279  ;;  %19289 = vpow2.f32 %v14520_v63 }
0x2181   :  { %v14524_v39 = vmul.f32 1.442695, %v14509_v24  ;;  %v14529_v6 = vsel %vm1272_vm12, %v19280_v22, 0.0 }
0x2182   :  { %14530 = vadd.xlane.f32.xlu0 %v14529_v6 }
0x2183   :  { %19291 = vpow2.f32 %v14524_v39 }
0x2184   :  { %v19282_v31 = vpop.eup %19281 }
0x2185   :  { %v14532_v55 = vsel %vm1272_vm12, %v19282_v31, 0.0 }
0x2186   :  { %14533 = vadd.xlane.f32.xlu1 %v14532_v55 }
0x2188   :  { %v19284_v40 = vpop.eup %19283 }
0x2189   :  { %v19286_v42 = vpop.eup %19285  ;;  %v14538_v5 = vsel %vm1272_vm12, %v19284_v40, 0.0 }
0x218a   :  { %14539 = vadd.xlane.f32.xlu1 %v14538_v5  ;;  %v14535_v48 = vsel %vm1272_vm12, %v19286_v42, 0.0 }
0x218b   :  { %14536 = vadd.xlane.f32.xlu0 %v14535_v48 }
0x218c   :  { %v19288_v10 = vpop.eup %19287 }
0x218d   :  { %v19290_v49 = vpop.eup %19289  ;;  %v14544_v62 = vsel %vm1272_vm12, %v19288_v10, 0.0 }
0x218e   :  { %14545 = vadd.xlane.f32.xlu1 %v14544_v62  ;;  %v14541_v19 = vsel %vm1272_vm12, %v19290_v49, 0.0 }
0x218f   :  { %14542 = vadd.xlane.f32.xlu0 %v14541_v19 }
0x2190   :  { %v19292_v3 = vpop.eup %19291 }
0x2191   :  { %v14547_v36 = vsel %vm1272_vm12, %v19292_v3, 0.0 }
0x2193   :  { %14548 = vadd.xlane.f32.xlu0 %v14547_v36 }
0x2207   :  { %v14528_v54 = vpop.xlane.xlu1 %14527 }
0x2208   :  { %19293 = vrcp.f32 %v14528_v54 }
0x220b   :  { %v14531_v27 = vpop.xlane.xlu0 %14530 }
0x220c   :  { %19295 = vrcp.f32 %v14531_v27 }
0x220f   :  { %v14534_v7 = vpop.xlane.xlu1 %14533 }
0x2210   :  { %19297 = vrcp.f32 %v14534_v7 }
0x2213   :  { %v14540_v15 = vpop.xlane.xlu1 %14539 }
0x2214   :  { %19299 = vrcp.f32 %v14540_v15  ;;  %v14537_v59 = vpop.xlane.xlu0 %14536 }
0x2215   :  { %v19294_v18 = vpop.eup %19293  ;;  %19301 = vrcp.f32 %v14537_v59 }
0x2216   :  { %v14558_v56 = vmul.f32 %v19294_v18, %v19278_v45 }
0x2217   :  { %v14546_v9 = vpop.xlane.xlu1 %14545 }
0x2218   :  { %19303 = vrcp.f32 %v14546_v9  ;;  %v14543_v0 = vpop.xlane.xlu0 %14542  ;;  %18927 = vmatmul.mubr.msk.f32.vlgmr.msra.gmra.mxu1 %vm1272_vm12, %v14558_v56 }
0x2219   :  { %v19296_v28 = vpop.eup %19295  ;;  %19305 = vrcp.f32 %v14543_v0  ;;  %18935 = vmatpush3.msra.mxu1 %v22093_v30  ;;  %18936 = vmatprep.mubr.msk.f32.mxu1 %vm19352_vm10, %v19351_v23 }
0x221a   :  { %v14559_v47 = vmul.f32 %v19296_v28, %v19280_v22  ;;  %18944 = vmatprep.subr.mxu1 %v19351_v23 }
0x221c   :  { %v14549_v1 = vpop.xlane.xlu0 %14548  ;;  %18932 = vmatmul.mubr.msk.f32.vlgmr.msra.gmra.mxu0 %vm1272_vm12, %v14559_v47 }
0x221d   :  { %v19298_v26 = vpop.eup %19297  ;;  %19307 = vrcp.f32 %v14549_v1  ;;  %18940 = vmatpush3.msra.mxu0 %v22090_v13  ;;  %18941 = vmatprep.mubr.msk.f32.mxu0 %vm19352_vm10, %v19351_v23  ;;  %v13854_v13 = vadd.f32 %v22087_v44, %v22192_v41  ;;  %v16589_v41 = vld [vmem:[%s22564_s9 + $0x78] sm:$0xff] }
0x221e   :  { %v14560_v53 = vmul.f32 %v19298_v26, %v19282_v31  ;;  %18949 = vmatprep.subr.mxu0 %v19351_v23 }
0x2220   :  { %18937 = vmatmul.mubr.msk.f32.vlgmr.msra.gmra.mxu1 %vm1272_vm12, %v14560_v53 }
0x2221   :  { %v19300_v30 = vpop.eup %19299  ;;  %18945 = vmatpush3.msra.mxu1 %v22099_v46  ;;  %18946 = vmatprep.mubr.msk.f32.mxu1 %vm19352_vm10, %v19351_v23 }
0x2222   :  { %v19302_v25 = vpop.eup %19301  ;;  %v14562_v51 = vmul.f32 %v19300_v30, %v19284_v40  ;;  %18954 = vmatprep.subr.mxu1 %v19351_v23 }
0x2223   :  { %v14561_v45 = vmul.f32 %v19302_v25, %v19286_v42 }
0x2224   :  { %18947 = vmatmul.mubr.msk.f32.vlgmr.msra.gmra.mxu1 %vm1272_vm12, %v14562_v51 }
0x2225   :  { %v19304_v32 = vpop.eup %19303  ;;  %18942 = vmatmul.mubr.msk.f32.vlgmr.msra.gmra.mxu0 %vm1272_vm12, %v14561_v45  ;;  %18955 = vmatpush3.msra.mxu1 %v13854_v13 }
0x2226   :  { %v19306_v63 = vpop.eup %19305  ;;  %v14564_v38 = vmul.f32 %v19304_v32, %v19288_v10  ;;  %18950 = vmatpush3.msra.mxu0 %v22096_v34  ;;  %18951 = vmatprep.mubr.msk.f32.mxu0 %vm19352_vm10, %v19351_v23 }
0x2227   :  { %v14563_v46 = vmul.f32 %v19306_v63, %v19290_v49  ;;  %18956 = vmatprep.mubr.msk.f32.mxu1 %vm19352_vm10, %v19351_v23  ;;  %18959 = vmatprep.subr.mxu0 %v19351_v23 }
0x2228   :  { %18957 = vmatmul.mubr.msk.f32.vlgmr.msra.gmra.mxu1 %vm1272_vm12, %v14564_v38  ;;  %18964 = vmatprep.subr.mxu1 %v16589_v41 }
0x2229   :  { %18952 = vmatmul.mubr.msk.f32.vlgmr.msra.gmra.mxu0 %vm1272_vm12, %v14563_v46  ;;  %18965 = vmatpush3.msra.mxu1 %v16589_v41 }
0x222a   :  { %v19308_v44 = vpop.eup %19307  ;;  %18960 = vmatpush3.msra.mxu0 %v22102_v58  ;;  %18961 = vmatprep.mubr.msk.f32.mxu0 %vm19352_vm10, %v19351_v23 }
0x222b   :  { %v14565_v34 = vmul.f32 %v19308_v44, %v19292_v3  ;;  %18966 = vmatprep.subr.mxu1 %v16588_v43 }
0x222c   :  { %18967 = vmatpush3.msra.mxu1 %v16588_v43 }
0x222d   :  { %18962 = vmatmul.mubr.msk.f32.vlgmr.msra.gmra.mxu0 %vm1272_vm12, %v14565_v34 }
0x222e   :  { %15552 = vmatprep.mubr.f32.mxu0 %v19351_v23 }
0x22d8   :  { %v14635_v58 = vpop.f32.mrf.mxu1 }
0x22d9   :  { %18968 = vmatprep.mubr.msk.f32.mxu1 %vm663_vm11, %v14635_v58 }
0x22da   :  { %v18928_v24 = vpop.f32.mrf.mxu1 }
0x22dc   :  { %v14708_v22 = vpop.f32.mrf.mxu0 }
0x22dd   :  { %18969 = vmatmul.mubr.msk.f32.vlgmr.msra.gmra.mxu1 %vm663_vm11, %v14708_v22 }
0x22de   :  { %v18933_v39 = vpop.f32.mrf.mxu0 }
0x22e0   :  { %v14781_v6 = vpop.f32.mrf.mxu1 }
0x22e1   :  { %18971 = vmatprep.mubr.msk.f32.mxu1 %vm663_vm11, %v14781_v6 }
0x22e2   :  { %v18938_v31 = vpop.f32.mrf.mxu1 }
0x22e4   :  { %v14927_v55 = vpop.f32.mrf.mxu1 }
0x22e5   :  { %v14854_v40 = vpop.f32.mrf.mxu0 }
0x22e6   :  { %18972 = vmatmul.mubr.msk.f32.gmra.mxu1 %vm663_vm11, %v14854_v40  ;;  %v18948_v42 = vpop.f32.mrf.mxu1 }
0x22e7   :  { %v18943_v5 = vpop.f32.mrf.mxu0  ;;  %18974 = vmatprep.mubr.msk.f32.mxu1 %vm663_vm11, %v14927_v55 }
0x22e8   :  { %v15073_v48 = vpop.f32.mrf.mxu1 }
0x22e9   :  { %v15000_v10 = vpop.f32.mrf.mxu0 }
0x22ea   :  { %18975 = vmatmul.mubr.msk.f32.gmra.mxu1 %vm663_vm11, %v15000_v10  ;;  %v18958_v49 = vpop.f32.mrf.mxu1 }
0x22eb   :  { %v18953_v62 = vpop.f32.mrf.mxu0  ;;  %18977 = vmatprep.mubr.msk.f32.mxu1 %vm663_vm11, %v15073_v48 }
0x22ed   :  { %v15146_v19 = vpop.f32.mrf.mxu0 }
0x22ee   :  { %18978 = vmatmul.mubr.msk.f32.gmra.mxu1 %vm663_vm11, %v15146_v19 }
0x22ef   :  { %v18963_v3 = vpop.f32.mrf.mxu0 }
0x239d   :  { %v18970_v36 = vpop.f32.mrf.mxu1 }
0x239e   :  { %v15283_v54 = vadd.f32 %v18970_v36, %v22108_v52 }
0x239f   :  { %v15243_v27 = vpop.f32.mrf.mxu1 }
0x23a0   :  { %v15291_v7 = vadd.f32 %v15283_v54, %v21106_v29  ;;  %v15282_v15 = vadd.f32 %v15243_v27, %v22110_v57 }
0x23a2   :  { %v15290_v59 = vadd.f32 %v15282_v15, %v21097_v35  ;;  %v15305_v18 = vsel %vm285_vm9, %v15291_v7, 0.0 }
0x23a3   :  { %15306 = vadd.xlane.f32.xlu0 %v15305_v18 }
0x23a4   :  { %v15302_v56 = vsel %vm285_vm9, %v15290_v59, 0.0 }
0x23a5   :  { %15303 = vadd.xlane.f32.xlu1 %v15302_v56 }
0x23a6   :  { %v18973_v9 = vpop.f32.mrf.mxu1 }
0x23a7   :  { %v15285_v0 = vadd.f32 %v18973_v9, %v22116_v61 }
0x23a8   :  { %v15253_v28 = vpop.f32.mrf.mxu1 }
0x23a9   :  { %v15293_v47 = vadd.f32 %v15285_v0, %v21133_v17  ;;  %v15284_v52 = vadd.f32 %v15253_v28, %v22120_v60 }
0x23aa   :  { %v18976_v1 = vpop.f32.mrf.mxu1 }
0x23ab   :  { %v15292_v29 = vadd.f32 %v15284_v52, %v21121_v2  ;;  %v15287_v57 = vadd.f32 %v18976_v1, %v22124_v8  ;;  %v15311_v35 = vsel %vm285_vm9, %v15293_v47, 0.0  ;;  %v16617_v52 = vld [vmem:[%s22568_s13 + $0xf8] sm:$0xff]  ;;  %v16616_v1 = vld [vmem:[%s22568_s13 + $0xf0] sm:$0xff] }
0x23ac   :  { %15312 = vadd.xlane.f32.xlu0 %v15311_v35  ;;  %v15263_v26 = vpop.f32.mrf.mxu1  ;;  %15504 = vmatprep.subr.mxu0 %v16617_v52  ;;  %v16613_v35 = vld [vmem:[%s22568_s13 + $0xd8] sm:$0xff] }
0x23ad   :  { %v15295_v53 = vadd.f32 %v15287_v57, %v21160_v4  ;;  %v15286_v30 = vadd.f32 %v15263_v26, %v22126_v21  ;;  %v15308_v61 = vsel %vm285_vm9, %v15292_v29, 0.0  ;;  %15505 = vmatpush1.msra.mxu0 %v16616_v1  ;;  %v16614_v57 = vld [vmem:[%s22568_s13 + $0xe0] sm:$0xff]  ;;  %v16612_v26 = vld [vmem:[%s22568_s13 + $0xd0] sm:$0xff] }
0x23ae   :  { %15309 = vadd.xlane.f32.xlu1 %v15308_v61  ;;  %v18979_v25 = vpop.f32.mrf.mxu1  ;;  %v16609_v61 = vld [vmem:[%s22568_s13 + $0xb8] sm:$0xff] }
0x23af   :  { %v15294_v17 = vadd.f32 %v15286_v30, %v21148_v12  ;;  %v15289_v60 = vadd.f32 %v18979_v25, %v22129_v16  ;;  %v15317_v2 = vsel %vm285_vm9, %v15295_v53, 0.0  ;;  %v16610_v30 = vld [vmem:[%s22568_s13 + $0xc0] sm:$0xff]  ;;  %v16608_v25 = vld [vmem:[%s22568_s13 + $0xb0] sm:$0xff] }
0x23b0   :  { %15318 = vadd.xlane.f32.xlu0 %v15317_v2  ;;  %v15273_v8 = vpop.f32.mrf.mxu1  ;;  %v16605_v2 = vld [vmem:[%s22568_s13 + $0x98] sm:$0xff] }
0x23b1   :  { %v15297_v51 = vadd.f32 %v15289_v60, %v21182_v20  ;;  %v15288_v13 = vadd.f32 %v15273_v8, %v22132_v37  ;;  %v15314_v4 = vsel %vm285_vm9, %v15294_v17, 0.0  ;;  %v16606_v60 = vld [vmem:[%s22568_s13 + $0xa0] sm:$0xff]  ;;  %v16604_v8 = vld [vmem:[%s22568_s13 + $0x90] sm:$0xff] }
0x23b2   :  { %15315 = vadd.xlane.f32.xlu1 %v15314_v4  ;;  %v16658_v4 = vld [vmem:[%s22570_s15 + $0x1f8] sm:$0xff] }
0x23b3   :  { %v15296_v21 = vadd.f32 %v15288_v13, %v21172_v50  ;;  %v15323_v45 = vsel %vm285_vm9, %v15297_v51, 0.0  ;;  %v16602_v13 = vld [vmem:[%s22568_s13 + $0x80] sm:$0xff]  ;;  %17455 = vmatprep.subr.mxu1 %v16658_v4 }
0x23b4   :  { %15324 = vadd.xlane.f32.xlu0 %v15323_v45  ;;  %v16657_v45 = vld [vmem:[%s22570_s15 + $0x1f0] sm:$0xff] }
0x23b5   :  { %v15320_v12 = vsel %vm285_vm9, %v15296_v21, 0.0 }
0x23b6   :  { %15321 = vadd.xlane.f32.xlu1 %v15320_v12  ;;  %v16641_v12 = vld [vmem:[%s22570_s15 + $0x170] sm:$0xff] }
0x242c   :  { %v15307_v16 = vpop.xlane.xlu0 %15306 }
0x242d   :  { %v15327_v32 = vmul.f32 0.015625, %v15307_v16  ;;  %v16656_v16 = vld [vmem:[%s22570_s15 + $0x1e8] sm:$0xff] }
0x242e   :  { %v15304_v63 = vpop.xlane.xlu1 %15303 }
0x242f   :  { %v22278_v38 = vsub.f32 %v15291_v7, %v15327_v32  ;;  %v15326_v46 = vmul.f32 0.015625, %v15304_v63  ;;  %v16640_v32 = vld [vmem:[%s22570_s15 + $0x168] sm:$0xff]  ;;  %v16655_v63 = vld [vmem:[%s22570_s15 + $0x1e0] sm:$0xff] }
0x2431   :  { %v22280_v20 = vsub.f32 %v15290_v59, %v15326_v46  ;;  %v15343_v37 = vmul.f32 %v22278_v38, %v22278_v38  ;;  %v16639_v46 = vld [vmem:[%s22570_s15 + $0x160] sm:$0xff] }
0x2433   :  { %v15353_v44 = vsel %vm285_vm9, %v15343_v37, 0.0  ;;  %v15342_v50 = vmul.f32 %v22280_v20, %v22280_v20  ;;  %v16654_v37 = vld [vmem:[%s22570_s15 + $0x1d8] sm:$0xff] }
0x2434   :  { %15354 = vadd.xlane.f32.xlu0 %v15353_v44  ;;  %v16638_v44 = vld [vmem:[%s22570_s15 + $0x158] sm:$0xff] }
0x2435   :  { %v15313_v34 = vpop.xlane.xlu0 %15312  ;;  %v15350_v41 = vsel %vm285_vm9, %v15342_v50, 0.0  ;;  %v16653_v50 = vld [vmem:[%s22570_s15 + $0x1d0] sm:$0xff] }
0x2436   :  { %v15329_v43 = vmul.f32 0.015625, %v15313_v34  ;;  %15351 = vadd.xlane.f32.xlu1 %v15350_v41  ;;  %v16637_v34 = vld [vmem:[%s22570_s15 + $0x150] sm:$0xff]  ;;  %v16652_v41 = vld [vmem:[%s22570_s15 + $0x1c8] sm:$0xff] }
0x2437   :  { %v15310_v58 = vpop.xlane.xlu1 %15309 }
0x2438   :  { %v22288_v24 = vsub.f32 %v15293_v47, %v15329_v43  ;;  %v15328_v22 = vmul.f32 0.015625, %v15310_v58  ;;  %v16636_v43 = vld [vmem:[%s22570_s15 + $0x148] sm:$0xff]  ;;  %v16651_v58 = vld [vmem:[%s22570_s15 + $0x1c0] sm:$0xff] }
0x2439   :  { %v15319_v39 = vpop.xlane.xlu0 %15318 }
0x243a   :  { %v22290_v6 = vsub.f32 %v15292_v29, %v15328_v22  ;;  %v15331_v31 = vmul.f32 0.015625, %v15319_v39  ;;  %v15345_v55 = vmul.f32 %v22288_v24, %v22288_v24  ;;  %v16615_v29 = vld [vmem:[%s22568_s13 + $0xe8] sm:$0xff]  ;;  %v16635_v22 = vld [vmem:[%s22570_s15 + $0x140] sm:$0xff]  ;;  %v16650_v39 = vld [vmem:[%s22570_s15 + $0x1b8] sm:$0xff] }
0x243b   :  { %v15316_v40 = vpop.xlane.xlu1 %15315  ;;  %15506 = vmatprep.subr.mxu0 %v16615_v29 }
0x243c   :  { %v22294_v42 = vsub.f32 %v15295_v53, %v15331_v31  ;;  %v15330_v5 = vmul.f32 0.015625, %v15316_v40  ;;  %v15359_v48 = vsel %vm285_vm9, %v15345_v55, 0.0  ;;  %v15344_v10 = vmul.f32 %v22290_v6, %v22290_v6  ;;  %15507 = vmatpush1.msra.mxu0 %v16614_v57  ;;  %v16611_v53 = vld [vmem:[%s22568_s13 + $0xc8] sm:$0xff]  ;;  %v16634_v31 = vld [vmem:[%s22570_s15 + $0x138] sm:$0xff]  ;;  %v16649_v55 = vld [vmem:[%s22570_s15 + $0x1b0] sm:$0xff] }
0x243d   :  { %15360 = vadd.xlane.f32.xlu0 %v15359_v48  ;;  %v15325_v49 = vpop.xlane.xlu0 %15324  ;;  %15508 = vmatprep.subr.mxu0 %v16613_v35  ;;  %v16633_v40 = vld [vmem:[%s22570_s15 + $0x130] sm:$0xff]  ;;  %v16632_v48 = vld [vmem:[%s22570_s15 + $0x128] sm:$0xff] }
0x243e   :  { %v22299_v62 = vsub.f32 %v15294_v17, %v15330_v5  ;;  %v15333_v19 = vmul.f32 0.015625, %v15325_v49  ;;  %v15356_v3 = vsel %vm285_vm9, %v15344_v10, 0.0  ;;  %v15347_v36 = vmul.f32 %v22294_v42, %v22294_v42  ;;  %15509 = vmatpush1.msra.mxu0 %v16612_v26  ;;  %v16607_v17 = vld [vmem:[%s22568_s13 + $0xa8] sm:$0xff]  ;;  %v16647_v10 = vld [vmem:[%s22570_s15 + $0x1a0] sm:$0xff] }
0x243f   :  { %15357 = vadd.xlane.f32.xlu1 %v15356_v3  ;;  %v15322_v54 = vpop.xlane.xlu1 %15321  ;;  %15510 = vmatprep.subr.mxu0 %v16611_v53  ;;  %v16648_v5 = vld [vmem:[%s22570_s15 + $0x1a8] sm:$0xff]  ;;  %v16631_v49 = vld [vmem:[%s22570_s15 + $0x120] sm:$0xff] }
0x2440   :  { %v22304_v27 = vsub.f32 %v15297_v51, %v15333_v19  ;;  %v15332_v7 = vmul.f32 0.015625, %v15322_v54  ;;  %v15365_v15 = vsel %vm285_vm9, %v15347_v36, 0.0  ;;  %v15346_v59 = vmul.f32 %v22299_v62, %v22299_v62  ;;  %15511 = vmatpush1.msra.mxu0 %v16610_v30  ;;  %v16603_v51 = vld [vmem:[%s22568_s13 + $0x88] sm:$0xff] }
0x2441   :  { %15366 = vadd.xlane.f32.xlu0 %v15365_v15  ;;  %15512 = vmatprep.subr.mxu0 %v16609_v61 }
0x2442   :  { %v22309_v18 = vsub.f32 %v15296_v21, %v15332_v7  ;;  %v15362_v56 = vsel %vm285_vm9, %v15346_v59, 0.0  ;;  %v15349_v9 = vmul.f32 %v22304_v27, %v22304_v27  ;;  %15513 = vmatpush1.msra.mxu0 %v16608_v25  ;;  %v16642_v21 = vld [vmem:[%s22570_s15 + $0x178] sm:$0xff] }
0x2443   :  { %15363 = vadd.xlane.f32.xlu1 %v15362_v56  ;;  %15514 = vmatprep.subr.mxu0 %v16607_v17 }
0x2444   :  { %v15371_v0 = vsel %vm285_vm9, %v15349_v9, 0.0  ;;  %v15348_v28 = vmul.f32 %v22309_v18, %v22309_v18  ;;  %15515 = vmatpush1.msra.mxu0 %v16606_v60  ;;  %17456 = vmatpush3.msra.mxu1 %v16642_v21  ;;  %v16601_v21 = vld [vmem:[%s22567_s12 + $0x1] ss:$0 sm:$0xff] }
0x2445   :  { %15372 = vadd.xlane.f32.xlu0 %v15371_v0  ;;  %15516 = vmatprep.subr.mxu0 %v16605_v2 }
0x2446   :  { %v15368_v47 = vsel %vm285_vm9, %v15348_v28, 0.0  ;;  %15517 = vmatpush1.msra.mxu0 %v16604_v8  ;;  %17457 = vmatprep.subr.mxu1 %v16657_v45  ;;  %v16600_v8 = vld [vmem:[%s22566_s11 + $0x1] ss:$0 sm:$0xff] }
0x2447   :  { %15369 = vadd.xlane.f32.xlu1 %v15368_v47  ;;  %15518 = vmatprep.subr.mxu0 %v16603_v51 }
0x2448   :  { %15519 = vmatpush1.msra.mxu0 %v16602_v13  ;;  %17458 = vmatpush3.msra.mxu1 %v16641_v12 }
0x2449   :  { %18980 = vmatprep.subr.mxu0 %v19351_v23  ;;  %17459 = vmatprep.subr.mxu1 %v16656_v16 }
0x244a   :  { %17460 = vmatpush3.msra.mxu1 %v16640_v32 }
0x244b   :  { %17461 = vmatprep.subr.mxu1 %v16655_v63 }
0x244c   :  { %17462 = vmatpush3.msra.mxu1 %v16639_v46 }
0x244d   :  { %17463 = vmatprep.subr.mxu1 %v16654_v37 }
0x244e   :  { %17464 = vmatpush3.msra.mxu1 %v16638_v44 }
0x244f   :  { %17465 = vmatprep.subr.mxu1 %v16653_v50 }
0x2450   :  { %17466 = vmatpush3.msra.mxu1 %v16637_v34 }
0x2451   :  { %17467 = vmatprep.subr.mxu1 %v16652_v41 }
0x2452   :  { %17468 = vmatpush3.msra.mxu1 %v16636_v43 }
0x2453   :  { %17469 = vmatprep.subr.mxu1 %v16651_v58 }
0x2454   :  { %17470 = vmatpush3.msra.mxu1 %v16635_v22 }
0x2455   :  { %17471 = vmatprep.subr.mxu1 %v16650_v39 }
0x2456   :  { %17472 = vmatpush3.msra.mxu1 %v16634_v31 }
0x2457   :  { %17473 = vmatprep.subr.mxu1 %v16649_v55 }
0x2458   :  { %17474 = vmatpush3.msra.mxu1 %v16633_v40 }
0x2459   :  { %17475 = vmatprep.subr.mxu1 %v16648_v5 }
0x245a   :  { %17476 = vmatpush3.msra.mxu1 %v16632_v48 }
0x245b   :  { %17477 = vmatprep.subr.mxu1 %v16647_v10 }
0x245c   :  { %17478 = vmatpush3.msra.mxu1 %v16631_v49  ;;  %v16630_v49 = vld [vmem:[%s22570_s15 + $0x118] sm:$0xff] }
0x24bd   :  { %v15355_v19 = vpop.xlane.xlu0 %15354 }
0x24be   :  { %v15375_v3 = vmul.f32 0.015625, %v15355_v19  ;;  %v16645_v19 = vld [vmem:[%s22570_s15 + $0x190] sm:$0xff] }
0x24bf   :  { %v15352_v36 = vpop.xlane.xlu1 %15351 }
0x24c0   :  { %v15383_v54 = vadd.f32 1e-05, %v15375_v3  ;;  %v15374_v7 = vmul.f32 0.015625, %v15352_v36  ;;  %v16629_v3 = vld [vmem:[%s22570_s15 + $0x110] sm:$0xff]  ;;  %v16644_v36 = vld [vmem:[%s22570_s15 + $0x188] sm:$0xff] }
0x24c2   :  { %19309 = vrsqrt.f32 %v15383_v54  ;;  %v15382_v15 = vadd.f32 1e-05, %v15374_v7  ;;  %v16628_v54 = vld [vmem:[%s22570_s15 + $0x108] sm:$0xff]  ;;  %v16643_v7 = vld [vmem:[%s22570_s15 + $0x180] sm:$0xff] }
0x24c4   :  { %19311 = vrsqrt.f32 %v15382_v15  ;;  %v16627_v15 = vld [vmem:[%s22570_s15 + $0x100] sm:$0xff] }
0x24c6   :  { %v15361_v59 = vpop.xlane.xlu0 %15360 }
0x24c7   :  { %v15377_v56 = vmul.f32 0.015625, %v15361_v59  ;;  %v16618_v59 = vld [vmem:[%s22569_s14 + $0x2] sm:$0x3] }
0x24c8   :  { %v15358_v9 = vpop.xlane.xlu1 %15357 }
0x24c9   :  { %v15385_v0 = vadd.f32 1e-05, %v15377_v56  ;;  %v15376_v28 = vmul.f32 0.015625, %v15358_v9  ;;  %v15457_v56 = vrot.slane %v16618_v59, %v7635_v11  ;;  %v15461_v9 = vrot.slane %v16618_v59, %v7639_v14 }
0x24ca   :  { %v15367_v47 = vpop.xlane.xlu0 %15366 }
0x24cb   :  { %19313 = vrsqrt.f32 %v15385_v0  ;;  %v15384_v52 = vadd.f32 1e-05, %v15376_v28  ;;  %v15379_v1 = vmul.f32 0.015625, %v15367_v47 }
0x24cc   :  { %v15364_v29 = vpop.xlane.xlu1 %15363 }
0x24cd   :  { %19315 = vrsqrt.f32 %v15384_v52  ;;  %v15378_v57 = vmul.f32 0.015625, %v15364_v29  ;;  %v15387_v26 = vadd.f32 1e-05, %v15379_v1 }
0x24ce   :  { %v15373_v30 = vpop.xlane.xlu0 %15372 }
0x24cf   :  { %v19310_v35 = vpop.eup %19309  ;;  %v15386_v53 = vadd.f32 1e-05, %v15378_v57  ;;  %v15381_v51 = vmul.f32 0.015625, %v15373_v30 }
0x24d0   :  { %v15370_v61 = vpop.xlane.xlu1 %15369  ;;  %v15399_v60 = vmul.f32 %v19310_v35, %v22278_v38 }
0x24d1   :  { %v19312_v25 = vpop.eup %19311  ;;  %19317 = vrsqrt.f32 %v15386_v53  ;;  %v15380_v17 = vmul.f32 0.015625, %v15370_v61  ;;  %v15389_v16 = vadd.f32 1e-05, %v15381_v51 }
0x24d2   :  { %v15398_v2 = vmul.f32 %v19312_v25, %v22280_v20  ;;  %19319 = vrsqrt.f32 %v15387_v26  ;;  %v15413_v12 = vmul.f32 %v16600_v8, %v15399_v60 }
0x24d3   :  { %v15388_v13 = vadd.f32 1e-05, %v15380_v17 }
0x24d4   :  { %v15412_v4 = vmul.f32 %v16600_v8, %v15398_v2  ;;  %v15427_v20 = vadd.f32 %v16601_v21, %v15413_v12 }
0x24d5   :  { %19321 = vrsqrt.f32 %v15388_v13 }
0x24d6   :  { %v15426_v45 = vadd.f32 %v16601_v21, %v15412_v4  ;;  %19323 = vrsqrt.f32 %v15389_v16 }
0x24d8   :  { %v19314_v32 = vpop.eup %19313  ;;  %16619 = vmatmul.mubr.msk.f32.vlgmr.msra.gmra.mxu0 %vm285_vm9, %v15426_v45 }
0x24d9   :  { %15558 = vmatprep.mubr.f32.mxu0 %v19351_v23  ;;  %v15401_v63 = vmul.f32 %v19314_v32, %v22288_v24 }
0x24da   :  { %v19316_v38 = vpop.eup %19315 }
0x24db   :  { %v15400_v46 = vmul.f32 %v19316_v38, %v22290_v6  ;;  %v15415_v41 = vmul.f32 %v16600_v8, %v15401_v63 }
0x24dc   :  { %16620 = vmatmul.mubr.msk.f32.gmra.mxu0 %vm285_vm9, %v15427_v20 }
0x24dd   :  { %15564 = vmatprep.mubr.f32.mxu0 %v19351_v23  ;;  %v15414_v37 = vmul.f32 %v16600_v8, %v15400_v46  ;;  %v15429_v58 = vadd.f32 %v16601_v21, %v15415_v41 }
0x24de   :  { %v19318_v44 = vpop.eup %19317 }
0x24df   :  { %v15402_v50 = vmul.f32 %v19318_v44, %v22299_v62  ;;  %v15428_v34 = vadd.f32 %v16601_v21, %v15414_v37  ;;  %v19320_v43 = vpop.eup %19319 }
0x24e0   :  { %v15403_v24 = vmul.f32 %v19320_v43, %v22294_v42 }
0x24e1   :  { %16621 = vmatmul.mubr.msk.f32.gmra.mxu0 %vm285_vm9, %v15428_v34  ;;  %v15416_v6 = vmul.f32 %v16600_v8, %v15402_v50 }
0x24e2   :  { %15570 = vmatprep.mubr.f32.mxu0 %v19351_v23  ;;  %v19322_v22 = vpop.eup %19321  ;;  %v15417_v62 = vmul.f32 %v16600_v8, %v15403_v24 }
0x24e3   :  { %v15404_v39 = vmul.f32 %v19322_v22, %v22309_v18  ;;  %v15430_v31 = vadd.f32 %v16601_v21, %v15416_v6  ;;  %v19324_v55 = vpop.eup %19323 }
0x24e4   :  { %v15405_v40 = vmul.f32 %v19324_v55, %v22304_v27  ;;  %v15431_v5 = vadd.f32 %v16601_v21, %v15417_v62  ;;  %v16646_v27 = vld [vmem:[%s22570_s15 + $0x198] sm:$0xff] }
0x24e5   :  { %16622 = vmatmul.mubr.msk.f32.gmra.mxu0 %vm285_vm9, %v15429_v58  ;;  %v15418_v42 = vmul.f32 %v16600_v8, %v15404_v39  ;;  %17479 = vmatprep.subr.mxu1 %v16646_v27 }
0x24e6   :  { %15576 = vmatprep.mubr.f32.mxu0 %v19351_v23  ;;  %v15419_v10 = vmul.f32 %v16600_v8, %v15405_v40  ;;  %17480 = vmatpush3.msra.mxu1 %v16630_v49 }
0x24e7   :  { %v15432_v48 = vadd.f32 %v16601_v21, %v15418_v42  ;;  %17481 = vmatprep.subr.mxu1 %v16645_v19 }
0x24e8   :  { %v22467_v18 = vadd.f32 %v16601_v21, %v15419_v10  ;;  %17482 = vmatpush3.msra.mxu1 %v16629_v3 }
0x24e9   :  { %16623 = vmatmul.mubr.msk.f32.gmra.mxu0 %vm285_vm9, %v15430_v31  ;;  %17483 = vmatprep.subr.mxu1 %v16644_v36 }
0x24ea   :  { %15582 = vmatprep.mubr.f32.mxu0 %v19351_v23  ;;  %17484 = vmatpush3.msra.mxu1 %v16628_v54 }
0x24eb   :  { %17485 = vmatprep.subr.mxu1 %v16643_v7 }
0x24ec   :  { %17486 = vmatpush3.msra.mxu1 %v16627_v15 }
0x24ed   :  { %16624 = vmatmul.mubr.msk.f32.gmra.mxu0 %vm285_vm9, %v15431_v5 }
0x24ee   :  { %15588 = vmatprep.mubr.f32.mxu0 %v19351_v23 }
0x24f1   :  { %16625 = vmatmul.mubr.msk.f32.gmra.mxu0 %vm285_vm9, %v15432_v48 }
0x24f2   :  { %15594 = vmatprep.mubr.f32.mxu0 %v19351_v23 }
0x24f5   :  { %16626 = vmatmul.mubr.msk.f32.gmra.mxu0 %vm285_vm9, %v22467_v18 }
0x24f6   :  { %18996 = vmatprep.mubr.msk.f32.mxu0 %vm19352_vm10, %v19351_v23 }
0x2598   :  { %v15554_v0 = vpop.f32.mrf.mxu0 }
0x2599   :  { %v15555_v28 = vadd.f32 %v15554_v0, %v15457_v56 }
0x259a   :  { %v15556_v47 = vpop.f32.mrf.mxu0 }
0x259b   :  { %v15557_v52 = vadd.f32 %v15556_v47, %v15461_v9  ;;  %v15601_v57 = vmax.f32 %v15555_v28, 0.0  ;;  %v16660_v28 = vld [vmem:[%s22571_s16 + $0x1] ss:$0 sm:$0xff] }
0x259c   :  { %v15560_v1 = vpop.f32.mrf.mxu0 }
0x259d   :  { %v15602_v29 = vmax.f32 %v15557_v52, 0.0  ;;  %v15561_v35 = vadd.f32 %v15560_v1, %v15457_v56 }
0x259e   :  { %v15562_v26 = vpop.f32.mrf.mxu0 }
0x259f   :  { %v15563_v53 = vadd.f32 %v15562_v26, %v15461_v9  ;;  %15722 = vmatprep.mubr.f32.mxu1 %v15602_v29  ;;  %v15603_v25 = vmax.f32 %v15561_v35, 0.0 }
0x25a0   :  { %15723 = vmatmul.mubr.f32.vlgmr.msra.gmra.mxu1 %v15601_v57 }
0x25a1   :  { %v15604_v30 = vmax.f32 %v15563_v53, 0.0  ;;  %v15566_v61 = vpop.f32.mrf.mxu0 }
0x25a2   :  { %v15567_v17 = vadd.f32 %v15566_v61, %v15457_v56 }
0x25a3   :  { %v15568_v11 = vpop.f32.mrf.mxu0  ;;  %15726 = vmatprep.mubr.f32.mxu1 %v15604_v30 }
0x25a4   :  { %v15569_v33 = vadd.f32 %v15568_v11, %v15461_v9  ;;  %15727 = vmatmul.mubr.f32.gmra.mxu1 %v15603_v25  ;;  %v15605_v2 = vmax.f32 %v15567_v17, 0.0  ;;  %v15795_v25 = vld [vmem:[%s22574_s19 + $0x38] sm:$0xff]  ;;  %v15793_v17 = vld [vmem:[%s22574_s19 + $0x28] sm:$0xff]  ;;  %v15792_v11 = vld [vmem:[%s22574_s19 + $0x20] sm:$0xff] }
0x25a5   :  { %v15572_v14 = vpop.f32.mrf.mxu0  ;;  %18981 = vmatpush3.msra.mxu0 %v15795_v25 }
0x25a6   :  { %v15606_v60 = vmax.f32 %v15569_v33, 0.0  ;;  %v15573_v8 = vadd.f32 %v15572_v14, %v15457_v56  ;;  %18982 = vmatprep.subr.mxu0 %v19351_v23  ;;  %v15791_v33 = vld [vmem:[%s22574_s19 + $0x18] sm:$0xff]  ;;  %v15790_v14 = vld [vmem:[%s22574_s19 + $0x10] sm:$0xff] }
0x25a7   :  { %v15574_v51 = vpop.f32.mrf.mxu0 }
0x25a8   :  { %v15575_v13 = vadd.f32 %v15574_v51, %v15461_v9  ;;  %15730 = vmatprep.mubr.f32.mxu1 %v15606_v60  ;;  %v15607_v45 = vmax.f32 %v15573_v8, 0.0  ;;  %v15789_v60 = vld [vmem:[%s22574_s19 + $0x8] sm:$0xff] }
0x25a9   :  { %v15578_v4 = vpop.f32.mrf.mxu0  ;;  %15731 = vmatmul.mubr.f32.gmra.mxu1 %v15605_v2  ;;  %v15788_v2 = vld [vmem:[%s22574_s19] sm:$0xff] }
0x25aa   :  { %v15608_v21 = vmax.f32 %v15575_v13, 0.0  ;;  %v15579_v12 = vadd.f32 %v15578_v4, %v15457_v56 }
0x25ab   :  { %v15580_v16 = vpop.f32.mrf.mxu0 }
0x25ac   :  { %v15581_v32 = vadd.f32 %v15580_v16, %v15461_v9  ;;  %15734 = vmatprep.mubr.f32.mxu1 %v15608_v21  ;;  %v15609_v63 = vmax.f32 %v15579_v12, 0.0  ;;  %v16663_v21 = vld [vmem:[%s22572_s17 + $0x1] ss:$0 sm:$0xff]  ;;  %s19328_s17 = scalar_lea.vmem %s15884_s23, 128 }
0x25ad   :  { %v15584_v38 = vpop.f32.mrf.mxu0  ;;  %15735 = vmatmul.mubr.f32.gmra.mxu1 %v15607_v45  ;;  %v16664_v12 = vld [vmem:[%s22573_s18 + $0x1] ss:$0 sm:$0xff]  ;;  %p19329_p0 = scmp.ne.s32.totalorder %s15884_s23, %s19328_s17  ;;  %p19334_p2 = scmp.lt.s32.totalorder %s19328_s17, %s19328_s17 }
0x25ae   :  { %v15610_v20 = vmax.f32 %v15581_v32, 0.0  ;;  %v15585_v46 = vadd.f32 %v15584_v38, %v15457_v56 }
0x25af   :  { %v15586_v37 = vpop.f32.mrf.mxu0  ;;  %p19335_p3 = por %p19334_p2, %p19333_p1 }
0x25b0   :  { %v15587_v44 = vadd.f32 %v15586_v37, %v15461_v9  ;;  %15738 = vmatprep.mubr.f32.mxu1 %v15610_v20  ;;  %v15611_v41 = vmax.f32 %v15585_v46, 0.0 }
0x25b1   :  { %v15590_v50 = vpop.f32.mrf.mxu0  ;;  %15739 = vmatmul.mubr.f32.gmra.mxu1 %v15609_v63  ;;  %p19336_p4 = pnand %p19335_p3, %p19329_p0 }
0x25b2   :  { %v15612_v34 = vmax.f32 %v15587_v44, 0.0  ;;  %v15591_v43 = vadd.f32 %v15590_v50, %v15457_v56 }
0x25b3   :  { %v15592_v24 = vpop.f32.mrf.mxu0 }
0x25b4   :  { %v15593_v58 = vadd.f32 %v15592_v24, %v15461_v9  ;;  %15742 = vmatprep.mubr.f32.mxu1 %v15612_v34  ;;  %v15613_v39 = vmax.f32 %v15591_v43, 0.0 }
0x25b5   :  { %v15596_v6 = vpop.f32.mrf.mxu0  ;;  %15743 = vmatmul.mubr.f32.gmra.mxu1 %v15611_v41 }
0x25b6   :  { %v15614_v22 = vmax.f32 %v15593_v58, 0.0  ;;  %v15597_v31 = vadd.f32 %v15596_v6, %v15457_v56 }
0x25b7   :  { %v15598_v62 = vpop.f32.mrf.mxu0 }
0x25b8   :  { %v15599_v55 = vadd.f32 %v15598_v62, %v15461_v9  ;;  %15746 = vmatprep.mubr.f32.mxu1 %v15614_v22  ;;  %v15615_v5 = vmax.f32 %v15597_v31, 0.0 }
0x25b9   :  { %15747 = vmatmul.mubr.f32.gmra.mxu1 %v15613_v39 }
0x25ba   :  { %v15616_v40 = vmax.f32 %v15599_v55, 0.0 }
0x25bc   :  { %15750 = vmatprep.mubr.f32.mxu1 %v15616_v40 }
0x25bd   :  { %15751 = vmatmul.mubr.f32.gmra.mxu1 %v15615_v5 }
0x2660   :  { %v17487_v42 = vpop.f32.mrf.mxu1 }
0x2662   :  { %v17488_v48 = vpop.f32.mrf.mxu1 }
0x2664   :  { %v17490_v10 = vpop.f32.mrf.mxu1 }
0x2666   :  { %v17491_v27 = vpop.f32.mrf.mxu1 }
0x2669   :  { %v17493_v49 = vpop.f32.mrf.mxu1 }
0x266b   :  { %v17494_v19 = vpop.f32.mrf.mxu1 }
0x266d   :  { %v17496_v3 = vpop.f32.mrf.mxu1 }
0x266f   :  { %v17497_v36 = vpop.f32.mrf.mxu1 }
0x2671   :  { %v17499_v54 = vpop.f32.mrf.mxu1 }
0x2673   :  { %v17500_v7 = vpop.f32.mrf.mxu1 }
0x2675   :  { %v17502_v15 = vpop.f32.mrf.mxu1 }
0x2677   :  { %v17503_v59 = vpop.f32.mrf.mxu1 }
0x2679   :  { %v17505_v56 = vpop.f32.mrf.mxu1 }
0x267b   :  { %v17506_v9 = vpop.f32.mrf.mxu1 }
0x267d   :  { %v17508_v0 = vpop.f32.mrf.mxu1 }
0x267f   :  { %v17509_v47 = vpop.f32.mrf.mxu1 }
0x2680   :  { %v17510_v52 = vadd.f32 %v17509_v47, %v17508_v0 }
0x2682   :  { %v15753_v1 = vadd.f32 %v17510_v52, %v16660_v28 }
0x2684   :  { %v15756_v29 = vadd.f32 %v15753_v1, %v22467_v18  ;;  %v15794_v18 = vld [vmem:[%s22574_s19 + $0x30] sm:$0xff] }
0x2685   :  { %18983 = vmatpush3.msra.mxu0 %v15794_v18 }
0x2686   :  { %v15761_v57 = vsel %vm285_vm9, %v15756_v29, 0.0  ;;  %18984 = vmatprep.subr.mxu0 %v19351_v23 }
0x2687   :  { %15762 = vadd.xlane.f32.xlu1 %v15761_v57  ;;  %18985 = vmatpush3.msra.mxu0 %v15793_v17 }
0x2688   :  { %18986 = vmatprep.subr.mxu0 %v19351_v23 }
0x2689   :  { %18987 = vmatpush3.msra.mxu0 %v15792_v11 }
0x268a   :  { %18988 = vmatprep.subr.mxu0 %v19351_v23 }
0x268b   :  { %18989 = vmatpush3.msra.mxu0 %v15791_v33 }
0x268c   :  { %18990 = vmatprep.subr.mxu0 %v19351_v23 }
0x268d   :  { %18991 = vmatpush3.msra.mxu0 %v15790_v14 }
0x268e   :  { %18992 = vmatprep.subr.mxu0 %v19351_v23 }
0x268f   :  { %18993 = vmatpush3.msra.mxu0 %v15789_v60 }
0x2690   :  { %18994 = vmatprep.subr.mxu0 %v19351_v23  ;;  %v16665_v23 = vld [vmem:[%s22575_s20] ss:$0 sm:$0xff] }
0x2691   :  { %18995 = vmatpush3.msra.mxu0 %v15788_v2 }
0x2710   :  { %v15763_v35 = vpop.xlane.xlu1 %15762 }
0x2711   :  { %v15764_v26 = vmul.f32 0.015625, %v15763_v35 }
0x2713   :  { %v15765_v53 = vsub.f32 %v15756_v29, %v15764_v26 }
0x2715   :  { %v15766_v30 = vmul.f32 %v15765_v53, %v15765_v53 }
0x2717   :  { %v15767_v61 = vsel %vm285_vm9, %v15766_v30, 0.0 }
0x2718   :  { %15768 = vadd.xlane.f32.xlu0 %v15767_v61 }
0x27a1   :  { %v15769_v8 = vpop.xlane.xlu0 %15768 }
0x27a2   :  { %v15770_v51 = vmul.f32 0.015625, %v15769_v8 }
0x27a4   :  { %v15771_v13 = vadd.f32 1e-05, %v15770_v51 }
0x27a6   :  { %19325 = vrsqrt.f32 %v15771_v13 }
0x27b3   :  { %v19326_v4 = vpop.eup %19325 }
0x27b4   :  { %v15773_v45 = vmul.f32 %v19326_v4, %v15765_v53 }
0x27b6   :  { %v15780_v16 = vmul.f32 %v16663_v21, %v15773_v45 }
0x27b8   :  { %v15787_v32 = vadd.f32 %v16664_v12, %v15780_v16 }
0x27ba   :  { %18997 = vmatmul.mubr.msk.f32.vlgmr.msra.gmra.mxu0 %vm285_vm9, %v15787_v32 }
0x287a   :  { %v15872_v38 = vpop.f32.mrf.mxu0 }
0x287b   :  { %v15873_v20 = vadd.f32 %v16665_v23, %v15872_v38 }
0x287c   :  { %v18998_v63 = vpop.f32.mrf.mxu0 }
0x287d   :  { %15876 = vst.msk [vmem:[#allocation2] sm:$0xff] %vm139_vm0, %v15873_v20 }
0x287e   :  { %19339 = shalt.err (!%p19336_p4)
}
0x287f   :  { %15886 = dma.vmem_to_hbm [thread:$0]  %s15884_s23, 128, %s22576_s21, [#allocation3]  }
0x2880   :  { %19348 = dma.done.wait [#allocation3], 128  }
0x2881   :  { %19349 = vsyncadd [#allocation3], 4294967168 }
0x2882   :  { %15890 = vsyncpa [#allocation3], 1 }

</bundles_post_ra>
